<compile_context>
chip_gen: v7x
topology: tpu7x:2x2x1
jax: 0.10.0
libtpu: 0.0.40
codegen_flags: <defaults>
</compile_context>

<pallas_src>
import functools

import numpy as np
import jax
import jax.numpy as jnp
from jax import lax
from jax.experimental import pallas as pl
from jax.experimental.pallas import tpu as pltpu

_EPS = 1e-5


def _silu(v):
    return v * jax.nn.sigmoid(v)


def _round_up(v, m):
    return (v + m - 1) // m * m


def _bn_scale_bias(bn, eps=_EPS):
    gamma, beta, mean, var = bn
    s = gamma / jnp.sqrt(var + eps)
    return s, beta - mean * s


def _pad_mat(w, rows, cols):
    return jnp.pad(w, ((0, rows - w.shape[0]), (0, cols - w.shape[1])))


def _pad_row(v, cols):
    v = v.reshape(1, -1)
    return jnp.pad(v, ((0, 0), (0, cols - v.shape[1])))


def _vmem_limit_bytes():
    try:
        info = pltpu.get_tpu_info()
        cap = int(getattr(info, "vmem_capacity_bytes", 64 * 1024 * 1024))
    except Exception:
        cap = 64 * 1024 * 1024
    # leave headroom for the runtime; never request more than 100 MiB
    return min((cap * 3) // 4, 100 * 1024 * 1024)


def _const_spec(shape):
    """BlockSpec for a grid-invariant (weight/bias) input; single-buffered if
    the installed JAX supports pipeline_mode=pl.Buffered(1)."""
    index_map = lambda b, t: (0,) * len(shape)
    try:
        return pl.BlockSpec(shape, index_map, pipeline_mode=pl.Buffered(1))
    except Exception:                       # older JAX: fall back to default
        return pl.BlockSpec(shape, index_map)


def _pick_tile_h(N, H, W, n_bn, Cp1, Cp_, Cp2, vmem_budget):
    """Largest row tile (divisor of H) whose full working set fits VMEM."""
    HALO = n_bn
    Wp = _round_up(W + 2, 8)
    # resident weights / biases (budgeted at 2 buffers in case the runtime
    # ignores the single-buffer request)
    weight_bytes = 2 * 2 * (Cp1 * Cp_                 # cv1
                            + Cp1 * Cp_               # cv2 (1x1)
                            + n_bn * Cp_ * Cp_        # bottleneck cv1
                            + n_bn * 9 * Cp_ * Cp_    # bottleneck cv2 (3x3)
                            + Cp_ * Cp_               # cv3
                            + 2 * Cp_ * Cp2)          # cv4 (fused)
    budget = vmem_budget - weight_bytes - (2 << 20)   # 2 MiB headroom

    def tile_bytes(th):
        hext = th + 2 * HALO
        per_ext = W * (2 * Cp1            # x window (bf16, manual single buf)
                       + 3 * 4 * Cp_      # h carry + 1x1 out + 3x3 acc (f32)
                       + 2 * Cp_)         # tap-slice temp (bf16)
        pad = (hext + 2) * Wp * 2 * Cp_   # 3x3 padded-input scratch (bf16)
        per_core = W * (2 * 2 * Cp2       # y tile (bf16, double-buffered out)
                        + 4 * Cp2         # y f32 temp
                        + 2 * 4 * Cp_     # z1, z2 (f32)
                        + 2 * 2 * Cp_)    # cat(z1, z2) (bf16)
        return hext * per_ext + pad + th * per_core

    divisors = [d for d in range(1, H + 1) if H % d == 0]
    valid = [d for d in divisors if d >= HALO or d == H]
    feasible = [d for d in valid if tile_bytes(d) <= budget and d * W <= 32768]
    if N == 1:                            # v7x: keep both TensorCores busy
        multi = [d for d in feasible if H // d >= 2]
        if multi:
            feasible = multi
    if feasible:
        return max(feasible)
    return min(valid)                     # nothing fits the model: smallest legal tile


def _cspgc_kernel(x_hbm, w1_ref, b1_ref, w2_ref, bnb_ref, wb1_ref, bb1_ref,
                  wb2_ref, bb2_ref, w3_ref, bna_ref, w4_ref, b4_ref, wm_ref,
                  y_ref, stats_ref, x_vmem, pad_ref, x_sem,
                  *, n_bn, shortcut, W, TILE_H, HALO):
    Hext = TILE_H + 2 * HALO
    Wp = pad_ref.shape[1]
    b = pl.program_id(0)
    t = pl.program_id(1)
    n_t = pl.num_programs(1)
    Cp1 = x_vmem.shape[-1]
    Cp_ = w1_ref.shape[-1]
    Cp2 = w4_ref.shape[-1]

    # ---- DMA this tile's halo-extended input window straight from HBM ----
    row0 = t * TILE_H
    if TILE_H % 8 == 0:
        row0 = pl.multiple_of(row0, 8)
    cp = pltpu.make_async_copy(x_hbm.at[b, pl.ds(row0, Hext)], x_vmem, x_sem)
    cp.start()

    # Zero only the 1-element border ring of the 3x3 padding scratch; the
    # interior is fully overwritten every bottleneck iteration.  Columns
    # [W+2, Wp) are never read.  (Ring == 3x3 SAME padding.)
    pad_ref[0:1] = jnp.zeros((1, Wp, Cp_), pad_ref.dtype)
    pad_ref[Hext + 1:Hext + 2] = jnp.zeros((1, Wp, Cp_), pad_ref.dtype)
    pad_ref[:, 0:1, :] = jnp.zeros((Hext + 2, 1, Cp_), pad_ref.dtype)
    pad_ref[:, W + 1:W + 2, :] = jnp.zeros((Hext + 2, 1, Cp_), pad_ref.dtype)

    cp.wait()
    # extended (halo-carrying) input tile: pixels on sublanes, channels on lanes
    x_ext = x_vmem[...].reshape(Hext * W, Cp1)                 # bf16

    # ---- cv1 = Conv(c1, c_, 1): 1x1 conv (BN scale pre-folded) + bias + SiLU
    h = jnp.dot(x_ext, w1_ref[...], preferred_element_type=jnp.float32)
    h = _silu(h + b1_ref[...])                                 # (Hext*W, cp_) f32

    # ---- m = n x Bottleneck(c_, c_, shortcut, e=1.0) ----
    def bottleneck(k, h):
        # bottleneck cv1 (1x1) + BN + SiLU, stored as bf16 into the pad scratch
        tin = jnp.dot(h.astype(jnp.bfloat16), wb1_ref[k],
                      preferred_element_type=jnp.float32)
        tin = _silu(tin + bb1_ref[k])                          # (Hext*W, cp_)
        pad_ref[1:1 + Hext, 1:1 + W, :] = (
            tin.reshape(Hext, W, Cp_).astype(pad_ref.dtype))

        # The 3x3 conv zero-pads its *input* at the true image boundary.  Rows
        # of the extended tile that fall outside the image only exist in the
        # first / last row tile -> re-zero them there every iteration.
        @pl.when(t == 0)
        def _zero_top():
            pad_ref[1:1 + HALO, 1:1 + W, :] = jnp.zeros(
                (HALO, W, Cp_), pad_ref.dtype)

        @pl.when(t == n_t - 1)
        def _zero_bot():
            pad_ref[1 + Hext - HALO:1 + Hext, 1:1 + W, :] = jnp.zeros(
                (HALO, W, Cp_), pad_ref.dtype)

        # 3x3 conv as 9 accumulated tap matmuls (no im2col patch, no concat)
        u = None
        for tap in range(9):
            ky, kx = divmod(tap, 3)
            patch = (pad_ref[ky:ky + Hext, kx:kx + W, :]
                     .reshape(Hext * W, Cp_))                  # bf16 view
            w_tap = wb2_ref[k, tap * Cp_:(tap + 1) * Cp_, :]
            d = jnp.dot(patch, w_tap, preferred_element_type=jnp.float32)
            u = d if u is None else u + d
        u = _silu(u + bb2_ref[k])                              # (Hext*W, cp_)
        return h + u if shortcut else u

    if n_bn == 1:
        h = bottleneck(0, h)
    else:
        h = lax.fori_loop(0, n_bn, bottleneck, h)

    # ---- core rows only from here on (the halo has served its purpose) ----
    h_core = (h.reshape(Hext, W, Cp_)[HALO:HALO + TILE_H]
              .reshape(TILE_H * W, Cp_).astype(jnp.bfloat16))
    x_core = x_vmem[HALO:HALO + TILE_H].reshape(TILE_H * W, Cp1)

    # y1 = cv3(...), y2 = cv2(x), z = SiLU(bn(cat(y1, y2)))   (bn scales folded)
    z1 = _silu(jnp.dot(h_core, w3_ref[...],
                       preferred_element_type=jnp.float32) + bna_ref[...])
    z2 = _silu(jnp.dot(x_core, w2_ref[...],
                       preferred_element_type=jnp.float32) + bnb_ref[...])
    # cv4 on cat(z1, z2) as ONE lane-dense K=2*Cp_ matmul (cv4 BN pre-folded)
    z = jnp.concatenate([z1.astype(jnp.bfloat16), z2.astype(jnp.bfloat16)],
                        axis=-1)                               # (TILE_H*W, 2cp_)
    y = jnp.dot(z, w4_ref[...], preferred_element_type=jnp.float32)
    y = _silu(y + b4_ref[...])                                 # (TILE_H*W, cp2)
    y_ref[0] = y.reshape(TILE_H, W, Cp2).astype(y_ref.dtype)   # bf16 writeback

    # ---- per-tile partials of the global-context softmax pooling ----
    # (conv_mask bias is constant over pixels and cancels in the softmax)
    logits = jnp.sum(y * wm_ref[...], axis=-1, keepdims=True)  # (TILE_H*W, 1)
    m_t = jnp.max(logits)
    e = jnp.exp(logits - m_t)
    s_t = jnp.sum(e)
    v_t = jnp.sum(y * e, axis=0, keepdims=True)                # (1, cp2)
    ones = jnp.ones((1, Cp2), jnp.float32)
    stats_ref[0, 0] = jnp.concatenate(
        [v_t, m_t * ones, s_t * ones, jnp.zeros((5, Cp2), jnp.float32)], axis=0)


def bottleneck_cspgc_pallas(x_nchw, params, *, shortcut=True, tile_h=None):
    """Forward pass of BottleneckCSPGC (eval-mode BN).  x_nchw: (N, C1, H, W)."""
    N, C1, H, W = x_nchw.shape
    blocks = params["m"]
    n_bn = len(blocks)
    assert n_bn >= 1
    c_ = params["cv1_w"].shape[1]
    c2 = params["cv4_w"].shape[1]

    Cp1 = _round_up(C1, 128)
    Cp_ = _round_up(c_, 128)
    Cp2 = _round_up(c2, 128)
    HALO = n_bn                      # one halo row per 3x3 conv in the chain
    Wp = _round_up(W + 2, 8)

    vmem_limit = _vmem_limit_bytes()
    if (tile_h is not None and H % int(tile_h) == 0
            and (int(tile_h) >= HALO or int(tile_h) == H)):
        TILE_H = int(tile_h)
    else:
        TILE_H = _pick_tile_h(N, H, W, n_bn, Cp1, Cp_, Cp2, vmem_limit)
    n_t = H // TILE_H
    Hext = TILE_H + 2 * HALO

    # ---- input: NCHW -> NHWC, bf16, lane-padded C, HALO zero rows top/bottom.
    # It stays in HBM; the kernel DMAs the overlapping Hext-row windows itself.
    x = jnp.transpose(x_nchw, (0, 2, 3, 1)).astype(jnp.bfloat16)
    x = jnp.pad(x, ((0, 0), (HALO, HALO), (0, 0), (0, Cp1 - C1)))
    # (N, H + 2*HALO, W, Cp1)

    # ---- fold BatchNorms into weights / biases, pad channels to 128 ----
    s, b = _bn_scale_bias(params["cv1_bn"])
    w1 = _pad_mat(params["cv1_w"] * s[None, :], Cp1, Cp_).astype(jnp.bfloat16)
    b1 = _pad_row(b, Cp_).astype(jnp.float32)

    wb1_l, bb1_l, wb2_l, bb2_l = [], [], [], []
    for blk in blocks:
        s, b = _bn_scale_bias(blk["cv1_bn"])
        wb1_l.append(_pad_mat(blk["cv1_w"] * s[None, :], Cp_, Cp_))
        bb1_l.append(_pad_row(b, Cp_))
        s, b = _bn_scale_bias(blk["cv2_bn"])
        w33 = blk["cv2_w"] * s[None, None, None, :]            # (3,3,c_,c_)
        w33 = jnp.pad(w33, ((0, 0), (0, 0), (0, Cp_ - c_), (0, Cp_ - c_)))
        wb2_l.append(w33.reshape(9 * Cp_, Cp_))
        bb2_l.append(_pad_row(b, Cp_))
    wb1 = jnp.stack(wb1_l).astype(jnp.bfloat16)                # (n, Cp_, Cp_)
    bb1 = jnp.stack(bb1_l).astype(jnp.float32)                 # (n, 1, Cp_)
    wb2 = jnp.stack(wb2_l).astype(jnp.bfloat16)                # (n, 9Cp_, Cp_)
    bb2 = jnp.stack(bb2_l).astype(jnp.float32)                 # (n, 1, Cp_)

    # standalone bn over cat(y1, y2): split halves, fold scales into cv3 / cv2
    s_bn, b_bn = _bn_scale_bias(params["bn"])
    w3 = _pad_mat(params["cv3_w"] * s_bn[None, :c_], Cp_, Cp_).astype(jnp.bfloat16)
    bna = _pad_row(b_bn[:c_], Cp_).astype(jnp.float32)
    w2 = _pad_mat(params["cv2_w"] * s_bn[None, c_:], Cp1, Cp_).astype(jnp.bfloat16)
    bnb = _pad_row(b_bn[c_:], Cp_).astype(jnp.float32)

    s, b = _bn_scale_bias(params["cv4_bn"])
    w4_full = params["cv4_w"] * s[None, :]                     # (2c_, c2)
    w4 = jnp.concatenate(
        [_pad_mat(w4_full[:c_], Cp_, Cp2),
         _pad_mat(w4_full[c_:], Cp_, Cp2)], axis=0).astype(jnp.bfloat16)
    b4 = _pad_row(b, Cp2).astype(jnp.float32)

    wm = _pad_row(params["mask_w"], Cp2).astype(jnp.float32)

    kernel = functools.partial(
        _cspgc_kernel, n_bn=n_bn, shortcut=bool(shortcut),
        W=W, TILE_H=TILE_H, HALO=HALO)

    y_pad, stats = pl.pallas_call(
        kernel,
        out_shape=(jax.ShapeDtypeStruct((N, H, W, Cp2), jnp.bfloat16),
                   jax.ShapeDtypeStruct((N, n_t, 8, Cp2), jnp.float32)),
        grid_spec=pltpu.PrefetchScalarGridSpec(
            num_scalar_prefetch=0,
            grid=(N, n_t),
            in_specs=[
                pl.BlockSpec(memory_space=pl.ANY),        # x (stays in HBM)
                _const_spec((Cp1, Cp_)),                  # w1
                _const_spec((1, Cp_)),                    # b1
                _const_spec((Cp1, Cp_)),                  # w2 (cv2)
                _const_spec((1, Cp_)),                    # bn bias (cv2 half)
                _const_spec((n_bn, Cp_, Cp_)),            # wb1
                _const_spec((n_bn, 1, Cp_)),              # bb1
                _const_spec((n_bn, 9 * Cp_, Cp_)),        # wb2
                _const_spec((n_bn, 1, Cp_)),              # bb2
                _const_spec((Cp_, Cp_)),                  # w3 (cv3)
                _const_spec((1, Cp_)),                    # bn bias (cv3 half)
                _const_spec((2 * Cp_, Cp2)),              # w4 (fused cv4)
                _const_spec((1, Cp2)),                    # b4
                _const_spec((1, Cp2)),                    # conv_mask weight
            ],
            out_specs=[
                pl.BlockSpec((1, TILE_H, W, Cp2), lambda b, t: (b, t, 0, 0)),
                pl.BlockSpec((1, 1, 8, Cp2), lambda b, t: (b, t, 0, 0)),
            ],
            scratch_shapes=[
                pltpu.VMEM((Hext, W, Cp1), jnp.bfloat16),       # input window
                pltpu.VMEM((Hext + 2, Wp, Cp_), jnp.bfloat16),  # 3x3 pad scratch
                pltpu.SemaphoreType.DMA,                        # input DMA sem
            ],
        ),
        compiler_params=pltpu.CompilerParams(
            dimension_semantics=("parallel", "parallel"),
            vmem_limit_bytes=vmem_limit),
    )(x, w1, b1, w2, bnb, wb1, bb1, wb2, bb2, w3, bna, w4, b4, wm)

    # ---- global-context block (tiny, per-batch) in plain JAX ----
    v_t = stats[:, :, 0, :c2]                      # (N, n_t, c2)
    m_t = stats[:, :, 1, 0]                        # (N, n_t)
    s_t = stats[:, :, 2, 0]                        # (N, n_t)
    m_g = jnp.max(m_t, axis=1, keepdims=True)
    wgt = jnp.exp(m_t - m_g)
    denom = jnp.sum(s_t * wgt, axis=1, keepdims=True)           # (N, 1)
    context = jnp.sum(v_t * wgt[:, :, None], axis=1) / denom    # (N, c2)

    t1 = context @ params["ca_w1"] + params["ca_b1"]
    mu = jnp.mean(t1, axis=-1, keepdims=True)
    var = jnp.mean((t1 - mu) ** 2, axis=-1, keepdims=True)
    t1 = (t1 - mu) * lax.rsqrt(var + _EPS) * params["ln_w"] + params["ln_b"]
    t1 = jnp.maximum(t1, 0.0)
    delta = t1 @ params["ca_w2"] + params["ca_b2"]               # (N, c2)

    out = y_pad[..., :c2].astype(jnp.float32) + delta[:, None, None, :]
    return jnp.transpose(out, (0, 3, 1, 2)).astype(x_nchw.dtype)


def bottleneck_cspgc_ref(x_nchw, params, *, shortcut=True):
    """Pure-JAX reference.  Eval-mode BN folded into the conv weights (exact in
    real arithmetic); conv operands cast to bf16 with f32 accumulation to mirror
    the kernel's deliberate MXU precision choice."""
    c_ = params["cv1_w"].shape[1]
    c2 = params["cv4_w"].shape[1]
    x = jnp.transpose(x_nchw, (0, 2, 3, 1)).astype(jnp.float32)

    def mm(a, w):   # 1x1 conv as channel matmul
        return jnp.einsum("nhwc,cd->nhwd", a.astype(jnp.bfloat16),
                          w.astype(jnp.bfloat16),
                          preferred_element_type=jnp.float32)

    def silu(v):
        return v * jax.nn.sigmoid(v)

    # cv1 = Conv(c1, c_, 1, 1)
    s, b = _bn_scale_bias(params["cv1_bn"])
    h = silu(mm(x, params["cv1_w"] * s[None, :]) + b)

    # m = n x Bottleneck(c_, c_, shortcut, e=1.0)
    for blk in params["m"]:
        s, b = _bn_scale_bias(blk["cv1_bn"])
        t = silu(mm(h, blk["cv1_w"] * s[None, :]) + b)
        s, b = _bn_scale_bias(blk["cv2_bn"])
        w33 = (blk["cv2_w"] * s[None, None, None, :]).astype(jnp.bfloat16)
        u = lax.conv_general_dilated(
            t.astype(jnp.bfloat16), w33, (1, 1), "SAME",
            dimension_numbers=("NHWC", "HWIO", "NHWC"),
            preferred_element_type=jnp.float32)
        u = silu(u + b)
        h = h + u if shortcut else u

    # y1 = cv3(...), y2 = cv2(x), y = cv4(SiLU(bn(cat(y1, y2))))
    s, b = _bn_scale_bias(params["bn"])
    z1 = silu(mm(h, params["cv3_w"] * s[None, :c_]) + b[:c_])
    z2 = silu(mm(x, params["cv2_w"] * s[None, c_:]) + b[c_:])
    s, b = _bn_scale_bias(params["cv4_bn"])
    w4 = params["cv4_w"] * s[None, :]
    y = silu(mm(z1, w4[:c_]) + mm(z2, w4[c_:]) + b)

    # spatial_pool (global context) + channel_add_conv
    N, H, W, _ = y.shape
    logits = jnp.einsum("nhwc,c->nhw", y, params["mask_w"]) + params["mask_b"]
    attn = jax.nn.softmax(logits.reshape(N, H * W), axis=-1)
    context = jnp.einsum("npc,np->nc", y.reshape(N, H * W, c2), attn)

    t1 = context @ params["ca_w1"] + params["ca_b1"]
    mu = jnp.mean(t1, axis=-1, keepdims=True)
    var = jnp.mean((t1 - mu) ** 2, axis=-1, keepdims=True)
    t1 = (t1 - mu) * lax.rsqrt(var + _EPS) * params["ln_w"] + params["ln_b"]
    t1 = jnp.maximum(t1, 0.0)
    delta = t1 @ params["ca_w2"] + params["ca_b2"]

    out = y + delta[:, None, None, :]
    return jnp.transpose(out, (0, 3, 1, 2))


if __name__ == "__main__":
    # BottleneckCSPGC(c1=8, c2=8, n=1, shortcut=True, g=1, e=0.5) -> c_ = 4
    N, C1, C2, H, W = 2, 8, 8, 16, 16
    c_ = int(C2 * 0.5)

    key = jax.random.PRNGKey(0)
    ks = iter(jax.random.split(key, 64))

    def nrm(shape, scale=1.0):
        return scale * jax.random.normal(next(ks), shape, jnp.float32)

    def bn_params(c):
        return (1.0 + 0.1 * nrm((c,)), 0.1 * nrm((c,)),
                0.1 * nrm((c,)), 0.5 + jnp.abs(nrm((c,))))

    def bottleneck_params():
        return {"cv1_w": nrm((c_, c_), 0.4), "cv1_bn": bn_params(c_),
                "cv2_w": nrm((3, 3, c_, c_), 0.2), "cv2_bn": bn_params(c_)}

    params = {
        "cv1_w": nrm((C1, c_), 0.4), "cv1_bn": bn_params(c_),
        "cv2_w": nrm((C1, c_), 0.4),
        "cv3_w": nrm((c_, c_), 0.4),
        "bn": bn_params(2 * c_),
        "cv4_w": nrm((2 * c_, C2), 0.4), "cv4_bn": bn_params(C2),
        "m": [bottleneck_params()],                 # n = 1
        "mask_w": nrm((C2,), 0.5), "mask_b": nrm((), 0.1),
        "ca_w1": nrm((C2, C2), 0.4), "ca_b1": nrm((C2,), 0.1),
        "ln_w": 1.0 + 0.1 * nrm((C2,)), "ln_b": 0.1 * nrm((C2,)),
        "ca_w2": nrm((C2, C2), 0.4), "ca_b2": nrm((C2,), 0.1),
    }
    params2 = dict(params)
    params2["m"] = params["m"] + [bottleneck_params()]   # n = 2 variant

    x = jax.random.normal(next(ks), (N, C1, H, W), jnp.float32)

    fn = jax.jit(bottleneck_cspgc_pallas, static_argnames=("shortcut", "tile_h"))

    ref1 = bottleneck_cspgc_ref(x, params, shortcut=True)
    ref2 = bottleneck_cspgc_ref(x, params2, shortcut=True)

    out_a = jax.block_until_ready(fn(x, params))               # auto tile
    out_b = jax.block_until_ready(fn(x, params, tile_h=4))     # 4 row-tiles
    out_c = jax.block_until_ready(fn(x, params2, tile_h=4))    # n=2, 2-row halo

    for got, want in ((out_a, ref1), (out_b, ref1), (out_c, ref2)):
        np.testing.assert_allclose(np.asarray(got), np.asarray(want),
                                   rtol=1e-2, atol=2e-2)
    print("KERNEL_OK")
</pallas_src>

<mosaic_0001>
module attributes {stable_mosaic.version = 11 : i64} {
  func.func @_cspgc_kernel(%arg0: i32, %arg1: i32, %arg2: memref<2x18x16x128xbf16, #tpu.memory_space<any>>, %arg3: memref<128x128xbf16, #tpu.memory_space<vmem>>, %arg4: memref<1x128xf32, #tpu.memory_space<vmem>>, %arg5: memref<128x128xbf16, #tpu.memory_space<vmem>>, %arg6: memref<1x128xf32, #tpu.memory_space<vmem>>, %arg7: memref<1x128x128xbf16, #tpu.memory_space<vmem>>, %arg8: memref<1x1x128xf32, #tpu.memory_space<vmem>>, %arg9: memref<1x1152x128xbf16, #tpu.memory_space<vmem>>, %arg10: memref<1x1x128xf32, #tpu.memory_space<vmem>>, %arg11: memref<128x128xbf16, #tpu.memory_space<vmem>>, %arg12: memref<1x128xf32, #tpu.memory_space<vmem>>, %arg13: memref<256x128xbf16, #tpu.memory_space<vmem>>, %arg14: memref<1x128xf32, #tpu.memory_space<vmem>>, %arg15: memref<1x128xf32, #tpu.memory_space<vmem>>, %arg16: memref<1x16x16x128xbf16, #tpu.memory_space<vmem>>, %arg17: memref<1x1x8x128xf32, #tpu.memory_space<vmem>>, %arg18: memref<18x16x128xbf16, #tpu.memory_space<vmem>>, %arg19: memref<20x24x128xbf16, #tpu.memory_space<vmem>>, %arg20: memref<!tpu.dma_semaphore, #tpu.memory_space<semaphore_mem>>) attributes {dimension_semantics = [#tpu.dimension_semantics<parallel>, #tpu.dimension_semantics<parallel>], iteration_bounds = array<i64: 2, 1>, scalar_prefetch = 0 : i64, scratch_operands = 3 : i64, tpu.core_type = #tpu.core_type<tc>, window_params = [{}, {pipeline_mode = #tpu.pipeline_mode<synchronous>, transform_indices = @transform_1, window_bounds = array<i64: 128, 128>}, {pipeline_mode = #tpu.pipeline_mode<synchronous>, transform_indices = @transform_2, window_bounds = array<i64: 1, 128>}, {pipeline_mode = #tpu.pipeline_mode<synchronous>, transform_indices = @transform_3, window_bounds = array<i64: 128, 128>}, {pipeline_mode = #tpu.pipeline_mode<synchronous>, transform_indices = @transform_4, window_bounds = array<i64: 1, 128>}, {pipeline_mode = #tpu.pipeline_mode<synchronous>, transform_indices = @transform_5, window_bounds = array<i64: 1, 128, 128>}, {pipeline_mode = #tpu.pipeline_mode<synchronous>, transform_indices = @transform_6, window_bounds = array<i64: 1, 1, 128>}, {pipeline_mode = #tpu.pipeline_mode<synchronous>, transform_indices = @transform_7, window_bounds = array<i64: 1, 1152, 128>}, {pipeline_mode = #tpu.pipeline_mode<synchronous>, transform_indices = @transform_8, window_bounds = array<i64: 1, 1, 128>}, {pipeline_mode = #tpu.pipeline_mode<synchronous>, transform_indices = @transform_9, window_bounds = array<i64: 128, 128>}, {pipeline_mode = #tpu.pipeline_mode<synchronous>, transform_indices = @transform_10, window_bounds = array<i64: 1, 128>}, {pipeline_mode = #tpu.pipeline_mode<synchronous>, transform_indices = @transform_11, window_bounds = array<i64: 256, 128>}, {pipeline_mode = #tpu.pipeline_mode<synchronous>, transform_indices = @transform_12, window_bounds = array<i64: 1, 128>}, {pipeline_mode = #tpu.pipeline_mode<synchronous>, transform_indices = @transform_13, window_bounds = array<i64: 1, 128>}, {transform_indices = @transform_14, window_bounds = array<i64: 1, 16, 16, 128>}, {transform_indices = @transform_15, window_bounds = array<i64: 1, 1, 8, 128>}]} {
    %c16_i32 = arith.constant 16 : i32
    %0 = arith.muli %arg1, %c16_i32 : i32
    %1 = tpu.assume_multiple %0, 8 : i32
    %c0_i32 = arith.constant 0 : i32
    %c0_i32_0 = arith.constant 0 : i32
    %2 = tpu.memref_slice %arg2[%arg0, %1, %c0_i32, %c0_i32_0] : memref<2x18x16x128xbf16, #tpu.memory_space<any>> -> memref<1x18x16x128xbf16, #tpu.memory_space<any>>
    %3 = tpu.memref_squeeze %2 : memref<1x18x16x128xbf16, #tpu.memory_space<any>> -> memref<18x16x128xbf16, #tpu.memory_space<any>>
    tpu.enqueue_dma source(%3 : memref<18x16x128xbf16, #tpu.memory_space<any>>) target(%arg18 : memref<18x16x128xbf16, #tpu.memory_space<vmem>>) target_semaphore(%arg20 : memref<!tpu.dma_semaphore, #tpu.memory_space<semaphore_mem>>)
    %cst = arith.constant 0.000000e+00 : bf16
    %4 = vector.broadcast %cst : bf16 to vector<1x24x128xbf16>
    %c0 = arith.constant 0 : index
    %c0_1 = arith.constant 0 : index
    %c0_2 = arith.constant 0 : index
    %5 = vector.load %arg19[%c0, %c0_1, %c0_2] : memref<20x24x128xbf16, #tpu.memory_space<vmem>>, vector<1x24x128xbf16>
    tpu.vector_store %arg19[%c0, %c0_1, %c0_2], %4 {strides = array<i32>} : memref<20x24x128xbf16, #tpu.memory_space<vmem>>, vector<1x24x128xbf16>,
    %cst_3 = arith.constant 0.000000e+00 : bf16
    %6 = vector.broadcast %cst_3 : bf16 to vector<1x24x128xbf16>
    %c19 = arith.constant 19 : index
    %c0_4 = arith.constant 0 : index
    %c0_5 = arith.constant 0 : index
    %7 = vector.load %arg19[%c19, %c0_4, %c0_5] : memref<20x24x128xbf16, #tpu.memory_space<vmem>>, vector<1x24x128xbf16>
    tpu.vector_store %arg19[%c19, %c0_4, %c0_5], %6 {strides = array<i32>} : memref<20x24x128xbf16, #tpu.memory_space<vmem>>, vector<1x24x128xbf16>,
    %cst_6 = arith.constant 0.000000e+00 : bf16
    %8 = vector.broadcast %cst_6 : bf16 to vector<20x1x128xbf16>
    %c0_7 = arith.constant 0 : index
    %c0_8 = arith.constant 0 : index
    %c0_9 = arith.constant 0 : index
    %9 = vector.load %arg19[%c0_7, %c0_8, %c0_9] : memref<20x24x128xbf16, #tpu.memory_space<vmem>>, vector<20x1x128xbf16>
    tpu.vector_store %arg19[%c0_7, %c0_8, %c0_9], %8 {strides = array<i32>} : memref<20x24x128xbf16, #tpu.memory_space<vmem>>, vector<20x1x128xbf16>,
    %cst_10 = arith.constant 0.000000e+00 : bf16
    %10 = vector.broadcast %cst_10 : bf16 to vector<20x1x128xbf16>
    %c0_11 = arith.constant 0 : index
    %c17 = arith.constant 17 : index
    %c0_12 = arith.constant 0 : index
    %11 = vector.load %arg19[%c0_11, %c17, %c0_12] : memref<20x24x128xbf16, #tpu.memory_space<vmem>>, vector<20x1x128xbf16>
    tpu.vector_store %arg19[%c0_11, %c17, %c0_12], %10 {strides = array<i32>} : memref<20x24x128xbf16, #tpu.memory_space<vmem>>, vector<20x1x128xbf16>,
    %c0_i32_13 = arith.constant 0 : i32
    %c0_i32_14 = arith.constant 0 : i32
    %12 = tpu.memref_slice %arg2[%arg0, %1, %c0_i32_13, %c0_i32_14] : memref<2x18x16x128xbf16, #tpu.memory_space<any>> -> memref<1x18x16x128xbf16, #tpu.memory_space<any>>
    %13 = tpu.memref_squeeze %12 : memref<1x18x16x128xbf16, #tpu.memory_space<any>> -> memref<18x16x128xbf16, #tpu.memory_space<any>>
    tpu.wait_dma2 semaphore(%arg20 : memref<!tpu.dma_semaphore, #tpu.memory_space<semaphore_mem>>) src(%13 : memref<18x16x128xbf16, #tpu.memory_space<any>>) dst(%arg18 : memref<18x16x128xbf16, #tpu.memory_space<vmem>>)
    %c0_15 = arith.constant 0 : index
    %c0_16 = arith.constant 0 : index
    %c0_17 = arith.constant 0 : index
    %14 = vector.load %arg18[%c0_15, %c0_16, %c0_17] : memref<18x16x128xbf16, #tpu.memory_space<vmem>>, vector<18x16x128xbf16>
    %15 = vector.shape_cast %14 : vector<18x16x128xbf16> to vector<288x128xbf16>
    %c0_18 = arith.constant 0 : index
    %c0_19 = arith.constant 0 : index
    %16 = vector.load %arg3[%c0_18, %c0_19] : memref<128x128xbf16, #tpu.memory_space<vmem>>, vector<128x128xbf16>
    %cst_20 = arith.constant dense<0.000000e+00> : vector<288x128xf32>
    %17 = tpu.matmul %15, %16, %cst_20 {dimension_numbers = #tpu.dot_dimension_numbers<[1], [0], [0], [1], [0, 0, 1, 1], [], []>} : vector<288x128xbf16>, vector<128x128xbf16>, vector<288x128xf32> -> vector<288x128xf32>
    %c0_21 = arith.constant 0 : index
    %c0_22 = arith.constant 0 : index
    %18 = vector.load %arg4[%c0_21, %c0_22] : memref<1x128xf32, #tpu.memory_space<vmem>>, vector<1x128xf32>
    %19 = vector.broadcast %18 : vector<1x128xf32> to vector<288x128xf32>
    %20 = arith.addf %17, %19 : vector<288x128xf32>
    %21 = arith.negf %20 : vector<288x128xf32>
    %22 = math.exp %21 : vector<288x128xf32>
    %cst_23 = arith.constant 1.000000e+00 : f32
    %23 = vector.broadcast %cst_23 : f32 to vector<288x128xf32>
    %24 = arith.addf %23, %22 : vector<288x128xf32>
    %25 = arith.divf %23, %24 : vector<288x128xf32>
    %26 = arith.mulf %20, %25 : vector<288x128xf32>
    %27 = arith.truncf %26 : vector<288x128xf32> to vector<288x128xbf16>
    %c0_24 = arith.constant 0 : index
    %c0_25 = arith.constant 0 : index
    %c0_26 = arith.constant 0 : index
    %28 = vector.load %arg7[%c0_24, %c0_25, %c0_26] : memref<1x128x128xbf16, #tpu.memory_space<vmem>>, vector<1x128x128xbf16>
    %29 = vector.shape_cast %28 : vector<1x128x128xbf16> to vector<128x128xbf16>
    %cst_27 = arith.constant dense<0.000000e+00> : vector<288x128xf32>
    %30 = tpu.matmul %27, %29, %cst_27 {dimension_numbers = #tpu.dot_dimension_numbers<[1], [0], [0], [1], [0, 0, 1, 1], [], []>} : vector<288x128xbf16>, vector<128x128xbf16>, vector<288x128xf32> -> vector<288x128xf32>
    %c0_28 = arith.constant 0 : index
    %c0_29 = arith.constant 0 : index
    %c0_30 = arith.constant 0 : index
    %31 = vector.load %arg8[%c0_28, %c0_29, %c0_30] : memref<1x1x128xf32, #tpu.memory_space<vmem>>, vector<1x1x128xf32>
    %32 = vector.shape_cast %31 : vector<1x1x128xf32> to vector<1x128xf32>
    %33 = vector.broadcast %32 : vector<1x128xf32> to vector<288x128xf32>
    %34 = arith.addf %30, %33 : vector<288x128xf32>
    %35 = arith.negf %34 : vector<288x128xf32>
    %36 = math.exp %35 : vector<288x128xf32>
    %cst_31 = arith.constant 1.000000e+00 : f32
    %37 = vector.broadcast %cst_31 : f32 to vector<288x128xf32>
    %38 = arith.addf %37, %36 : vector<288x128xf32>
    %39 = arith.divf %37, %38 : vector<288x128xf32>
    %40 = arith.mulf %34, %39 : vector<288x128xf32>
    %41 = vector.shape_cast %40 : vector<288x128xf32> to vector<18x16x128xf32>
    %42 = arith.truncf %41 : vector<18x16x128xf32> to vector<18x16x128xbf16>
    %c1 = arith.constant 1 : index
    %c1_32 = arith.constant 1 : index
    %c0_33 = arith.constant 0 : index
    %43 = vector.load %arg19[%c1, %c1_32, %c0_33] : memref<20x24x128xbf16, #tpu.memory_space<vmem>>, vector<18x16x128xbf16>
    tpu.vector_store %arg19[%c1, %c1_32, %c0_33], %42 {strides = array<i32>} : memref<20x24x128xbf16, #tpu.memory_space<vmem>>, vector<18x16x128xbf16>,
    %c0_i32_34 = arith.constant 0 : i32
    %44 = arith.cmpi eq, %arg1, %c0_i32_34 : i32
    %45 = arith.extui %44 : i1 to i32
    %c0_i32_35 = arith.constant 0 : i32
    %46 = arith.cmpi ne, %45, %c0_i32_35 : i32
    scf.if %46 {
      %cst_133 = arith.constant 0.000000e+00 : bf16
      %191 = vector.broadcast %cst_133 : bf16 to vector<1x16x128xbf16>
      %c1_134 = arith.constant 1 : index
      %c1_135 = arith.constant 1 : index
      %c0_136 = arith.constant 0 : index
      %192 = vector.load %arg19[%c1_134, %c1_135, %c0_136] : memref<20x24x128xbf16, #tpu.memory_space<vmem>>, vector<1x16x128xbf16>
      tpu.vector_store %arg19[%c1_134, %c1_135, %c0_136], %191 {strides = array<i32>} : memref<20x24x128xbf16, #tpu.memory_space<vmem>>, vector<1x16x128xbf16>,
    } else {
    }
    %c0_i32_36 = arith.constant 0 : i32
    %47 = arith.cmpi eq, %arg1, %c0_i32_36 : i32
    %48 = arith.extui %47 : i1 to i32
    %c0_i32_37 = arith.constant 0 : i32
    %49 = arith.cmpi ne, %48, %c0_i32_37 : i32
    scf.if %49 {
      %cst_133 = arith.constant 0.000000e+00 : bf16
      %191 = vector.broadcast %cst_133 : bf16 to vector<1x16x128xbf16>
      %c18 = arith.constant 18 : index
      %c1_134 = arith.constant 1 : index
      %c0_135 = arith.constant 0 : index
      %192 = vector.load %arg19[%c18, %c1_134, %c0_135] : memref<20x24x128xbf16, #tpu.memory_space<vmem>>, vector<1x16x128xbf16>
      tpu.vector_store %arg19[%c18, %c1_134, %c0_135], %191 {strides = array<i32>} : memref<20x24x128xbf16, #tpu.memory_space<vmem>>, vector<1x16x128xbf16>,
    } else {
    }
    %c0_38 = arith.constant 0 : index
    %c0_39 = arith.constant 0 : index
    %c0_40 = arith.constant 0 : index
    %50 = vector.load %arg19[%c0_38, %c0_39, %c0_40] : memref<20x24x128xbf16, #tpu.memory_space<vmem>>, vector<18x16x128xbf16>
    %51 = vector.shape_cast %50 : vector<18x16x128xbf16> to vector<288x128xbf16>
    %c0_41 = arith.constant 0 : index
    %c0_42 = arith.constant 0 : index
    %c0_43 = arith.constant 0 : index
    %52 = vector.load %arg9[%c0_41, %c0_42, %c0_43] : memref<1x1152x128xbf16, #tpu.memory_space<vmem>>, vector<1x128x128xbf16>
    %53 = vector.shape_cast %52 : vector<1x128x128xbf16> to vector<128x128xbf16>
    %cst_44 = arith.constant dense<0.000000e+00> : vector<288x128xf32>
    %54 = tpu.matmul %51, %53, %cst_44 {dimension_numbers = #tpu.dot_dimension_numbers<[1], [0], [0], [1], [0, 0, 1, 1], [], []>} : vector<288x128xbf16>, vector<128x128xbf16>, vector<288x128xf32> -> vector<288x128xf32>
    %c0_45 = arith.constant 0 : index
    %c1_46 = arith.constant 1 : index
    %c0_47 = arith.constant 0 : index
    %55 = vector.load %arg19[%c0_45, %c1_46, %c0_47] : memref<20x24x128xbf16, #tpu.memory_space<vmem>>, vector<18x16x128xbf16>
    %56 = vector.shape_cast %55 : vector<18x16x128xbf16> to vector<288x128xbf16>
    %c0_48 = arith.constant 0 : index
    %c128 = arith.constant 128 : index
    %c0_49 = arith.constant 0 : index
    %57 = vector.load %arg9[%c0_48, %c128, %c0_49] : memref<1x1152x128xbf16, #tpu.memory_space<vmem>>, vector<1x128x128xbf16>
    %58 = vector.shape_cast %57 : vector<1x128x128xbf16> to vector<128x128xbf16>
    %cst_50 = arith.constant dense<0.000000e+00> : vector<288x128xf32>
    %59 = tpu.matmul %56, %58, %cst_50 {dimension_numbers = #tpu.dot_dimension_numbers<[1], [0], [0], [1], [0, 0, 1, 1], [], []>} : vector<288x128xbf16>, vector<128x128xbf16>, vector<288x128xf32> -> vector<288x128xf32>
    %60 = arith.addf %54, %59 : vector<288x128xf32>
    %c0_51 = arith.constant 0 : index
    %c2 = arith.constant 2 : index
    %c0_52 = arith.constant 0 : index
    %61 = vector.load %arg19[%c0_51, %c2, %c0_52] : memref<20x24x128xbf16, #tpu.memory_space<vmem>>, vector<18x16x128xbf16>
    %62 = vector.shape_cast %61 : vector<18x16x128xbf16> to vector<288x128xbf16>
    %c0_53 = arith.constant 0 : index
    %c256 = arith.constant 256 : index
    %c0_54 = arith.constant 0 : index
    %63 = vector.load %arg9[%c0_53, %c256, %c0_54] : memref<1x1152x128xbf16, #tpu.memory_space<vmem>>, vector<1x128x128xbf16>
    %64 = vector.shape_cast %63 : vector<1x128x128xbf16> to vector<128x128xbf16>
    %cst_55 = arith.constant dense<0.000000e+00> : vector<288x128xf32>
    %65 = tpu.matmul %62, %64, %cst_55 {dimension_numbers = #tpu.dot_dimension_numbers<[1], [0], [0], [1], [0, 0, 1, 1], [], []>} : vector<288x128xbf16>, vector<128x128xbf16>, vector<288x128xf32> -> vector<288x128xf32>
    %66 = arith.addf %60, %65 : vector<288x128xf32>
    %c1_56 = arith.constant 1 : index
    %c0_57 = arith.constant 0 : index
    %c0_58 = arith.constant 0 : index
    %67 = vector.load %arg19[%c1_56, %c0_57, %c0_58] : memref<20x24x128xbf16, #tpu.memory_space<vmem>>, vector<18x16x128xbf16>
    %68 = vector.shape_cast %67 : vector<18x16x128xbf16> to vector<288x128xbf16>
    %c0_59 = arith.constant 0 : index
    %c384 = arith.constant 384 : index
    %c0_60 = arith.constant 0 : index
    %69 = vector.load %arg9[%c0_59, %c384, %c0_60] : memref<1x1152x128xbf16, #tpu.memory_space<vmem>>, vector<1x128x128xbf16>
    %70 = vector.shape_cast %69 : vector<1x128x128xbf16> to vector<128x128xbf16>
    %cst_61 = arith.constant dense<0.000000e+00> : vector<288x128xf32>
    %71 = tpu.matmul %68, %70, %cst_61 {dimension_numbers = #tpu.dot_dimension_numbers<[1], [0], [0], [1], [0, 0, 1, 1], [], []>} : vector<288x128xbf16>, vector<128x128xbf16>, vector<288x128xf32> -> vector<288x128xf32>
    %72 = arith.addf %66, %71 : vector<288x128xf32>
    %c1_62 = arith.constant 1 : index
    %c1_63 = arith.constant 1 : index
    %c0_64 = arith.constant 0 : index
    %73 = vector.load %arg19[%c1_62, %c1_63, %c0_64] : memref<20x24x128xbf16, #tpu.memory_space<vmem>>, vector<18x16x128xbf16>
    %74 = vector.shape_cast %73 : vector<18x16x128xbf16> to vector<288x128xbf16>
    %c0_65 = arith.constant 0 : index
    %c512 = arith.constant 512 : index
    %c0_66 = arith.constant 0 : index
    %75 = vector.load %arg9[%c0_65, %c512, %c0_66] : memref<1x1152x128xbf16, #tpu.memory_space<vmem>>, vector<1x128x128xbf16>
    %76 = vector.shape_cast %75 : vector<1x128x128xbf16> to vector<128x128xbf16>
    %cst_67 = arith.constant dense<0.000000e+00> : vector<288x128xf32>
    %77 = tpu.matmul %74, %76, %cst_67 {dimension_numbers = #tpu.dot_dimension_numbers<[1], [0], [0], [1], [0, 0, 1, 1], [], []>} : vector<288x128xbf16>, vector<128x128xbf16>, vector<288x128xf32> -> vector<288x128xf32>
    %78 = arith.addf %72, %77 : vector<288x128xf32>
    %c1_68 = arith.constant 1 : index
    %c2_69 = arith.constant 2 : index
    %c0_70 = arith.constant 0 : index
    %79 = vector.load %arg19[%c1_68, %c2_69, %c0_70] : memref<20x24x128xbf16, #tpu.memory_space<vmem>>, vector<18x16x128xbf16>
    %80 = vector.shape_cast %79 : vector<18x16x128xbf16> to vector<288x128xbf16>
    %c0_71 = arith.constant 0 : index
    %c640 = arith.constant 640 : index
    %c0_72 = arith.constant 0 : index
    %81 = vector.load %arg9[%c0_71, %c640, %c0_72] : memref<1x1152x128xbf16, #tpu.memory_space<vmem>>, vector<1x128x128xbf16>
    %82 = vector.shape_cast %81 : vector<1x128x128xbf16> to vector<128x128xbf16>
    %cst_73 = arith.constant dense<0.000000e+00> : vector<288x128xf32>
    %83 = tpu.matmul %80, %82, %cst_73 {dimension_numbers = #tpu.dot_dimension_numbers<[1], [0], [0], [1], [0, 0, 1, 1], [], []>} : vector<288x128xbf16>, vector<128x128xbf16>, vector<288x128xf32> -> vector<288x128xf32>
    %84 = arith.addf %78, %83 : vector<288x128xf32>
    %c2_74 = arith.constant 2 : index
    %c0_75 = arith.constant 0 : index
    %c0_76 = arith.constant 0 : index
    %85 = vector.load %arg19[%c2_74, %c0_75, %c0_76] : memref<20x24x128xbf16, #tpu.memory_space<vmem>>, vector<18x16x128xbf16>
    %86 = vector.shape_cast %85 : vector<18x16x128xbf16> to vector<288x128xbf16>
    %c0_77 = arith.constant 0 : index
    %c768 = arith.constant 768 : index
    %c0_78 = arith.constant 0 : index
    %87 = vector.load %arg9[%c0_77, %c768, %c0_78] : memref<1x1152x128xbf16, #tpu.memory_space<vmem>>, vector<1x128x128xbf16>
    %88 = vector.shape_cast %87 : vector<1x128x128xbf16> to vector<128x128xbf16>
    %cst_79 = arith.constant dense<0.000000e+00> : vector<288x128xf32>
    %89 = tpu.matmul %86, %88, %cst_79 {dimension_numbers = #tpu.dot_dimension_numbers<[1], [0], [0], [1], [0, 0, 1, 1], [], []>} : vector<288x128xbf16>, vector<128x128xbf16>, vector<288x128xf32> -> vector<288x128xf32>
    %90 = arith.addf %84, %89 : vector<288x128xf32>
    %c2_80 = arith.constant 2 : index
    %c1_81 = arith.constant 1 : index
    %c0_82 = arith.constant 0 : index
    %91 = vector.load %arg19[%c2_80, %c1_81, %c0_82] : memref<20x24x128xbf16, #tpu.memory_space<vmem>>, vector<18x16x128xbf16>
    %92 = vector.shape_cast %91 : vector<18x16x128xbf16> to vector<288x128xbf16>
    %c0_83 = arith.constant 0 : index
    %c896 = arith.constant 896 : index
    %c0_84 = arith.constant 0 : index
    %93 = vector.load %arg9[%c0_83, %c896, %c0_84] : memref<1x1152x128xbf16, #tpu.memory_space<vmem>>, vector<1x128x128xbf16>
    %94 = vector.shape_cast %93 : vector<1x128x128xbf16> to vector<128x128xbf16>
    %cst_85 = arith.constant dense<0.000000e+00> : vector<288x128xf32>
    %95 = tpu.matmul %92, %94, %cst_85 {dimension_numbers = #tpu.dot_dimension_numbers<[1], [0], [0], [1], [0, 0, 1, 1], [], []>} : vector<288x128xbf16>, vector<128x128xbf16>, vector<288x128xf32> -> vector<288x128xf32>
    %96 = arith.addf %90, %95 : vector<288x128xf32>
    %c2_86 = arith.constant 2 : index
    %c2_87 = arith.constant 2 : index
    %c0_88 = arith.constant 0 : index
    %97 = vector.load %arg19[%c2_86, %c2_87, %c0_88] : memref<20x24x128xbf16, #tpu.memory_space<vmem>>, vector<18x16x128xbf16>
    %98 = vector.shape_cast %97 : vector<18x16x128xbf16> to vector<288x128xbf16>
    %c0_89 = arith.constant 0 : index
    %c1024 = arith.constant 1024 : index
    %c0_90 = arith.constant 0 : index
    %99 = vector.load %arg9[%c0_89, %c1024, %c0_90] : memref<1x1152x128xbf16, #tpu.memory_space<vmem>>, vector<1x128x128xbf16>
    %100 = vector.shape_cast %99 : vector<1x128x128xbf16> to vector<128x128xbf16>
    %cst_91 = arith.constant dense<0.000000e+00> : vector<288x128xf32>
    %101 = tpu.matmul %98, %100, %cst_91 {dimension_numbers = #tpu.dot_dimension_numbers<[1], [0], [0], [1], [0, 0, 1, 1], [], []>} : vector<288x128xbf16>, vector<128x128xbf16>, vector<288x128xf32> -> vector<288x128xf32>
    %102 = arith.addf %96, %101 : vector<288x128xf32>
    %c0_92 = arith.constant 0 : index
    %c0_93 = arith.constant 0 : index
    %c0_94 = arith.constant 0 : index
    %103 = vector.load %arg10[%c0_92, %c0_93, %c0_94] : memref<1x1x128xf32, #tpu.memory_space<vmem>>, vector<1x1x128xf32>
    %104 = vector.shape_cast %103 : vector<1x1x128xf32> to vector<1x128xf32>
    %105 = vector.broadcast %104 : vector<1x128xf32> to vector<288x128xf32>
    %106 = arith.addf %102, %105 : vector<288x128xf32>
    %107 = arith.negf %106 : vector<288x128xf32>
    %108 = math.exp %107 : vector<288x128xf32>
    %cst_95 = arith.constant 1.000000e+00 : f32
    %109 = vector.broadcast %cst_95 : f32 to vector<288x128xf32>
    %110 = arith.addf %109, %108 : vector<288x128xf32>
    %111 = arith.divf %109, %110 : vector<288x128xf32>
    %112 = arith.mulf %106, %111 : vector<288x128xf32>
    %113 = arith.addf %26, %112 : vector<288x128xf32>
    %114 = vector.shape_cast %113 : vector<288x128xf32> to vector<18x16x128xf32>
    %115 = vector.extract_strided_slice %114 {offsets = [1, 0, 0], sizes = [16, 16, 128], strides = [1, 1, 1]} : vector<18x16x128xf32> to vector<16x16x128xf32>
    %116 = vector.shape_cast %115 : vector<16x16x128xf32> to vector<256x128xf32>
    %117 = arith.truncf %116 : vector<256x128xf32> to vector<256x128xbf16>
    %c1_96 = arith.constant 1 : index
    %c0_97 = arith.constant 0 : index
    %c0_98 = arith.constant 0 : index
    %118 = vector.load %arg18[%c1_96, %c0_97, %c0_98] : memref<18x16x128xbf16, #tpu.memory_space<vmem>>, vector<16x16x128xbf16>
    %119 = vector.shape_cast %118 : vector<16x16x128xbf16> to vector<256x128xbf16>
    %c0_99 = arith.constant 0 : index
    %c0_100 = arith.constant 0 : index
    %120 = vector.load %arg11[%c0_99, %c0_100] : memref<128x128xbf16, #tpu.memory_space<vmem>>, vector<128x128xbf16>
    %cst_101 = arith.constant dense<0.000000e+00> : vector<256x128xf32>
    %121 = tpu.matmul %117, %120, %cst_101 {dimension_numbers = #tpu.dot_dimension_numbers<[1], [0], [0], [1], [0, 0, 1, 1], [], []>} : vector<256x128xbf16>, vector<128x128xbf16>, vector<256x128xf32> -> vector<256x128xf32>
    %c0_102 = arith.constant 0 : index
    %c0_103 = arith.constant 0 : index
    %122 = vector.load %arg12[%c0_102, %c0_103] : memref<1x128xf32, #tpu.memory_space<vmem>>, vector<1x128xf32>
    %123 = vector.broadcast %122 : vector<1x128xf32> to vector<256x128xf32>
    %124 = arith.addf %121, %123 : vector<256x128xf32>
    %125 = arith.negf %124 : vector<256x128xf32>
    %126 = math.exp %125 : vector<256x128xf32>
    %cst_104 = arith.constant 1.000000e+00 : f32
    %127 = vector.broadcast %cst_104 : f32 to vector<256x128xf32>
    %128 = arith.addf %127, %126 : vector<256x128xf32>
    %129 = arith.divf %127, %128 : vector<256x128xf32>
    %130 = arith.mulf %124, %129 : vector<256x128xf32>
    %c0_105 = arith.constant 0 : index
    %c0_106 = arith.constant 0 : index
    %131 = vector.load %arg5[%c0_105, %c0_106] : memref<128x128xbf16, #tpu.memory_space<vmem>>, vector<128x128xbf16>
    %cst_107 = arith.constant dense<0.000000e+00> : vector<256x128xf32>
    %132 = tpu.matmul %119, %131, %cst_107 {dimension_numbers = #tpu.dot_dimension_numbers<[1], [0], [0], [1], [0, 0, 1, 1], [], []>} : vector<256x128xbf16>, vector<128x128xbf16>, vector<256x128xf32> -> vector<256x128xf32>
    %c0_108 = arith.constant 0 : index
    %c0_109 = arith.constant 0 : index
    %133 = vector.load %arg6[%c0_108, %c0_109] : memref<1x128xf32, #tpu.memory_space<vmem>>, vector<1x128xf32>
    %134 = vector.broadcast %133 : vector<1x128xf32> to vector<256x128xf32>
    %135 = arith.addf %132, %134 : vector<256x128xf32>
    %136 = arith.negf %135 : vector<256x128xf32>
    %137 = math.exp %136 : vector<256x128xf32>
    %cst_110 = arith.constant 1.000000e+00 : f32
    %138 = vector.broadcast %cst_110 : f32 to vector<256x128xf32>
    %139 = arith.addf %138, %137 : vector<256x128xf32>
    %140 = arith.divf %138, %139 : vector<256x128xf32>
    %141 = arith.mulf %135, %140 : vector<256x128xf32>
    %142 = arith.truncf %130 : vector<256x128xf32> to vector<256x128xbf16>
    %143 = arith.truncf %141 : vector<256x128xf32> to vector<256x128xbf16>
    %144 = tpu.concatenate %142, %143 in 1 : vector<256x128xbf16>, vector<256x128xbf16> -> vector<256x256xbf16>
    %c0_111 = arith.constant 0 : index
    %c0_112 = arith.constant 0 : index
    %145 = vector.load %arg13[%c0_111, %c0_112] : memref<256x128xbf16, #tpu.memory_space<vmem>>, vector<256x128xbf16>
    %cst_113 = arith.constant dense<0.000000e+00> : vector<256x128xf32>
    %146 = tpu.matmul %144, %145, %cst_113 {dimension_numbers = #tpu.dot_dimension_numbers<[1], [0], [0], [1], [0, 0, 1, 1], [], []>} : vector<256x256xbf16>, vector<256x128xbf16>, vector<256x128xf32> -> vector<256x128xf32>
    %c0_114 = arith.constant 0 : index
    %c0_115 = arith.constant 0 : index
    %147 = vector.load %arg14[%c0_114, %c0_115] : memref<1x128xf32, #tpu.memory_space<vmem>>, vector<1x128xf32>
    %148 = vector.broadcast %147 : vector<1x128xf32> to vector<256x128xf32>
    %149 = arith.addf %146, %148 : vector<256x128xf32>
    %150 = arith.negf %149 : vector<256x128xf32>
    %151 = math.exp %150 : vector<256x128xf32>
    %cst_116 = arith.constant 1.000000e+00 : f32
    %152 = vector.broadcast %cst_116 : f32 to vector<256x128xf32>
    %153 = arith.addf %152, %151 : vector<256x128xf32>
    %154 = arith.divf %152, %153 : vector<256x128xf32>
    %155 = arith.mulf %149, %154 : vector<256x128xf32>
    %156 = vector.shape_cast %155 : vector<256x128xf32> to vector<16x16x128xf32>
    %157 = arith.truncf %156 : vector<16x16x128xf32> to vector<16x16x128xbf16>
    %c0_117 = arith.constant 0 : index
    %c0_118 = arith.constant 0 : index
    %c0_119 = arith.constant 0 : index
    %c0_120 = arith.constant 0 : index
    %158 = vector.load %arg16[%c0_117, %c0_118, %c0_119, %c0_120] : memref<1x16x16x128xbf16, #tpu.memory_space<vmem>>, vector<1x16x16x128xbf16>
    %159 = vector.shape_cast %158 : vector<1x16x16x128xbf16> to vector<16x16x128xbf16>
    %160 = vector.shape_cast %157 : vector<16x16x128xbf16> to vector<1x16x16x128xbf16>
    tpu.vector_store %arg16[%c0_117, %c0_118, %c0_119, %c0_120], %160 {strides = array<i32>} : memref<1x16x16x128xbf16, #tpu.memory_space<vmem>>, vector<1x16x16x128xbf16>,
    %c0_121 = arith.constant 0 : index
    %c0_122 = arith.constant 0 : index
    %161 = vector.load %arg15[%c0_121, %c0_122] : memref<1x128xf32, #tpu.memory_space<vmem>>, vector<1x128xf32>
    %162 = vector.broadcast %161 : vector<1x128xf32> to vector<256x128xf32>
    %163 = arith.mulf %155, %162 : vector<256x128xf32>
    %cst_123 = arith.constant dense<0.000000e+00> : vector<256xf32>
    %164 = vector.multi_reduction <add>, %163, %cst_123 [1] : vector<256x128xf32> to vector<256xf32>
    %165 = vector.shape_cast %164 : vector<256xf32> to vector<256x1xf32>
    %166 = vector.shape_cast %165 : vector<256x1xf32> to vector<1x256x1xf32>
    %cst_124 = arith.constant dense<0xFF800000> : vector<1xf32>
    %167 = vector.multi_reduction <maximumf>, %166, %cst_124 [1, 2] : vector<1x256x1xf32> to vector<1xf32>
    %168 = vector.shape_cast %167 : vector<1xf32> to vector<1x1x1xf32>
    %169 = vector.extract %168[0, 0, 0] : f32 from vector<1x1x1xf32>
    %170 = vector.broadcast %169 : f32 to vector<256x1xf32>
    %171 = arith.subf %165, %170 : vector<256x1xf32>
    %172 = math.exp %171 : vector<256x1xf32>
    %173 = vector.shape_cast %172 : vector<256x1xf32> to vector<1x256x1xf32>
    %cst_125 = arith.constant dense<0.000000e+00> : vector<1xf32>
    %174 = vector.multi_reduction <add>, %173, %cst_125 [1, 2] : vector<1x256x1xf32> to vector<1xf32>
    %175 = vector.shape_cast %174 : vector<1xf32> to vector<1x1x1xf32>
    %176 = vector.extract %175[0, 0, 0] : f32 from vector<1x1x1xf32>
    %177 = vector.broadcast %172 : vector<256x1xf32> to vector<256x128xf32>
    %178 = arith.mulf %155, %177 : vector<256x128xf32>
    %cst_126 = arith.constant dense<0.000000e+00> : vector<128xf32>
    %179 = vector.multi_reduction <add>, %178, %cst_126 [0] : vector<256x128xf32> to vector<128xf32>
    %180 = vector.shape_cast %179 : vector<128xf32> to vector<1x128xf32>
    %cst_127 = arith.constant 1.000000e+00 : f32
    %181 = vector.broadcast %cst_127 : f32 to vector<1x128xf32>
    %182 = vector.broadcast %169 : f32 to vector<1x128xf32>
    %183 = arith.mulf %182, %181 : vector<1x128xf32>
    %184 = vector.broadcast %176 : f32 to vector<1x128xf32>
    %185 = arith.mulf %184, %181 : vector<1x128xf32>
    %cst_128 = arith.constant 0.000000e+00 : f32
    %186 = vector.broadcast %cst_128 : f32 to vector<5x128xf32>
    %187 = tpu.concatenate %180, %183, %185, %186 in 0 : vector<1x128xf32>, vector<1x128xf32>, vector<1x128xf32>, vector<5x128xf32> -> vector<8x128xf32>
    %c0_129 = arith.constant 0 : index
    %c0_130 = arith.constant 0 : index
    %c0_131 = arith.constant 0 : index
    %c0_132 = arith.constant 0 : index
    %188 = vector.load %arg17[%c0_129, %c0_130, %c0_131, %c0_132] : memref<1x1x8x128xf32, #tpu.memory_space<vmem>>, vector<1x1x8x128xf32>
    %189 = vector.shape_cast %188 : vector<1x1x8x128xf32> to vector<8x128xf32>
    %190 = vector.shape_cast %187 : vector<8x128xf32> to vector<1x1x8x128xf32>
    tpu.vector_store %arg17[%c0_129, %c0_130, %c0_131, %c0_132], %190 {strides = array<i32>} : memref<1x1x8x128xf32, #tpu.memory_space<vmem>>, vector<1x1x8x128xf32>,
    return
  }
  func.func @transform_1(%arg0: i32, %arg1: i32) -> (i32, i32) {
    %c0_i32 = arith.constant 0 : i32
    %c0_i32_0 = arith.constant 0 : i32
    %c0_i32_1 = arith.constant 0 : i32
    return %c0_i32, %c0_i32_0 : i32, i32
  }
  func.func @transform_2(%arg0: i32, %arg1: i32) -> (i32, i32) {
    %c0_i32 = arith.constant 0 : i32
    %c0_i32_0 = arith.constant 0 : i32
    %c0_i32_1 = arith.constant 0 : i32
    return %c0_i32, %c0_i32_0 : i32, i32
  }
  func.func @transform_3(%arg0: i32, %arg1: i32) -> (i32, i32) {
    %c0_i32 = arith.constant 0 : i32
    %c0_i32_0 = arith.constant 0 : i32
    %c0_i32_1 = arith.constant 0 : i32
    return %c0_i32, %c0_i32_0 : i32, i32
  }
  func.func @transform_4(%arg0: i32, %arg1: i32) -> (i32, i32) {
    %c0_i32 = arith.constant 0 : i32
    %c0_i32_0 = arith.constant 0 : i32
    %c0_i32_1 = arith.constant 0 : i32
    return %c0_i32, %c0_i32_0 : i32, i32
  }
  func.func @transform_5(%arg0: i32, %arg1: i32) -> (i32, i32, i32) {
    %c0_i32 = arith.constant 0 : i32
    %c0_i32_0 = arith.constant 0 : i32
    %c0_i32_1 = arith.constant 0 : i32
    %c0_i32_2 = arith.constant 0 : i32
    return %c0_i32, %c0_i32_0, %c0_i32_1 : i32, i32, i32
  }
  func.func @transform_6(%arg0: i32, %arg1: i32) -> (i32, i32, i32) {
    %c0_i32 = arith.constant 0 : i32
    %c0_i32_0 = arith.constant 0 : i32
    %c0_i32_1 = arith.constant 0 : i32
    %c0_i32_2 = arith.constant 0 : i32
    return %c0_i32, %c0_i32_0, %c0_i32_1 : i32, i32, i32
  }
  func.func @transform_7(%arg0: i32, %arg1: i32) -> (i32, i32, i32) {
    %c0_i32 = arith.constant 0 : i32
    %c0_i32_0 = arith.constant 0 : i32
    %c0_i32_1 = arith.constant 0 : i32
    %c0_i32_2 = arith.constant 0 : i32
    return %c0_i32, %c0_i32_0, %c0_i32_1 : i32, i32, i32
  }
  func.func @transform_8(%arg0: i32, %arg1: i32) -> (i32, i32, i32) {
    %c0_i32 = arith.constant 0 : i32
    %c0_i32_0 = arith.constant 0 : i32
    %c0_i32_1 = arith.constant 0 : i32
    %c0_i32_2 = arith.constant 0 : i32
    return %c0_i32, %c0_i32_0, %c0_i32_1 : i32, i32, i32
  }
  func.func @transform_9(%arg0: i32, %arg1: i32) -> (i32, i32) {
    %c0_i32 = arith.constant 0 : i32
    %c0_i32_0 = arith.constant 0 : i32
    %c0_i32_1 = arith.constant 0 : i32
    return %c0_i32, %c0_i32_0 : i32, i32
  }
  func.func @transform_10(%arg0: i32, %arg1: i32) -> (i32, i32) {
    %c0_i32 = arith.constant 0 : i32
    %c0_i32_0 = arith.constant 0 : i32
    %c0_i32_1 = arith.constant 0 : i32
    return %c0_i32, %c0_i32_0 : i32, i32
  }
  func.func @transform_11(%arg0: i32, %arg1: i32) -> (i32, i32) {
    %c0_i32 = arith.constant 0 : i32
    %c0_i32_0 = arith.constant 0 : i32
    %c0_i32_1 = arith.constant 0 : i32
    return %c0_i32, %c0_i32_0 : i32, i32
  }
  func.func @transform_12(%arg0: i32, %arg1: i32) -> (i32, i32) {
    %c0_i32 = arith.constant 0 : i32
    %c0_i32_0 = arith.constant 0 : i32
    %c0_i32_1 = arith.constant 0 : i32
    return %c0_i32, %c0_i32_0 : i32, i32
  }
  func.func @transform_13(%arg0: i32, %arg1: i32) -> (i32, i32) {
    %c0_i32 = arith.constant 0 : i32
    %c0_i32_0 = arith.constant 0 : i32
    %c0_i32_1 = arith.constant 0 : i32
    return %c0_i32, %c0_i32_0 : i32, i32
  }
  func.func @transform_14(%arg0: i32, %arg1: i32) -> (i32, i32, i32, i32) {
    %c0_i32 = arith.constant 0 : i32
    %c0_i32_0 = arith.constant 0 : i32
    %c0_i32_1 = arith.constant 0 : i32
    return %arg0, %arg1, %c0_i32, %c0_i32_0 : i32, i32, i32, i32
  }
  func.func @transform_15(%arg0: i32, %arg1: i32) -> (i32, i32, i32, i32) {
    %c0_i32 = arith.constant 0 : i32
    %c0_i32_0 = arith.constant 0 : i32
    %c0_i32_1 = arith.constant 0 : i32
    return %arg0, %arg1, %c0_i32, %c0_i32_0 : i32, i32, i32, i32
  }
}

</mosaic_0001>

<bundles_post_ra>
// kernel: mul.8
= control target key start
LH: loop header
LB: loop body
LE: loop exit
PB: predicated region body
PF: predicated region fallthrough
CT: control target
= control target key end

     0   :  { %s34_s0 = inlined_call_operand.vmem [shape: f32[2], index: 0, kind: input, shape index: {}]   ;;  %s35_s1 = inlined_call_operand.vmem [shape: f32[2], index: 1, kind: input, shape index: {}]   ;;  %s36_s2 = inlined_call_operand.vmem [shape: f32[2], index: 2, kind: output, shape index: {}]  }
   0x1   :  { %v3_v0 = vld [vmem:[%s34_s0] sm:$0x1] }
   0x2   :  { %v4_v1 = vld [vmem:[%s35_s1] sm:$0x1] }
   0x3   :  { %v7_v2 = vmul.f32 %v4_v1, %v3_v0 }
   0x5   :  { %9 = vst [vmem:[%s36_s2] sm:$0x1] %v7_v2 }

// kernel: bottleneck_cspgc_pallas.1
= control target key start
LH: loop header
LB: loop body
LE: loop exit
PB: predicated region body
PF: predicated region fallthrough
CT: control target
= control target key end

     0   :  { %s13432_s18 = smov 0   ;;  %s13434_s19 = smov 0   ;;  %s17702_s0 = inlined_call_operand.vmem [shape: bf16[2,18,16,128], index: 0, kind: input, shape index: {}]   ;;  %s17703_s1 = inlined_call_operand.vmem [shape: bf16[128,128], index: 1, kind: input, shape index: {}]   ;;  %s17704_s2 = inlined_call_operand.vmem [shape: f32[1,128], index: 2, kind: input, shape index: {}]   ;;  %s17705_s3 = inlined_call_operand.vmem [shape: bf16[128,128], index: 3, kind: input, shape index: {}]   ;;  %s17706_s4 = inlined_call_operand.vmem [shape: f32[1,128], index: 4, kind: input, shape index: {}]   ;;  %s17707_s5 = inlined_call_operand.vmem [shape: bf16[1,128,128], index: 5, kind: input, shape index: {}]   ;;  %s17708_s6 = inlined_call_operand.vmem [shape: f32[1,1,128], index: 6, kind: input, shape index: {}]   ;;  %s17709_s7 = inlined_call_operand.vmem [shape: bf16[1,1152,128], index: 7, kind: input, shape index: {}]   ;;  %s17710_s8 = inlined_call_operand.vmem [shape: f32[1,1,128], index: 8, kind: input, shape index: {}]   ;;  %s17711_s9 = inlined_call_operand.vmem [shape: bf16[128,128], index: 9, kind: input, shape index: {}]   ;;  %s17712_s10 = inlined_call_operand.vmem [shape: f32[1,128], index: 10, kind: input, shape index: {}]   ;;  %s17713_s11 = inlined_call_operand.vmem [shape: bf16[256,128], index: 11, kind: input, shape index: {}]   ;;  %s17714_s12 = inlined_call_operand.vmem [shape: f32[1,128], index: 12, kind: input, shape index: {}]   ;;  %s17715_s13 = inlined_call_operand.vmem [shape: f32[1,128], index: 13, kind: input, shape index: {}]   ;;  %s17716_s14 = inlined_call_operand.vmem [shape: bf16[2,16,16,128], index: 14, kind: output, shape index: {0}]   ;;  %s17717_s15 = inlined_call_operand.vmem [shape: f32[2,1,8,128], index: 15, kind: output, shape index: {1}]  }
   0x1   :  { %s13436_s20 = smov 0  }
   0x2 LB: > { %s38_s21 = sadd.s32 1, %s13345_s19  ;;  %p10071_p0 = scmp.ge.s32.totalorder %s13349_s20, 1  ;;  %s13349_s20 = sphi %s13436_s20, %s26_s20   ;;  %s13345_s19 = sphi %s13434_s19, %s18131_s19   ;;  %s13341_s18 = sphi %s13432_s18, %s18130_s18  }
   0x3   : > { %p40_p1 = scmp.ge.s32.totalorder %s38_s21, 2  ;;  %p422_p2 = scmp.lt.s32.totalorder %s13349_s20, 3 }
   0x5   : > { %s18133_s21 = smov (%p40_p1, %s38_s21), 0  ;;  %p423_p3 = pnand %p10071_p0, %p422_p2 }
   0x6   : > { %17812 = sst [smem:[#allocation7_spill]] %s18133_s21 }
   0x7   : > { %426 = sbr.rel (%p423_p3) target bundleno = 2657 (0xa61), region = 72 }
   0xe   : > { %p476_p4 = scmp.lt.s32.totalorder %s13341_s18, 1  ;;  %s10691_s22 = smul.u32 144, %s13341_s18 }
  0x10   : > { %s18135_s18 = smov (!%p476_p4, %s13341_s18), 1  ;;  %s499_s25 = scalar_lea.vmem %s17702_s0, %s10691_s22 }
  0x11   : > { %s10690_s26 = sshll.u32 %s18135_s18, 7  ;;  %s10074_s27 = sshll.u32 %s18135_s18, 3  ;;  %v13453_v0 = vld [vmem:[%s499_s25] sm:$0xff]  ;;  %v13455_v1 = vld [vmem:[%s499_s25 + $0x8] sm:$0xff]  ;;  %v13457_v2 = vld [vmem:[%s499_s25 + $0x10] sm:$0xff] }
  0x12   : > { %17813 = vst [vmem:[#allocation8_spill] sm:$0xff] %v13455_v1  ;;  %17814 = vst [vmem:[#allocation9_spill] sm:$0xff] %v13457_v2  ;;  %s13462_s30 = scalar_lea.vmem %s17716_s14, %s10690_s26  ;;  %s13467_s21 = scalar_lea.vmem %s17717_s15, %s10074_s27  ;;  %v13469_v3 = vld [vmem:[%s499_s25 + $0x18] sm:$0xff]  ;;  %v13471_v4 = vld [vmem:[%s499_s25 + $0x20] sm:$0xff] }
  0x13   : > { %17815 = vst [vmem:[#allocation10_spill] sm:$0xff] %v13469_v3  ;;  %17816 = vst [vmem:[#allocation11_spill] sm:$0xff] %v13471_v4  ;;  %v13473_v5 = vld [vmem:[%s499_s25 + $0x28] sm:$0xff]  ;;  %v13475_v6 = vld [vmem:[%s499_s25 + $0x30] sm:$0xff] }
  0x14   : > { %17817 = vst [vmem:[#allocation12_spill] sm:$0xff] %v13473_v5  ;;  %17818 = vst [vmem:[#allocation13_spill] sm:$0xff] %v13475_v6  ;;  %v13477_v7 = vld [vmem:[%s499_s25 + $0x38] sm:$0xff]  ;;  %v13479_v8 = vld [vmem:[%s499_s25 + $0x40] sm:$0xff] }
  0x15   : > { %17819 = vst [vmem:[#allocation14_spill] sm:$0xff] %v13477_v7  ;;  %17820 = vst [vmem:[#allocation15_spill] sm:$0xff] %v13479_v8  ;;  %v13481_v9 = vld [vmem:[%s499_s25 + $0x48] sm:$0xff]  ;;  %v13483_v10 = vld [vmem:[%s499_s25 + $0x50] sm:$0xff] }
  0x16   : > { %17821 = vst [vmem:[#allocation16_spill] sm:$0xff] %v13481_v9  ;;  %17822 = vst [vmem:[#allocation17_spill] sm:$0xff] %v13483_v10  ;;  %v13485_v11 = vld [vmem:[%s499_s25 + $0x58] sm:$0xff]  ;;  %v13487_v12 = vld [vmem:[%s499_s25 + $0x60] sm:$0xff] }
  0x17   : > { %17823 = vst [vmem:[#allocation18_spill] sm:$0xff] %v13485_v11  ;;  %17824 = vst [vmem:[#allocation19_spill] sm:$0xff] %v13487_v12  ;;  %v13489_v13 = vld [vmem:[%s499_s25 + $0x68] sm:$0xff]  ;;  %v13491_v14 = vld [vmem:[%s499_s25 + $0x70] sm:$0xff] }
  0x18   : > { %17825 = vst [vmem:[#allocation20_spill] sm:$0xff] %v13489_v13  ;;  %17826 = vst [vmem:[#allocation21_spill] sm:$0xff] %v13491_v14  ;;  %v13493_v15 = vld [vmem:[%s499_s25 + $0x78] sm:$0xff]  ;;  %v13495_v16 = vld [vmem:[%s499_s25 + $0x80] sm:$0xff] }
  0x19   : > { %17827 = vst [vmem:[#allocation22_spill] sm:$0xff] %v13493_v15  ;;  %17828 = vst [vmem:[#allocation23_spill] sm:$0xff] %v13495_v16  ;;  %v13497_v17 = vld [vmem:[%s499_s25 + $0x88] sm:$0xff] }
  0x1a   : > { %575 = vsyncadd [#allocation4], 2304  ;;  %vm583_vm0 = vcmask 1040384   ;;  %vm584_vm1 = vsmask.f32 256  ;;  %v17718_v18 = vmov 0  }
  0x1b   : > { %576 = vst [vmem:[#allocation3] sm:$0xf] %v17718_v18  ;;  %577 = vst [vmem:[#allocation3 + $0x4] sm:$0xf] %v17718_v18  ;;  %v589_v20 = vld [vmem:[#allocation3 + $0xc] sm:$0x1] }
  0x1c   : > { %578 = vst [vmem:[#allocation3 + $0x8] sm:$0xf] %v17718_v18  ;;  %580 = vst [vmem:[#allocation3 + $0xe4] sm:$0xf] %v17718_v18  ;;  %v592_v21 = vld [vmem:[#allocation3 + $0x18] sm:$0x1] }
  0x1d   : > { %581 = vst [vmem:[#allocation3 + $0xe8] sm:$0xf] %v17718_v18  ;;  %582 = vst [vmem:[#allocation3 + $0xec] sm:$0xf] %v17718_v18  ;;  %vm646_vm3 = vsmask.f32 7938 }
  0x1e   : > { %vm13507_vm2 = vmand %vm583_vm0, %vm584_vm1  ;;  %v595_v24 = vld [vmem:[#allocation3 + $0x24] sm:$0x1]  ;;  %v598_v25 = vld [vmem:[#allocation3 + $0x30] sm:$0x1] }
  0x1f   : > { %v590_v22 = vsel %vm13507_vm2, 0, %v589_v20  ;;  %v593_v23 = vsel %vm13507_vm2, 0, %v592_v21  ;;  %v596_v26 = vsel %vm13507_vm2, 0, %v595_v24  ;;  %v599_v27 = vsel %vm13507_vm2, 0, %v598_v25  ;;  %v601_v28 = vld [vmem:[#allocation3 + $0x3c] sm:$0x1]  ;;  %vm13545_vm4 = vmand %vm583_vm0, %vm646_vm3 }
  0x20   : > { %591 = vst [vmem:[#allocation3 + $0xc] sm:$0x1] %v590_v22  ;;  %594 = vst [vmem:[#allocation3 + $0x18] sm:$0x1] %v593_v23  ;;  %v604_v29 = vld [vmem:[#allocation3 + $0x48] sm:$0x1] }
  0x21   : > { %597 = vst [vmem:[#allocation3 + $0x24] sm:$0x1] %v596_v26  ;;  %600 = vst [vmem:[#allocation3 + $0x30] sm:$0x1] %v599_v27  ;;  %v602_v30 = vsel %vm13507_vm2, 0, %v601_v28  ;;  %v605_v31 = vsel %vm13507_vm2, 0, %v604_v29 }
  0x22   : > { %v607_v32 = vld [vmem:[#allocation3 + $0x54] sm:$0x1]  ;;  %v610_v33 = vld [vmem:[#allocation3 + $0x60] sm:$0x1]  ;;  %603 = vst [vmem:[#allocation3 + $0x3c] sm:$0x1] %v602_v30 }
  0x23   : > { %606 = vst [vmem:[#allocation3 + $0x48] sm:$0x1] %v605_v31  ;;  %v608_v34 = vsel %vm13507_vm2, 0, %v607_v32  ;;  %v611_v35 = vsel %vm13507_vm2, 0, %v610_v33  ;;  %v613_v36 = vld [vmem:[#allocation3 + $0x6c] sm:$0x1] }
  0x24   : > { %v616_v37 = vld [vmem:[#allocation3 + $0x78] sm:$0x1]  ;;  %609 = vst [vmem:[#allocation3 + $0x54] sm:$0x1] %v608_v34  ;;  %612 = vst [vmem:[#allocation3 + $0x60] sm:$0x1] %v611_v35 }
  0x25   : > { %v614_v38 = vsel %vm13507_vm2, 0, %v613_v36  ;;  %v617_v39 = vsel %vm13507_vm2, 0, %v616_v37  ;;  %v619_v40 = vld [vmem:[#allocation3 + $0x84] sm:$0x1]  ;;  %v622_v41 = vld [vmem:[#allocation3 + $0x90] sm:$0x1] }
  0x26   : > { %615 = vst [vmem:[#allocation3 + $0x6c] sm:$0x1] %v614_v38  ;;  %618 = vst [vmem:[#allocation3 + $0x78] sm:$0x1] %v617_v39  ;;  %v620_v42 = vsel %vm13507_vm2, 0, %v619_v40  ;;  %v623_v43 = vsel %vm13507_vm2, 0, %v622_v41 }
  0x27   : > { %v625_v44 = vld [vmem:[#allocation3 + $0x9c] sm:$0x1]  ;;  %v628_v45 = vld [vmem:[#allocation3 + $0xa8] sm:$0x1]  ;;  %v586_v46 = vld [vmem:[#allocation3] sm:$0x1] }
  0x28   : > { %621 = vst [vmem:[#allocation3 + $0x84] sm:$0x1] %v620_v42  ;;  %624 = vst [vmem:[#allocation3 + $0x90] sm:$0x1] %v623_v43  ;;  %v626_v47 = vsel %vm13507_vm2, 0, %v625_v44  ;;  %v629_v48 = vsel %vm13507_vm2, 0, %v628_v45 }
  0x29   : > { %v631_v49 = vld [vmem:[#allocation3 + $0xb4] sm:$0x1]  ;;  %v587_v50 = vsel %vm13507_vm2, 0, %v586_v46  ;;  %627 = vst [vmem:[#allocation3 + $0x9c] sm:$0x1] %v626_v47 }
  0x2a   : > { %630 = vst [vmem:[#allocation3 + $0xa8] sm:$0x1] %v629_v48  ;;  %v632_v51 = vsel %vm13507_vm2, 0, %v631_v49  ;;  %v634_v52 = vld [vmem:[#allocation3 + $0xc0] sm:$0x1] }
  0x2b   : > { %v637_v53 = vld [vmem:[#allocation3 + $0xcc] sm:$0x1]  ;;  %588 = vst [vmem:[#allocation3] sm:$0x1] %v587_v50  ;;  %633 = vst [vmem:[#allocation3 + $0xb4] sm:$0x1] %v632_v51 }
  0x2c   : > { %v635_v55 = vsel %vm13507_vm2, 0, %v634_v52  ;;  %v638_v56 = vsel %vm13507_vm2, 0, %v637_v53  ;;  %v640_v57 = vld [vmem:[#allocation3 + $0xd8] sm:$0x1]  ;;  %v643_v58 = vld [vmem:[#allocation3 + $0xe4] sm:$0x1] }
  0x2d   : > { %636 = vst [vmem:[#allocation3 + $0xc0] sm:$0x1] %v635_v55  ;;  %639 = vst [vmem:[#allocation3 + $0xcc] sm:$0x1] %v638_v56  ;;  %v641_v59 = vsel %vm13507_vm2, 0, %v640_v57  ;;  %v644_v60 = vsel %vm13507_vm2, 0, %v643_v58 }
  0x2e   : > { %v648_v61 = vld [vmem:[#allocation3 + $0x8] sm:$0x1]  ;;  %v651_v62 = vld [vmem:[#allocation3 + $0x14] sm:$0x1]  ;;  %642 = vst [vmem:[#allocation3 + $0xd8] sm:$0x1] %v641_v59 }
  0x2f   : > { %645 = vst [vmem:[#allocation3 + $0xe4] sm:$0x1] %v644_v60  ;;  %v649_v63 = vsel %vm13545_vm4, 0, %v648_v61  ;;  %v652_v20 = vsel %vm13545_vm4, 0, %v651_v62  ;;  %v654_v21 = vld [vmem:[#allocation3 + $0x20] sm:$0x1] }
  0x30   : > { %v657_v22 = vld [vmem:[#allocation3 + $0x2c] sm:$0x1]  ;;  %650 = vst [vmem:[#allocation3 + $0x8] sm:$0x1] %v649_v63  ;;  %653 = vst [vmem:[#allocation3 + $0x14] sm:$0x1] %v652_v20 }
  0x31   : > { %v655_v23 = vsel %vm13545_vm4, 0, %v654_v21  ;;  %v658_v24 = vsel %vm13545_vm4, 0, %v657_v22  ;;  %v660_v25 = vld [vmem:[#allocation3 + $0x38] sm:$0x1]  ;;  %v663_v26 = vld [vmem:[#allocation3 + $0x44] sm:$0x1] }
  0x32   : > { %656 = vst [vmem:[#allocation3 + $0x20] sm:$0x1] %v655_v23  ;;  %659 = vst [vmem:[#allocation3 + $0x2c] sm:$0x1] %v658_v24  ;;  %v661_v27 = vsel %vm13545_vm4, 0, %v660_v25  ;;  %v664_v28 = vsel %vm13545_vm4, 0, %v663_v26 }
  0x33   : > { %v666_v29 = vld [vmem:[#allocation3 + $0x50] sm:$0x1]  ;;  %v669_v30 = vld [vmem:[#allocation3 + $0x5c] sm:$0x1]  ;;  %662 = vst [vmem:[#allocation3 + $0x38] sm:$0x1] %v661_v27 }
  0x34   : > { %665 = vst [vmem:[#allocation3 + $0x44] sm:$0x1] %v664_v28  ;;  %v667_v31 = vsel %vm13545_vm4, 0, %v666_v29  ;;  %v670_v32 = vsel %vm13545_vm4, 0, %v669_v30  ;;  %v672_v33 = vld [vmem:[#allocation3 + $0x68] sm:$0x1] }
  0x35   : > { %v675_v34 = vld [vmem:[#allocation3 + $0x74] sm:$0x1]  ;;  %668 = vst [vmem:[#allocation3 + $0x50] sm:$0x1] %v667_v31  ;;  %671 = vst [vmem:[#allocation3 + $0x5c] sm:$0x1] %v670_v32 }
  0x36   : > { %v673_v35 = vsel %vm13545_vm4, 0, %v672_v33  ;;  %v676_v36 = vsel %vm13545_vm4, 0, %v675_v34  ;;  %v678_v37 = vld [vmem:[#allocation3 + $0x80] sm:$0x1]  ;;  %v681_v38 = vld [vmem:[#allocation3 + $0x8c] sm:$0x1] }
  0x37   : > { %674 = vst [vmem:[#allocation3 + $0x68] sm:$0x1] %v673_v35  ;;  %677 = vst [vmem:[#allocation3 + $0x74] sm:$0x1] %v676_v36  ;;  %v679_v39 = vsel %vm13545_vm4, 0, %v678_v37  ;;  %v682_v40 = vsel %vm13545_vm4, 0, %v681_v38 }
  0x38   : > { %v684_v41 = vld [vmem:[#allocation3 + $0x98] sm:$0x1]  ;;  %v687_v42 = vld [vmem:[#allocation3 + $0xa4] sm:$0x1]  ;;  %680 = vst [vmem:[#allocation3 + $0x80] sm:$0x1] %v679_v39 }
  0x39   : > { %683 = vst [vmem:[#allocation3 + $0x8c] sm:$0x1] %v682_v40  ;;  %v685_v43 = vsel %vm13545_vm4, 0, %v684_v41  ;;  %v688_v44 = vsel %vm13545_vm4, 0, %v687_v42  ;;  %v690_v45 = vld [vmem:[#allocation3 + $0xb0] sm:$0x1] }
  0x3a   : > { %v693_v46 = vld [vmem:[#allocation3 + $0xbc] sm:$0x1]  ;;  %686 = vst [vmem:[#allocation3 + $0x98] sm:$0x1] %v685_v43  ;;  %689 = vst [vmem:[#allocation3 + $0xa4] sm:$0x1] %v688_v44 }
  0x3b   : > { %v691_v47 = vsel %vm13545_vm4, 0, %v690_v45  ;;  %v694_v48 = vsel %vm13545_vm4, 0, %v693_v46  ;;  %v696_v49 = vld [vmem:[#allocation3 + $0xc8] sm:$0x1]  ;;  %v699_v50 = vld [vmem:[#allocation3 + $0xd4] sm:$0x1] }
  0x3c   : > { %692 = vst [vmem:[#allocation3 + $0xb0] sm:$0x1] %v691_v47  ;;  %695 = vst [vmem:[#allocation3 + $0xbc] sm:$0x1] %v694_v48  ;;  %v697_v51 = vsel %vm13545_vm4, 0, %v696_v49  ;;  %v700_v52 = vsel %vm13545_vm4, 0, %v699_v50 }
  0x3d   : > { %v702_v53 = vld [vmem:[#allocation3 + $0xe0] sm:$0x1]  ;;  %v705_v55 = vld [vmem:[#allocation3 + $0xec] sm:$0x1]  ;;  %698 = vst [vmem:[#allocation3 + $0xc8] sm:$0x1] %v697_v51 }
  0x3e   : > { %701 = vst [vmem:[#allocation3 + $0xd4] sm:$0x1] %v700_v52  ;;  %v703_v56 = vsel %vm13545_vm4, 0, %v702_v53  ;;  %v706_v57 = vsel %vm13545_vm4, 0, %v705_v55 }
  0x3f   : > { %704 = vst [vmem:[#allocation3 + $0xe0] sm:$0x1] %v703_v56  ;;  %707 = vst [vmem:[#allocation3 + $0xec] sm:$0x1] %v706_v57 }
  0x40   : > { %13337 = dma.done.wait [#allocation4], 2304 }
  0x41   : > { %13338 = vsyncadd [#allocation4], 4294964992  ;;  %11317 = vmatprep.mubr.bf16.mxu1 %v13453_v0  ;;  %v12238_v58 = vld [vmem:[%s17703_s1] sm:$0xff]   ;;  %v12239_v59 = vld [vmem:[%s17703_s1 + $0x8] sm:$0xff]   ;;  %vm2437_vm5 = vsmask.f32 3328 }
  0x42   : > { %11301 = vmatprep.subr.bf16.mxu1 %v12238_v58  ;;  %v12240_v54 = vld [vmem:[%s17703_s1 + $0x10] sm:$0xff]   ;;  %v12241_v0 = vld [vmem:[%s17703_s1 + $0x18] sm:$0xff]   ;;  %v12242_v60 = vld [vmem:[%s17703_s1 + $0x20] sm:$0xff]   ;;  %vm2438_vm6 = vsmask.f32 7440  ;;  %vm2220_vm8 = vcmask 1043456  }
  0x43   : > { %11302 = vmatpush3.bf16.msra.mxu1 %v12238_v58  ;;  %v12243_v61 = vld [vmem:[%s17703_s1 + $0x28] sm:$0xff]   ;;  %v12244_v62 = vld [vmem:[%s17703_s1 + $0x30] sm:$0xff]   ;;  %v12245_v63 = vld [vmem:[%s17703_s1 + $0x38] sm:$0xff]   ;;  %vm1857_vm9 = vsmask.f32 4368  ;;  %vm3564_vm12 = vcmask 1042432  }
  0x44   : > { %11303 = vmatprep.subr.bf16.mxu1 %v12239_v59  ;;  %v12246_v20 = vld [vmem:[%s17707_s5] sm:$0xff]   ;;  %v12247_v21 = vld [vmem:[%s17707_s5 + $0x8] sm:$0xff]   ;;  %v12248_v22 = vld [vmem:[%s17707_s5 + $0x10] sm:$0xff]   ;;  %vm3565_vm13 = vcmask 1046532   ;;  %vm9783_vm15 = vcmask 7168  }
  0x45   : > { %v12249_v23 = vld [vmem:[%s17707_s5 + $0x18] sm:$0xff]   ;;  %v12250_v24 = vld [vmem:[%s17707_s5 + $0x20] sm:$0xff]   ;;  %v12251_v25 = vld [vmem:[%s17707_s5 + $0x28] sm:$0xff]  }
  0x46   : > { %v12252_v26 = vld [vmem:[%s17707_s5 + $0x30] sm:$0xff]   ;;  %v13666_v27 = vld [vmem:[%s17704_s2] ss:$0 sm:$0xff]  ;;  %vm13997_vm7 = vmor %vm2437_vm5, %vm2438_vm6 }
  0x47   : > { %11304 = vmatpush3.bf16.msra.mxu1 %v12239_v59  ;;  %vm14089_vm10 = vmand %vm2220_vm8, %vm646_vm3 }
  0x48   : > { %11305 = vmatprep.subr.bf16.mxu1 %v12240_v54  ;;  %vm14100_vm11 = vmor %vm584_vm1, %vm1857_vm9  ;;  %vm9928_vm1 = vcmask 1041408  }
  0x49   : > { %vm14801_vm14 = vmor %vm3564_vm12, %vm3565_vm13 }
  0x4b   : > { %11306 = vmatpush3.bf16.msra.mxu1 %v12240_v54 }
  0x4c   : > { %11307 = vmatprep.subr.bf16.mxu1 %v12241_v0 }
  0x4f   : > { %11308 = vmatpush3.bf16.msra.mxu1 %v12241_v0 }
  0x50   : > { %11309 = vmatprep.subr.bf16.mxu1 %v12242_v60 }
  0x53   : > { %11310 = vmatpush3.bf16.msra.mxu1 %v12242_v60 }
  0x54   : > { %11311 = vmatprep.subr.bf16.mxu1 %v12243_v61 }
  0x57   : > { %11312 = vmatpush3.bf16.msra.mxu1 %v12243_v61 }
  0x58   : > { %11313 = vmatprep.subr.bf16.mxu1 %v12244_v62 }
  0x5b   : > { %11314 = vmatpush3.bf16.msra.mxu1 %v12244_v62 }
  0x5c   : > { %11315 = vmatprep.subr.bf16.mxu1 %v12245_v63 }
  0x5f   : > { %11316 = vmatpush3.bf16.msra.mxu1 %v12245_v63 }
  0x60   : > { %11353 = vmatprep.subr.bf16.mxu1 %v12246_v20 }
  0x62   : > { %11318 = vmatmul.mubr.bf16.vlgmr.msra.gmra.mrb[0].mxu1 %v13455_v1 }
  0x63   : > { %11321 = vmatprep.mubr.bf16.mxu1 %v13457_v2  ;;  %11354 = vmatpush3.bf16.msra.mxu1 %v12246_v20 }
  0x64   : > { %11355 = vmatprep.subr.bf16.mxu1 %v12247_v21 }
  0x67   : > { %11356 = vmatpush3.bf16.msra.mxu1 %v12247_v21 }
  0x68   : > { %11357 = vmatprep.subr.bf16.mxu1 %v12248_v22 }
  0x6a   : > { %11322 = vmatmul.mubr.bf16.gmra.mrb[4].mxu1 %v13469_v3 }
  0x6b   : > { %11325 = vmatprep.mubr.bf16.mxu1 %v13471_v4  ;;  %11358 = vmatpush3.bf16.msra.mxu1 %v12248_v22 }
  0x6c   : > { %11359 = vmatprep.subr.bf16.mxu1 %v12249_v23 }
  0x6f   : > { %11360 = vmatpush3.bf16.msra.mxu1 %v12249_v23 }
  0x70   : > { %11361 = vmatprep.subr.bf16.mxu1 %v12250_v24 }
  0x72   : > { %11326 = vmatmul.mubr.bf16.gmra.mrb[8].mxu1 %v13473_v5 }
  0x73   : > { %11329 = vmatprep.mubr.bf16.mxu1 %v13475_v6  ;;  %11362 = vmatpush3.bf16.msra.mxu1 %v12250_v24 }
  0x74   : > { %11363 = vmatprep.subr.bf16.mxu1 %v12251_v25 }
  0x77   : > { %11364 = vmatpush3.bf16.msra.mxu1 %v12251_v25 }
  0x78   : > { %11365 = vmatprep.subr.bf16.mxu1 %v12252_v26 }
  0x7a   : > { %11330 = vmatmul.mubr.bf16.gmra.mrb[12].mxu1 %v13477_v7 }
  0x7b   : > { %11333 = vmatprep.mubr.bf16.mxu1 %v13479_v8  ;;  %11366 = vmatpush3.bf16.msra.mxu1 %v12252_v26 }
  0x82   : > { %11334 = vmatmul.mubr.bf16.gmra.mrb[16].mxu1 %v13481_v9 }
  0x83   : > { %11337 = vmatprep.mubr.bf16.mxu1 %v13483_v10 }
  0x8a   : > { %11338 = vmatmul.mubr.bf16.gmra.mrb[20].mxu1 %v13485_v11 }
  0x8b   : > { %11341 = vmatprep.mubr.bf16.mxu1 %v13487_v12 }
  0x92   : > { %11342 = vmatmul.mubr.bf16.gmra.mrb[24].mxu1 %v13489_v13 }
  0x93   : > { %11345 = vmatprep.mubr.bf16.mxu1 %v13491_v14 }
  0x9a   : > { %11346 = vmatmul.mubr.bf16.gmra.mrb[28].mxu1 %v13493_v15 }
  0x9b   : > { %11349 = vmatprep.mubr.bf16.mxu1 %v13495_v16 }
  0xa2   : > { %11350 = vmatmul.mubr.bf16.gmra.mrb[32].mxu1 %v13497_v17  ;;  %v12253_v17 = vld [vmem:[%s17707_s5 + $0x38] sm:$0xff]  }
  0xa3   : > { %11367 = vmatprep.subr.bf16.mxu1 %v12253_v17 }
  0xa4   : > { %11368 = vmatpush3.bf16.msra.mxu1 %v12253_v17 }
 0x135   : > { %v11319_v28 = vpop.f32.mrb[0].mxu1 }
 0x136   : > { %v13669_v29 = vadd.f32 %v11319_v28, %v13666_v27  ;;  %v836_v30 = vpop.f32.mrb[1].mxu1 }
 0x137   : > { %v13672_v31 = vadd.f32 %v13666_v27, %v836_v30  ;;  %v11320_v32 = vpop.f32.mrb[2].mxu1 }
 0x138   : > { %v10087_v33 = vmul.f32 -1.442695, %v13669_v29  ;;  %v13676_v34 = vadd.f32 %v11320_v32, %v13666_v27  ;;  %v839_v35 = vpop.f32.mrb[3].mxu1 }
 0x139   : > { %v10085_v36 = vmul.f32 -1.442695, %v13672_v31  ;;  %v13680_v37 = vadd.f32 %v13666_v27, %v839_v35 }
 0x13a   : > { %12412 = vpow2.f32 %v10087_v33  ;;  %v10088_v38 = vmul.f32 -1.442695, %v13676_v34 }
 0x13b   : > { %12414 = vpow2.f32 %v10085_v36  ;;  %v10086_v39 = vmul.f32 -1.442695, %v13680_v37 }
 0x13c   : > { %12416 = vpow2.f32 %v10088_v38 }
 0x13d   : > { %12418 = vpow2.f32 %v10086_v39  ;;  %v11323_v40 = vpop.f32.mrb[4].mxu1 }
 0x13e   : > { %v13685_v41 = vadd.f32 %v11323_v40, %v13666_v27  ;;  %v852_v42 = vpop.f32.mrb[5].mxu1 }
 0x13f   : > { %v13688_v43 = vadd.f32 %v13666_v27, %v852_v42  ;;  %v11324_v44 = vpop.f32.mrb[6].mxu1 }
 0x140   : > { %v10091_v45 = vmul.f32 -1.442695, %v13685_v41  ;;  %v13692_v46 = vadd.f32 %v11324_v44, %v13666_v27  ;;  %v855_v47 = vpop.f32.mrb[7].mxu1 }
 0x141   : > { %v10089_v48 = vmul.f32 -1.442695, %v13688_v43  ;;  %v13696_v49 = vadd.f32 %v13666_v27, %v855_v47 }
 0x142   : > { %12420 = vpow2.f32 %v10091_v45  ;;  %v10092_v50 = vmul.f32 -1.442695, %v13692_v46 }
 0x143   : > { %12422 = vpow2.f32 %v10089_v48  ;;  %v10090_v51 = vmul.f32 -1.442695, %v13696_v49 }
 0x144   : > { %v12413_v52 = vpop.eup %12412  ;;  %12424 = vpow2.f32 %v10092_v50 }
 0x145   : > { %v12415_v53 = vpop.eup %12414  ;;  %v1089_v55 = vadd.f32 1.0, %v12413_v52  ;;  %12426 = vpow2.f32 %v10090_v51  ;;  %v11327_v56 = vpop.f32.mrb[8].mxu1 }
 0x146   : > { %v12417_v57 = vpop.eup %12416  ;;  %v1087_v58 = vadd.f32 1.0, %v12415_v53  ;;  %v13701_v59 = vadd.f32 %v11327_v56, %v13666_v27  ;;  %v868_v54 = vpop.f32.mrb[9].mxu1 }
 0x147   : > { %v12419_v0 = vpop.eup %12418  ;;  %12428 = vrcp.f32 %v1089_v55  ;;  %v1090_v60 = vadd.f32 1.0, %v12417_v57  ;;  %v13704_v61 = vadd.f32 %v13666_v27, %v868_v54  ;;  %v11328_v62 = vpop.f32.mrb[10].mxu1 }
 0x148   : > { %12430 = vrcp.f32 %v1087_v58  ;;  %v1088_v63 = vadd.f32 1.0, %v12419_v0  ;;  %v10095_v20 = vmul.f32 -1.442695, %v13701_v59  ;;  %v13708_v21 = vadd.f32 %v11328_v62, %v13666_v27  ;;  %v871_v22 = vpop.f32.mrb[11].mxu1 }
 0x149   : > { %12432 = vrcp.f32 %v1090_v60  ;;  %v10093_v23 = vmul.f32 -1.442695, %v13704_v61  ;;  %v13712_v24 = vadd.f32 %v13666_v27, %v871_v22 }
 0x14a   : > { %12434 = vrcp.f32 %v1088_v63  ;;  %v10096_v25 = vmul.f32 -1.442695, %v13708_v21 }
 0x14b   : > { %12436 = vpow2.f32 %v10095_v20  ;;  %v10094_v26 = vmul.f32 -1.442695, %v13712_v24 }
 0x14c   : > { %v12421_v17 = vpop.eup %12420  ;;  %12438 = vpow2.f32 %v10093_v23 }
 0x14d   : > { %v12423_v28 = vpop.eup %12422  ;;  %v1093_v30 = vadd.f32 1.0, %v12421_v17  ;;  %12440 = vpow2.f32 %v10096_v25  ;;  %v11331_v32 = vpop.f32.mrb[12].mxu1 }
 0x14e   : > { %v12425_v33 = vpop.eup %12424  ;;  %v1091_v35 = vadd.f32 1.0, %v12423_v28  ;;  %12442 = vpow2.f32 %v10094_v26  ;;  %v13717_v36 = vadd.f32 %v11331_v32, %v13666_v27  ;;  %v884_v38 = vpop.f32.mrb[13].mxu1 }
 0x14f   : > { %v12427_v39 = vpop.eup %12426  ;;  %12444 = vrcp.f32 %v1093_v30  ;;  %v1094_v40 = vadd.f32 1.0, %v12425_v33  ;;  %v13720_v42 = vadd.f32 %v13666_v27, %v884_v38  ;;  %v11332_v44 = vpop.f32.mrb[14].mxu1 }
 0x150   : > { %12446 = vrcp.f32 %v1091_v35  ;;  %v1092_v45 = vadd.f32 1.0, %v12427_v39  ;;  %v10099_v47 = vmul.f32 -1.442695, %v13717_v36  ;;  %v13724_v48 = vadd.f32 %v11332_v44, %v13666_v27  ;;  %v887_v50 = vpop.f32.mrb[15].mxu1 }
 0x151   : > { %v12429_v51 = vpop.eup %12428  ;;  %12448 = vrcp.f32 %v1094_v40  ;;  %v10097_v52 = vmul.f32 -1.442695, %v13720_v42  ;;  %v13728_v53 = vadd.f32 %v13666_v27, %v887_v50 }
 0x152   : > { %v12431_v55 = vpop.eup %12430  ;;  %12450 = vrcp.f32 %v1092_v45  ;;  %v10100_v56 = vmul.f32 -1.442695, %v13724_v48  ;;  %v13736_v62 = vmul.f32 %v12429_v51, %v13669_v29 }
 0x153   : > { %v12433_v57 = vpop.eup %12432  ;;  %12452 = vpow2.f32 %v10099_v47  ;;  %v10098_v58 = vmul.f32 -1.442695, %v13728_v53  ;;  %v1195_v63 = vmul.f32 %v12431_v55, %v13672_v31 }
 0x154   : > { %v12435_v54 = vpop.eup %12434  ;;  %v13733_v0 = vmul.f32 %v12433_v57, %v13676_v34  ;;  %12454 = vpow2.f32 %v10097_v52  ;;  %17834 = vst [vmem:[#allocation25_spill] sm:$0xff] %v13736_v62 }
 0x155   : > { %v12437_v60 = vpop.eup %12436  ;;  %v1196_v20 = vmul.f32 %v12435_v54, %v13680_v37  ;;  %12456 = vpow2.f32 %v10100_v56  ;;  %v11335_v22 = vpop.f32.mrb[16].mxu1 }
 0x156   : > { %17833 = vst [vmem:[#allocation24_spill] sm:$0xff] %v13733_v0  ;;  %v12439_v23 = vpop.eup %12438  ;;  %v1097_v25 = vadd.f32 1.0, %v12437_v60  ;;  %12458 = vpow2.f32 %v10098_v58  ;;  %v13741_v26 = vadd.f32 %v11335_v22, %v13666_v27  ;;  %v900_v17 = vpop.f32.mrb[17].mxu1  ;;  %v1232_v28 = vpack.c.bf16 %v13733_v0, %v13736_v62 }
 0x157   : > { %v12441_v34 = vpop.eup %12440  ;;  %v1095_v30 = vadd.f32 1.0, %v12439_v23  ;;  %v13746_v29 = vadd.f32 %v13666_v27, %v900_v17  ;;  %v11336_v31 = vpop.f32.mrb[18].mxu1  ;;  %v1231_v32 = vpack.c.bf16 %v1196_v20, %v1195_v63 }
 0x158   : > { %v12443_v37 = vpop.eup %12442  ;;  %12460 = vrcp.f32 %v1097_v25  ;;  %v1098_v33 = vadd.f32 1.0, %v12441_v34  ;;  %v10103_v35 = vmul.f32 -1.442695, %v13741_v26  ;;  %v13750_v38 = vadd.f32 %v11336_v31, %v13666_v27  ;;  %v903_v39 = vpop.f32.mrb[19].mxu1 }
 0x159   : > { %v12445_v40 = vpop.eup %12444  ;;  %12462 = vrcp.f32 %v1095_v30  ;;  %v1096_v44 = vadd.f32 1.0, %v12443_v37  ;;  %v10101_v45 = vmul.f32 -1.442695, %v13746_v29  ;;  %v13754_v47 = vadd.f32 %v13666_v27, %v903_v39  ;;  %11369 = vmatprep.mubr.bf16.mxu1 %v1231_v32 }
 0x15a   : > { %v12447_v50 = vpop.eup %12446  ;;  %12464 = vrcp.f32 %v1098_v33  ;;  %v10104_v51 = vmul.f32 -1.442695, %v13750_v38  ;;  %11370 = vmatmul.mubr.bf16.vlgmr.msra.gmra.mrb[36].mxu1 %v1232_v28  ;;  %v13759_v57 = vmul.f32 %v12445_v40, %v13685_v41 }
 0x15b   : > { %v12449_v52 = vpop.eup %12448  ;;  %12466 = vrcp.f32 %v1096_v44  ;;  %v10102_v55 = vmul.f32 -1.442695, %v13754_v47  ;;  %v13765_v60 = vmul.f32 %v12447_v50, %v13688_v43 }
 0x15c   : > { %v12451_v56 = vpop.eup %12450  ;;  %17835 = vst [vmem:[#allocation26_spill] sm:$0xff] %v13759_v57  ;;  %v13762_v58 = vmul.f32 %v12449_v52, %v13692_v46  ;;  %12468 = vpow2.f32 %v10103_v35 }
 0x15d   : > { %v12453_v54 = vpop.eup %12452  ;;  %17837 = vst [vmem:[#allocation28_spill] sm:$0xff] %v13765_v60  ;;  %v13768_v63 = vmul.f32 %v12451_v56, %v13696_v49  ;;  %12470 = vpow2.f32 %v10101_v45  ;;  %v11339_v20 = vpop.f32.mrb[20].mxu1 }
 0x15e   : > { %17836 = vst [vmem:[#allocation27_spill] sm:$0xff] %v13762_v58  ;;  %v12455_v22 = vpop.eup %12454  ;;  %v1101_v23 = vadd.f32 1.0, %v12453_v54  ;;  %12472 = vpow2.f32 %v10104_v51  ;;  %v13771_v25 = vadd.f32 %v11339_v20, %v13666_v27  ;;  %v916_v41 = vpop.f32.mrb[21].mxu1  ;;  %v1234_v46 = vpack.c.bf16 %v13762_v58, %v13759_v57 }
 0x15f   : > { %17838 = vst [vmem:[#allocation29_spill] sm:$0xff] %v13768_v63  ;;  %v12457_v17 = vpop.eup %12456  ;;  %v1099_v34 = vadd.f32 1.0, %v12455_v22  ;;  %12474 = vpow2.f32 %v10102_v55  ;;  %v13776_v43 = vadd.f32 %v13666_v27, %v916_v41  ;;  %v11340_v49 = vpop.f32.mrb[22].mxu1  ;;  %v1233_v28 = vpack.c.bf16 %v13768_v63, %v13765_v60 }
 0x160   : > { %v12459_v30 = vpop.eup %12458  ;;  %12476 = vrcp.f32 %v1101_v23  ;;  %v1102_v31 = vadd.f32 1.0, %v12457_v17  ;;  %v10107_v32 = vmul.f32 -1.442695, %v13771_v25  ;;  %v13782_v37 = vadd.f32 %v11340_v49, %v13666_v27  ;;  %v919_v33 = vpop.f32.mrb[23].mxu1 }
 0x161   : > { %12478 = vrcp.f32 %v1099_v34  ;;  %v1100_v35 = vadd.f32 1.0, %v12459_v30  ;;  %v10105_v39 = vmul.f32 -1.442695, %v13776_v43  ;;  %v13786_v40 = vadd.f32 %v13666_v27, %v919_v33  ;;  %11373 = vmatprep.mubr.bf16.mxu1 %v1233_v28 }
 0x162   : > { %v12461_v44 = vpop.eup %12460  ;;  %12480 = vrcp.f32 %v1102_v31  ;;  %v10108_v45 = vmul.f32 -1.442695, %v13782_v37  ;;  %11374 = vmatmul.mubr.bf16.gmra.mrb[40].mxu1 %v1234_v46 }
 0x163   : > { %v12463_v50 = vpop.eup %12462  ;;  %12482 = vrcp.f32 %v1100_v35  ;;  %v10106_v51 = vmul.f32 -1.442695, %v13786_v40  ;;  %v13791_v56 = vmul.f32 %v12461_v44, %v13701_v59 }
 0x164   : > { %v12465_v52 = vpop.eup %12464  ;;  %12484 = vpow2.f32 %v10107_v32  ;;  %v13797_v23 = vmul.f32 %v12463_v50, %v13704_v61 }
 0x165   : > { %v12467_v55 = vpop.eup %12466  ;;  %17839 = vst [vmem:[#allocation30_spill] sm:$0xff] %v13791_v56  ;;  %v13794_v54 = vmul.f32 %v12465_v52, %v13708_v21  ;;  %12486 = vpow2.f32 %v10105_v39  ;;  %v11343_v20 = vpop.f32.mrb[24].mxu1 }
 0x166   : > { %v12469_v22 = vpop.eup %12468  ;;  %17841 = vst [vmem:[#allocation32_spill] sm:$0xff] %v13797_v23  ;;  %v13800_v41 = vmul.f32 %v12467_v55, %v13712_v24  ;;  %12488 = vpow2.f32 %v10108_v45  ;;  %v13803_v46 = vadd.f32 %v11343_v20, %v13666_v27  ;;  %v932_v17 = vpop.f32.mrb[25].mxu1 }
 0x167   : > { %17840 = vst [vmem:[#allocation31_spill] sm:$0xff] %v13794_v54  ;;  %v12471_v34 = vpop.eup %12470  ;;  %v1105_v59 = vadd.f32 1.0, %v12469_v22  ;;  %12490 = vpow2.f32 %v10106_v51  ;;  %v13806_v21 = vadd.f32 %v13666_v27, %v932_v17  ;;  %v11344_v49 = vpop.f32.mrb[26].mxu1  ;;  %v1236_v32 = vpack.c.bf16 %v13794_v54, %v13791_v56 }
 0x168   : > { %17842 = vst [vmem:[#allocation33_spill] sm:$0xff] %v13800_v41  ;;  %v12473_v28 = vpop.eup %12472  ;;  %v1103_v30 = vadd.f32 1.0, %v12471_v34  ;;  %v13809_v61 = vadd.f32 %v11344_v49, %v13666_v27  ;;  %v935_v31 = vpop.f32.mrb[27].mxu1  ;;  %v1235_v24 = vpack.c.bf16 %v13800_v41, %v13797_v23  ;;  %v10111_v39 = vmul.f32 -1.442695, %v13803_v46 }
 0x169   : > { %v12475_v33 = vpop.eup %12474  ;;  %12492 = vrcp.f32 %v1105_v59  ;;  %v1106_v35 = vadd.f32 1.0, %v12473_v28  ;;  %v13817_v44 = vadd.f32 %v13666_v27, %v935_v31  ;;  %v10109_v51 = vmul.f32 -1.442695, %v13806_v21 }
 0x16a   : > { %v12477_v45 = vpop.eup %12476  ;;  %12494 = vrcp.f32 %v1103_v30  ;;  %v1104_v50 = vadd.f32 1.0, %v12475_v33  ;;  %11377 = vmatprep.mubr.bf16.mxu1 %v1235_v24  ;;  %v10112_v55 = vmul.f32 -1.442695, %v13809_v61 }
 0x16b   : > { %v12479_v52 = vpop.eup %12478  ;;  %12496 = vrcp.f32 %v1106_v35  ;;  %11378 = vmatmul.mubr.bf16.gmra.mrb[44].mxu1 %v1236_v32  ;;  %v10110_v22 = vmul.f32 -1.442695, %v13817_v44  ;;  %v13823_v49 = vmul.f32 %v12477_v45, %v13717_v36 }
 0x16c   : > { %v12481_v20 = vpop.eup %12480  ;;  %12498 = vrcp.f32 %v1104_v50  ;;  %v13838_v45 = vmul.f32 %v12479_v52, %v13720_v42 }
 0x16d   : > { %v12483_v17 = vpop.eup %12482  ;;  %12500 = vpow2.f32 %v10111_v39  ;;  %v11347_v34 = vpop.f32.mrb[28].mxu1  ;;  %17843 = vst [vmem:[#allocation34_spill] sm:$0xff] %v13823_v49  ;;  %v13832_v32 = vmul.f32 %v12481_v20, %v13724_v48 }
 0x16e   : > { %v12485_v59 = vpop.eup %12484  ;;  %v13826_v28 = vmul.f32 %v12483_v17, %v13728_v53  ;;  %12502 = vpow2.f32 %v10109_v51  ;;  %v13829_v30 = vadd.f32 %v11347_v34, %v13666_v27  ;;  %v948_v31 = vpop.f32.mrb[29].mxu1  ;;  %17846 = vst [vmem:[#allocation37_spill] sm:$0xff] %v13838_v45 }
 0x16f   : > { %v12487_v24 = vpop.eup %12486  ;;  %17845 = vst [vmem:[#allocation36_spill] sm:$0xff] %v13832_v32  ;;  %v1109_v33 = vadd.f32 1.0, %v12485_v59  ;;  %12504 = vpow2.f32 %v10112_v55  ;;  %v13835_v35 = vadd.f32 %v13666_v27, %v948_v31  ;;  %v11348_v39 = vpop.f32.mrb[30].mxu1  ;;  %v1238_v31 = vpack.c.bf16 %v13832_v32, %v13823_v49 }
 0x170   : > { %17844 = vst [vmem:[#allocation35_spill] sm:$0xff] %v13826_v28  ;;  %v12489_v36 = vpop.eup %12488  ;;  %v1107_v53 = vadd.f32 1.0, %v12487_v24  ;;  %12506 = vpow2.f32 %v10110_v22  ;;  %v13841_v50 = vadd.f32 %v11348_v39, %v13666_v27  ;;  %v951_v51 = vpop.f32.mrb[31].mxu1  ;;  %v10115_v20 = vmul.f32 -1.442695, %v13829_v30 }
 0x171   : > { %v12491_v17 = vpop.eup %12490  ;;  %12508 = vrcp.f32 %v1109_v33  ;;  %v1110_v48 = vadd.f32 1.0, %v12489_v36  ;;  %v13845_v55 = vadd.f32 %v13666_v27, %v951_v51  ;;  %v10113_v59 = vmul.f32 -1.442695, %v13835_v35 }
 0x172   : > { %12510 = vrcp.f32 %v1107_v53  ;;  %v1108_v34 = vadd.f32 1.0, %v12491_v17  ;;  %v1237_v42 = vpack.c.bf16 %v13826_v28, %v13838_v45  ;;  %v10116_v22 = vmul.f32 -1.442695, %v13841_v50 }
 0x173   : > { %v12493_v52 = vpop.eup %12492  ;;  %12512 = vrcp.f32 %v1110_v48  ;;  %v10114_v33 = vmul.f32 -1.442695, %v13845_v55 }
 0x174   : > { %v12495_v24 = vpop.eup %12494  ;;  %12514 = vrcp.f32 %v1108_v34  ;;  %11381 = vmatprep.mubr.bf16.mxu1 %v1237_v42  ;;  %v13873_v15 = vmul.f32 %v12493_v52, %v13741_v26 }
 0x175   : > { %v12497_v39 = vpop.eup %12496  ;;  %12516 = vpow2.f32 %v10115_v20  ;;  %11382 = vmatmul.mubr.bf16.gmra.mrb[48].mxu1 %v1238_v31  ;;  %v11351_v36 = vpop.f32.mrb[32].mxu1  ;;  %v13855_v51 = vmul.f32 %v12495_v24, %v13746_v29 }
 0x176   : > { %v12499_v53 = vpop.eup %12498  ;;  %12518 = vpow2.f32 %v10113_v59  ;;  %v13858_v17 = vadd.f32 %v11351_v36, %v13666_v27  ;;  %v964_v48 = vpop.f32.mrb[33].mxu1  ;;  %v13861_v16 = vmul.f32 %v12497_v39, %v13750_v38  ;;  %17850 = vst [vmem:[#allocation41_spill] sm:$0xff] %v13873_v15 }
 0x177   : > { %17847 = vst [vmem:[#allocation38_spill] sm:$0xff] %v13855_v51  ;;  %v12501_v18 = vpop.eup %12500  ;;  %v13864_v34 = vmul.f32 %v12499_v53, %v13754_v47  ;;  %12520 = vpow2.f32 %v10116_v22  ;;  %v13867_v20 = vadd.f32 %v13666_v27, %v964_v48  ;;  %v11352_v42 = vpop.f32.mrb[34].mxu1 }
 0x178   : > { %17848 = vst [vmem:[#allocation39_spill] sm:$0xff] %v13861_v16  ;;  %v12503_v31 = vpop.eup %12502  ;;  %v1113_v29 = vadd.f32 1.0, %v12501_v18  ;;  %12522 = vpow2.f32 %v10114_v33  ;;  %v13870_v59 = vadd.f32 %v11352_v42, %v13666_v27  ;;  %v967_v24 = vpop.f32.mrb[35].mxu1  ;;  %v10119_v18 = vmul.f32 -1.442695, %v13858_v17 }
 0x179   : > { %17849 = vst [vmem:[#allocation40_spill] sm:$0xff] %v13864_v34  ;;  %v12505_v36 = vpop.eup %12504  ;;  %v1111_v38 = vadd.f32 1.0, %v12503_v31  ;;  %v13876_v47 = vadd.f32 %v13666_v27, %v967_v24  ;;  %v1239_v22 = vpack.c.bf16 %v13864_v34, %v13855_v51  ;;  %v10117_v42 = vmul.f32 -1.442695, %v13867_v20  ;;  %v2278_v34 = vld [vmem:[#allocation3 + $0x6c] sm:$0xf] }
 0x17a   : > { %v12507_v39 = vpop.eup %12506  ;;  %12524 = vrcp.f32 %v1113_v29  ;;  %v1114_v53 = vadd.f32 1.0, %v12505_v36  ;;  %v1240_v26 = vpack.c.bf16 %v13861_v16, %v13873_v15  ;;  %v10120_v27 = vmul.f32 -1.442695, %v13870_v59 }
 0x17b   : > { %v12509_v33 = vpop.eup %12508  ;;  %12526 = vrcp.f32 %v1111_v38  ;;  %v1112_v48 = vadd.f32 1.0, %v12507_v39  ;;  %11385 = vmatprep.mubr.bf16.mxu1 %v1239_v22  ;;  %v10118_v29 = vmul.f32 -1.442695, %v13876_v47 }
 0x17c   : > { %v12511_v52 = vpop.eup %12510  ;;  %12528 = vrcp.f32 %v1114_v53  ;;  %v13896_v13 = vmul.f32 %v12509_v33, %v13771_v25 }
 0x17d   : > { %v12513_v31 = vpop.eup %12512  ;;  %12530 = vrcp.f32 %v1112_v48  ;;  %11386 = vmatmul.mubr.bf16.gmra.mrb[52].mxu1 %v1240_v26  ;;  %v13887_v38 = vmul.f32 %v12511_v52, %v13776_v43 }
 0x17e   : > { %v12515_v24 = vpop.eup %12514  ;;  %12532 = vpow2.f32 %v10119_v18  ;;  %v13890_v22 = vmul.f32 %v12513_v31, %v13782_v37  ;;  %17854 = vst [vmem:[#allocation45_spill] sm:$0xff] %v13896_v13 }
 0x17f   : > { %v12517_v36 = vpop.eup %12516  ;;  %17851 = vst [vmem:[#allocation42_spill] sm:$0xff] %v13887_v38  ;;  %v13893_v39 = vmul.f32 %v12515_v24, %v13786_v40  ;;  %12534 = vpow2.f32 %v10117_v42 }
 0x180   : > { %17852 = vst [vmem:[#allocation43_spill] sm:$0xff] %v13890_v22  ;;  %v12519_v53 = vpop.eup %12518  ;;  %v1117_v14 = vadd.f32 1.0, %v12517_v36  ;;  %12536 = vpow2.f32 %v10120_v27  ;;  %v1242_v40 = vpack.c.bf16 %v13890_v22, %v13896_v13 }
 0x181   : > { %17853 = vst [vmem:[#allocation44_spill] sm:$0xff] %v13893_v39  ;;  %v12521_v48 = vpop.eup %12520  ;;  %v1115_v26 = vadd.f32 1.0, %v12519_v53  ;;  %12538 = vpow2.f32 %v10118_v29  ;;  %v1241_v43 = vpack.c.bf16 %v13893_v39, %v13887_v38 }
 0x182   : > { %v12523_v18 = vpop.eup %12522  ;;  %12540 = vrcp.f32 %v1117_v14  ;;  %v1118_v37 = vadd.f32 1.0, %v12521_v48 }
 0x183   : > { %12542 = vrcp.f32 %v1115_v26  ;;  %v1116_v52 = vadd.f32 1.0, %v12523_v18  ;;  %11389 = vmatprep.mubr.bf16.mxu1 %v1241_v43 }
 0x184   : > { %v12525_v42 = vpop.eup %12524  ;;  %12544 = vrcp.f32 %v1118_v37 }
 0x185   : > { %v12527_v27 = vpop.eup %12526  ;;  %12546 = vrcp.f32 %v1116_v52  ;;  %11390 = vmatmul.mubr.bf16.gmra.mrb[56].mxu1 %v1242_v40  ;;  %v13912_v53 = vmul.f32 %v12525_v42, %v13803_v46 }
 0x186   : > { %v12529_v25 = vpop.eup %12528  ;;  %v13906_v14 = vmul.f32 %v12527_v27, %v13806_v21 }
 0x187   : > { %v12531_v33 = vpop.eup %12530  ;;  %v13903_v31 = vmul.f32 %v12529_v25, %v13809_v61  ;;  %17858 = vst [vmem:[#allocation49_spill] sm:$0xff] %v13912_v53 }
 0x188   : > { %v12533_v29 = vpop.eup %12532  ;;  %17856 = vst [vmem:[#allocation47_spill] sm:$0xff] %v13906_v14  ;;  %v13909_v24 = vmul.f32 %v12531_v33, %v13817_v44 }
 0x189   : > { %17855 = vst [vmem:[#allocation46_spill] sm:$0xff] %v13903_v31  ;;  %v12535_v36 = vpop.eup %12534  ;;  %v1121_v48 = vadd.f32 1.0, %v12533_v29  ;;  %v1244_v21 = vpack.c.bf16 %v13903_v31, %v13912_v53 }
 0x18a   : > { %17857 = vst [vmem:[#allocation48_spill] sm:$0xff] %v13909_v24  ;;  %v12537_v26 = vpop.eup %12536  ;;  %v1119_v43 = vadd.f32 1.0, %v12535_v36  ;;  %v1243_v18 = vpack.c.bf16 %v13909_v24, %v13906_v14 }
 0x18b   : > { %v12539_v37 = vpop.eup %12538  ;;  %12548 = vrcp.f32 %v1121_v48  ;;  %v1122_v61 = vadd.f32 1.0, %v12537_v26 }
 0x18c   : > { %v12541_v52 = vpop.eup %12540  ;;  %12550 = vrcp.f32 %v1119_v43  ;;  %v1120_v44 = vadd.f32 1.0, %v12539_v37  ;;  %11393 = vmatprep.mubr.bf16.mxu1 %v1243_v18 }
 0x18d   : > { %v12543_v40 = vpop.eup %12542  ;;  %12552 = vrcp.f32 %v1122_v61  ;;  %11394 = vmatmul.mubr.bf16.gmra.mrb[60].mxu1 %v1244_v21  ;;  %v13928_v29 = vmul.f32 %v12541_v52, %v13829_v30  ;;  %v12254_v52 = vld [vmem:[%s17709_s7] sm:$0xff]  }
 0x18e   : > { %v12545_v46 = vpop.eup %12544  ;;  %12554 = vrcp.f32 %v1120_v44  ;;  %v13922_v25 = vmul.f32 %v12543_v40, %v13835_v35  ;;  %11457 = vmatprep.subr.bf16.mxu0 %v12254_v52  ;;  %v12259_v44 = vld [vmem:[%s17709_s7 + $0x48] sm:$0xff]   ;;  %v12260_v40 = vld [vmem:[%s17709_s7 + $0x20] sm:$0xff]  }
 0x18f   : > { %v12547_v42 = vpop.eup %12546  ;;  %v13919_v27 = vmul.f32 %v12545_v46, %v13841_v50  ;;  %17862 = vst [vmem:[#allocation53_spill] sm:$0xff] %v13928_v29  ;;  %11458 = vmatpush3.bf16.msra.mxu0 %v12254_v52  ;;  %v12261_v46 = vld [vmem:[%s17709_s7 + $0x50] sm:$0xff]  }
 0x190   : > { %17860 = vst [vmem:[#allocation51_spill] sm:$0xff] %v13922_v25  ;;  %v13925_v33 = vmul.f32 %v12547_v42, %v13845_v55  ;;  %v12262_v42 = vld [vmem:[%s17709_s7 + $0x28] sm:$0xff]   ;;  %v12271_v52 = vld [vmem:[%s17709_s7 + $0x70] sm:$0xff]  }
 0x191   : > { %17859 = vst [vmem:[#allocation50_spill] sm:$0xff] %v13919_v27  ;;  %v1246_v48 = vpack.c.bf16 %v13919_v27, %v13928_v29 }
 0x192   : > { %17861 = vst [vmem:[#allocation52_spill] sm:$0xff] %v13925_v33  ;;  %v1245_v36 = vpack.c.bf16 %v13925_v33, %v13922_v25 }
 0x194   : > { %11397 = vmatprep.mubr.bf16.mxu1 %v1245_v36  ;;  %v12263_v36 = vld [vmem:[%s17709_s7 + $0x58] sm:$0xff]  }
 0x195   : > { %v12549_v26 = vpop.eup %12548  ;;  %11398 = vmatmul.mubr.bf16.gmra.mrb[64].mxu1 %v1246_v48  ;;  %v12264_v48 = vld [vmem:[%s17709_s7 + $0x30] sm:$0xff]  }
 0x196   : > { %v12551_v50 = vpop.eup %12550  ;;  %v1229_v35 = vmul.f32 %v12549_v26, %v13858_v17  ;;  %v12255_v17 = vld [vmem:[%s17709_s7 + $0x8] sm:$0xff]   ;;  %v12265_v26 = vld [vmem:[%s17709_s7 + $0x60] sm:$0xff]  }
 0x197   : > { %v12553_v43 = vpop.eup %12552  ;;  %v13937_v37 = vmul.f32 %v12551_v50, %v13867_v20  ;;  %11459 = vmatprep.subr.bf16.mxu0 %v12255_v17  ;;  %v12256_v20 = vld [vmem:[%s17709_s7 + $0x10] sm:$0xff]   ;;  %v12266_v50 = vld [vmem:[%s17709_s7 + $0x38] sm:$0xff]  }
 0x198   : > { %v12555_v18 = vpop.eup %12554  ;;  %v1230_v55 = vmul.f32 %v12553_v43, %v13870_v59  ;;  %11460 = vmatpush3.bf16.msra.mxu0 %v12255_v17  ;;  %v12257_v59 = vld [vmem:[%s17709_s7 + $0x40] sm:$0xff]   ;;  %v12267_v43 = vld [vmem:[%s17709_s7 + $0x68] sm:$0xff]  }
 0x199   : > { %17863 = vst [vmem:[#allocation54_spill] sm:$0xff] %v13937_v37  ;;  %v13940_v30 = vmul.f32 %v12555_v18, %v13876_v47  ;;  %11461 = vmatprep.subr.bf16.mxu0 %v12256_v20  ;;  %11405 = vmatprep.subr.bf16.mxu1 %v12257_v59  ;;  %v12258_v47 = vld [vmem:[%s17709_s7 + $0x18] sm:$0xff]   ;;  %v2367_v18 = vld [vmem:[#allocation3] sm:$0xf] }
 0x19a   : > { %v1248_v61 = vpack.c.bf16 %v1230_v55, %v1229_v35  ;;  %11406 = vmatpush3.bf16.msra.mxu1 %v12257_v59  ;;  %v13986_v35 = vld [vmem:[#allocation3 + $0x4] sm:$0xf] }
 0x19b   : > { %17864 = vst [vmem:[#allocation55_spill] sm:$0xff] %v13940_v30  ;;  %v1247_v21 = vpack.c.bf16 %v13940_v30, %v13937_v37  ;;  %11407 = vmatprep.subr.bf16.mxu1 %v12259_v44  ;;  %v10228_v55 = vcombine.low %v2367_v18, %v13986_v35  ;;  %v2450_v59 = vshll.u32 %v13986_v35, 16 }
 0x19c   : > { %11462 = vmatpush3.bf16.msra.mxu0 %v12256_v20 }
 0x19d   : > { %11401 = vmatprep.mubr.bf16.mxu1 %v1247_v21  ;;  %11463 = vmatprep.subr.bf16.mxu0 %v12258_v47  ;;  %v2444_v21 = vshll.u32 %v2367_v18, 16 }
 0x19e   : > { %11402 = vmatmul.mubr.bf16.gmra.mrb[68].mxu1 %v1248_v61  ;;  %v2441_v61 = vshrl.u32 %v2367_v18, 16  ;;  %11473 = vmatprep.mubr.bf16.mxu0 %v10228_v55 }
 0x19f   : > { %11408 = vmatpush3.bf16.msra.mxu1 %v12259_v44  ;;  %v2446_v20 = vrot.slane %v2444_v21, 5 }
 0x1a0   : > { %11464 = vmatpush3.bf16.msra.mxu0 %v12258_v47  ;;  %11409 = vmatprep.subr.bf16.mxu1 %v12261_v46  ;;  %v2443_v17 = vrot.slane %v2441_v61, 4  ;;  %v2454_v47 = vshrl.u32 %v13986_v35, 16  ;;  %v14004_v61 = vld [vmem:[%s17708_s6] ss:$0 sm:$0xff] }
 0x1a1   : > { %11465 = vmatprep.subr.bf16.mxu0 %v12260_v40 }
 0x1a2   : > { %v2447_v44 = vor.u32 %v2446_v20, %v2443_v17 }
 0x1a3   : > { %11410 = vmatpush3.bf16.msra.mxu1 %v12261_v46  ;;  %v2456_v46 = vrot.slane %v2454_v47, 4 }
 0x1a4   : > { %11466 = vmatpush3.bf16.msra.mxu0 %v12260_v40  ;;  %11411 = vmatprep.subr.bf16.mxu1 %v12263_v36  ;;  %v2452_v40 = vrot.slane %v2450_v59, 5 }
 0x1a5   : > { %11467 = vmatprep.subr.bf16.mxu0 %v12262_v42 }
 0x1a7   : > { %11412 = vmatpush3.bf16.msra.mxu1 %v12263_v36  ;;  %v2419_v36 = vld [vmem:[#allocation3 + $0x8] sm:$0x1] }
 0x1a8   : > { %11468 = vmatpush3.bf16.msra.mxu0 %v12262_v42  ;;  %11413 = vmatprep.subr.bf16.mxu1 %v12265_v26  ;;  %v2448_v42 = vrot.slane %v2447_v44, 4 }
 0x1a9   : > { %11469 = vmatprep.subr.bf16.mxu0 %v12264_v48 }
 0x1aa   : > { %v2453_v21 = vsel %vm13997_vm7, %v2448_v42, %v2452_v40 }
 0x1ab   : > { %11414 = vmatpush3.bf16.msra.mxu1 %v12265_v26  ;;  %v2460_v26 = vshll.u32 %v2419_v36, 16 }
 0x1ac   : > { %11470 = vmatpush3.bf16.msra.mxu0 %v12264_v48  ;;  %11415 = vmatprep.subr.bf16.mxu1 %v12267_v43  ;;  %v2457_v48 = vor.u32 %v2456_v46, %v2452_v40 }
 0x1ad   : > { %11471 = vmatprep.subr.bf16.mxu0 %v12266_v50  ;;  %v2462_v18 = vrot.slane %v2460_v26, 5 }
 0x1af   : > { %11416 = vmatpush3.bf16.msra.mxu1 %v12267_v43  ;;  %v2458_v43 = vrot.slane %v2457_v48, 4 }
 0x1b0   : > { %11472 = vmatpush3.bf16.msra.mxu0 %v12266_v50  ;;  %11417 = vmatprep.subr.bf16.mxu1 %v12271_v52  ;;  %v12273_v50 = vld [vmem:[%s17709_s7 + $0x78] sm:$0xff]  }
 0x1b3   : > { %11418 = vmatpush3.bf16.msra.mxu1 %v12271_v52  ;;  %v2463_v52 = vsel %vm13997_vm7, %v2458_v43, %v2462_v18 }
 0x1b4   : > { %11419 = vmatprep.subr.bf16.mxu1 %v12273_v50  ;;  %v10202_v17 = vcombine.low %v2453_v21, %v2463_v52 }
 0x1b6   : > { %11421 = vmatprep.mubr.bf16.mxu1 %v10202_v17 }
 0x1b7   : > { %11420 = vmatpush3.bf16.msra.mxu1 %v12273_v50 }
 0x22d   : > { %v11371_v20 = vpop.f32.mrb[36].mxu1 }
 0x22e   : > { %v14011_v59 = vadd.f32 %v11371_v20, %v14004_v61  ;;  %v1354_v47 = vpop.f32.mrb[37].mxu1 }
 0x22f   : > { %v14014_v44 = vadd.f32 %v14004_v61, %v1354_v47  ;;  %v11372_v46 = vpop.f32.mrb[38].mxu1 }
 0x230   : > { %v10132_v36 = vmul.f32 -1.442695, %v14011_v59  ;;  %v14018_v48 = vadd.f32 %v11372_v46, %v14004_v61  ;;  %v1357_v40 = vpop.f32.mrb[39].mxu1 }
 0x231   : > { %v10130_v42 = vmul.f32 -1.442695, %v14014_v44  ;;  %v14022_v26 = vadd.f32 %v14004_v61, %v1357_v40 }
 0x232   : > { %12556 = vpow2.f32 %v10132_v36  ;;  %v10133_v50 = vmul.f32 -1.442695, %v14018_v48 }
 0x233   : > { %12558 = vpow2.f32 %v10130_v42  ;;  %v10131_v43 = vmul.f32 -1.442695, %v14022_v26 }
 0x234   : > { %12560 = vpow2.f32 %v10133_v50 }
 0x235   : > { %12562 = vpow2.f32 %v10131_v43  ;;  %v11375_v18 = vpop.f32.mrb[40].mxu1 }
 0x236   : > { %v14027_v21 = vadd.f32 %v11375_v18, %v14004_v61  ;;  %v1370_v52 = vpop.f32.mrb[41].mxu1 }
 0x237   : > { %v14030_v17 = vadd.f32 %v14004_v61, %v1370_v52  ;;  %v11376_v20 = vpop.f32.mrb[42].mxu1 }
 0x238   : > { %v10136_v47 = vmul.f32 -1.442695, %v14027_v21  ;;  %v14034_v46 = vadd.f32 %v11376_v20, %v14004_v61  ;;  %v1373_v36 = vpop.f32.mrb[43].mxu1 }
 0x239   : > { %v10134_v40 = vmul.f32 -1.442695, %v14030_v17  ;;  %v14038_v42 = vadd.f32 %v14004_v61, %v1373_v36 }
 0x23a   : > { %12564 = vpow2.f32 %v10136_v47  ;;  %v10137_v50 = vmul.f32 -1.442695, %v14034_v46 }
 0x23b   : > { %12566 = vpow2.f32 %v10134_v40  ;;  %v10135_v43 = vmul.f32 -1.442695, %v14038_v42 }
 0x23c   : > { %v12557_v18 = vpop.eup %12556  ;;  %12568 = vpow2.f32 %v10137_v50  ;;  %v12269_v50 = vld [vmem:[%s17709_s7 + $0x80] sm:$0xff]  }
 0x23d   : > { %v12559_v52 = vpop.eup %12558  ;;  %v1607_v12 = vadd.f32 1.0, %v12557_v18  ;;  %12570 = vpow2.f32 %v10135_v43  ;;  %11509 = vmatprep.subr.bf16.mxu0 %v12269_v50 }
 0x23e   : > { %v12561_v11 = vpop.eup %12560  ;;  %v1605_v20 = vadd.f32 1.0, %v12559_v52  ;;  %v11379_v10 = vpop.f32.mrb[44].mxu1 }
 0x23f   : > { %v12563_v9 = vpop.eup %12562  ;;  %12572 = vrcp.f32 %v1607_v12  ;;  %v1608_v8 = vadd.f32 1.0, %v12561_v11  ;;  %v14043_v36 = vadd.f32 %v11379_v10, %v14004_v61  ;;  %v1386_v47 = vpop.f32.mrb[45].mxu1 }
 0x240   : > { %12574 = vrcp.f32 %v1605_v20  ;;  %v1606_v7 = vadd.f32 1.0, %v12563_v9  ;;  %v14046_v40 = vadd.f32 %v14004_v61, %v1386_v47  ;;  %v11380_v6 = vpop.f32.mrb[46].mxu1 }
 0x241   : > { %12576 = vrcp.f32 %v1608_v8  ;;  %v10140_v43 = vmul.f32 -1.442695, %v14043_v36  ;;  %v14053_v12 = vadd.f32 %v11380_v6, %v14004_v61  ;;  %v1389_v11 = vpop.f32.mrb[47].mxu1 }
 0x242   : > { %12578 = vrcp.f32 %v1606_v7  ;;  %v10138_v10 = vmul.f32 -1.442695, %v14046_v40  ;;  %v14057_v9 = vadd.f32 %v14004_v61, %v1389_v11 }
 0x243   : > { %12580 = vpow2.f32 %v10140_v43  ;;  %v10141_v18 = vmul.f32 -1.442695, %v14053_v12 }
 0x244   : > { %v12565_v52 = vpop.eup %12564  ;;  %12582 = vpow2.f32 %v10138_v10  ;;  %v10139_v47 = vmul.f32 -1.442695, %v14057_v9 }
 0x245   : > { %v12567_v20 = vpop.eup %12566  ;;  %v1611_v8 = vadd.f32 1.0, %v12565_v52  ;;  %12584 = vpow2.f32 %v10141_v18 }
 0x246   : > { %v12569_v5 = vpop.eup %12568  ;;  %v1609_v6 = vadd.f32 1.0, %v12567_v20 }
 0x247   : > { %v12571_v4 = vpop.eup %12570  ;;  %12586 = vrcp.f32 %v1611_v8  ;;  %v1612_v7 = vadd.f32 1.0, %v12569_v5 }
 0x248   : > { %12588 = vrcp.f32 %v1609_v6  ;;  %v1610_v3 = vadd.f32 1.0, %v12571_v4  ;;  %v11383_v11 = vpop.f32.mrb[48].mxu1 }
 0x249   : > { %v12573_v2 = vpop.eup %12572  ;;  %12590 = vpow2.f32 %v10139_v47  ;;  %v14062_v50 = vadd.f32 %v11383_v11, %v14004_v61  ;;  %v1402_v43 = vpop.f32.mrb[49].mxu1 }
 0x24a   : > { %v12575_v10 = vpop.eup %12574  ;;  %v1715_v52 = vmul.f32 %v12573_v2, %v14011_v59  ;;  %12592 = vrcp.f32 %v1612_v7  ;;  %v14066_v18 = vadd.f32 %v14004_v61, %v1402_v43  ;;  %v11384_v20 = vpop.f32.mrb[50].mxu1 }
 0x24b   : > { %v12577_v4 = vpop.eup %12576  ;;  %v1713_v8 = vmul.f32 %v12575_v10, %v14014_v44  ;;  %12594 = vrcp.f32 %v1610_v3  ;;  %v10144_v47 = vmul.f32 -1.442695, %v14062_v50  ;;  %v14072_v6 = vadd.f32 %v11384_v20, %v14004_v61  ;;  %v1405_v11 = vpop.f32.mrb[51].mxu1 }
 0x24c   : > { %v12579_v1 = vpop.eup %12578  ;;  %v10694_v41 = vpack.c.bf16 %v1715_v52, %v1715_v52  ;;  %v1716_v2 = vmul.f32 %v12577_v4, %v14018_v48  ;;  %v14076_v59 = vmul.f32 -1.442695, %v14066_v18  ;;  %v14079_v7 = vadd.f32 %v14004_v61, %v1405_v11 }
 0x24d   : > { %v12581_v43 = vpop.eup %12580  ;;  %v10692_v5 = vpack.c.bf16 %v1713_v8, %v1713_v8  ;;  %v1714_v3 = vmul.f32 %v12579_v1, %v14022_v26  ;;  %12596 = vpow2.f32 %v10144_v47  ;;  %v14083_v44 = vmul.f32 -1.442695, %v14072_v6 }
 0x24e   : > { %v12583_v10 = vpop.eup %12582  ;;  %v1877_v20 = vshrl.u32 %v10694_v41, 16  ;;  %v1880_v23 = vshll.u32 %v10694_v41, 16  ;;  %v10695_v52 = vpack.c.bf16 %v1716_v2, %v1716_v2  ;;  %v1615_v54 = vadd.f32 1.0, %v12581_v43  ;;  %v2229_v41 = vld [vmem:[#allocation3 + $0x18] sm:$0xf] }
 0x24f   : > { %v1860_v48 = vshrl.u32 %v10692_v5, 16  ;;  %v1863_v4 = vshll.u32 %v10692_v5, 16  ;;  %v10693_v56 = vpack.c.bf16 %v1714_v3, %v1714_v3  ;;  %v1613_v63 = vadd.f32 1.0, %v12583_v10  ;;  %v12585_v60 = vpop.eup %12584 }
 0x250   : > { %v1879_v11 = vrot.slane %v1877_v20, 7  ;;  %v1885_v58 = vshrl.u32 %v10695_v52, 16  ;;  %v1888_v57 = vshll.u32 %v10695_v52, 16  ;;  %12598 = vrcp.f32 %v1615_v54  ;;  %v14085_v8 = vpop.f32.mrb[52].mxu1  ;;  %v2222_v54 = vld [vmem:[#allocation3 + $0xc] sm:$0xf] }
 0x251   : > { %v12587_v1 = vpop.eup %12586  ;;  %v1862_v47 = vrot.slane %v1860_v48, 7  ;;  %v1868_v2 = vshrl.u32 %v10693_v56, 16  ;;  %v1871_v5 = vshll.u32 %v10693_v56, 16  ;;  %12600 = vrcp.f32 %v1613_v63  ;;  %v14093_v43 = vpop.f32.mrb[53].mxu1  ;;  %v2233_v63 = vld [vmem:[#allocation3 + $0x20] sm:$0x1] }
 0x252   : > { %v12589_v3 = vpop.eup %12588  ;;  %v1882_v10 = vor.u32 %v1880_v23, %v1879_v11  ;;  %v1883_v20 = vrot.slane %v1879_v11, 4  ;;  %v1887_v52 = vrot.slane %v1885_v58, 7  ;;  %v1719_v0 = vmul.f32 %v12587_v1, %v14027_v21  ;;  %v14096_v62 = vpop.f32.mrb[54].mxu1 }
 0x253   : > { %v12591_v30 = vpop.eup %12590  ;;  %v1865_v37 = vor.u32 %v1863_v4, %v1862_v47  ;;  %v1866_v27 = vrot.slane %v1862_v47, 4  ;;  %v1870_v56 = vrot.slane %v1868_v2, 7  ;;  %v1717_v23 = vmul.f32 %v12589_v3, %v14030_v17  ;;  %v14105_v11 = vpop.f32.mrb[55].mxu1  ;;  %v2226_v4 = vld [vmem:[#allocation3 + $0x14] sm:$0x1] }
 0x254   : > { %v12593_v58 = vpop.eup %12592  ;;  %v2230_v21 = vsel %vm14089_vm10, %v1882_v10, %v2229_v41  ;;  %v1890_v1 = vor.u32 %v1888_v57, %v1887_v52  ;;  %v1892_v33 = vrot.slane %v1887_v52, 4  ;;  %v10698_v47 = vpack.c.bf16 %v1719_v0, %v1719_v0 }
 0x255   : > { %v12595_v29 = vpop.eup %12594  ;;  %2231 = vst [vmem:[#allocation3 + $0x18] sm:$0xf] %v2230_v21  ;;  %v2223_v25 = vsel %vm14089_vm10, %v1865_v37, %v2222_v54  ;;  %v1873_v31 = vor.u32 %v1871_v5, %v1870_v56  ;;  %v1875_v53 = vrot.slane %v1870_v56, 4  ;;  %v10696_v2 = vpack.c.bf16 %v1717_v23, %v1717_v23  ;;  %v2243_v23 = vld [vmem:[#allocation3 + $0x30] sm:$0xf] }
 0x256   : > { %2224 = vst [vmem:[#allocation3 + $0xc] sm:$0xf] %v2223_v25  ;;  %v1891_v17 = vsel %vm14100_vm11, %v1883_v20, %v1890_v1  ;;  %v2234_v3 = vsel %vm13507_vm2, %v1892_v33, %v2233_v63  ;;  %v1911_v41 = vshrl.u32 %v10698_v47, 16  ;;  %v1914_v57 = vshll.u32 %v10698_v47, 16 }
 0x257   : > { %v12597_v10 = vpop.eup %12596  ;;  %2232 = vst [vmem:[#allocation3 + $0x1c] sm:$0xf] %v1891_v17  ;;  %2235 = vst [vmem:[#allocation3 + $0x20] sm:$0x1] %v2234_v3  ;;  %v1874_v0 = vsel %vm14100_vm11, %v1866_v27, %v1873_v31  ;;  %v2227_v37 = vsel %vm13507_vm2, %v1875_v53, %v2226_v4  ;;  %v1894_v5 = vshrl.u32 %v10696_v2, 16  ;;  %v1897_v54 = vshll.u32 %v10696_v2, 16 }
 0x258   : > { %2225 = vst [vmem:[#allocation3 + $0x10] sm:$0xf] %v1874_v0  ;;  %2228 = vst [vmem:[#allocation3 + $0x14] sm:$0x1] %v2227_v37  ;;  %v1913_v25 = vrot.slane %v1911_v41, 7  ;;  %v1720_v20 = vmul.f32 %v12593_v58, %v14034_v46  ;;  %v1718_v33 = vmul.f32 %v12595_v29, %v14038_v42  ;;  %v1616_v52 = vadd.f32 1.0, %v12585_v60 }
 0x259   : > { %v14121_v63 = vpop.f32.mrb[56].mxu1  ;;  %v17871_v56 = vmov 0   ;;  %v1896_v21 = vrot.slane %v1894_v5, 7  ;;  %v1614_v31 = vadd.f32 1.0, %v12591_v30  ;;  %v1619_v27 = vadd.f32 1.0, %v12597_v10 }
 0x25a   : > { %2355 = vst [vmem:[#allocation3 + $0x10] sm:$0xf] %v17871_v56  ;;  %12602 = vpow2.f32 %v14076_v59  ;;  %v14125_v53 = vpop.f32.mrb[57].mxu1  ;;  %v12599_v1 = vpop.eup %12598  ;;  %v1916_v4 = vor.u32 %v1914_v57, %v1913_v25  ;;  %v1917_v47 = vrot.slane %v1913_v25, 4  ;;  %v2236_v2 = vld [vmem:[#allocation3 + $0x24] sm:$0xf]  ;;  %v10699_v46 = vpack.c.bf16 %v1720_v20, %v1720_v20 }
 0x25b   : > { %v10697_v58 = vpack.c.bf16 %v1718_v33, %v1718_v33  ;;  %v14127_v29 = vpop.f32.mrb[58].mxu1  ;;  %v12601_v60 = vpop.eup %12600  ;;  %v1899_v42 = vor.u32 %v1897_v54, %v1896_v21  ;;  %v1900_v17 = vrot.slane %v1896_v21, 4  ;;  %v1723_v3 = vmul.f32 %v12599_v1, %v14043_v36  ;;  %v2247_v33 = vld [vmem:[#allocation3 + $0x38] sm:$0x1]  ;;  %v2240_v21 = vld [vmem:[#allocation3 + $0x2c] sm:$0x1] }
 0x25c   : > { %12604 = vrcp.f32 %v1616_v52  ;;  %v14130_v30 = vpop.f32.mrb[59].mxu1  ;;  %v2244_v59 = vsel %vm14089_vm10, %v1916_v4, %v2243_v23  ;;  %v1919_v41 = vshrl.u32 %v10699_v46, 16  ;;  %v1922_v10 = vshll.u32 %v10699_v46, 16 }
 0x25d   : > { %v1902_v57 = vshrl.u32 %v10697_v58, 16  ;;  %v2352_v0 = vld [vmem:[#allocation3 + $0xc] sm:$0xf]  ;;  %2245 = vst [vmem:[#allocation3 + $0x30] sm:$0xf] %v2244_v59  ;;  %v2237_v37 = vsel %vm14089_vm10, %v1899_v42, %v2236_v2  ;;  %v1905_v5 = vshll.u32 %v10697_v58, 16  ;;  %v10702_v25 = vpack.c.bf16 %v1723_v3, %v1723_v3 }
 0x25e   : > { %v1721_v54 = vmul.f32 %v12601_v60, %v14046_v40  ;;  %v2353_v36 = vsel %vm14089_vm10, 0, %v2352_v0  ;;  %2238 = vst [vmem:[#allocation3 + $0x24] sm:$0xf] %v2237_v37  ;;  %v1921_v20 = vrot.slane %v1919_v41, 7  ;;  %12606 = vrcp.f32 %v1614_v31  ;;  %v2257_v42 = vld [vmem:[#allocation3 + $0x48] sm:$0xf] }
 0x25f   : > { %v1904_v52 = vrot.slane %v1902_v57, 7  ;;  %2354 = vst [vmem:[#allocation3 + $0xc] sm:$0xf] %v2353_v36  ;;  %v2356_v23 = vld [vmem:[#allocation3 + $0x14] sm:$0x1]  ;;  %v1945_v1 = vshrl.u32 %v10702_v25, 16  ;;  %12608 = vrcp.f32 %v1619_v27 }
 0x260   : > { %v1948_v4 = vshll.u32 %v10702_v25, 16  ;;  %v10700_v46 = vpack.c.bf16 %v1721_v54, %v1721_v54  ;;  %v2357_v2 = vsel %vm13507_vm2, 0, %v2356_v23  ;;  %v1924_v58 = vor.u32 %v1922_v10, %v1921_v20  ;;  %v14141_v3 = vpop.f32.mrb[60].mxu1 }
 0x261   : > { %v1926_v40 = vrot.slane %v1921_v20, 4  ;;  %v1907_v60 = vor.u32 %v1905_v5, %v1904_v52  ;;  %2358 = vst [vmem:[#allocation3 + $0x14] sm:$0x1] %v2357_v2  ;;  %v1909_v59 = vrot.slane %v1904_v52, 4  ;;  %v14143_v41 = vrot.slane %v1945_v1, 7  ;;  %v14145_v0 = vpop.f32.mrb[61].mxu1 }
 0x262   : > { %v1928_v31 = vshrl.u32 %v10700_v46, 16  ;;  %v1931_v57 = vshll.u32 %v10700_v46, 16  ;;  %v1925_v27 = vsel %vm14100_vm11, %v1917_v47, %v1924_v58  ;;  %12610 = vpow2.f32 %v14083_v44  ;;  %v14154_v5 = vpop.f32.mrb[62].mxu1  ;;  %v2254_v2 = vld [vmem:[#allocation3 + $0x44] sm:$0x1] }
 0x263   : > { %v2248_v37 = vsel %vm13507_vm2, %v1926_v40, %v2247_v33  ;;  %v1908_v10 = vsel %vm14100_vm11, %v1900_v17, %v1907_v60  ;;  %2246 = vst [vmem:[#allocation3 + $0x34] sm:$0xf] %v1925_v27  ;;  %v2241_v54 = vsel %vm13507_vm2, %v1909_v59, %v2240_v21  ;;  %v1950_v36 = vor.u32 %v1948_v4, %v14143_v41  ;;  %v14162_v33 = vpop.f32.mrb[63].mxu1  ;;  %v2250_v17 = vld [vmem:[#allocation3 + $0x3c] sm:$0xf] }
 0x264   : > { %v12603_v25 = vpop.eup %12602  ;;  %2249 = vst [vmem:[#allocation3 + $0x38] sm:$0x1] %v2248_v37  ;;  %2239 = vst [vmem:[#allocation3 + $0x28] sm:$0xf] %v1908_v10  ;;  %v1951_v47 = vrot.slane %v14143_v41, 4  ;;  %v14160_v20 = vrot.slane %v1928_v31, 7  ;;  %v14167_v23 = vadd.f32 %v14085_v8, %v14004_v61  ;;  %v14171_v21 = vadd.f32 %v14004_v61, %v14093_v43 }
 0x265   : > { %2242 = vst [vmem:[#allocation3 + $0x2c] sm:$0x1] %v2241_v54  ;;  %v1617_v44 = vadd.f32 1.0, %v12603_v25  ;;  %v10143_v52 = vmul.f32 -1.442695, %v14079_v7  ;;  %v2258_v4 = vsel %vm14089_vm10, %v1950_v36, %v2257_v42  ;;  %v14179_v58 = vadd.f32 %v14096_v62, %v14004_v61 }
 0x266   : > { %v12605_v1 = vpop.eup %12604  ;;  %v1933_v46 = vor.u32 %v1931_v57, %v14160_v20  ;;  %2259 = vst [vmem:[#allocation3 + $0x48] sm:$0xf] %v2258_v4  ;;  %v10148_v40 = vmul.f32 -1.442695, %v14167_v23  ;;  %v10146_v43 = vmul.f32 -1.442695, %v14171_v21  ;;  %v14189_v59 = vadd.f32 %v14004_v61, %v14105_v11 }
 0x267   : > { %v1724_v8 = vmul.f32 %v12605_v1, %v14053_v12  ;;  %12612 = vrcp.f32 %v1617_v44  ;;  %v10149_v42 = vmul.f32 -1.442695, %v14179_v58  ;;  %v14193_v12 = vadd.f32 %v14121_v63, %v14004_v61 }
 0x268   : > { %v2251_v60 = vsel %vm14089_vm10, %v1933_v46, %v2250_v17  ;;  %12614 = vpow2.f32 %v10143_v52  ;;  %v12607_v62 = vpop.eup %12606  ;;  %v14197_v57 = vadd.f32 %v14004_v61, %v14125_v53  ;;  %v14199_v27 = vpop.f32.mrb[64].mxu1  ;;  %v10147_v11 = vmul.f32 -1.442695, %v14189_v59 }
 0x269   : > { %2252 = vst [vmem:[#allocation3 + $0x3c] sm:$0xf] %v2251_v60  ;;  %v10703_v31 = vpack.c.bf16 %v1724_v8, %v1724_v8  ;;  %12616 = vpow2.f32 %v10148_v40  ;;  %v12609_v37 = vpop.eup %12608  ;;  %v1722_v10 = vmul.f32 %v12607_v62, %v14057_v9  ;;  %v14205_v25 = vadd.f32 %v14127_v29, %v14004_v61  ;;  %v14207_v54 = vpop.f32.mrb[65].mxu1 }
 0x26a   : > { %12618 = vpow2.f32 %v10146_v43  ;;  %v1727_v17 = vmul.f32 %v12609_v37, %v14062_v50  ;;  %v14210_v53 = vpop.f32.mrb[66].mxu1  ;;  %v10152_v9 = vmul.f32 -1.442695, %v14193_v12  ;;  %v10150_v52 = vmul.f32 -1.442695, %v14197_v57 }
 0x26b   : > { %v1953_v63 = vshrl.u32 %v10703_v31, 16  ;;  %v1956_v36 = vshll.u32 %v10703_v31, 16  ;;  %12620 = vpow2.f32 %v10149_v42  ;;  %v10701_v44 = vpack.c.bf16 %v1722_v10, %v1722_v10  ;;  %v14214_v1 = vpop.f32.mrb[67].mxu1  ;;  %v2261_v50 = vld [vmem:[#allocation3 + $0x50] sm:$0x1] }
 0x26c   : > { %12622 = vpow2.f32 %v10147_v11  ;;  %v12611_v4 = vpop.eup %12610  ;;  %v10706_v46 = vpack.c.bf16 %v1727_v17, %v1727_v17  ;;  %v10153_v8 = vmul.f32 -1.442695, %v14205_v25  ;;  %v14219_v40 = vadd.f32 %v14004_v61, %v14130_v30 }
 0x26d   : > { %v1955_v29 = vrot.slane %v1953_v63, 7  ;;  %v1936_v43 = vshrl.u32 %v10701_v44, 16  ;;  %v1939_v60 = vshll.u32 %v10701_v44, 16  ;;  %v1620_v42 = vadd.f32 1.0, %v12611_v4  ;;  %v2271_v4 = vld [vmem:[#allocation3 + $0x60] sm:$0xf] }
 0x26e   : > { %12624 = vpow2.f32 %v10152_v9  ;;  %v1979_v37 = vshrl.u32 %v10706_v46, 16  ;;  %v1982_v10 = vshll.u32 %v10706_v46, 16  ;;  %v10151_v63 = vmul.f32 -1.442695, %v14219_v40 }
 0x26f   : > { %v1958_v62 = vor.u32 %v1956_v36, %v1955_v29  ;;  %v1960_v31 = vrot.slane %v1955_v29, 4  ;;  %v1938_v11 = vrot.slane %v1936_v43, 7  ;;  %12626 = vrcp.f32 %v1620_v42 }
 0x270   : > { %v14224_v17 = vadd.f32 %v14141_v3, %v14004_v61  ;;  %v14232_v9 = vrot.slane %v1979_v37, 7  ;;  %12628 = vpow2.f32 %v10150_v52  ;;  %v17872_v37 = vrot.slane %v14160_v20, 4 }
 0x271   : > { %v12613_v30 = vpop.eup %12612  ;;  %v1959_v44 = vsel %vm14100_vm11, %v1951_v47, %v1958_v62  ;;  %v2262_v36 = vsel %vm13507_vm2, %v1960_v31, %v2261_v50  ;;  %v1941_v46 = vor.u32 %v1939_v60, %v1938_v11  ;;  %v1943_v43 = vrot.slane %v1938_v11, 4  ;;  %v14235_v42 = vpop.f32.mrb[68].mxu1 }
 0x272   : > { %v12615_v29 = vpop.eup %12614  ;;  %2260 = vst [vmem:[#allocation3 + $0x4c] sm:$0xf] %v1959_v44  ;;  %2263 = vst [vmem:[#allocation3 + $0x50] sm:$0x1] %v2262_v36  ;;  %v1725_v3 = vmul.f32 %v12613_v30, %v14066_v18  ;;  %12630 = vpow2.f32 %v10153_v8  ;;  %v1984_v47 = vor.u32 %v1982_v10, %v14232_v9  ;;  %v14239_v31 = vpop.f32.mrb[69].mxu1 }
 0x273   : > { %v12617_v41 = vpop.eup %12616  ;;  %v1618_v50 = vadd.f32 1.0, %v12615_v29  ;;  %12632 = vpow2.f32 %v10151_v63  ;;  %v1942_v60 = vsel %vm14100_vm11, %v17872_v37, %v1941_v46  ;;  %v2255_v18 = vsel %vm13507_vm2, %v1943_v43, %v2254_v2  ;;  %v14247_v30 = vpop.f32.mrb[70].mxu1  ;;  %v14257_v2 = vld [vmem:[%s17709_s7 + $0x200] sm:$0xff]  }
 0x274   : > { %v12619_v52 = vpop.eup %12618  ;;  %v10704_v8 = vpack.c.bf16 %v1725_v3, %v1725_v3  ;;  %v1623_v11 = vadd.f32 1.0, %v12617_v41  ;;  %2253 = vst [vmem:[#allocation3 + $0x40] sm:$0xf] %v1942_v60  ;;  %2256 = vst [vmem:[#allocation3 + $0x44] sm:$0x1] %v2255_v18  ;;  %v2272_v63 = vsel %vm14089_vm10, %v1984_v47, %v2271_v4  ;;  %v14252_v36 = vpop.f32.mrb[71].mxu1  ;;  %v14261_v47 = vadd.f32 %v14004_v61, %v14145_v0 }
 0x275   : > { %v12621_v10 = vpop.eup %12620  ;;  %12634 = vrcp.f32 %v1618_v50  ;;  %v1621_v44 = vadd.f32 1.0, %v12619_v52  ;;  %v10156_v20 = vmul.f32 -1.442695, %v14224_v17  ;;  %2273 = vst [vmem:[#allocation3 + $0x60] sm:$0xf] %v2272_v63  ;;  %v14265_v50 = vadd.f32 %v14154_v5, %v14004_v61  ;;  %11969 = vmatprep.subr.bf16.mxu1 %v14257_v2 }
 0x276   : > { %v12623_v29 = vpop.eup %12622  ;;  %v1962_v46 = vshrl.u32 %v10704_v8, 16  ;;  %v1965_v43 = vshll.u32 %v10704_v8, 16  ;;  %12636 = vrcp.f32 %v1623_v11  ;;  %v1624_v3 = vadd.f32 1.0, %v12621_v10  ;;  %v2264_v41 = vld [vmem:[#allocation3 + $0x54] sm:$0xf] }
 0x277   : > { %12638 = vrcp.f32 %v1621_v44  ;;  %v1622_v4 = vadd.f32 1.0, %v12623_v29  ;;  %v14272_v60 = vadd.f32 %v14004_v61, %v14162_v33  ;;  %v14276_v18 = vadd.f32 %v14199_v27, %v14004_v61 }
 0x278   : > { %v12625_v52 = vpop.eup %12624  ;;  %v14268_v37 = vrot.slane %v1962_v46, 7  ;;  %12640 = vrcp.f32 %v1624_v3  ;;  %v10154_v8 = vmul.f32 -1.442695, %v14261_v47  ;;  %v10157_v5 = vmul.f32 -1.442695, %v14265_v50 }
 0x279   : > { %12642 = vrcp.f32 %v1622_v4  ;;  %v1627_v0 = vadd.f32 1.0, %v12625_v52  ;;  %v12627_v11 = vpop.eup %12626  ;;  %v10155_v44 = vmul.f32 -1.442695, %v14272_v60  ;;  %v10160_v27 = vmul.f32 -1.442695, %v14276_v18 }
 0x27a   : > { %v1967_v10 = vor.u32 %v1965_v43, %v14268_v37  ;;  %12644 = vpow2.f32 %v10156_v20  ;;  %v12629_v33 = vpop.eup %12628  ;;  %v1728_v29 = vmul.f32 %v12627_v11, %v14072_v6  ;;  %v14287_v46 = vadd.f32 %v14004_v61, %v14207_v54  ;;  %v14295_v52 = vld [vmem:[#allocation3 + $0xc] sm:$0xf] }
 0x27b   : > { %12646 = vrcp.f32 %v1627_v0  ;;  %v1625_v43 = vadd.f32 1.0, %v12629_v33  ;;  %v14293_v20 = vadd.f32 %v14210_v53, %v14004_v61  ;;  %v17874_v32 = vrot.slane %v14268_v37, 4 }
 0x27c   : > { %v12631_v3 = vpop.eup %12630  ;;  %v2265_v4 = vsel %vm14089_vm10, %v1967_v10, %v2264_v41  ;;  %12648 = vpow2.f32 %v10154_v8  ;;  %v10707_v0 = vpack.c.bf16 %v1728_v29, %v1728_v29  ;;  %v14298_v54 = vmul.f32 -1.442695, %v14287_v46 }
 0x27d   : > { %v12633_v6 = vpop.eup %12632  ;;  %2266 = vst [vmem:[#allocation3 + $0x54] sm:$0xf] %v2265_v4  ;;  %v1628_v11 = vadd.f32 1.0, %v12631_v3  ;;  %12650 = vpow2.f32 %v10157_v5  ;;  %v14301_v41 = vmul.f32 -1.442695, %v14293_v20  ;;  %v14305_v8 = vadd.f32 %v14004_v61, %v14214_v1 }
 0x27e   : > { %12652 = vrcp.f32 %v1625_v43  ;;  %v1626_v63 = vadd.f32 1.0, %v12633_v6  ;;  %v1987_v10 = vshrl.u32 %v10707_v0, 16  ;;  %v1990_v33 = vshll.u32 %v10707_v0, 16 }
 0x27f   : > { %v12635_v53 = vpop.eup %12634  ;;  %12654 = vrcp.f32 %v1628_v11  ;;  %v2465_v29 = vshrl.u32 %v14295_v52, 16  ;;  %v14310_v4 = vmul.f32 -1.442695, %v14305_v8  ;;  %v2468_v43 = vshll.u32 %v14295_v52, 16  ;;  %v2275_v11 = vld [vmem:[#allocation3 + $0x68] sm:$0x1] }
 0x280   : > { %v12637_v3 = vpop.eup %12636  ;;  %v1726_v5 = vmul.f32 %v12635_v53, %v14079_v7  ;;  %12656 = vrcp.f32 %v1626_v63  ;;  %v1989_v62 = vrot.slane %v1987_v10, 7 }
 0x281   : > { %v12639_v6 = vpop.eup %12638  ;;  %v1731_v61 = vmul.f32 %v12637_v3, %v14167_v23  ;;  %12658 = vpow2.f32 %v10155_v44  ;;  %v14314_v1 = vrot.slane %v2465_v29, 4  ;;  %v14317_v7 = vrot.slane %v2468_v43, 5 }
 0x282   : > { %v12641_v0 = vpop.eup %12640  ;;  %v10705_v24 = vpack.c.bf16 %v1726_v5, %v1726_v5  ;;  %v1729_v14 = vmul.f32 %v12639_v6, %v14171_v21  ;;  %12660 = vpow2.f32 %v10160_v27  ;;  %v1992_v53 = vor.u32 %v1990_v33, %v1989_v62 }
 0x283   : > { %v12643_v63 = vpop.eup %12642  ;;  %v1994_v39 = vrot.slane %v1989_v62, 4  ;;  %v10710_v38 = vpack.c.bf16 %v1731_v61, %v1731_v61  ;;  %v1732_v22 = vmul.f32 %v12641_v0, %v14179_v58  ;;  %v17873_v5 = vrot.slane %v14232_v9, 4  ;;  %v2268_v61 = vld [vmem:[#allocation3 + $0x5c] sm:$0x1] }
 0x284   : > { %v12645_v10 = vpop.eup %12644  ;;  %v1970_v13 = vshrl.u32 %v10705_v24, 16  ;;  %v1973_v23 = vshll.u32 %v10705_v24, 16  ;;  %v10708_v44 = vpack.c.bf16 %v1729_v14, %v1729_v14  ;;  %v1730_v29 = vmul.f32 %v12643_v63, %v14189_v59 }
 0x285   : > { %v12647_v3 = vpop.eup %12646  ;;  %v1993_v21 = vsel %vm14100_vm11, %v17873_v5, %v1992_v53  ;;  %v2276_v27 = vsel %vm13507_vm2, %v1994_v39, %v2275_v11  ;;  %v2013_v33 = vshrl.u32 %v10710_v38, 16  ;;  %v2016_v62 = vshll.u32 %v10710_v38, 16  ;;  %v2285_v38 = vld [vmem:[#allocation3 + $0x78] sm:$0xf] }
 0x286   : > { %v14327_v43 = vpop.eup %12648  ;;  %2274 = vst [vmem:[#allocation3 + $0x64] sm:$0xf] %v1993_v21  ;;  %2277 = vst [vmem:[#allocation3 + $0x68] sm:$0x1] %v2276_v27  ;;  %v1972_v58 = vrot.slane %v1970_v13, 7  ;;  %v1996_v24 = vshrl.u32 %v10708_v44, 16  ;;  %v10711_v6 = vpack.c.bf16 %v1732_v22, %v1732_v22  ;;  %v10709_v0 = vpack.c.bf16 %v1730_v29, %v1730_v29 }
 0x287   : > { %v1999_v14 = vshll.u32 %v10708_v44, 16  ;;  %v14329_v59 = vpop.eup %12650  ;;  %v2015_v9 = vrot.slane %v2013_v33, 7  ;;  %v1735_v63 = vmul.f32 %v12647_v3, %v14193_v12  ;;  %v1631_v53 = vadd.f32 1.0, %v12645_v10 }
 0x288   : > { %v12653_v5 = vpop.eup %12652  ;;  %v1975_v39 = vor.u32 %v1973_v23, %v1972_v58  ;;  %v1977_v11 = vrot.slane %v1972_v58, 4  ;;  %v1998_v16 = vrot.slane %v1996_v24, 7  ;;  %v2021_v15 = vshrl.u32 %v10711_v6, 16 }
 0x289   : > { %v12655_v21 = vpop.eup %12654  ;;  %v2018_v27 = vor.u32 %v2016_v62, %v2015_v9  ;;  %v2019_v13 = vrot.slane %v2015_v9, 4  ;;  %v2024_v44 = vshll.u32 %v10711_v6, 16  ;;  %v2004_v22 = vshrl.u32 %v10709_v0, 16  ;;  %v2282_v9 = vld [vmem:[#allocation3 + $0x74] sm:$0x1] }
 0x28a   : > { %v12657_v51 = vpop.eup %12656  ;;  %v1976_v29 = vsel %vm14100_vm11, %v17874_v32, %v1975_v39  ;;  %v2269_v12 = vsel %vm13507_vm2, %v1977_v11, %v2268_v61  ;;  %v2001_v10 = vor.u32 %v1999_v14, %v1998_v16  ;;  %v2002_v23 = vrot.slane %v1998_v16, 4  ;;  %v2289_v32 = vld [vmem:[#allocation3 + $0x80] sm:$0x1] }
 0x28b   : > { %v12659_v3 = vpop.eup %12658  ;;  %2267 = vst [vmem:[#allocation3 + $0x58] sm:$0xf] %v1976_v29  ;;  %2270 = vst [vmem:[#allocation3 + $0x5c] sm:$0x1] %v2269_v12  ;;  %v2286_v33 = vsel %vm14089_vm10, %v2018_v27, %v2285_v38  ;;  %v2023_v62 = vrot.slane %v2021_v15, 7  ;;  %v2006_v58 = vrot.slane %v2004_v22, 7  ;;  %v10714_v39 = vpack.c.bf16 %v1735_v63, %v1735_v63 }
 0x28c   : > { %v2007_v24 = vshll.u32 %v10709_v0, 16  ;;  %v12661_v6 = vpop.eup %12660  ;;  %2287 = vst [vmem:[#allocation3 + $0x78] sm:$0xf] %v2286_v33  ;;  %v2279_v37 = vsel %vm14089_vm10, %v2001_v10, %v2278_v34  ;;  %v1733_v14 = vmul.f32 %v12653_v5, %v14197_v57  ;;  %v1736_v16 = vmul.f32 %v12655_v21, %v14205_v25  ;;  %v2299_v10 = vld [vmem:[#allocation3 + $0x90] sm:$0xf] }
 0x28d   : > { %2280 = vst [vmem:[#allocation3 + $0x6c] sm:$0xf] %v2279_v37  ;;  %v2026_v61 = vor.u32 %v2024_v44, %v2023_v62  ;;  %v2028_v11 = vrot.slane %v2023_v62, 4  ;;  %v2011_v38 = vrot.slane %v2006_v58, 4  ;;  %v2047_v15 = vshrl.u32 %v10714_v39, 16 }
 0x28e   : > { %v2009_v29 = vor.u32 %v2007_v24, %v2006_v58  ;;  %v2050_v27 = vshll.u32 %v10714_v39, 16  ;;  %v10712_v0 = vpack.c.bf16 %v1733_v14, %v1733_v14  ;;  %v10715_v22 = vpack.c.bf16 %v1736_v16, %v1736_v16 }
 0x28f   : > { %v2027_v12 = vsel %vm14100_vm11, %v2019_v13, %v2026_v61  ;;  %v2290_v34 = vsel %vm13507_vm2, %v2028_v11, %v2289_v32  ;;  %v2283_v25 = vsel %vm13507_vm2, %v2011_v38, %v2282_v9  ;;  %v2049_v63 = vrot.slane %v2047_v15, 7  ;;  %v2292_v32 = vld [vmem:[#allocation3 + $0x84] sm:$0xf] }
 0x290   : > { %v2010_v57 = vsel %vm14100_vm11, %v2002_v23, %v2009_v29  ;;  %2288 = vst [vmem:[#allocation3 + $0x7c] sm:$0xf] %v2027_v12  ;;  %2291 = vst [vmem:[#allocation3 + $0x80] sm:$0x1] %v2290_v34  ;;  %v2030_v5 = vshrl.u32 %v10712_v0, 16  ;;  %v2033_v21 = vshll.u32 %v10712_v0, 16  ;;  %v1734_v13 = vmul.f32 %v12657_v51, %v14219_v40 }
 0x291   : > { %2281 = vst [vmem:[#allocation3 + $0x70] sm:$0xf] %v2010_v57  ;;  %2284 = vst [vmem:[#allocation3 + $0x74] sm:$0x1] %v2283_v25  ;;  %v2055_v44 = vshrl.u32 %v10715_v22, 16  ;;  %v2058_v33 = vshll.u32 %v10715_v22, 16  ;;  %12662 = vrcp.f32 %v1631_v53  ;;  %v2052_v58 = vor.u32 %v2050_v27, %v2049_v63 }
 0x292   : > { %v1629_v62 = vadd.f32 1.0, %v14327_v43  ;;  %v2053_v23 = vrot.slane %v2049_v63, 4  ;;  %v2032_v24 = vrot.slane %v2030_v5, 7  ;;  %v10713_v9 = vpack.c.bf16 %v1734_v13, %v1734_v13  ;;  %v2303_v51 = vld [vmem:[#allocation3 + $0x98] sm:$0x1]  ;;  %v12275_v63 = vld [vmem:[%s17709_s7 + $0x88] sm:$0xff]  }
 0x293   : > { %v2057_v37 = vrot.slane %v2055_v44, 7  ;;  %v1632_v39 = vadd.f32 1.0, %v14329_v59  ;;  %v1630_v14 = vadd.f32 1.0, %v12659_v3  ;;  %v2300_v16 = vsel %vm14089_vm10, %v2052_v58, %v2299_v10  ;;  %v14357_v40 = vld [vmem:[#allocation3 + $0x10] sm:$0xf] }
 0x294   : > { %12664 = vrcp.f32 %v1629_v62  ;;  %v2035_v61 = vor.u32 %v2033_v21, %v2032_v24  ;;  %v2036_v11 = vrot.slane %v2032_v24, 4  ;;  %2301 = vst [vmem:[#allocation3 + $0x90] sm:$0xf] %v2300_v16  ;;  %v2038_v53 = vshrl.u32 %v10713_v9, 16  ;;  %v2296_v22 = vld [vmem:[#allocation3 + $0x8c] sm:$0x1] }
 0x295   : > { %v2060_v29 = vor.u32 %v2058_v33, %v2057_v37  ;;  %v2062_v43 = vrot.slane %v2057_v37, 4  ;;  %v2041_v38 = vshll.u32 %v10713_v9, 16  ;;  %12666 = vrcp.f32 %v1632_v39  ;;  %v2371_v25 = vld [vmem:[#allocation3 + $0x18] sm:$0xf]  ;;  %v12279_v9 = vld [vmem:[%s17709_s7 + $0x90] sm:$0xff]  }
 0x296   : > { %v2293_v15 = vsel %vm14089_vm10, %v2035_v61, %v2292_v32  ;;  %12668 = vrcp.f32 %v1630_v14  ;;  %v1635_v3 = vadd.f32 1.0, %v12661_v6  ;;  %v2040_v0 = vrot.slane %v2038_v53, 7  ;;  %v14398_v32 = vld [vmem:[#allocation3 + $0x24] sm:$0xf]  ;;  %v13277_v61 = vld [vmem:[%s17708_s6] ss:$0 sm:$0xff] }
 0x297   : > { %v2061_v59 = vsel %vm14100_vm11, %v2053_v23, %v2060_v29  ;;  %2294 = vst [vmem:[#allocation3 + $0x84] sm:$0xf] %v2293_v15  ;;  %v2304_v27 = vsel %vm13507_vm2, %v2062_v43, %v2303_v51  ;;  %12670 = vpow2.f32 %v14298_v54  ;;  %v2471_v12 = vor.u32 %v14317_v7, %v14314_v1  ;;  %v14378_v1 = vld [vmem:[#allocation3 + $0x1c] sm:$0xf] }
 0x298   : > { %2302 = vst [vmem:[#allocation3 + $0x94] sm:$0xf] %v2061_v59  ;;  %2305 = vst [vmem:[#allocation3 + $0x98] sm:$0x1] %v2304_v27  ;;  %12672 = vrcp.f32 %v1635_v3  ;;  %v2474_v34 = vshll.u32 %v14357_v40, 16  ;;  %v2478_v57 = vshrl.u32 %v14357_v40, 16  ;;  %v10229_v6 = vcombine.low %v14295_v52, %v14357_v40 }
 0x299   : > { %v2043_v5 = vor.u32 %v2041_v38, %v2040_v0  ;;  %v2045_v21 = vrot.slane %v2040_v0, 4  ;;  %12674 = vpow2.f32 %v14301_v41  ;;  %v14376_v54 = vrot.slane %v2471_v12, 4  ;;  %v13276_v41 = vld [vmem:[%s17709_s7 + $0x80] sm:$0xff]   ;;  %v12282_v12 = vld [vmem:[%s17709_s7 + $0x98] sm:$0xff]  }
 0x29a   : > { %12676 = vpow2.f32 %v14310_v4  ;;  %v14381_v7 = vrot.slane %v2474_v34, 5  ;;  %v2480_v44 = vrot.slane %v2478_v57, 4  ;;  %11474 = vmatmul.mubr.bf16.vlgmr.msra.gmra.mrb[0].mxu0 %v10229_v6  ;;  %v17765_v52 = vrot.slane %v14357_v40, 5 }
 0x29b   : > { %v12663_v10 = vpop.eup %12662  ;;  %v2044_v33 = vsel %vm14100_vm11, %v2036_v11, %v2043_v5  ;;  %v2297_v13 = vsel %vm13507_vm2, %v2045_v21, %v2296_v22  ;;  %11510 = vmatpush3.bf16.msra.mxu0 %v13276_v41  ;;  %v2489_v62 = vshrl.u32 %v2371_v25, 16  ;;  %v2492_v4 = vshll.u32 %v2371_v25, 16 }
 0x29c   : > { %2295 = vst [vmem:[#allocation3 + $0x88] sm:$0xf] %v2044_v33  ;;  %2298 = vst [vmem:[#allocation3 + $0x8c] sm:$0x1] %v2297_v13  ;;  %v1739_v58 = vmul.f32 %v12663_v10, %v14224_v17  ;;  %v2481_v23 = vor.u32 %v2480_v44, %v14381_v7  ;;  %v14395_v24 = vrot.slane %v17765_v52, 4  ;;  %v2502_v37 = vshrl.u32 %v14378_v1, 16  ;;  %11511 = vmatprep.subr.bf16.mxu0 %v12275_v63 }
 0x29d   : > { %v14403_v14 = vrot.slane %v2489_v62, 4  ;;  %v14405_v16 = vrot.slane %v2492_v4, 5  ;;  %v10230_v17 = vcombine.low %v2371_v25, %v14378_v1  ;;  %v14412_v11 = vadd.f32 %v13277_v61, %v14235_v42  ;;  %v2313_v44 = vld [vmem:[#allocation3 + $0xa8] sm:$0xf] }
 0x29e   : > { %v12665_v39 = vpop.eup %12664  ;;  %v10718_v29 = vpack.c.bf16 %v1739_v58, %v1739_v58  ;;  %v14415_v43 = vrot.slane %v2481_v23, 4  ;;  %v14418_v53 = vadd.f32 %v13277_v61, %v14239_v31  ;;  %v14422_v59 = vadd.f32 %v13277_v61, %v14247_v30  ;;  %v12285_v23 = vld [vmem:[%s17709_s7 + $0xa0] sm:$0xff]  }
 0x29f   : > { %v1737_v51 = vmul.f32 %v12665_v39, %v14261_v47  ;;  %v12667_v38 = vpop.eup %12666  ;;  %11477 = vmatprep.mubr.bf16.mxu0 %v10230_v17  ;;  %v10164_v15 = vmul.f32 -1.442695, %v14412_v11  ;;  %v14425_v3 = vadd.f32 %v13277_v61, %v14252_v36  ;;  %v2513_v42 = vshrl.u32 %v14398_v32, 16  ;;  %11512 = vmatpush3.bf16.msra.mxu0 %v12275_v63  ;;  %v2306_v39 = vld [vmem:[#allocation3 + $0x9c] sm:$0xf] }
 0x2a0   : > { %v12669_v27 = vpop.eup %12668  ;;  %v2081_v47 = vshrl.u32 %v10718_v29, 16  ;;  %v2084_v0 = vshll.u32 %v10718_v29, 16  ;;  %v1740_v31 = vmul.f32 %v12667_v38, %v14265_v50  ;;  %11513 = vmatprep.subr.bf16.mxu0 %v12279_v9  ;;  %v10162_v36 = vmul.f32 -1.442695, %v14418_v53 }
 0x2a1   : > { %v10716_v22 = vpack.c.bf16 %v1737_v51, %v1737_v51  ;;  %v12671_v34 = vpop.eup %12670  ;;  %v1738_v30 = vmul.f32 %v12669_v27, %v14272_v60  ;;  %12678 = vpow2.f32 %v10164_v15  ;;  %v14435_v57 = vmul.f32 -1.442695, %v14422_v59  ;;  %v2317_v27 = vld [vmem:[#allocation3 + $0xb0] sm:$0x1] }
 0x2a2   : > { %v12673_v6 = vpop.eup %12672  ;;  %v2083_v25 = vrot.slane %v2081_v47, 7  ;;  %v10719_v21 = vpack.c.bf16 %v1740_v31, %v1740_v31  ;;  %v1633_v13 = vadd.f32 1.0, %v12671_v34  ;;  %12680 = vpow2.f32 %v10162_v36 }
 0x2a3   : > { %v2064_v63 = vshrl.u32 %v10716_v22, 16  ;;  %v2067_v5 = vshll.u32 %v10716_v22, 16  ;;  %v12675_v50 = vpop.eup %12674  ;;  %v10717_v10 = vpack.c.bf16 %v1738_v30, %v1738_v30  ;;  %v1743_v33 = vmul.f32 %v12673_v6, %v14276_v18  ;;  %11514 = vmatpush3.bf16.msra.mxu0 %v12279_v9  ;;  %v2327_v6 = vld [vmem:[#allocation3 + $0xc0] sm:$0xf] }
 0x2a4   : > { %v12677_v60 = vpop.eup %12676  ;;  %v2086_v41 = vor.u32 %v2084_v0, %v2083_v25  ;;  %v2087_v62 = vrot.slane %v2083_v25, 4  ;;  %v2089_v58 = vshrl.u32 %v10719_v21, 16  ;;  %11515 = vmatprep.subr.bf16.mxu0 %v12282_v12  ;;  %v2092_v17 = vshll.u32 %v10719_v21, 16  ;;  %v2310_v0 = vld [vmem:[#allocation3 + $0xa4] sm:$0x1] }
 0x2a5   : > { %v2066_v4 = vrot.slane %v2064_v63, 7  ;;  %v2072_v61 = vshrl.u32 %v10717_v10, 16  ;;  %v2075_v29 = vshll.u32 %v10717_v10, 16  ;;  %v10722_v51 = vpack.c.bf16 %v1743_v33, %v1743_v33  ;;  %v12288_v63 = vld [vmem:[%s17709_s7 + $0xa8] sm:$0xff]  }
 0x2a6   : > { %v2314_v18 = vsel %vm14089_vm10, %v2086_v41, %v2313_v44  ;;  %v2091_v15 = vrot.slane %v2089_v58, 7  ;;  %12682 = vrcp.f32 %v1633_v13  ;;  %v1636_v25 = vadd.f32 1.0, %v12675_v50  ;;  %v14455_v13 = vld [vmem:[#allocation3 + $0x28] sm:$0xf]  ;;  %v2420_v41 = vld [vmem:[#allocation3 + $0x14] sm:$0x1] }
 0x2a7   : > { %v2069_v38 = vor.u32 %v2067_v5, %v2066_v4  ;;  %v2070_v9 = vrot.slane %v2066_v4, 4  ;;  %2315 = vst [vmem:[#allocation3 + $0xa8] sm:$0xf] %v2314_v18  ;;  %v2074_v47 = vrot.slane %v2072_v61, 7  ;;  %v2115_v22 = vshrl.u32 %v10722_v51, 16  ;;  %11516 = vmatpush3.bf16.msra.mxu0 %v12282_v12 }
 0x2a8   : > { %v2118_v31 = vshll.u32 %v10722_v51, 16  ;;  %v2094_v30 = vor.u32 %v2092_v17, %v2091_v15  ;;  %v2096_v36 = vrot.slane %v2091_v15, 4  ;;  %11517 = vmatprep.subr.bf16.mxu0 %v12285_v23  ;;  %v1634_v10 = vadd.f32 1.0, %v12677_v60  ;;  %v2375_v4 = vld [vmem:[#allocation3 + $0x30] sm:$0xf] }
 0x2a9   : > { %v2307_v34 = vsel %vm14089_vm10, %v2069_v38, %v2306_v39  ;;  %v2077_v5 = vor.u32 %v2075_v29, %v2074_v47  ;;  %v2079_v21 = vrot.slane %v2074_v47, 4  ;;  %v14448_v44 = vrot.slane %v2115_v22, 7  ;;  %v14474_v15 = vld [vmem:[#allocation3 + $0x34] sm:$0xf] }
 0x2aa   : > { %2308 = vst [vmem:[#allocation3 + $0x9c] sm:$0xf] %v2307_v34  ;;  %v2095_v12 = vsel %vm14100_vm11, %v2087_v62, %v2094_v30  ;;  %v2318_v33 = vsel %vm13507_vm2, %v2096_v36, %v2317_v27  ;;  %12684 = vrcp.f32 %v1636_v25  ;;  %v10163_v50 = vmul.f32 -1.442695, %v14425_v3  ;;  %v14489_v25 = vld [vmem:[#allocation3 + $0x40] sm:$0xf] }
 0x2ab   : > { %v12679_v58 = vpop.eup %12678  ;;  %2316 = vst [vmem:[#allocation3 + $0xac] sm:$0xf] %v2095_v12  ;;  %2319 = vst [vmem:[#allocation3 + $0xb0] sm:$0x1] %v2318_v33  ;;  %v2078_v39 = vsel %vm14100_vm11, %v2070_v9, %v2077_v5  ;;  %v2311_v60 = vsel %vm13507_vm2, %v2079_v21, %v2310_v0  ;;  %v2120_v62 = vor.u32 %v2118_v31, %v14448_v44  ;;  %v2121_v17 = vrot.slane %v14448_v44, 4  ;;  %v12298_v12 = vld [vmem:[%s17709_s7 + $0xb8] sm:$0xff]  }
 0x2ac   : > { %11518 = vmatpush3.bf16.msra.mxu0 %v12285_v23  ;;  %2309 = vst [vmem:[#allocation3 + $0xa0] sm:$0xf] %v2078_v39  ;;  %2312 = vst [vmem:[#allocation3 + $0xa4] sm:$0x1] %v2311_v60  ;;  %12686 = vrcp.f32 %v1634_v10  ;;  %v1639_v61 = vadd.f32 1.0, %v12679_v58  ;;  %v14465_v29 = vrot.slane %v2513_v42, 4  ;;  %v12681_v18 = vpop.eup %12680  ;;  %v10231_v23 = vcombine.low %v14398_v32, %v14455_v13 }
 0x2ad   : > { %v2516_v51 = vshll.u32 %v14398_v32, 16  ;;  %11519 = vmatprep.subr.bf16.mxu0 %v12288_v63  ;;  %v2328_v38 = vsel %vm14089_vm10, %v2120_v62, %v2327_v6  ;;  %12688 = vpow2.f32 %v14435_v57  ;;  %v2526_v9 = vshrl.u32 %v14455_v13, 16  ;;  %v12292_v42 = vld [vmem:[%s17709_s7 + $0xb0] sm:$0xff]   ;;  %v2421_v31 = vld [vmem:[#allocation3 + $0x20] sm:$0x1] }
 0x2ae   : > { %2329 = vst [vmem:[#allocation3 + $0xc0] sm:$0xf] %v2328_v38  ;;  %12690 = vrcp.f32 %v1639_v61  ;;  %v1637_v27 = vadd.f32 1.0, %v12681_v18  ;;  %v2477_v57 = vsel %vm13997_vm7, %v14376_v54, %v14381_v7  ;;  %11478 = vmatmul.mubr.bf16.gmra.mrb[4].mxu0 %v10231_v23  ;;  %v2484_v0 = vshll.u32 %v2420_v41, 16  ;;  %v2377_v6 = vld [vmem:[#allocation3 + $0x3c] sm:$0xf] }
 0x2af   : > { %v14479_v47 = vrot.slane %v2516_v51, 5  ;;  %12692 = vpow2.f32 %v10163_v50  ;;  %v2537_v32 = vshrl.u32 %v2375_v4, 16  ;;  %v2540_v22 = vshll.u32 %v2375_v4, 16  ;;  %v12300_v44 = vld [vmem:[%s17709_s7 + $0x220] sm:$0xff]  }
 0x2b0   : > { %12694 = vrcp.f32 %v1637_v27  ;;  %v2550_v34 = vshrl.u32 %v14474_v15, 16  ;;  %v10232_v30 = vcombine.low %v2375_v4, %v14474_v15  ;;  %v2495_v36 = vor.u32 %v14405_v16, %v14403_v14  ;;  %11520 = vmatpush3.bf16.msra.mxu0 %v12288_v63  ;;  %v12683_v5 = vpop.eup %12682 }
 0x2b1   : > { %v2486_v54 = vrot.slane %v2484_v0, 5  ;;  %v14491_v7 = vrot.slane %v2537_v32, 4  ;;  %v14493_v21 = vrot.slane %v2540_v22, 5  ;;  %v2498_v10 = vshll.u32 %v14378_v1, 16  ;;  %11521 = vmatprep.subr.bf16.mxu0 %v12292_v42  ;;  %v12293_v1 = vld [vmem:[%s17709_s7 + $0x208] sm:$0xff]  }
 0x2b2   : > { %v1741_v33 = vmul.f32 %v12683_v5, %v14287_v46  ;;  %11481 = vmatprep.mubr.bf16.mxu0 %v10232_v30  ;;  %v14500_v14 = vrot.slane %v2495_v36, 4  ;;  %v2504_v16 = vrot.slane %v2502_v37, 4  ;;  %v2508_v63 = vshll.u32 %v2421_v31, 16 }
 0x2b3   : > { %v2487_v50 = vsel %vm13997_vm7, %v14415_v43, %v2486_v54  ;;  %v14507_v41 = vrot.slane %v2498_v10, 5  ;;  %v2561_v4 = vshrl.u32 %v2377_v6, 16  ;;  %v2564_v58 = vshll.u32 %v2377_v6, 16 }
 0x2b4   : > { %v12685_v39 = vpop.eup %12684  ;;  %v10720_v60 = vpack.c.bf16 %v1741_v33, %v1741_v33  ;;  %v10203_v62 = vcombine.low %v2477_v57, %v2487_v50  ;;  %v14509_v61 = vrot.slane %v2508_v63, 5  ;;  %v2574_v46 = vshrl.u32 %v14489_v25, 16  ;;  %11522 = vmatpush3.bf16.msra.mxu0 %v12292_v42 }
 0x2b5   : > { %v1744_v37 = vmul.f32 %v12685_v39, %v14293_v20  ;;  %v2501_v43 = vsel %vm13997_vm7, %v14500_v14, %v14507_v41  ;;  %v2505_v51 = vor.u32 %v2504_v16, %v14507_v41  ;;  %v14521_v18 = vrot.slane %v2561_v4, 4  ;;  %11523 = vmatprep.subr.bf16.mxu0 %v12298_v12  ;;  %v14529_v20 = vld [vmem:[%s17709_s7 + $0xc0] sm:$0xff]   ;;  %v2320_v14 = vld [vmem:[#allocation3 + $0xb4] sm:$0xf]  ;;  %v2331_v4 = vld [vmem:[#allocation3 + $0xc8] sm:$0x1] }
 0x2b6   : > { %v12687_v38 = vpop.eup %12686  ;;  %v2098_v23 = vshrl.u32 %v10720_v60, 16  ;;  %v2101_v27 = vshll.u32 %v10720_v60, 16  ;;  %11422 = vmatmul.mubr.bf16.vlgmr.msra.gmra.mrb[72].mxu1 %v10203_v62  ;;  %v14523_v57 = vrot.slane %v2564_v58, 5  ;;  %v10233_v42 = vcombine.low %v2377_v6, %v14489_v25 }
 0x2b7   : > { %v12689_v0 = vpop.eup %12688  ;;  %v10723_v32 = vpack.c.bf16 %v1744_v37, %v1744_v37  ;;  %v1742_v22 = vmul.f32 %v12687_v38, %v14305_v8  ;;  %v2506_v31 = vrot.slane %v2505_v51, 4  ;;  %v2519_v30 = vor.u32 %v14479_v47, %v14465_v29  ;;  %11977 = vmatpush3.bf16.msra.mxu1 %v14257_v2  ;;  %v12296_v8 = vld [vmem:[%s17709_s7 + $0x210] sm:$0xff]   ;;  %v2324_v37 = vld [vmem:[#allocation3 + $0xbc] sm:$0x1] }
 0x2b8   : > { %v12691_v36 = vpop.eup %12690  ;;  %v2100_v5 = vrot.slane %v2098_v23, 7  ;;  %v1640_v54 = vadd.f32 1.0, %v12689_v0  ;;  %11482 = vmatmul.mubr.bf16.gmra.mrb[8].mxu0 %v10233_v42  ;;  %v2522_v6 = vshll.u32 %v14455_v13, 16  ;;  %v14538_v10 = vrot.slane %v2526_v9, 4  ;;  %11970 = vmatprep.subr.bf16.mxu1 %v12293_v1  ;;  %v12297_v51 = vld [vmem:[%s17709_s7 + $0x218] sm:$0xff]  }
 0x2b9   : > { %v12693_v33 = vpop.eup %12692  ;;  %v2123_v29 = vshrl.u32 %v10723_v32, 16  ;;  %v2126_v47 = vshll.u32 %v10723_v32, 16  ;;  %v10721_v2 = vpack.c.bf16 %v1742_v22, %v1742_v22  ;;  %v1747_v16 = vmul.f32 %v12691_v36, %v14412_v11  ;;  %11524 = vmatpush3.bf16.msra.mxu0 %v12298_v12  ;;  %v14554_v22 = vld [vmem:[#allocation3 + $0x2c] sm:$0x1]  ;;  %v2379_v36 = vld [vmem:[#allocation3 + $0x48] sm:$0xf] }
 0x2ba   : > { %v12695_v63 = vpop.eup %12694  ;;  %v2103_v50 = vor.u32 %v2101_v27, %v2100_v5  ;;  %v2104_v41 = vrot.slane %v2100_v5, 4  ;;  %12696 = vrcp.f32 %v1640_v54  ;;  %v1638_v13 = vadd.f32 1.0, %v12693_v33  ;;  %11561 = vmatprep.subr.bf16.mxu0 %v14529_v20  ;;  %v2341_v33 = vld [vmem:[#allocation3 + $0xd8] sm:$0xf] }
 0x2bb   : > { %v2125_v9 = vrot.slane %v2123_v29, 7  ;;  %v2106_v58 = vshrl.u32 %v10721_v2, 16  ;;  %v2109_v39 = vshll.u32 %v10721_v2, 16  ;;  %v10726_v60 = vpack.c.bf16 %v1747_v16, %v1747_v16  ;;  %11978 = vmatpush3.bf16.msra.mxu1 %v12293_v1  ;;  %v14572_v2 = vld [vmem:[#allocation3 + $0x4c] sm:$0xf] }
 0x2bc   : > { %v2321_v62 = vsel %vm14089_vm10, %v2103_v50, %v2320_v14  ;;  %v1745_v11 = vmul.f32 %v12695_v63, %v14418_v53  ;;  %12698 = vrcp.f32 %v1638_v13  ;;  %v2511_v12 = vsel %vm13997_vm7, %v2506_v31, %v14509_v61  ;;  %11971 = vmatprep.subr.bf16.mxu1 %v12296_v8 }
 0x2bd   : > { %2322 = vst [vmem:[#allocation3 + $0xb4] sm:$0xf] %v2321_v62  ;;  %v2128_v38 = vor.u32 %v2126_v47, %v2125_v9  ;;  %v2130_v23 = vrot.slane %v2125_v9, 4  ;;  %v2108_v1 = vrot.slane %v2106_v58, 7  ;;  %v2149_v27 = vshrl.u32 %v10726_v60, 16 }
 0x2be   : > { %v2152_v42 = vshll.u32 %v10726_v60, 16  ;;  %v10724_v0 = vpack.c.bf16 %v1745_v11, %v1745_v11  ;;  %v10204_v32 = vcombine.low %v2501_v43, %v2511_v12  ;;  %v2520_v53 = vrot.slane %v2519_v30, 4 }
 0x2bf   : > { %v2129_v61 = vsel %vm14100_vm11, %v2121_v17, %v2128_v38  ;;  %v2332_v31 = vsel %vm13507_vm2, %v2130_v23, %v2331_v4  ;;  %v2111_v5 = vor.u32 %v2109_v39, %v2108_v1  ;;  %v2113_v54 = vrot.slane %v2108_v1, 4  ;;  %11979 = vmatpush3.bf16.msra.mxu1 %v12296_v8  ;;  %v14588_v38 = vld [vmem:[#allocation3 + $0x38] sm:$0x1] }
 0x2c0   : > { %2330 = vst [vmem:[#allocation3 + $0xc4] sm:$0xf] %v2129_v61  ;;  %2333 = vst [vmem:[#allocation3 + $0xc8] sm:$0x1] %v2332_v31  ;;  %v14562_v14 = vrot.slane %v2149_v27, 7  ;;  %v2132_v43 = vshrl.u32 %v10724_v0, 16  ;;  %11425 = vmatprep.mubr.bf16.mxu1 %v10204_v32  ;;  %11972 = vmatprep.subr.bf16.mxu1 %v12297_v51  ;;  %v10234_v27 = vcombine.low %v2379_v36, %v14572_v2 }
 0x2c1   : > { %v2135_v29 = vshll.u32 %v10724_v0, 16  ;;  %v2524_v30 = vrot.slane %v2522_v6, 5  ;;  %v2112_v17 = vsel %vm14100_vm11, %v2104_v41, %v2111_v5  ;;  %v2325_v47 = vsel %vm13507_vm2, %v2113_v54, %v2324_v37  ;;  %v2334_v41 = vld [vmem:[#allocation3 + $0xcc] sm:$0xf] }
 0x2c2   : > { %v2532_v8 = vshll.u32 %v14554_v22, 16  ;;  %v2585_v16 = vshrl.u32 %v2379_v36, 16  ;;  %2323 = vst [vmem:[#allocation3 + $0xb8] sm:$0xf] %v2112_v17  ;;  %2326 = vst [vmem:[#allocation3 + $0xbc] sm:$0x1] %v2325_v47  ;;  %v2154_v6 = vor.u32 %v2152_v42, %v14562_v14  ;;  %11485 = vmatprep.mubr.bf16.mxu0 %v10234_v27 }
 0x2c3   : > { %v2155_v63 = vrot.slane %v14562_v14, 4  ;;  %v14576_v50 = vrot.slane %v2132_v43, 7  ;;  %v2525_v4 = vsel %vm13997_vm7, %v2520_v53, %v2524_v30  ;;  %v2529_v13 = vor.u32 %v14538_v10, %v2524_v30  ;;  %11980 = vmatpush3.bf16.msra.mxu1 %v12297_v51  ;;  %v12301_v10 = vld [vmem:[%s17709_s7 + $0x228] sm:$0xff]   ;;  %v2381_v42 = vld [vmem:[#allocation3 + $0x54] sm:$0xf] }
 0x2c4   : > { %v2534_v9 = vrot.slane %v2532_v8, 5  ;;  %v14581_v58 = vrot.slane %v2585_v16, 4  ;;  %v2588_v39 = vshll.u32 %v2379_v36, 16  ;;  %v12697_v60 = vpop.eup %12696  ;;  %v2342_v62 = vsel %vm14089_vm10, %v2154_v6, %v2341_v33  ;;  %11973 = vmatprep.subr.bf16.mxu1 %v12300_v44  ;;  %v2345_v47 = vld [vmem:[#allocation3 + $0xe0] sm:$0x1] }
 0x2c5   : > { %v2137_v37 = vor.u32 %v2135_v29, %v14576_v50  ;;  %v2138_v11 = vrot.slane %v14576_v50, 4  ;;  %v2598_v12 = vshrl.u32 %v14572_v2, 16  ;;  %2343 = vst [vmem:[#allocation3 + $0xd8] sm:$0xf] %v2342_v62  ;;  %v1748_v51 = vmul.f32 %v12697_v60, %v14422_v59  ;;  %v2383_v60 = vld [vmem:[#allocation3 + $0x60] sm:$0xf] }
 0x2c6   : > { %v2530_v23 = vrot.slane %v2529_v13, 4  ;;  %v14594_v1 = vrot.slane %v2588_v39, 5  ;;  %v12699_v0 = vpop.eup %12698  ;;  %v2543_v53 = vor.u32 %v14493_v21, %v14491_v7  ;;  %v2546_v61 = vshll.u32 %v14474_v15, 16  ;;  %v14608_v7 = vld [vmem:[#allocation3 + $0x58] sm:$0xf]  ;;  %v12303_v15 = vld [vmem:[%s17709_s7 + $0x230] sm:$0xff]  }
 0x2c7   : > { %v2335_v32 = vsel %vm14089_vm10, %v2137_v37, %v2334_v41  ;;  %v2552_v31 = vrot.slane %v2550_v34, 4  ;;  %v10727_v59 = vpack.c.bf16 %v1748_v51, %v1748_v51  ;;  %v1746_v5 = vmul.f32 %v12699_v0, %v14425_v3  ;;  %11981 = vmatpush3.bf16.msra.mxu1 %v12300_v44  ;;  %v14618_v39 = vld [vmem:[#allocation3 + $0x44] sm:$0x1]  ;;  %v2338_v37 = vld [vmem:[#allocation3 + $0xd4] sm:$0x1] }
 0x2c8   : > { %2336 = vst [vmem:[#allocation3 + $0xcc] sm:$0xf] %v2335_v32  ;;  %v2535_v36 = vsel %vm13997_vm7, %v2530_v23, %v2534_v9  ;;  %v2556_v54 = vshll.u32 %v14588_v38, 16  ;;  %v2544_v43 = vrot.slane %v2543_v53, 4  ;;  %v2548_v29 = vrot.slane %v2546_v61, 5  ;;  %11974 = vmatprep.subr.bf16.mxu1 %v12301_v10  ;;  %v12304_v32 = vld [vmem:[%s17709_s7 + $0x238] sm:$0xff]  }
 0x2c9   : > { %v10205_v33 = vcombine.low %v2525_v4, %v2535_v36  ;;  %v2609_v21 = vshrl.u32 %v2381_v42, 16  ;;  %v2157_v34 = vshrl.u32 %v10727_v59, 16  ;;  %v2160_v3 = vshll.u32 %v10727_v59, 16  ;;  %v14656_v50 = vld [vmem:[#allocation3 + $0x70] sm:$0xf] }
 0x2ca   : > { %v10725_v30 = vpack.c.bf16 %v1746_v5, %v1746_v5  ;;  %v2558_v17 = vrot.slane %v2556_v54, 5  ;;  %v2549_v44 = vsel %vm13997_vm7, %v2544_v43, %v2548_v29  ;;  %v2553_v8 = vor.u32 %v2552_v31, %v2548_v29  ;;  %v14643_v43 = vld [vmem:[#allocation3 + $0x50] sm:$0x1] }
 0x2cb   : > { %11426 = vmatmul.mubr.bf16.gmra.mrb[76].mxu1 %v10205_v33  ;;  %v14615_v16 = vrot.slane %v2609_v21, 4  ;;  %v2612_v6 = vshll.u32 %v2381_v42, 16  ;;  %v2159_v4 = vrot.slane %v2157_v34, 7  ;;  %v2622_v9 = vshrl.u32 %v14608_v7, 16 }
 0x2cc   : > { %v2140_v41 = vshrl.u32 %v10725_v30, 16  ;;  %v2143_v13 = vshll.u32 %v10725_v30, 16  ;;  %11982 = vmatpush3.bf16.msra.mxu1 %v12301_v10  ;;  %v2360_v62 = vld [vmem:[#allocation3 + $0xd8] sm:$0xf]  ;;  %v2554_v51 = vrot.slane %v2553_v8, 4  ;;  %v10235_v27 = vcombine.low %v2381_v42, %v14608_v7 }
 0x2cd   : > { %v14620_v23 = vrot.slane %v2612_v6, 5  ;;  %v2567_v0 = vor.u32 %v14523_v57, %v14521_v18  ;;  %11975 = vmatprep.subr.bf16.mxu1 %v12303_v15  ;;  %v2361_v53 = vsel %vm14089_vm10, 0, %v2360_v62  ;;  %v2162_v61 = vor.u32 %v2160_v3, %v2159_v4  ;;  %v14635_v57 = vld [vmem:[#allocation3 + $0x64] sm:$0xf]  ;;  %v2385_v3 = vld [vmem:[#allocation3 + $0x6c] sm:$0xf] }
 0x2ce   : > { %v2164_v10 = vrot.slane %v2159_v4, 4  ;;  %v2142_v31 = vrot.slane %v2140_v41, 7  ;;  %2362 = vst [vmem:[#allocation3 + $0xd8] sm:$0xf] %v2361_v53  ;;  %v2559_v59 = vsel %vm13997_vm7, %v2554_v51, %v2558_v17  ;;  %11486 = vmatmul.mubr.bf16.gmra.mrb[12].mxu0 %v10235_v27  ;;  %v2570_v5 = vshll.u32 %v14489_v25, 16 }
 0x2cf   : > { %v2568_v42 = vrot.slane %v2567_v0, 4  ;;  %v2576_v18 = vrot.slane %v2574_v46, 4  ;;  %v2163_v26 = vsel %vm14100_vm11, %v2155_v63, %v2162_v61  ;;  %v10206_v29 = vcombine.low %v2549_v44, %v2559_v59  ;;  %v2387_v53 = vld [vmem:[#allocation3 + $0x78] sm:$0xf] }
 0x2d0   : > { %v2346_v36 = vsel %vm13507_vm2, %v2164_v10, %v2345_v47  ;;  %v2145_v54 = vor.u32 %v2143_v13, %v2142_v31  ;;  %v2147_v33 = vrot.slane %v2142_v31, 4  ;;  %11983 = vmatpush3.bf16.msra.mxu1 %v12303_v15  ;;  %2344 = vst [vmem:[#allocation3 + $0xdc] sm:$0xf] %v2163_v26  ;;  %v2572_v25 = vrot.slane %v2570_v5, 5 }
 0x2d1   : > { %2347 = vst [vmem:[#allocation3 + $0xe0] sm:$0x1] %v2346_v36  ;;  %v2580_v46 = vshll.u32 %v14618_v39, 16  ;;  %v2633_v21 = vshrl.u32 %v2383_v60, 16  ;;  %11976 = vmatprep.subr.bf16.mxu1 %v12304_v32  ;;  %2363 = vst [vmem:[#allocation3 + $0xdc] sm:$0xf] %v17871_v56  ;;  %11429 = vmatprep.mubr.bf16.mxu1 %v10206_v29  ;;  %v2591_v44 = vor.u32 %v14594_v1, %v14581_v58 }
 0x2d2   : > { %v2146_v14 = vsel %vm14100_vm11, %v2138_v11, %v2145_v54  ;;  %v2339_v63 = vsel %vm13507_vm2, %v2147_v33, %v2338_v37  ;;  %v2636_v34 = vshll.u32 %v2383_v60, 16  ;;  %v2646_v15 = vshrl.u32 %v14635_v57, 16 }
 0x2d3   : > { %2337 = vst [vmem:[#allocation3 + $0xd0] sm:$0xf] %v2146_v14  ;;  %2340 = vst [vmem:[#allocation3 + $0xd4] sm:$0x1] %v2339_v63  ;;  %v2573_v30 = vsel %vm13997_vm7, %v2568_v42, %v2572_v25  ;;  %v2577_v17 = vor.u32 %v2576_v18, %v2572_v25  ;;  %v2582_v56 = vrot.slane %v2580_v46, 5  ;;  %v2635_v47 = vrot.slane %v2633_v21, 4 }
 0x2d4   : > { %v2638_v48 = vrot.slane %v2636_v34, 5  ;;  %v10236_v11 = vcombine.low %v2383_v60, %v14635_v57  ;;  %v2594_v8 = vshll.u32 %v14572_v2, 16  ;;  %11984 = vmatpush3.bf16.msra.mxu1 %v12304_v32  ;;  %v2600_v4 = vrot.slane %v2598_v12, 4  ;;  %v14666_v60 = vld [vmem:[#allocation3 + $0x5c] sm:$0x1] }
 0x2d5   : > { %v2578_v6 = vrot.slane %v2577_v17, 4  ;;  %v2604_v41 = vshll.u32 %v14643_v43, 16  ;;  %v2657_v13 = vshrl.u32 %v2385_v3, 16  ;;  %v2592_v62 = vrot.slane %v2591_v44, 4  ;;  %v14673_v42 = vld [vmem:[#allocation3 + $0x7c] sm:$0xf] }
 0x2d6   : > { %11489 = vmatprep.mubr.bf16.mxu0 %v10236_v11  ;;  %v2596_v37 = vrot.slane %v2594_v8, 5  ;;  %v2660_v51 = vshll.u32 %v2385_v3, 16  ;;  %v2670_v27 = vshrl.u32 %v14656_v50, 16  ;;  %v10237_v32 = vcombine.low %v2385_v3, %v14656_v50  ;;  %v14683_v46 = vld [vmem:[#allocation3 + $0x68] sm:$0x1] }
 0x2d7   : > { %v2583_v58 = vsel %vm13997_vm7, %v2578_v6, %v2582_v56  ;;  %v2606_v1 = vrot.slane %v2604_v41, 5  ;;  %v2659_v0 = vrot.slane %v2657_v13, 4  ;;  %v2615_v18 = vor.u32 %v14620_v23, %v14615_v16  ;;  %v2389_v23 = vld [vmem:[#allocation3 + $0x84] sm:$0xf] }
 0x2d8   : > { %v2364_v12 = vld [vmem:[#allocation3 + $0xe0] sm:$0x1]  ;;  %v10207_v61 = vcombine.low %v2573_v30, %v2583_v58  ;;  %v2597_v10 = vsel %vm13997_vm7, %v2592_v62, %v2596_v37  ;;  %v2601_v31 = vor.u32 %v2600_v4, %v2596_v37  ;;  %v2662_v59 = vrot.slane %v2660_v51, 5  ;;  %11490 = vmatmul.mubr.bf16.gmra.mrb[16].mxu0 %v10237_v32  ;;  %v14689_v30 = vld [vmem:[#allocation3 + $0x88] sm:$0xf] }
 0x2d9   : > { %v2365_v5 = vsel %vm13507_vm2, 0, %v2364_v12  ;;  %v2618_v26 = vshll.u32 %v14608_v7, 16  ;;  %v2624_v36 = vrot.slane %v2622_v9, 4  ;;  %v2628_v33 = vshll.u32 %v14666_v60, 16  ;;  %v14698_v58 = vld [vmem:[#allocation3 + $0x74] sm:$0x1] }
 0x2da   : > { %2366 = vst [vmem:[#allocation3 + $0xe0] sm:$0x1] %v2365_v5  ;;  %11430 = vmatmul.mubr.bf16.gmra.mrb[80].mxu1 %v10207_v61  ;;  %v2602_v54 = vrot.slane %v2601_v31, 4  ;;  %v2681_v29 = vshrl.u32 %v2387_v53, 16  ;;  %v2684_v25 = vshll.u32 %v2387_v53, 16  ;;  %v2616_v19 = vrot.slane %v2615_v18, 4 }
 0x2db   : > { %v2620_v21 = vrot.slane %v2618_v26, 5  ;;  %v2694_v14 = vshrl.u32 %v14673_v42, 16  ;;  %v10238_v16 = vcombine.low %v2387_v53, %v14673_v42  ;;  %v2630_v9 = vrot.slane %v2628_v33, 5  ;;  %v14706_v31 = vld [vmem:[#allocation3 + $0x94] sm:$0xf] }
 0x2dc   : > { %v2607_v63 = vsel %vm13997_vm7, %v2602_v54, %v2606_v1  ;;  %v2683_v34 = vrot.slane %v2681_v29, 4  ;;  %v2686_v3 = vrot.slane %v2684_v25, 5  ;;  %v2639_v44 = vor.u32 %v2638_v48, %v2635_v47  ;;  %v2391_v48 = vld [vmem:[#allocation3 + $0x90] sm:$0xf] }
 0x2dd   : > { %v10208_v17 = vcombine.low %v2597_v10, %v2607_v63  ;;  %v2621_v56 = vsel %vm13997_vm7, %v2616_v19, %v2620_v21  ;;  %v2625_v11 = vor.u32 %v2624_v36, %v2620_v21  ;;  %11493 = vmatprep.mubr.bf16.mxu0 %v10238_v16  ;;  %v2642_v8 = vshll.u32 %v14635_v57, 16  ;;  %v14715_v16 = vld [vmem:[#allocation3 + $0x80] sm:$0x1] }
 0x2de   : > { %v2648_v6 = vrot.slane %v2646_v15, 4  ;;  %v2652_v4 = vshll.u32 %v14683_v46, 16  ;;  %v2705_v41 = vshrl.u32 %v2389_v23, 16  ;;  %v2640_v62 = vrot.slane %v2639_v44, 4 }
 0x2df   : > { %11433 = vmatprep.mubr.bf16.mxu1 %v10208_v17  ;;  %v2626_v13 = vrot.slane %v2625_v11, 4  ;;  %v2708_v37 = vshll.u32 %v2389_v23, 16  ;;  %v2718_v51 = vshrl.u32 %v14689_v30, 16  ;;  %v2644_v1 = vrot.slane %v2642_v8, 5  ;;  %v2393_v17 = vld [vmem:[#allocation3 + $0x9c] sm:$0xf] }
 0x2e0   : > { %v2654_v32 = vrot.slane %v2652_v4, 5  ;;  %v14700_v53 = vrot.slane %v2705_v41, 4  ;;  %v10239_v47 = vcombine.low %v2389_v23, %v14689_v30  ;;  %v2663_v61 = vor.u32 %v2662_v59, %v2659_v0 }
 0x2e1   : > { %v2631_v15 = vsel %vm13997_vm7, %v2626_v13, %v2630_v9  ;;  %v2710_v12 = vrot.slane %v2708_v37, 5  ;;  %v2666_v10 = vshll.u32 %v14656_v50, 16  ;;  %v2645_v18 = vsel %vm13997_vm7, %v2640_v62, %v2644_v1 }
 0x2e2   : > { %v10209_v5 = vcombine.low %v2621_v56, %v2631_v15  ;;  %v2649_v26 = vor.u32 %v2648_v6, %v2644_v1  ;;  %11494 = vmatmul.mubr.bf16.gmra.mrb[20].mxu0 %v10239_v47  ;;  %v2672_v36 = vrot.slane %v2670_v27, 4  ;;  %v2664_v54 = vrot.slane %v2663_v61, 4  ;;  %v14722_v6 = vld [vmem:[#allocation3 + $0xa0] sm:$0xf]  ;;  %v14729_v61 = vld [vmem:[#allocation3 + $0x8c] sm:$0x1] }
 0x2e3   : > { %v2668_v33 = vrot.slane %v2666_v10, 5  ;;  %v2676_v29 = vshll.u32 %v14698_v58, 16  ;;  %v2729_v25 = vshrl.u32 %v2391_v48, 16  ;;  %v2732_v59 = vshll.u32 %v2391_v48, 16  ;;  %v2395_v10 = vld [vmem:[#allocation3 + $0xa8] sm:$0xf] }
 0x2e4   : > { %11434 = vmatmul.mubr.bf16.gmra.mrb[84].mxu1 %v10209_v5  ;;  %v2650_v0 = vrot.slane %v2649_v26, 4  ;;  %v2742_v19 = vshrl.u32 %v14706_v31, 16  ;;  %v10240_v21 = vcombine.low %v2391_v48, %v14706_v31  ;;  %v2687_v44 = vor.u32 %v2686_v3, %v2683_v34 }
 0x2e5   : > { %v2669_v23 = vsel %vm13997_vm7, %v2664_v54, %v2668_v33  ;;  %v2673_v63 = vor.u32 %v2672_v36, %v2668_v33  ;;  %v2678_v9 = vrot.slane %v2676_v29, 5  ;;  %v2731_v27 = vrot.slane %v2729_v25, 4  ;;  %v14733_v36 = vld [vmem:[#allocation3 + $0xac] sm:$0xf] }
 0x2e6   : > { %v2655_v56 = vsel %vm13997_vm7, %v2650_v0, %v2654_v32  ;;  %v2734_v11 = vrot.slane %v2732_v59, 5  ;;  %11497 = vmatprep.mubr.bf16.mxu0 %v10240_v21  ;;  %v2690_v8 = vshll.u32 %v14673_v42, 16  ;;  %v2696_v13 = vrot.slane %v2694_v14, 4 }
 0x2e7   : > { %v10210_v4 = vcombine.low %v2645_v18, %v2655_v56  ;;  %v2674_v41 = vrot.slane %v2673_v63, 4  ;;  %v2700_v62 = vshll.u32 %v14715_v16, 16  ;;  %v2688_v37 = vrot.slane %v2687_v44, 4  ;;  %v14738_v63 = vld [vmem:[#allocation3 + $0x98] sm:$0x1] }
 0x2e8   : > { %v2692_v1 = vrot.slane %v2690_v8, 5  ;;  %v2753_v47 = vshrl.u32 %v2393_v17, 16  ;;  %v2756_v48 = vshll.u32 %v2393_v17, 16  ;;  %v2766_v34 = vshrl.u32 %v14722_v6, 16  ;;  %v2397_v8 = vld [vmem:[#allocation3 + $0xb4] sm:$0xf] }
 0x2e9   : > { %11437 = vmatprep.mubr.bf16.mxu1 %v10210_v4  ;;  %v2679_v32 = vsel %vm13997_vm7, %v2674_v41, %v2678_v9  ;;  %v2702_v15 = vrot.slane %v2700_v62, 5  ;;  %v10241_v3 = vcombine.low %v2393_v17, %v14722_v6  ;;  %v2711_v33 = vor.u32 %v2710_v12, %v14700_v53  ;;  %v14744_v41 = vld [vmem:[#allocation3 + $0xb8] sm:$0xf] }
 0x2ea   : > { %v10211_v5 = vcombine.low %v2669_v23, %v2679_v32  ;;  %v2693_v14 = vsel %vm13997_vm7, %v2688_v37, %v2692_v1  ;;  %v2697_v18 = vor.u32 %v2696_v13, %v2692_v1  ;;  %v2755_v26 = vrot.slane %v2753_v47, 4 }
 0x2eb   : > { %v2758_v54 = vrot.slane %v2756_v48, 5  ;;  %11498 = vmatmul.mubr.bf16.gmra.mrb[24].mxu0 %v10241_v3  ;;  %v2714_v29 = vshll.u32 %v14689_v30, 16  ;;  %v2720_v25 = vrot.slane %v2718_v51, 4  ;;  %v2724_v59 = vshll.u32 %v14729_v61, 16 }
 0x2ec   : > { %11438 = vmatmul.mubr.bf16.gmra.mrb[88].mxu1 %v10211_v5  ;;  %v2698_v0 = vrot.slane %v2697_v18, 4  ;;  %v2777_v21 = vshrl.u32 %v2395_v10, 16  ;;  %v2780_v23 = vshll.u32 %v2395_v10, 16  ;;  %v2712_v9 = vrot.slane %v2711_v33, 4 }
 0x2ed   : > { %v2716_v17 = vrot.slane %v2714_v29, 5  ;;  %v2790_v56 = vshrl.u32 %v14733_v36, 16  ;;  %v10242_v44 = vcombine.low %v2395_v10, %v14733_v36  ;;  %v2726_v12 = vrot.slane %v2724_v59, 5  ;;  %v14750_v10 = vld [vmem:[#allocation3 + $0xa4] sm:$0x1] }
 0x2ee   : > { %v2703_v53 = vsel %vm13997_vm7, %v2698_v0, %v2702_v15  ;;  %v2779_v51 = vrot.slane %v2777_v21, 4  ;;  %v2782_v4 = vrot.slane %v2780_v23, 5  ;;  %v2735_v1 = vor.u32 %v2734_v11, %v2731_v27  ;;  %v2399_v15 = vld [vmem:[#allocation3 + $0xc0] sm:$0xf]  ;;  %v14753_v29 = vld [vmem:[#allocation3 + $0xc4] sm:$0xf] }
 0x2ef   : > { %v10212_v13 = vcombine.low %v2693_v14, %v2703_v53  ;;  %v2717_v62 = vsel %vm13997_vm7, %v2712_v9, %v2716_v17  ;;  %v2721_v37 = vor.u32 %v2720_v25, %v2716_v17  ;;  %11501 = vmatprep.mubr.bf16.mxu0 %v10242_v44  ;;  %v2738_v47 = vshll.u32 %v14706_v31, 16 }
 0x2f0   : > { %v2744_v48 = vrot.slane %v2742_v19, 4  ;;  %v2748_v32 = vshll.u32 %v14738_v63, 16  ;;  %v2801_v3 = vshrl.u32 %v2397_v8, 16  ;;  %v2736_v18 = vrot.slane %v2735_v1, 4 }
 0x2f1   : > { %11441 = vmatprep.mubr.bf16.mxu1 %v10212_v13  ;;  %v2722_v5 = vrot.slane %v2721_v37, 4  ;;  %v2804_v33 = vshll.u32 %v2397_v8, 16  ;;  %v2814_v14 = vshrl.u32 %v14744_v41, 16  ;;  %v2740_v25 = vrot.slane %v2738_v47, 5 }
 0x2f2   : > { %v2750_v0 = vrot.slane %v2748_v32, 5  ;;  %v14755_v27 = vrot.slane %v2801_v3, 4  ;;  %v10243_v19 = vcombine.low %v2397_v8, %v14744_v41  ;;  %v2759_v21 = vor.u32 %v2758_v54, %v2755_v26  ;;  %v14766_v54 = vld [vmem:[#allocation3 + $0xb0] sm:$0x1] }
 0x2f3   : > { %v2727_v11 = vsel %vm13997_vm7, %v2722_v5, %v2726_v12  ;;  %v2806_v59 = vrot.slane %v2804_v33, 5  ;;  %v2762_v23 = vshll.u32 %v14722_v6, 16  ;;  %v2741_v17 = vsel %vm13997_vm7, %v2736_v18, %v2740_v25  ;;  %v2401_v5 = vld [vmem:[#allocation3 + $0xcc] sm:$0xf] }
 0x2f4   : > { %v10213_v9 = vcombine.low %v2717_v62, %v2727_v11  ;;  %v2745_v44 = vor.u32 %v2744_v48, %v2740_v25  ;;  %11502 = vmatmul.mubr.bf16.gmra.mrb[28].mxu0 %v10243_v19  ;;  %v2768_v53 = vrot.slane %v2766_v34, 4  ;;  %v2760_v13 = vrot.slane %v2759_v21, 4  ;;  %v14773_v11 = vld [vmem:[#allocation3 + $0xd0] sm:$0xf] }
 0x2f5   : > { %v2764_v37 = vrot.slane %v2762_v23, 5  ;;  %v2772_v1 = vshll.u32 %v14750_v10, 16  ;;  %v2825_v47 = vshrl.u32 %v2399_v15, 16  ;;  %v2828_v32 = vshll.u32 %v2399_v15, 16 }
 0x2f6   : > { %11442 = vmatmul.mubr.bf16.gmra.mrb[92].mxu1 %v10213_v9  ;;  %v2746_v8 = vrot.slane %v2745_v44, 4  ;;  %v2838_v12 = vshrl.u32 %v14753_v29, 16  ;;  %v10244_v26 = vcombine.low %v2399_v15, %v14753_v29  ;;  %v2783_v25 = vor.u32 %v2782_v4, %v2779_v51 }
 0x2f7   : > { %v2765_v62 = vsel %vm13997_vm7, %v2760_v13, %v2764_v37  ;;  %v2769_v48 = vor.u32 %v2768_v53, %v2764_v37  ;;  %v2774_v3 = vrot.slane %v2772_v1, 5  ;;  %v2827_v34 = vrot.slane %v2825_v47, 4  ;;  %v14776_v1 = vld [vmem:[#allocation3 + $0xc8] sm:$0x1] }
 0x2f8   : > { %v2751_v18 = vsel %vm13997_vm7, %v2746_v8, %v2750_v0  ;;  %v2830_v33 = vrot.slane %v2828_v32, 5  ;;  %11505 = vmatprep.mubr.bf16.mxu0 %v10244_v26  ;;  %v2786_v19 = vshll.u32 %v14733_v36, 16  ;;  %v2792_v23 = vrot.slane %v2790_v56, 4 }
 0x2f9   : > { %v10214_v15 = vcombine.low %v2741_v17, %v2751_v18  ;;  %v2770_v21 = vrot.slane %v2769_v48, 4  ;;  %v2796_v9 = vshll.u32 %v14766_v54, 16  ;;  %v2784_v44 = vrot.slane %v2783_v25, 4  ;;  %v14782_v17 = vld [vmem:[#allocation3 + $0xbc] sm:$0x1] }
 0x2fa   : > { %v2788_v53 = vrot.slane %v2786_v19, 5  ;;  %v2849_v13 = vshrl.u32 %v2401_v5, 16  ;;  %v2852_v37 = vshll.u32 %v2401_v5, 16  ;;  %v2862_v0 = vshrl.u32 %v14773_v11, 16 }
 0x2fb   : > { %11445 = vmatprep.mubr.bf16.mxu1 %v10214_v15  ;;  %v2775_v51 = vsel %vm13997_vm7, %v2770_v21, %v2774_v3  ;;  %v2798_v4 = vrot.slane %v2796_v9, 5  ;;  %v10245_v47 = vcombine.low %v2401_v5, %v14773_v11  ;;  %v2807_v18 = vor.u32 %v2806_v59, %v14755_v27 }
 0x2fc   : > { %v10215_v56 = vcombine.low %v2765_v62, %v2775_v51  ;;  %v2789_v8 = vsel %vm13997_vm7, %v2784_v44, %v2788_v53  ;;  %v2793_v32 = vor.u32 %v2792_v23, %v2788_v53  ;;  %v2851_v26 = vrot.slane %v2849_v13, 4  ;;  %v3511_v62 = vld [vmem:[#allocation3 + $0xc] sm:$0xe]  ;;  %v3510_v53 = vld [vmem:[#allocation3] sm:$0xe] }
 0x2fd   : > { %v2854_v48 = vrot.slane %v2852_v37, 5  ;;  %11506 = vmatmul.mubr.bf16.gmra.mrb[32].mxu0 %v10245_v47  ;;  %v2810_v25 = vshll.u32 %v14744_v41, 16  ;;  %v2816_v3 = vrot.slane %v2814_v14, 4  ;;  %v2820_v15 = vshll.u32 %v14782_v17, 16 }
 0x2fe   : > { %11446 = vmatmul.mubr.bf16.gmra.mrb[96].mxu1 %v10215_v56  ;;  %v2794_v19 = vrot.slane %v2793_v32, 4  ;;  %v2831_v5 = vor.u32 %v2830_v33, %v2827_v34  ;;  %v2834_v21 = vshll.u32 %v14753_v29, 16  ;;  %v2808_v9 = vrot.slane %v2807_v18, 4 }
 0x2ff   : > { %v2812_v51 = vrot.slane %v2810_v25, 5  ;;  %v2840_v44 = vrot.slane %v2838_v12, 4  ;;  %v2844_v23 = vshll.u32 %v14776_v1, 16  ;;  %v2822_v59 = vrot.slane %v2820_v15, 5  ;;  %v13279_v15 = vld [vmem:[#allocation3 + $0x14] sm:$0x1] }
 0x300   : > { %v2799_v27 = vsel %vm13997_vm7, %v2794_v19, %v2798_v4  ;;  %v2832_v13 = vrot.slane %v2831_v5, 4  ;;  %v2836_v14 = vrot.slane %v2834_v21, 5  ;;  %v10254_v12 = vrot.slane %v3510_v53, 9 }
 0x301   : > { %v10216_v37 = vcombine.low %v2789_v8, %v2799_v27  ;;  %v2813_v47 = vsel %vm13997_vm7, %v2808_v9, %v2812_v51  ;;  %v2817_v34 = vor.u32 %v2816_v3, %v2812_v51  ;;  %v2846_v33 = vrot.slane %v2844_v23, 5  ;;  %v13278_v8 = vld [vmem:[#allocation3 + $0x8] sm:$0x1] }
 0x302   : > { %v2837_v56 = vsel %vm13997_vm7, %v2832_v13, %v2836_v14  ;;  %v2841_v32 = vor.u32 %v2840_v44, %v2836_v14  ;;  %v17875_v18 = vrot.slane %v13986_v35, 5  ;;  %v3572_v19 = vrot.slane %v13278_v8, 5  ;;  %v14821_v14 = vld [vmem:[#allocation3 + $0xd4] sm:$0x1]  ;;  %v12305_v8 = vld [vmem:[%s17709_s7 + $0xc8] sm:$0xff]  }
 0x303   : > { %11449 = vmatprep.mubr.bf16.mxu1 %v10216_v37  ;;  %v2818_v52 = vrot.slane %v2817_v34, 4  ;;  %v10255_v3 = vrot.slane %v3511_v62, 9  ;;  %v3579_v5 = vrot.slane %v13279_v15, 5  ;;  %v2855_v44 = vor.u32 %v2854_v48, %v2851_v26  ;;  %v6246_v34 = vld [vmem:[#allocation3 + $0x64] sm:$0xf] }
 0x304   : > { %v3571_v25 = vrot.slane %v17875_v18, 4  ;;  %v2842_v21 = vrot.slane %v2841_v32, 4  ;;  %v17878_v9 = vmov %v17875_v18  ;;  %v2858_v23 = vshll.u32 %v14773_v11, 16 }
 0x305   : > { %v3570_v51 = vsel %vm14801_vm14, %v10254_v12, %v17878_v9  ;;  %v2823_v53 = vsel %vm13997_vm7, %v2818_v52, %v2822_v59  ;;  %v17879_v13 = vrot.slane %v14357_v40, 5  ;;  %v3580_v35 = vsel %vm14801_vm14, %v14395_v24, %v3579_v5  ;;  %v3512_v59 = vld [vmem:[#allocation3 + $0x18] sm:$0xe] }
 0x306   : > { %v3573_v27 = vsel %vm14801_vm14, %v3571_v25, %v3572_v19  ;;  %v10217_v26 = vcombine.low %v2813_v47, %v2823_v53  ;;  %v2847_v48 = vsel %vm13997_vm7, %v2842_v21, %v2846_v33  ;;  %v2856_v12 = vrot.slane %v2855_v44, 4  ;;  %v7060_v25 = vld [vmem:[#allocation3 + $0x60] sm:$0xe]  ;;  %v13280_v47 = vld [vmem:[#allocation3 + $0x1c] sm:$0xf] }
 0x307   : > { %v3577_v62 = vsel %vm14801_vm14, %v10255_v3, %v17879_v13  ;;  %v10272_v37 = vcombine.low %v3570_v51, %v3573_v27  ;;  %v10218_v32 = vcombine.low %v2837_v56, %v2847_v48  ;;  %v2860_v40 = vrot.slane %v2858_v23, 5  ;;  %v6247_v33 = vld [vmem:[#allocation3 + $0x68] sm:$0x1]  ;;  %v13281_v21 = vld [vmem:[#allocation3 + $0x20] sm:$0x1] }
 0x308   : > { %v10273_v52 = vcombine.low %v3577_v62, %v3580_v35  ;;  %v2864_v18 = vrot.slane %v2862_v0, 4  ;;  %11450 = vmatmul.mubr.bf16.gmra.mrb[100].mxu1 %v10217_v26  ;;  %v2868_v24 = vshll.u32 %v14821_v14, 16  ;;  %v3583_v19 = vrot.slane %v13280_v47, 5  ;;  %v3513_v44 = vld [vmem:[#allocation3 + $0x24] sm:$0xe]  ;;  %v12306_v62 = vld [vmem:[%s17709_s7 + $0xd0] sm:$0xff]  }
 0x309   : > { %11525 = vmatprep.mubr.bf16.mxu0 %v10272_v37  ;;  %11453 = vmatprep.mubr.bf16.mxu1 %v10218_v32  ;;  %v10256_v15 = vrot.slane %v3512_v59, 9  ;;  %v7170_v56 = vrot.slane %v6246_v34, 5  ;;  %v2861_v0 = vsel %vm13997_vm7, %v2856_v12, %v2860_v40  ;;  %v3586_v9 = vrot.slane %v13281_v21, 5  ;;  %v13282_v48 = vld [vmem:[#allocation3 + $0x28] sm:$0xf] }
 0x30a   : > { %11526 = vmatmul.mubr.bf16.vlgmr.msra.gmra.mrb[36].mxu0 %v10273_v52  ;;  %v2865_v3 = vor.u32 %v2864_v18, %v2860_v40  ;;  %v3585_v5 = vrot.slane %v3583_v19, 4  ;;  %v10452_v51 = vrot.slane %v7060_v25, 9  ;;  %v2870_v53 = vrot.slane %v2868_v24, 5  ;;  %v3514_v52 = vld [vmem:[#allocation3 + $0x30] sm:$0xe] }
 0x30b   : > { %11562 = vmatpush3.bf16.msra.mxu0 %v14529_v20  ;;  %v7172_v27 = vrot.slane %v7170_v56, 4  ;;  %v7173_v13 = vrot.slane %v6247_v33, 5  ;;  %v3584_v20 = vsel %vm14801_vm14, %v10256_v15, %v3583_v19  ;;  %v3590_v37 = vrot.slane %v13282_v48, 5  ;;  %v13283_v12 = vld [vmem:[#allocation3 + $0x34] sm:$0xf] }
 0x30c   : > { %v2866_v23 = vrot.slane %v2865_v3, 4  ;;  %11563 = vmatprep.subr.bf16.mxu0 %v12305_v8  ;;  %v3587_v35 = vsel %vm14801_vm14, %v3585_v5, %v3586_v9  ;;  %v7171_v26 = vsel %vm14801_vm14, %v10452_v51, %v7170_v56  ;;  %v3597_v40 = vrot.slane %v13283_v12, 5  ;;  %v6249_v18 = vld [vmem:[#allocation3 + $0x70] sm:$0xf]  ;;  %v7061_v25 = vld [vmem:[#allocation3 + $0x6c] sm:$0xe] }
 0x30d   : > { %v10274_v34 = vcombine.low %v3584_v20, %v3587_v35  ;;  %v7174_v32 = vsel %vm14801_vm14, %v7172_v27, %v7173_v13  ;;  %v10257_v47 = vrot.slane %v3513_v44, 9  ;;  %v3592_v19 = vrot.slane %v3590_v37, 4  ;;  %v6252_v3 = vld [vmem:[#allocation3 + $0x7c] sm:$0xf]  ;;  %v6250_v9 = vld [vmem:[#allocation3 + $0x74] sm:$0x1] }
 0x30e   : > { %v2871_v59 = vsel %vm13997_vm7, %v2866_v23, %v2870_v53  ;;  %v3593_v33 = vrot.slane %v14554_v22, 5  ;;  %v10470_v15 = vcombine.low %v7171_v26, %v7174_v32  ;;  %v10258_v56 = vrot.slane %v3514_v52, 9  ;;  %v12307_v51 = vld [vmem:[%s17709_s7 + $0xd8] sm:$0xff]   ;;  %v6253_v44 = vld [vmem:[#allocation3 + $0x80] sm:$0x1] }
 0x30f   : > { %v10219_v24 = vcombine.low %v2861_v0, %v2871_v59  ;;  %11564 = vmatpush3.bf16.msra.mxu0 %v12305_v8  ;;  %11529 = vmatprep.mubr.bf16.mxu0 %v10274_v34  ;;  %v3599_v5 = vrot.slane %v3597_v40, 4  ;;  %v3600_v21 = vrot.slane %v14588_v38, 5  ;;  %v3591_v0 = vsel %vm14801_vm14, %v10257_v47, %v3590_v37  ;;  %v7062_v23 = vld [vmem:[#allocation3 + $0x78] sm:$0xe]  ;;  %v3515_v20 = vld [vmem:[#allocation3 + $0x3c] sm:$0xe] }
 0x310   : > { %11565 = vmatprep.subr.bf16.mxu0 %v12306_v62  ;;  %v3594_v22 = vsel %vm14801_vm14, %v3592_v19, %v3593_v33  ;;  %v7177_v8 = vrot.slane %v6249_v18, 5  ;;  %v3598_v38 = vsel %vm14801_vm14, %v10258_v56, %v3597_v40  ;;  %v7184_v13 = vrot.slane %v6252_v3, 5  ;;  %v3516_v52 = vld [vmem:[#allocation3 + $0x48] sm:$0xe]  ;;  %v13284_v12 = vld [vmem:[#allocation3 + $0x40] sm:$0xf] }
 0x311   : > { %11454 = vmatmul.mubr.bf16.gmra.mrb[104].mxu1 %v10219_v24  ;;  %v10275_v53 = vcombine.low %v3591_v0, %v3594_v22  ;;  %v3601_v27 = vsel %vm14801_vm14, %v3599_v5, %v3600_v21  ;;  %v10453_v26 = vrot.slane %v7061_v25, 9  ;;  %v7180_v37 = vrot.slane %v6250_v9, 5  ;;  %v12308_v40 = vld [vmem:[%s17709_s7 + $0xe0] sm:$0xff]   ;;  %v6255_v19 = vld [vmem:[#allocation3 + $0x88] sm:$0xf] }
 0x312   : > { %11849 = vmatprep.mubr.bf16.mxu1 %v10470_v15  ;;  %v10276_v35 = vcombine.low %v3598_v38, %v3601_v27  ;;  %v7179_v48 = vrot.slane %v7177_v8, 4  ;;  %v10454_v59 = vrot.slane %v7062_v23, 9  ;;  %v7186_v34 = vrot.slane %v7184_v13, 4  ;;  %v7063_v5 = vld [vmem:[#allocation3 + $0x84] sm:$0xe] }
 0x313   : > { %11566 = vmatpush3.bf16.msra.mxu0 %v12306_v62  ;;  %v7187_v32 = vrot.slane %v6253_v44, 5  ;;  %v3604_v18 = vrot.slane %v13284_v12, 5  ;;  %v7178_v24 = vsel %vm14801_vm14, %v10453_v26, %v7177_v8  ;;  %v10259_v47 = vrot.slane %v3515_v20, 9  ;;  %v6258_v21 = vld [vmem:[#allocation3 + $0x94] sm:$0xf] }
 0x314   : > { %11530 = vmatmul.mubr.bf16.gmra.mrb[4].mxu0 %v10275_v53  ;;  %11567 = vmatprep.subr.bf16.mxu0 %v12307_v51  ;;  %v7181_v25 = vsel %vm14801_vm14, %v7179_v48, %v7180_v37  ;;  %v3611_v62 = vrot.slane %v14572_v2, 5  ;;  %v7185_v33 = vsel %vm14801_vm14, %v10454_v59, %v7184_v13  ;;  %v3607_v56 = vrot.slane %v14618_v39, 5  ;;  %v6256_v44 = vld [vmem:[#allocation3 + $0x8c] sm:$0x1]  ;;  %v6259_v38 = vld [vmem:[#allocation3 + $0x98] sm:$0x1] }
 0x315   : > { %11533 = vmatprep.mubr.bf16.mxu0 %v10276_v35  ;;  %v7188_v3 = vsel %vm14801_vm14, %v7186_v34, %v7187_v32  ;;  %v3606_v15 = vrot.slane %v3604_v18, 4  ;;  %v10471_v9 = vcombine.low %v7178_v24, %v7181_v25  ;;  %v10260_v0 = vrot.slane %v3516_v52, 9  ;;  %v12309_v39 = vld [vmem:[%s17709_s7 + $0xe8] sm:$0xff]   ;;  %v7064_v13 = vld [vmem:[#allocation3 + $0x90] sm:$0xe] }
 0x316   : > { %v3613_v22 = vrot.slane %v3611_v62, 4  ;;  %v3614_v8 = vrot.slane %v14643_v43, 5  ;;  %v10472_v2 = vcombine.low %v7185_v33, %v7188_v3  ;;  %v7191_v53 = vrot.slane %v6255_v19, 5  ;;  %v3517_v52 = vld [vmem:[#allocation3 + $0x54] sm:$0xe] }
 0x317   : > { %11568 = vmatpush3.bf16.msra.mxu0 %v12307_v51  ;;  %v3608_v23 = vsel %vm14801_vm14, %v3606_v15, %v3607_v56  ;;  %v3605_v27 = vsel %vm14801_vm14, %v10259_v47, %v3604_v18  ;;  %v3612_v43 = vsel %vm14801_vm14, %v10260_v0, %v3611_v62  ;;  %v7198_v20 = vrot.slane %v6258_v21, 5  ;;  %v3518_v18 = vld [vmem:[#allocation3 + $0x60] sm:$0xe]  ;;  %v12310_v19 = vld [vmem:[%s17709_s7 + $0xf0] sm:$0xff]   ;;  %v6264_v15 = vld [vmem:[#allocation3 + $0xac] sm:$0xf] }
 0x318   : > { %11569 = vmatprep.subr.bf16.mxu0 %v12308_v40  ;;  %v3615_v51 = vsel %vm14801_vm14, %v3613_v22, %v3614_v8  ;;  %v10277_v35 = vcombine.low %v3605_v27, %v3608_v23  ;;  %v10455_v26 = vrot.slane %v7063_v5, 9  ;;  %v7193_v48 = vrot.slane %v7191_v53, 4  ;;  %v6261_v62 = vld [vmem:[#allocation3 + $0xa0] sm:$0xf]  ;;  %v6262_v8 = vld [vmem:[#allocation3 + $0xa4] sm:$0x1] }
 0x319   : > { %11850 = vmatmul.mubr.bf16.vlgmr.msra.gmra.mrb[108].mxu1 %v10471_v9  ;;  %v7194_v37 = vrot.slane %v6256_v44, 5  ;;  %v10278_v59 = vcombine.low %v3612_v43, %v3615_v51  ;;  %v7200_v34 = vrot.slane %v7198_v20, 4  ;;  %v7201_v32 = vrot.slane %v6259_v38, 5  ;;  %v6265_v23 = vld [vmem:[#allocation3 + $0xb0] sm:$0x1]  ;;  %v12311_v38 = vld [vmem:[%s17709_s7 + $0xf8] sm:$0xff]  }
 0x31a   : > { %11853 = vmatprep.mubr.bf16.mxu1 %v10472_v2  ;;  %v3618_v12 = vrot.slane %v14608_v7, 5  ;;  %v10456_v25 = vrot.slane %v7064_v13, 9  ;;  %v3625_v47 = vrot.slane %v14635_v57, 5  ;;  %v7192_v33 = vsel %vm14801_vm14, %v10455_v26, %v7191_v53  ;;  %v7065_v43 = vld [vmem:[#allocation3 + $0x9c] sm:$0xe] }
 0x31b   : > { %11570 = vmatpush3.bf16.msra.mxu0 %v12308_v40  ;;  %v7195_v24 = vsel %vm14801_vm14, %v7193_v48, %v7194_v37  ;;  %v7202_v7 = vsel %vm14801_vm14, %v7200_v34, %v7201_v32  ;;  %v3621_v3 = vrot.slane %v14666_v60, 5  ;;  %v10261_v56 = vrot.slane %v3517_v52, 9  ;;  %v3519_v52 = vld [vmem:[#allocation3 + $0x6c] sm:$0xe]  ;;  %v6267_v34 = vld [vmem:[#allocation3 + $0xb8] sm:$0xf] }
 0x31c   : > { %11534 = vmatmul.mubr.bf16.gmra.mrb[8].mxu0 %v10277_v35  ;;  %11571 = vmatprep.subr.bf16.mxu0 %v12309_v39  ;;  %v3620_v40 = vrot.slane %v3618_v12, 4  ;;  %v7199_v57 = vsel %vm14801_vm14, %v10456_v25, %v7198_v20  ;;  %v3627_v5 = vrot.slane %v3625_v47, 4  ;;  %v3628_v21 = vrot.slane %v14683_v46, 5  ;;  %v7066_v20 = vld [vmem:[#allocation3 + $0xa8] sm:$0xe]  ;;  %v14916_v25 = vld [vmem:[%s17709_s7 + $0x100] sm:$0xff]  }
 0x31d   : > { %11537 = vmatprep.mubr.bf16.mxu0 %v10278_v59  ;;  %v10473_v9 = vcombine.low %v7192_v33, %v7195_v24  ;;  %v10262_v22 = vrot.slane %v3518_v18, 9  ;;  %v7205_v44 = vrot.slane %v6261_v62, 5  ;;  %v10474_v2 = vcombine.low %v7199_v57, %v7202_v7  ;;  %v6270_v24 = vld [vmem:[#allocation3 + $0xc4] sm:$0xf]  ;;  %v3520_v62 = vld [vmem:[#allocation3 + $0x78] sm:$0xe] }
 0x31e   : > { %v3622_v0 = vsel %vm14801_vm14, %v3620_v40, %v3621_v3  ;;  %v3629_v60 = vsel %vm14801_vm14, %v3627_v5, %v3628_v21  ;;  %v7212_v53 = vrot.slane %v6264_v15, 5  ;;  %v3619_v46 = vsel %vm14801_vm14, %v10261_v56, %v3618_v12  ;;  %v6268_v5 = vld [vmem:[#allocation3 + $0xbc] sm:$0x1] }
 0x31f   : > { %11572 = vmatpush3.bf16.msra.mxu0 %v12309_v39  ;;  %v3626_v27 = vsel %vm14801_vm14, %v10262_v22, %v3625_v47  ;;  %v7207_v39 = vrot.slane %v7205_v44, 4  ;;  %v10279_v51 = vcombine.low %v3619_v46, %v3622_v0  ;;  %v7208_v13 = vrot.slane %v6262_v8, 5  ;;  %v6271_v8 = vld [vmem:[#allocation3 + $0xc8] sm:$0x1]  ;;  %v7068_v46 = vld [vmem:[#allocation3 + $0xc0] sm:$0xe] }
 0x320   : > { %11573 = vmatprep.subr.bf16.mxu0 %v12310_v19  ;;  %v7214_v35 = vrot.slane %v7212_v53, 4  ;;  %v3632_v26 = vrot.slane %v14656_v50, 5  ;;  %v10280_v48 = vcombine.low %v3626_v27, %v3629_v60  ;;  %v7215_v37 = vrot.slane %v6265_v23, 5 }
 0x321   : > { %11854 = vmatmul.mubr.bf16.gmra.mrb[112].mxu1 %v10473_v9  ;;  %v3639_v59 = vrot.slane %v14673_v42, 5  ;;  %v10457_v32 = vrot.slane %v7065_v43, 9  ;;  %v7209_v12 = vsel %vm14801_vm14, %v7207_v39, %v7208_v13  ;;  %v10458_v50 = vrot.slane %v7066_v20, 9  ;;  %v6273_v43 = vld [vmem:[#allocation3 + $0xd0] sm:$0xf] }
 0x322   : > { %11857 = vmatprep.mubr.bf16.mxu1 %v10474_v2  ;;  %v3634_v18 = vrot.slane %v3632_v26, 4  ;;  %v7216_v42 = vsel %vm14801_vm14, %v7214_v35, %v7215_v37  ;;  %v3635_v47 = vrot.slane %v14698_v58, 5  ;;  %v10263_v7 = vrot.slane %v3519_v52, 9  ;;  %v3521_v13 = vld [vmem:[#allocation3 + $0x84] sm:$0xe] }
 0x323   : > { %11574 = vmatpush3.bf16.msra.mxu0 %v12310_v19  ;;  %v3641_v19 = vrot.slane %v3639_v59, 4  ;;  %v7206_v33 = vsel %vm14801_vm14, %v10457_v32, %v7205_v44  ;;  %v3642_v40 = vrot.slane %v14715_v16, 5  ;;  %v7219_v3 = vrot.slane %v6267_v34, 5  ;;  %v7067_v44 = vld [vmem:[#allocation3 + $0xb4] sm:$0xe] }
 0x324   : > { %11538 = vmatmul.mubr.bf16.gmra.mrb[12].mxu0 %v10279_v51  ;;  %11575 = vmatprep.subr.bf16.mxu0 %v12311_v38  ;;  %v10475_v15 = vcombine.low %v7206_v33, %v7209_v12  ;;  %v7213_v57 = vsel %vm14801_vm14, %v10458_v50, %v7212_v53  ;;  %v3636_v56 = vsel %vm14801_vm14, %v3634_v18, %v3635_v47  ;;  %v7226_v21 = vrot.slane %v6270_v24, 5  ;;  %v6276_v34 = vld [vmem:[#allocation3 + $0xdc] sm:$0xf]  ;;  %v6277_v24 = vld [vmem:[#allocation3 + $0xe0] sm:$0x1] }
 0x325   : > { %11541 = vmatprep.mubr.bf16.mxu0 %v10280_v48  ;;  %v10476_v58 = vcombine.low %v7213_v57, %v7216_v42  ;;  %v10264_v9 = vrot.slane %v3520_v62, 9  ;;  %v3643_v0 = vsel %vm14801_vm14, %v3641_v19, %v3642_v40  ;;  %v7221_v22 = vrot.slane %v7219_v3, 4  ;;  %v6274_v33 = vld [vmem:[#allocation3 + $0xd4] sm:$0x1]  ;;  %v7069_v57 = vld [vmem:[#allocation3 + $0xcc] sm:$0xe] }
 0x326   : > { %v3633_v16 = vsel %vm14801_vm14, %v10263_v7, %v3632_v26  ;;  %v7228_v2 = vrot.slane %v7226_v21, 4  ;;  %v3646_v60 = vrot.slane %v14689_v30, 5  ;;  %v3653_v27 = vrot.slane %v14706_v31, 5  ;;  %v3522_v30 = vld [vmem:[#allocation3 + $0x90] sm:$0xe] }
 0x327   : > { %11576 = vmatpush3.bf16.msra.mxu0 %v12311_v38  ;;  %v10281_v23 = vcombine.low %v3633_v16, %v3636_v56  ;;  %v3640_v53 = vsel %vm14801_vm14, %v10264_v9, %v3639_v59  ;;  %v7222_v38 = vrot.slane %v6268_v5, 5  ;;  %v7229_v51 = vrot.slane %v6271_v8, 5  ;;  %v3523_v16 = vld [vmem:[#allocation3 + $0x9c] sm:$0xe] }
 0x328   : > { %11613 = vmatprep.subr.bf16.mxu0 %v14916_v25  ;;  %v10282_v39 = vcombine.low %v3640_v53, %v3643_v0  ;;  %v3648_v20 = vrot.slane %v3646_v60, 4  ;;  %v10459_v35 = vrot.slane %v7067_v44, 9  ;;  %v3655_v48 = vrot.slane %v3653_v27, 4  ;;  %v3524_v53 = vld [vmem:[#allocation3 + $0xa8] sm:$0xe] }
 0x329   : > { %11858 = vmatmul.mubr.bf16.gmra.mrb[116].mxu1 %v10475_v15  ;;  %v7223_v26 = vsel %vm14801_vm14, %v7221_v22, %v7222_v38  ;;  %v10460_v37 = vrot.slane %v7068_v46, 9  ;;  %v7230_v52 = vsel %vm14801_vm14, %v7228_v2, %v7229_v51  ;;  %v3649_v59 = vrot.slane %v14729_v61, 5 }
 0x32a   : > { %11861 = vmatprep.mubr.bf16.mxu1 %v10476_v58  ;;  %v7233_v31 = vrot.slane %v6273_v43, 5  ;;  %v7220_v32 = vsel %vm14801_vm14, %v10459_v35, %v7219_v3  ;;  %v10265_v12 = vrot.slane %v3521_v13, 9  ;;  %v3656_v18 = vrot.slane %v14738_v63, 5  ;;  %v7070_v3 = vld [vmem:[#allocation3 + $0xd8] sm:$0xe] }
 0x32b   : > { %v7240_v50 = vrot.slane %v6276_v34, 5  ;;  %v10477_v42 = vcombine.low %v7220_v32, %v7223_v26  ;;  %v7227_v47 = vsel %vm14801_vm14, %v10460_v37, %v7226_v21  ;;  %v3650_v62 = vsel %vm14801_vm14, %v3648_v20, %v3649_v59  ;;  %v3526_v34 = vld [vmem:[#allocation3 + $0xc0] sm:$0xe] }
 0x32c   : > { %11542 = vmatmul.mubr.bf16.gmra.mrb[16].mxu0 %v10281_v23  ;;  %v10266_v19 = vrot.slane %v3522_v30, 9  ;;  %v10478_v61 = vcombine.low %v7227_v47, %v7230_v52  ;;  %v3657_v7 = vsel %vm14801_vm14, %v3655_v48, %v3656_v18  ;;  %v7235_v40 = vrot.slane %v7233_v31, 4 }
 0x32d   : > { %11545 = vmatprep.mubr.bf16.mxu0 %v10282_v39  ;;  %v3660_v15 = vrot.slane %v14722_v6, 5  ;;  %v3647_v63 = vsel %vm14801_vm14, %v10265_v12, %v3646_v60  ;;  %v7242_v56 = vrot.slane %v7240_v50, 4  ;;  %v7243_v5 = vrot.slane %v6277_v24, 5 }
 0x32e   : > { %v3667_v21 = vrot.slane %v14733_v36, 5  ;;  %v10283_v58 = vcombine.low %v3647_v63, %v3650_v62  ;;  %v3654_v9 = vsel %vm14801_vm14, %v10266_v19, %v3653_v27  ;;  %v7236_v0 = vrot.slane %v6274_v33, 5  ;;  %v12317_v63 = vld [vmem:[%s17709_s7 + $0x108] sm:$0xff]  }
 0x32f   : > { %v10284_v22 = vcombine.low %v3654_v9, %v3657_v7  ;;  %v10462_v8 = vrot.slane %v7070_v3, 9  ;;  %v3662_v44 = vrot.slane %v3660_v15, 4  ;;  %v10461_v6 = vrot.slane %v7069_v57, 9  ;;  %v12312_v3 = vld [vmem:[#allocation3 + $0xc] sm:$0xff]   ;;  %v12315_v57 = vld [vmem:[#allocation3 + $0x24] sm:$0xff]  }
 0x330   : > { %v7237_v2 = vsel %vm14801_vm14, %v7235_v40, %v7236_v0  ;;  %v3669_v60 = vrot.slane %v3667_v21, 4  ;;  %v7244_v36 = vsel %vm14801_vm14, %v7242_v56, %v7243_v5  ;;  %v3663_v23 = vrot.slane %v14750_v10, 5  ;;  %v12316_v56 = vld [vmem:[#allocation3 + $0x30] sm:$0xff]   ;;  %v12324_v5 = vld [vmem:[%s17709_s7 + $0x118] sm:$0xff]   ;;  %v12330_v9 = vld [vmem:[%s17709_s7 + $0x128] sm:$0xff]  }
 0x331   : > { %11862 = vmatmul.mubr.bf16.gmra.mrb[120].mxu1 %v10477_v42  ;;  %v7234_v38 = vsel %vm14801_vm14, %v10461_v6, %v7233_v31  ;;  %v10267_v46 = vrot.slane %v3523_v16, 9  ;;  %v3670_v27 = vrot.slane %v14766_v54, 5  ;;  %v7241_v39 = vsel %vm14801_vm14, %v10462_v8, %v7240_v50  ;;  %v4447_v0 = vld [vmem:[#allocation3 + $0xc] sm:$0xf]  ;;  %v4448_v6 = vld [vmem:[#allocation3 + $0x10] sm:$0xf] }
 0x332   : > { %11865 = vmatprep.mubr.bf16.mxu1 %v10478_v61  ;;  %v10479_v43 = vcombine.low %v7234_v38, %v7237_v2  ;;  %v3664_v51 = vsel %vm14801_vm14, %v3662_v44, %v3663_v23  ;;  %v3674_v13 = vrot.slane %v14744_v41, 5  ;;  %v10480_v20 = vcombine.low %v7241_v39, %v7244_v36  ;;  %v3525_v41 = vld [vmem:[#allocation3 + $0xb4] sm:$0xe]  ;;  %v4450_v36 = vld [vmem:[#allocation3 + $0x18] sm:$0xf]  ;;  %v12322_v23 = vld [vmem:[#allocation3 + $0x60] sm:$0xff]  }
 0x333   : > { %v10268_v35 = vrot.slane %v3524_v53, 9  ;;  %v3671_v10 = vsel %vm14801_vm14, %v3669_v60, %v3670_v27  ;;  %v3681_v26 = vrot.slane %v14753_v29, 5  ;;  %v3661_v54 = vsel %vm14801_vm14, %v10267_v46, %v3660_v15  ;;  %v12314_v15 = vld [vmem:[#allocation3 + $0x18] sm:$0xff]   ;;  %v12333_v44 = vld [vmem:[%s17709_s7 + $0x130] sm:$0xff]  }
 0x334   : > { %11546 = vmatmul.mubr.bf16.gmra.mrb[20].mxu0 %v10283_v58  ;;  %v10285_v30 = vcombine.low %v3661_v54, %v3664_v51  ;;  %v3676_v52 = vrot.slane %v3674_v13, 4  ;;  %v3677_v31 = vrot.slane %v14782_v17, 5  ;;  %v3684_v29 = vrot.slane %v14776_v1, 5  ;;  %v3527_v1 = vld [vmem:[#allocation3 + $0xcc] sm:$0xe]  ;;  %v12336_v53 = vld [vmem:[%s17709_s7 + $0x138] sm:$0xff]  }
 0x335   : > { %11549 = vmatprep.mubr.bf16.mxu0 %v10284_v22  ;;  %v3668_v48 = vsel %vm14801_vm14, %v10268_v35, %v3667_v21  ;;  %v3683_v59 = vrot.slane %v3681_v26, 4  ;;  %v10269_v32 = vrot.slane %v3525_v41, 9  ;;  %v3688_v18 = vrot.slane %v14773_v11, 5  ;;  %v12318_v21 = vld [vmem:[#allocation3 + $0x3c] sm:$0xff]   ;;  %v12319_v58 = vld [vmem:[#allocation3 + $0x48] sm:$0xff]   ;;  %v12320_v22 = vld [vmem:[#allocation3 + $0x54] sm:$0xff]  }
 0x336   : > { %v10286_v37 = vcombine.low %v3668_v48, %v3671_v10  ;;  %v3678_v12 = vsel %vm14801_vm14, %v3676_v52, %v3677_v31  ;;  %v10270_v24 = vrot.slane %v3526_v34, 9  ;;  %v3691_v33 = vrot.slane %v14821_v14, 5  ;;  %v12321_v14 = vld [vmem:[%s17709_s7 + $0x110] sm:$0xff]   ;;  %v4451_v27 = vld [vmem:[#allocation3 + $0x1c] sm:$0xf]  ;;  %v15020_v48 = vld [vmem:[%s17709_s7 + $0x140] sm:$0xff]  }
 0x337   : > { %v3685_v50 = vsel %vm14801_vm14, %v3683_v59, %v3684_v29  ;;  %v3675_v42 = vsel %vm14801_vm14, %v10269_v32, %v3674_v13  ;;  %v3690_v19 = vrot.slane %v3688_v18, 4  ;;  %v10271_v61 = vrot.slane %v3527_v1, 9  ;;  %v4454_v51 = vld [vmem:[#allocation3 + $0x28] sm:$0xf]  ;;  %v4449_v13 = vld [vmem:[#allocation3 + $0x14] sm:$0x1] }
 0x338   : > { %v10287_v47 = vcombine.low %v3675_v42, %v3678_v12  ;;  %v3682_v17 = vsel %vm14801_vm14, %v10270_v24, %v3681_v26  ;;  %v4502_v8 = vshrl.u32 %v4447_v0, 16  ;;  %v4505_v16 = vshll.u32 %v4447_v0, 16  ;;  %v4452_v35 = vld [vmem:[#allocation3 + $0x20] sm:$0x1]  ;;  %v4456_v52 = vld [vmem:[#allocation3 + $0x30] sm:$0xf] }
 0x339   : > { %11866 = vmatmul.mubr.bf16.gmra.mrb[124].mxu1 %v10479_v43  ;;  %v10288_v62 = vcombine.low %v3682_v17, %v3685_v50  ;;  %v3692_v11 = vsel %vm14801_vm14, %v3690_v19, %v3691_v33  ;;  %v3689_v7 = vsel %vm14801_vm14, %v10271_v61, %v3688_v18  ;;  %v4511_v38 = vshll.u32 %v4448_v6, 16  ;;  %v12323_v43 = vld [vmem:[#allocation3 + $0x6c] sm:$0xff]   ;;  %v4453_v59 = vld [vmem:[#allocation3 + $0x24] sm:$0xf]  ;;  %v4457_v18 = vld [vmem:[#allocation3 + $0x34] sm:$0xf] }
 0x33a   : > { %11869 = vmatprep.mubr.bf16.mxu1 %v10480_v20  ;;  %v10289_v40 = vcombine.low %v3689_v7, %v3692_v11  ;;  %v4504_v2 = vrot.slane %v4502_v8, 4  ;;  %v4507_v60 = vrot.slane %v4505_v16, 5  ;;  %v4515_v46 = vshrl.u32 %v4448_v6, 16  ;;  %v12326_v7 = vld [vmem:[#allocation3 + $0x84] sm:$0xff]   ;;  %v4460_v0 = vld [vmem:[#allocation3 + $0x40] sm:$0xf] }
 0x33b   : > { %v4526_v39 = vshrl.u32 %v4450_v36, 16  ;;  %v4529_v10 = vshll.u32 %v4450_v36, 16  ;;  %v4535_v26 = vshll.u32 %v4451_v27, 16  ;;  %v15015_v54 = vrot.slane %v4511_v38, 5  ;;  %v4462_v6 = vld [vmem:[#allocation3 + $0x48] sm:$0xf] }
 0x33c   : > { %11550 = vmatmul.mubr.bf16.gmra.mrb[24].mxu0 %v10285_v30  ;;  %v4508_v20 = vor.u32 %v4507_v60, %v4504_v2  ;;  %v4517_v30 = vrot.slane %v4515_v46, 4  ;;  %v4559_v31 = vshll.u32 %v4454_v51, 16  ;;  %v4563_v34 = vshrl.u32 %v4454_v51, 16  ;;  %v4458_v38 = vld [vmem:[#allocation3 + $0x38] sm:$0x1] }
 0x33d   : > { %11553 = vmatprep.mubr.bf16.mxu0 %v10286_v37  ;;  %v4539_v37 = vshrl.u32 %v4451_v27, 16  ;;  %v4521_v29 = vshll.u32 %v4449_v13, 16  ;;  %v4528_v12 = vrot.slane %v4526_v39, 4  ;;  %v4531_v42 = vrot.slane %v4529_v10, 5  ;;  %v12328_v10 = vld [vmem:[#allocation3 + $0x90] sm:$0xff]  }
 0x33e   : > { %v15024_v24 = vrot.slane %v4508_v20, 4  ;;  %v4545_v17 = vshll.u32 %v4452_v35, 16  ;;  %v4518_v19 = vor.u32 %v4517_v30, %v15015_v54  ;;  %v4550_v61 = vshrl.u32 %v4453_v59, 16 }
 0x33f   : > { %v4541_v33 = vrot.slane %v4539_v37, 4  ;;  %v4553_v11 = vshll.u32 %v4453_v59, 16  ;;  %v4607_v51 = vshll.u32 %v4460_v0, 16  ;;  %v4611_v13 = vshrl.u32 %v4460_v0, 16  ;;  %v12329_v59 = vld [vmem:[#allocation3 + $0x9c] sm:$0xff]  }
 0x340   : > { %v4552_v16 = vrot.slane %v4550_v61, 4  ;;  %v4622_v20 = vshrl.u32 %v4462_v6, 16  ;;  %v4625_v35 = vshll.u32 %v4462_v6, 16 }
 0x342   : > { %v4624_v61 = vrot.slane %v4622_v20, 4 }
 0x344   : > { %11554 = vmatmul.mubr.bf16.gmra.mrb[28].mxu0 %v10287_v47  ;;  %v15028_v47 = vrot.slane %v4535_v26, 5 }
 0x345   : > { %11557 = vmatprep.mubr.bf16.mxu0 %v10288_v62  ;;  %v12325_v62 = vld [vmem:[#allocation3 + $0x78] sm:$0xff]  }
 0x346   : > { %v4542_v8 = vor.u32 %v4541_v33, %v15028_v47  ;;  %v4613_v33 = vrot.slane %v4611_v13, 4 }
 0x348   : > { %v4543_v30 = vrot.slane %v4542_v8, 4 }
 0x34c   : > { %11558 = vmatmul.mubr.bf16.gmra.mrb[40].mxu0 %v10289_v40  ;;  %v15032_v40 = vrot.slane %v4559_v31, 5 }
 0x34d   : > { %11577 = vmatprep.mubr.bf16.mxu0 %v12312_v3  ;;  %v4565_v3 = vrot.slane %v4563_v34, 4 }
 0x34f   : > { %v4566_v2 = vor.u32 %v4565_v3, %v15032_v40 }
 0x351   : > { %v4567_v34 = vrot.slane %v4566_v2, 4 }
 0x354   : > { %11578 = vmatmul.mubr.bf16.vlgmr.msra.gmra.mrb[44].mxu0 %v12314_v15  ;;  %v4574_v15 = vshrl.u32 %v4456_v52, 16 }
 0x355   : > { %11614 = vmatpush3.bf16.msra.mxu0 %v14916_v25  ;;  %11581 = vmatprep.mubr.bf16.mxu0 %v12315_v57  ;;  %v12327_v25 = vld [vmem:[%s17709_s7 + $0x120] sm:$0xff]   ;;  %v4455_v57 = vld [vmem:[#allocation3 + $0x2c] sm:$0x1] }
 0x356   : > { %11615 = vmatprep.subr.bf16.mxu0 %v12317_v63  ;;  %v4569_v60 = vshll.u32 %v4455_v57, 16  ;;  %v4576_v36 = vrot.slane %v4574_v15, 4 }
 0x359   : > { %11616 = vmatpush3.bf16.msra.mxu0 %v12317_v63  ;;  %v4577_v63 = vshll.u32 %v4456_v52, 16 }
 0x35a   : > { %11617 = vmatprep.subr.bf16.mxu0 %v12321_v14 }
 0x35c   : > { %11582 = vmatmul.mubr.bf16.gmra.mrb[4].mxu0 %v12316_v56  ;;  %v4587_v56 = vshrl.u32 %v4457_v18, 16 }
 0x35d   : > { %11585 = vmatprep.mubr.bf16.mxu0 %v12318_v21  ;;  %11618 = vmatpush3.bf16.msra.mxu0 %v12321_v14  ;;  %v4583_v14 = vshll.u32 %v4457_v18, 16  ;;  %v15038_v21 = vrot.slane %v4521_v29, 5  ;;  %v4571_v29 = vrot.slane %v4569_v60, 5  ;;  %v12331_v60 = vld [vmem:[#allocation3 + $0xa8] sm:$0xff]  }
 0x35e   : > { %11619 = vmatprep.subr.bf16.mxu0 %v12324_v5  ;;  %v4589_v27 = vrot.slane %v4587_v56, 4 }
 0x35f   : > { %v15046_v46 = vrot.slane %v4583_v14, 5  ;;  %v4572_v8 = vsel %vm13997_vm7, %v4567_v34, %v4571_v29  ;;  %v4471_v29 = vld [vmem:[#allocation3 + $0x6c] sm:$0xf] }
 0x361   : > { %11620 = vmatpush3.bf16.msra.mxu0 %v12324_v5  ;;  %v4514_v5 = vsel %vm13997_vm7, %v15024_v24, %v15015_v54 }
 0x362   : > { %11621 = vmatprep.subr.bf16.mxu0 %v12327_v25 }
 0x364   : > { %11586 = vmatmul.mubr.bf16.gmra.mrb[8].mxu0 %v12319_v58  ;;  %v15040_v58 = vrot.slane %v4545_v17, 5 }
 0x365   : > { %11589 = vmatprep.mubr.bf16.mxu0 %v12320_v22  ;;  %11622 = vmatpush3.bf16.msra.mxu0 %v12327_v25  ;;  %v4532_v25 = vor.u32 %v4531_v42, %v4528_v12  ;;  %v15042_v22 = vrot.slane %v4518_v19, 4  ;;  %v4465_v12 = vld [vmem:[#allocation3 + $0x54] sm:$0xf]  ;;  %v4590_v42 = vor.u32 %v4589_v27, %v15046_v46  ;;  %v15049_v19 = vld [vmem:[#allocation3 + $0x58] sm:$0xf] }
 0x366   : > { %11623 = vmatprep.subr.bf16.mxu0 %v12330_v9  ;;  %v4646_v15 = vshrl.u32 %v4465_v12, 16  ;;  %v4655_v56 = vshll.u32 %v15049_v19, 16  ;;  %v12332_v27 = vld [vmem:[#allocation3 + $0xb4] sm:$0xff]  }
 0x367   : > { %v4533_v26 = vrot.slane %v4532_v25, 4  ;;  %v4524_v57 = vsel %vm13997_vm7, %v15042_v22, %v15038_v21  ;;  %v4659_v25 = vshrl.u32 %v15049_v19, 16  ;;  %v4591_v21 = vrot.slane %v4590_v42, 4  ;;  %v15069_v22 = vld [vmem:[#allocation3 + $0x44] sm:$0x1] }
 0x368   : > { %v15082_v20 = vcombine.low %v4514_v5, %v4524_v57  ;;  %v15098_v5 = vld [vmem:[#allocation3 + $0x5c] sm:$0x1]  ;;  %v4697_v57 = vshll.u32 %v4471_v29, 16 }
 0x369   : > { %11624 = vmatpush3.bf16.msra.mxu0 %v12330_v9  ;;  %v4459_v9 = vld [vmem:[#allocation3 + $0x3c] sm:$0xf]  ;;  %v4538_v14 = vsel %vm13997_vm7, %v4533_v26, %v15028_v47  ;;  %v4617_v26 = vshll.u32 %v15069_v22, 16 }
 0x36a   : > { %11625 = vmatprep.subr.bf16.mxu0 %v12333_v44  ;;  %v4601_v39 = vshll.u32 %v4459_v9, 16 }
 0x36c   : > { %11590 = vmatmul.mubr.bf16.gmra.mrb[12].mxu0 %v12322_v23  ;;  %v4579_v23 = vrot.slane %v4577_v63, 5  ;;  %v4649_v63 = vshll.u32 %v4465_v12, 16 }
 0x36d   : > { %11593 = vmatprep.mubr.bf16.mxu0 %v12323_v43  ;;  %11626 = vmatpush3.bf16.msra.mxu0 %v12333_v44  ;;  %v15022_v41 = vpop.f32.mrb[0].mxu0  ;;  %v4555_v44 = vrot.slane %v4553_v11, 5  ;;  %v4598_v43 = vshrl.u32 %v4459_v9, 16  ;;  %v4627_v11 = vrot.slane %v4625_v35, 5  ;;  %v4548_v9 = vsel %vm13997_vm7, %v4543_v30, %v15040_v58 }
 0x36e   : > { %11627 = vmatprep.subr.bf16.mxu0 %v12336_v53  ;;  %v3371_v32 = vpop.f32.mrb[1].mxu0  ;;  %v4580_v18 = vor.u32 %v4579_v23, %v4576_v36  ;;  %v15072_v36 = vld [vmem:[#allocation3 + $0x50] sm:$0x1]  ;;  %v4648_v58 = vrot.slane %v4646_v15, 4  ;;  %v15084_v35 = vcombine.low %v4538_v14, %v4548_v9  ;;  %v12334_v14 = vld [vmem:[#allocation3 + $0xc0] sm:$0xff]  }
 0x36f   : > { %v15026_v50 = vpop.f32.mrb[2].mxu0  ;;  %v4556_v31 = vor.u32 %v4555_v44, %v4552_v16  ;;  %v4593_v32 = vshll.u32 %v4458_v38, 16  ;;  %v4600_v17 = vrot.slane %v4598_v43, 4  ;;  %v4468_v44 = vld [vmem:[#allocation3 + $0x60] sm:$0xf]  ;;  %v4628_v23 = vor.u32 %v4627_v11, %v4624_v61 }
 0x370   : > { %v3373_v1 = vpop.f32.mrb[3].mxu0  ;;  %v4581_v6 = vrot.slane %v4580_v18, 4  ;;  %v4651_v38 = vrot.slane %v4649_v63, 5  ;;  %v15075_v43 = vrot.slane %v4655_v56, 5  ;;  %v4673_v13 = vshll.u32 %v4468_v44, 16 }
 0x371   : > { %11628 = vmatpush3.bf16.msra.mxu0 %v12336_v53  ;;  %v4463_v53 = vld [vmem:[#allocation3 + $0x4c] sm:$0xf]  ;;  %v15051_v1 = vrot.slane %v4607_v51, 5  ;;  %v4557_v0 = vrot.slane %v4556_v31, 4  ;;  %v4595_v16 = vrot.slane %v4593_v32, 5  ;;  %v4670_v51 = vshrl.u32 %v4468_v44, 16 }
 0x372   : > { %11665 = vmatprep.subr.bf16.mxu0 %v15020_v48  ;;  %v4631_v37 = vshll.u32 %v4463_v53, 16  ;;  %v4635_v52 = vshrl.u32 %v4463_v53, 16  ;;  %v4641_v24 = vshll.u32 %v15072_v36, 16  ;;  %v4629_v31 = vrot.slane %v4628_v23, 4  ;;  %v15110_v15 = vld [vmem:[#allocation3 + $0x70] sm:$0xf] }
 0x373   : > { %v4614_v47 = vor.u32 %v4613_v33, %v15051_v1  ;;  %v4596_v54 = vsel %vm13997_vm7, %v4591_v21, %v4595_v16  ;;  %v4652_v34 = vor.u32 %v4651_v38, %v4648_v58  ;;  %v4672_v18 = vrot.slane %v4670_v51, 4 }
 0x374   : > { %11594 = vmatmul.mubr.bf16.gmra.mrb[16].mxu0 %v12325_v62  ;;  %v4603_v62 = vrot.slane %v4601_v39, 5  ;;  %v4637_v3 = vrot.slane %v4635_v52, 4  ;;  %v4661_v39 = vrot.slane %v4659_v25, 4  ;;  %v15100_v52 = vld [vmem:[#allocation3 + $0x64] sm:$0xf]  ;;  %v4675_v42 = vrot.slane %v4673_v13, 5 }
 0x375   : > { %11597 = vmatprep.mubr.bf16.mxu0 %v12326_v7  ;;  %v15053_v7 = vrot.slane %v4631_v37, 5  ;;  %v4586_v37 = vsel %vm13997_vm7, %v4581_v6, %v15046_v46  ;;  %v4679_v33 = vshll.u32 %v15100_v52, 16  ;;  %v4683_v61 = vshrl.u32 %v15100_v52, 16 }
 0x376   : > { %v4604_v2 = vor.u32 %v4603_v62, %v4600_v17  ;;  %v4662_v12 = vor.u32 %v4661_v39, %v15075_v43  ;;  %v15103_v46 = vcombine.low %v4586_v37, %v4596_v54  ;;  %v4619_v17 = vrot.slane %v4617_v26, 5  ;;  %v15105_v62 = vld [vmem:[#allocation3 + $0x68] sm:$0x1]  ;;  %v15155_v54 = vld [vmem:[#allocation3 + $0x7c] sm:$0xf] }
 0x377   : > { %v4638_v53 = vor.u32 %v4637_v3, %v15053_v7  ;;  %v4643_v11 = vrot.slane %v4641_v24, 5  ;;  %v4665_v3 = vshll.u32 %v15098_v5, 16  ;;  %v4694_v63 = vshrl.u32 %v4471_v29, 16  ;;  %v5280_v24 = vld [vmem:[#allocation3 + $0x54] sm:$0xe] }
 0x378   : > { %v4634_v9 = vsel %vm13997_vm7, %v4629_v31, %v15053_v7  ;;  %v15124_v6 = vrot.slane %v4662_v12, 4  ;;  %v4676_v21 = vor.u32 %v4675_v42, %v4672_v18  ;;  %v15132_v7 = vrot.slane %v4683_v61, 4  ;;  %v12337_v42 = vld [vmem:[#allocation3 + $0xd8] sm:$0xff]  }
 0x379   : > { %v4639_v32 = vrot.slane %v4638_v53, 4  ;;  %v4703_v23 = vshll.u32 %v15110_v15, 16  ;;  %v15135_v53 = vld [vmem:[#allocation3 + $0x78] sm:$0xf]  ;;  %v15137_v38 = vrot.slane %v4665_v3, 5  ;;  %v15141_v39 = vrot.slane %v4697_v57, 5 }
 0x37a   : > { %v4718_v31 = vshrl.u32 %v15135_v53, 16  ;;  %v5390_v18 = vrot.slane %v15049_v19, 5  ;;  %v5397_v3 = vrot.slane %v15100_v52, 5  ;;  %v15181_v19 = vld [vmem:[#allocation3 + $0x80] sm:$0x1] }
 0x37b   : > { %v4644_v44 = vsel %vm13997_vm7, %v4639_v32, %v4643_v11  ;;  %v15168_v32 = vrot.slane %v4703_v23, 5  ;;  %v10356_v11 = vrot.slane %v5280_v24, 9  ;;  %v15190_v52 = vld [vmem:[#allocation3 + $0x88] sm:$0xf] }
 0x37c   : > { %11598 = vmatmul.mubr.bf16.gmra.mrb[20].mxu0 %v12328_v10  ;;  %v4562_v10 = vsel %vm13997_vm7, %v4557_v0, %v15032_v40  ;;  %v4615_v40 = vrot.slane %v4614_v47, 4  ;;  %v15120_v0 = vrot.slane %v4652_v34, 4  ;;  %v15149_v26 = vcombine.low %v4634_v9, %v4644_v44  ;;  %v5281_v34 = vld [vmem:[#allocation3 + $0x60] sm:$0xe]  ;;  %v5283_v9 = vld [vmem:[#allocation3 + $0x78] sm:$0xe] }
 0x37d   : > { %11601 = vmatprep.mubr.bf16.mxu0 %v12329_v59  ;;  %v15090_v30 = vcombine.low %v4562_v10, %v4572_v8  ;;  %v4605_v59 = vrot.slane %v4604_v2, 4  ;;  %v12335_v8 = vld [vmem:[#allocation3 + $0xcc] sm:$0xff]   ;;  %v4689_v2 = vshll.u32 %v15105_v62, 16  ;;  %v5399_v44 = vrot.slane %v5397_v3, 4  ;;  %v5287_v57 = vld [vmem:[#allocation3 + $0xa8] sm:$0xe] }
 0x37e   : > { %v4620_v25 = vsel %vm13997_vm7, %v4615_v40, %v4619_v17  ;;  %v15172_v17 = vld [vmem:[#allocation3 + $0x74] sm:$0x1]  ;;  %v10359_v24 = vrot.slane %v5283_v9, 9  ;;  %v5414_v9 = vrot.slane %v15181_v19, 5 }
 0x37f   : > { %v4610_v56 = vsel %vm13997_vm7, %v4605_v59, %v15051_v1  ;;  %v15163_v40 = vrot.slane %v4689_v2, 5  ;;  %v15192_v2 = vld [vmem:[#allocation3 + $0x8c] sm:$0x1] }
 0x380   : > { %v15147_v10 = vcombine.low %v4610_v56, %v4620_v25  ;;  %v5393_v56 = vrot.slane %v15098_v5, 5  ;;  %v10357_v25 = vrot.slane %v5281_v34, 9  ;;  %v5284_v34 = vld [vmem:[#allocation3 + $0x84] sm:$0xe] }
 0x384   : > { %11602 = vmatmul.mubr.bf16.gmra.mrb[24].mxu0 %v12331_v60  ;;  %v15130_v60 = vrot.slane %v4679_v33, 5  ;;  %v15238_v33 = vld [vmem:[#allocation3 + $0xb0] sm:$0x1] }
 0x385   : > { %11605 = vmatprep.mubr.bf16.mxu0 %v12332_v27  ;;  %v15139_v27 = vrot.slane %v4694_v63, 4  ;;  %v5282_v63 = vld [vmem:[#allocation3 + $0x6c] sm:$0xe] }
 0x386   : > { %v10358_v23 = vrot.slane %v5282_v63, 9  ;;  %v15222_v63 = vld [vmem:[#allocation3 + $0xa0] sm:$0xf] }
 0x387   : > { %v5432_v28 = vrot.slane %v15222_v63, 5 }
 0x389   : > { %v11423_v16 = vpop.f32.mrb[72].mxu1 }
 0x38a   : > { %v15128_v1 = vadd.f32 %v15022_v41, %v11423_v16  ;;  %v3042_v47 = vpop.f32.mrb[73].mxu1  ;;  %v4707_v41 = vshrl.u32 %v15110_v15, 16  ;;  %v15187_v16 = vsel %vm14801_vm14, %v10356_v11, %v5390_v18  ;;  %v5407_v11 = vrot.slane %v15172_v17, 5 }
 0x38b   : > { %v11424_v58 = vpop.f32.mrb[74].mxu1  ;;  %v15200_v47 = vsel %vm14801_vm14, %v10357_v25, %v5397_v3  ;;  %v5285_v3 = vld [vmem:[#allocation3 + $0x90] sm:$0xe] }
 0x38c   : > { %11606 = vmatmul.mubr.bf16.gmra.mrb[28].mxu0 %v12334_v14  ;;  %v15145_v51 = vadd.f32 %v15026_v50, %v11424_v58  ;;  %v3044_v13 = vpop.f32.mrb[75].mxu1  ;;  %v15161_v50 = vrot.slane %v4676_v21, 4  ;;  %v15176_v61 = vrot.slane %v4707_v41, 4  ;;  %v5392_v14 = vrot.slane %v5390_v18, 4  ;;  %17881 = vst [vmem:[#allocation57_spill] sm:$0xff] %v15200_v47 }
 0x38d   : > { %11609 = vmatprep.mubr.bf16.mxu0 %v12335_v8  ;;  %v15183_v8 = vrot.slane %v4718_v31, 4  ;;  %v5400_v21 = vrot.slane %v15105_v62, 5  ;;  %v5404_v58 = vrot.slane %v15110_v15, 5  ;;  %v15204_v41 = vld [vmem:[#allocation3 + $0x94] sm:$0xf]  ;;  %v5411_v31 = vrot.slane %v15155_v54, 5 }
 0x38e   : > { %v15196_v5 = vsel %vm14801_vm14, %v5392_v14, %v5393_v56  ;;  %v15213_v18 = vld [vmem:[#allocation3 + $0x98] sm:$0x1]  ;;  %v15224_v14 = vld [vmem:[#allocation3 + $0xac] sm:$0xf]  ;;  %v5425_v15 = vrot.slane %v15204_v41, 5  ;;  %v10361_v59 = vrot.slane %v5285_v3, 9 }
 0x38f   : > { %17880 = vst [vmem:[#allocation56_spill] sm:$0xff] %v15196_v5  ;;  %v15210_v13 = vsel %vm14801_vm14, %v5399_v44, %v5400_v21  ;;  %v15228_v56 = vsel %vm14801_vm14, %v10359_v24, %v5411_v31  ;;  %v5413_v25 = vrot.slane %v5411_v31, 4  ;;  %v5418_v44 = vrot.slane %v15190_v52, 5  ;;  %v5286_v62 = vld [vmem:[#allocation3 + $0x9c] sm:$0xe] }
 0x390   : > { %17882 = vst [vmem:[#allocation58_spill] sm:$0xff] %v15210_v13  ;;  %17884 = vst [vmem:[#allocation60_spill] sm:$0xff] %v15228_v56  ;;  %v5427_v24 = vrot.slane %v5425_v15, 4  ;;  %v15260_v3 = vld [vmem:[#allocation3 + $0xc4] sm:$0xf]  ;;  %v15268_v49 = vsel %vm14801_vm14, %v10361_v59, %v5425_v15  ;;  %v5434_v15 = vrot.slane %v5432_v28, 4 }
 0x391   : > { %v15244_v31 = vsel %vm14801_vm14, %v5413_v25, %v5414_v9  ;;  %v5420_v37 = vrot.slane %v5418_v44, 4  ;;  %v5428_v25 = vrot.slane %v15213_v18, 5  ;;  %v15258_v9 = vld [vmem:[#allocation3 + $0xb8] sm:$0xf]  ;;  %17889 = vst [vmem:[#allocation65_spill] sm:$0xff] %v15268_v49  ;;  %v5453_v56 = vrot.slane %v15260_v3, 5 }
 0x392   : > { %17886 = vst [vmem:[#allocation62_spill] sm:$0xff] %v15244_v31  ;;  %v5288_v31 = vld [vmem:[#allocation3 + $0xb4] sm:$0xe]  ;;  %v15283_v59 = vld [vmem:[#allocation3 + $0xc8] sm:$0x1] }
 0x393   : > { %v15278_v45 = vsel %vm14801_vm14, %v5427_v24, %v5428_v25  ;;  %v15295_v25 = vld [vmem:[#allocation3 + $0xd0] sm:$0xf] }
 0x394   : > { %11610 = vmatmul.mubr.bf16.gmra.mrb[48].mxu0 %v12337_v42  ;;  %v5406_v42 = vrot.slane %v5404_v58, 4  ;;  %17890 = vst [vmem:[#allocation66_spill] sm:$0xff] %v15278_v45  ;;  %v15305_v45 = vld [vmem:[#allocation3 + $0xd4] sm:$0x1]  ;;  %v5460_v5 = vrot.slane %v15295_v25, 5 }
 0x395   : > { %11629 = vmatprep.mubr.bf16.mxu0 %v15082_v20  ;;  %v15219_v20 = vsel %vm14801_vm14, %v10358_v23, %v5404_v58  ;;  %v10360_v23 = vrot.slane %v5284_v34, 9  ;;  %v5421_v58 = vrot.slane %v15192_v2, 5  ;;  %v12339_v34 = vld [vmem:[%s17709_s7 + $0x148] sm:$0xff]  }
 0x396   : > { %17883 = vst [vmem:[#allocation59_spill] sm:$0xff] %v15219_v20  ;;  %v15234_v21 = vsel %vm14801_vm14, %v5406_v42, %v5407_v11  ;;  %v15249_v42 = vld [vmem:[#allocation3 + $0xa4] sm:$0x1]  ;;  %v10362_v11 = vrot.slane %v5286_v62, 9  ;;  %v5455_v20 = vrot.slane %v5453_v56, 4 }
 0x397   : > { %17885 = vst [vmem:[#allocation61_spill] sm:$0xff] %v15234_v21  ;;  %v15255_v29 = vsel %vm14801_vm14, %v10360_v23, %v5418_v44  ;;  %v15264_v12 = vsel %vm14801_vm14, %v5420_v37, %v5421_v58  ;;  %v15272_v44 = vld [vmem:[#allocation3 + $0xbc] sm:$0x1]  ;;  %v10363_v37 = vrot.slane %v5287_v57, 9  ;;  %v5439_v58 = vrot.slane %v15224_v14, 5 }
 0x398   : > { %17887 = vst [vmem:[#allocation63_spill] sm:$0xff] %v15255_v29  ;;  %17888 = vst [vmem:[#allocation64_spill] sm:$0xff] %v15264_v12  ;;  %v15289_v62 = vsel %vm14801_vm14, %v10362_v11, %v5432_v28  ;;  %v5435_v24 = vrot.slane %v15249_v42, 5  ;;  %v5289_v57 = vld [vmem:[#allocation3 + $0xc0] sm:$0xe]  ;;  %v5442_v23 = vrot.slane %v15238_v33, 5 }
 0x399   : > { %v5446_v11 = vrot.slane %v15258_v9, 5  ;;  %v10364_v12 = vrot.slane %v5288_v31, 9  ;;  %v5449_v29 = vrot.slane %v15272_v44, 5  ;;  %v10365_v47 = vrot.slane %v5289_v57, 9 }
 0x39a   : > { %v15309_v49 = vsel %vm14801_vm14, %v5434_v15, %v5435_v24  ;;  %v5291_v15 = vld [vmem:[#allocation3 + $0xd8] sm:$0xe]  ;;  %v15323_v24 = vld [vmem:[#allocation3 + $0xe0] sm:$0x1] }
 0x39b   : > { %17893 = vst [vmem:[#allocation69_spill] sm:$0xff] %v15309_v49  ;;  %v5448_v13 = vrot.slane %v5446_v11, 4  ;;  %v5456_v49 = vrot.slane %v15283_v59, 5 }
 0x39c   : > { %11630 = vmatmul.mubr.bf16.vlgmr.msra.gmra.mrb[52].mxu0 %v15084_v35  ;;  %v5441_v35 = vrot.slane %v5439_v58, 4 }
 0x39d   : > { %11666 = vmatpush3.bf16.msra.mxu0 %v15020_v48  ;;  %11633 = vmatprep.mubr.bf16.mxu0 %v15090_v30  ;;  %v12340_v48 = vld [vmem:[%s17709_s7 + $0x150] sm:$0xff]   ;;  %v15299_v30 = vsel %vm14801_vm14, %v10363_v37, %v5439_v58  ;;  %v5290_v37 = vld [vmem:[#allocation3 + $0xcc] sm:$0xe]  ;;  %v4477_v58 = vld [vmem:[#allocation3 + $0x84] sm:$0xf]  ;;  %v15341_v57 = vsel %vm14801_vm14, %v5448_v13, %v5449_v29  ;;  %v5463_v13 = vrot.slane %v15305_v45, 5 }
 0x39e   : > { %11667 = vmatprep.subr.bf16.mxu0 %v12339_v34  ;;  %17891 = vst [vmem:[#allocation67_spill] sm:$0xff] %v15299_v30  ;;  %v15303_v28 = vpop.f32.mrb[76].mxu1  ;;  %17898 = vst [vmem:[#allocation74_spill] sm:$0xff] %v15341_v57  ;;  %v12342_v29 = vld [vmem:[%s17709_s7 + $0x160] sm:$0xff]  }
 0x39f   : > { %17892 = vst [vmem:[#allocation68_spill] sm:$0xff] %v15303_v28  ;;  %v15313_v21 = vpop.f32.mrb[77].mxu1  ;;  %v15319_v28 = vsel %vm14801_vm14, %v5441_v35, %v5442_v23  ;;  %v15337_v35 = vld [vmem:[#allocation3 + $0xdc] sm:$0xf] }
 0x3a0   : > { %17894 = vst [vmem:[#allocation70_spill] sm:$0xff] %v15313_v21  ;;  %17895 = vst [vmem:[#allocation71_spill] sm:$0xff] %v15319_v28  ;;  %v15321_v31 = vpop.f32.mrb[78].mxu1  ;;  %v15329_v21 = vsel %vm14801_vm14, %v10364_v12, %v5446_v11  ;;  %v15345_v12 = vsel %vm14801_vm14, %v10365_v47, %v5453_v56  ;;  %v10366_v11 = vrot.slane %v5290_v37, 9  ;;  %v10367_v28 = vrot.slane %v5291_v15, 9 }
 0x3a1   : > { %11668 = vmatpush3.bf16.msra.mxu0 %v12339_v34  ;;  %17896 = vst [vmem:[#allocation72_spill] sm:$0xff] %v15321_v31  ;;  %v15332_v23 = vpop.f32.mrb[79].mxu1  ;;  %v12341_v34 = vld [vmem:[%s17709_s7 + $0x158] sm:$0xff]   ;;  %17899 = vst [vmem:[#allocation75_spill] sm:$0xff] %v15345_v12  ;;  %v15352_v31 = vsel %vm14801_vm14, %v5455_v20, %v5456_v49  ;;  %v5467_v30 = vrot.slane %v15337_v35, 5  ;;  %v5462_v47 = vrot.slane %v5460_v5, 4 }
 0x3a2   : > { %17897 = vst [vmem:[#allocation73_spill] sm:$0xff] %v15332_v23  ;;  %11669 = vmatprep.subr.bf16.mxu0 %v12340_v48  ;;  %17900 = vst [vmem:[#allocation76_spill] sm:$0xff] %v15352_v31  ;;  %v5470_v56 = vrot.slane %v15323_v24, 5  ;;  %v4731_v37 = vshrl.u32 %v15155_v54, 16  ;;  %v4742_v49 = vshrl.u32 %v4477_v58, 16  ;;  %v4745_v20 = vshll.u32 %v4477_v58, 16 }
 0x3a3   : > { %v5469_v15 = vrot.slane %v5467_v30, 4  ;;  %v4751_v23 = vshll.u32 %v15190_v52, 16  ;;  %v15369_v31 = vsel %vm14801_vm14, %v10366_v11, %v5460_v5  ;;  %v17903_v5 = vor.u32 %v15132_v7, %v15130_v60  ;;  %v4480_v12 = vld [vmem:[#allocation3 + $0x90] sm:$0xf] }
 0x3a4   : > { %11634 = vmatmul.mubr.bf16.gmra.mrb[4].mxu0 %v15103_v46  ;;  %v4755_v46 = vshrl.u32 %v15190_v52, 16  ;;  %v15381_v52 = vsel %vm14801_vm14, %v10367_v28, %v5467_v30  ;;  %v17904_v30 = vshll.u32 %v15155_v54, 16  ;;  %v17905_v54 = vsel %vm13997_vm7, %v15124_v6, %v15137_v38 }
 0x3a5   : > { %11637 = vmatprep.mubr.bf16.mxu0 %v15147_v10  ;;  %11670 = vmatpush3.bf16.msra.mxu0 %v12340_v48  ;;  %v15373_v10 = vsel %vm14801_vm14, %v5462_v47, %v5463_v13  ;;  %v17902_v48 = vshll.u32 %v15135_v53, 16  ;;  %v15385_v57 = vsel %vm14801_vm14, %v5469_v15, %v5470_v56  ;;  %v4687_v11 = vrot.slane %v17903_v5, 4 }
 0x3a6   : > { %11671 = vmatprep.subr.bf16.mxu0 %v12341_v34  ;;  %17901 = vst [vmem:[#allocation77_spill] sm:$0xff] %v15373_v10  ;;  %v4710_v47 = vor.u32 %v15176_v61, %v15168_v32  ;;  %v4713_v53 = vshll.u32 %v15172_v17, 16  ;;  %v15397_v28 = vrot.slane %v17904_v30, 5  ;;  %v4744_v56 = vrot.slane %v4742_v49, 4 }
 0x3a7   : > { %v4723_v58 = vrot.slane %v17902_v48, 5  ;;  %v4733_v48 = vrot.slane %v4731_v37, 4  ;;  %v4747_v15 = vrot.slane %v4745_v20, 5  ;;  %v15399_v10 = vrot.slane %v4751_v23, 5 }
 0x3a8   : > { %v4757_v7 = vrot.slane %v4755_v46, 4  ;;  %v4775_v61 = vshll.u32 %v15204_v41, 16  ;;  %v4779_v17 = vshrl.u32 %v15204_v41, 16  ;;  %v17906_v23 = vsel %vm13997_vm7, %v15120_v0, %v15075_v43 }
 0x3a9   : > { %11672 = vmatpush3.bf16.msra.mxu0 %v12341_v34  ;;  %v12343_v34 = vld [vmem:[%s17709_s7 + $0x168] sm:$0xff]   ;;  %v10330_v37 = vcombine.low %v17906_v23, %v17905_v54  ;;  %v17907_v49 = vor.u32 %v15141_v39, %v15139_v27  ;;  %v4724_v41 = vor.u32 %v4723_v58, %v15183_v8  ;;  %v4682_v46 = vsel %vm13997_vm7, %v15161_v50, %v15130_v60  ;;  %v4483_v50 = vld [vmem:[#allocation3 + $0x9c] sm:$0xf] }
 0x3aa   : > { %11673 = vmatprep.subr.bf16.mxu0 %v12342_v29  ;;  %v4692_v6 = vsel %vm13997_vm7, %v4687_v11, %v15163_v40  ;;  %v4711_v38 = vrot.slane %v4710_v47, 4  ;;  %v4715_v43 = vrot.slane %v4713_v53, 5  ;;  %v4734_v0 = vor.u32 %v4733_v48, %v15397_v28  ;;  %v12344_v40 = vld [vmem:[%s17709_s7 + $0x170] sm:$0xff]  }
 0x3ab   : > { %v4701_v20 = vrot.slane %v17907_v49, 4  ;;  %v4766_v27 = vshrl.u32 %v4480_v12, 16  ;;  %v4769_v39 = vshll.u32 %v4480_v12, 16  ;;  %v4758_v58 = vor.u32 %v4757_v7, %v15399_v10 }
 0x3ac   : > { %11638 = vmatmul.mubr.bf16.gmra.mrb[8].mxu0 %v15149_v26  ;;  %v4748_v26 = vor.u32 %v4747_v15, %v4744_v56  ;;  %v15432_v5 = vrot.slane %v4775_v61, 5  ;;  %v4781_v60 = vrot.slane %v4779_v17, 4  ;;  %v10331_v47 = vcombine.low %v4682_v46, %v4692_v6 }
 0x3ad   : > { %11641 = vmatprep.mubr.bf16.mxu0 %v10330_v37  ;;  %11674 = vmatpush3.bf16.msra.mxu0 %v12342_v29  ;;  %v15429_v8 = vpop.f32.mrb[80].mxu1  ;;  %v4706_v12 = vsel %vm13997_vm7, %v4701_v20, %v15168_v32  ;;  %v4725_v29 = vrot.slane %v4724_v41, 4  ;;  %v4737_v53 = vshll.u32 %v15181_v19, 16  ;;  %v4716_v48 = vsel %vm13997_vm7, %v4711_v38, %v4715_v43 }
 0x3ae   : > { %17908 = vst [vmem:[#allocation78_spill] sm:$0xff] %v15429_v8  ;;  %11675 = vmatprep.subr.bf16.mxu0 %v12343_v34  ;;  %v15437_v11 = vpop.f32.mrb[81].mxu1  ;;  %v4761_v56 = vshll.u32 %v15192_v2, 16  ;;  %v4799_v15 = vshll.u32 %v15222_v63, 16  ;;  %v4803_v7 = vshrl.u32 %v15222_v63, 16  ;;  %v4768_v17 = vrot.slane %v4766_v27, 4 }
 0x3af   : > { %17909 = vst [vmem:[#allocation79_spill] sm:$0xff] %v15437_v11  ;;  %v15443_v30 = vpop.f32.mrb[82].mxu1  ;;  %v4771_v54 = vrot.slane %v4769_v39, 5  ;;  %v4790_v23 = vshrl.u32 %v4483_v50, 16  ;;  %v4793_v32 = vshll.u32 %v4483_v50, 16  ;;  %v4735_v37 = vrot.slane %v4734_v0, 4 }
 0x3b0   : > { %17910 = vst [vmem:[#allocation80_spill] sm:$0xff] %v15443_v30  ;;  %v15450_v61 = vpop.f32.mrb[83].mxu1  ;;  %v4749_v19 = vrot.slane %v4748_v26, 4  ;;  %v4759_v49 = vrot.slane %v4758_v58, 4  ;;  %v4782_v20 = vor.u32 %v4781_v60, %v15432_v5  ;;  %v12345_v2 = vld [vmem:[%s17709_s7 + $0x178] sm:$0xff]   ;;  %v10332_v41 = vcombine.low %v4706_v12, %v4716_v48 }
 0x3b1   : > { %17911 = vst [vmem:[#allocation81_spill] sm:$0xff] %v15450_v61  ;;  %11676 = vmatpush3.bf16.msra.mxu0 %v12343_v34  ;;  %v4739_v46 = vrot.slane %v4737_v53, 5  ;;  %v4763_v63 = vrot.slane %v4761_v56, 5  ;;  %v4785_v6 = vshll.u32 %v15213_v18, 16  ;;  %v15457_v38 = vrot.slane %v4799_v15, 5  ;;  %v17956_v61 = vld [vmem:[#allocation66_spill] sm:$0xff] }
 0x3b2   : > { %11677 = vmatprep.subr.bf16.mxu0 %v12344_v40  ;;  %v4805_v43 = vrot.slane %v4803_v7, 4  ;;  %v4486_v34 = vld [vmem:[#allocation3 + $0xa8] sm:$0xf]  ;;  %v4730_v0 = vsel %vm13997_vm7, %v4725_v29, %v15397_v28  ;;  %v4772_v27 = vor.u32 %v4771_v54, %v4768_v17  ;;  %v4792_v39 = vrot.slane %v4790_v23, 4  ;;  %v15472_v28 = vld [vmem:[%s17709_s7 + $0x180] sm:$0xff]  }
 0x3b3   : > { %v4795_v26 = vrot.slane %v4793_v32, 5  ;;  %v4740_v58 = vsel %vm13997_vm7, %v4735_v37, %v4739_v46  ;;  %v4754_v18 = vsel %vm13997_vm7, %v4749_v19, %v15399_v10  ;;  %v4764_v60 = vsel %vm13997_vm7, %v4759_v49, %v4763_v63  ;;  %v4489_v53 = vld [vmem:[#allocation3 + $0xb4] sm:$0xf] }
 0x3b4   : > { %11642 = vmatmul.mubr.bf16.gmra.mrb[12].mxu0 %v10331_v47  ;;  %v4783_v50 = vrot.slane %v4782_v20, 4  ;;  %v4814_v47 = vshrl.u32 %v4486_v34, 16  ;;  %v4817_v12 = vshll.u32 %v4486_v34, 16  ;;  %v4827_v29 = vshrl.u32 %v15224_v14, 16 }
 0x3b5   : > { %11645 = vmatprep.mubr.bf16.mxu0 %v10332_v41  ;;  %11678 = vmatpush3.bf16.msra.mxu0 %v12344_v40  ;;  %v4823_v40 = vshll.u32 %v15224_v14, 16  ;;  %v4787_v10 = vrot.slane %v4785_v6, 5  ;;  %v4806_v56 = vor.u32 %v4805_v43, %v15457_v38  ;;  %v4847_v15 = vshll.u32 %v15258_v9, 16 }
 0x3b6   : > { %11679 = vmatprep.subr.bf16.mxu0 %v12345_v2  ;;  %v4851_v7 = vshrl.u32 %v15258_v9, 16  ;;  %v10333_v54 = vcombine.low %v4730_v0, %v4740_v58  ;;  %v10334_v23 = vcombine.low %v4754_v18, %v4764_v60  ;;  %v4773_v32 = vrot.slane %v4772_v27, 4  ;;  %v4492_v60 = vld [vmem:[#allocation3 + $0xc0] sm:$0xf] }
 0x3b7   : > { %v15476_v48 = vpop.f32.mrb[84].mxu1  ;;  %v4796_v37 = vor.u32 %v4795_v26, %v4792_v39  ;;  %v4788_v14 = vsel %vm13997_vm7, %v4783_v50, %v4787_v10  ;;  %v4809_v49 = vshll.u32 %v15249_v42, 16  ;;  %v4838_v20 = vshrl.u32 %v4489_v53, 16 }
 0x3b8   : > { %v15481_v17 = vpop.f32.mrb[85].mxu1  ;;  %v4841_v41 = vshll.u32 %v4489_v53, 16  ;;  %v4816_v9 = vrot.slane %v4814_v47, 4  ;;  %v4819_v63 = vrot.slane %v4817_v12, 5  ;;  %v15491_v6 = vrot.slane %v4823_v40, 5 }
 0x3b9   : > { %11680 = vmatpush3.bf16.msra.mxu0 %v12345_v2  ;;  %v15483_v19 = vpop.f32.mrb[86].mxu1  ;;  %v4829_v43 = vrot.slane %v4827_v29, 4  ;;  %v4807_v2 = vrot.slane %v4806_v56, 4  ;;  %v15493_v34 = vrot.slane %v4847_v15, 5  ;;  %v4853_v0 = vrot.slane %v4851_v7, 4 }
 0x3ba   : > { %11717 = vmatprep.subr.bf16.mxu0 %v15472_v28  ;;  %v15489_v46 = vpop.f32.mrb[87].mxu1  ;;  %v4778_v42 = vsel %vm13997_vm7, %v4773_v32, %v15432_v5  ;;  %v4797_v27 = vrot.slane %v4796_v37, 4  ;;  %v4811_v26 = vrot.slane %v4809_v49, 5  ;;  %v4840_v58 = vrot.slane %v4838_v20, 4  ;;  %v4495_v29 = vld [vmem:[#allocation3 + $0xcc] sm:$0xf] }
 0x3bb   : > { %v10335_v39 = vcombine.low %v4778_v42, %v4788_v14  ;;  %v4843_v18 = vrot.slane %v4841_v41, 5  ;;  %v4820_v50 = vor.u32 %v4819_v63, %v4816_v9  ;;  %v4830_v47 = vor.u32 %v4829_v43, %v15491_v6 }
 0x3bc   : > { %11646 = vmatmul.mubr.bf16.gmra.mrb[16].mxu0 %v10333_v54  ;;  %v4871_v12 = vshll.u32 %v15260_v3, 16  ;;  %v4875_v40 = vshrl.u32 %v15260_v3, 16  ;;  %v4812_v10 = vsel %vm13997_vm7, %v4807_v2, %v4811_v26  ;;  %v4854_v5 = vor.u32 %v4853_v0, %v15493_v34 }
 0x3bd   : > { %11649 = vmatprep.mubr.bf16.mxu0 %v10334_v23  ;;  %v4895_v56 = vshll.u32 %v15295_v25, 16  ;;  %v4899_v15 = vshrl.u32 %v15295_v25, 16  ;;  %v4802_v54 = vsel %vm13997_vm7, %v4797_v27, %v15457_v38  ;;  %v4833_v3 = vshll.u32 %v15238_v33, 16  ;;  %v4498_v27 = vld [vmem:[#allocation3 + $0xd8] sm:$0xf] }
 0x3be   : > { %v4862_v23 = vshrl.u32 %v4492_v60, 16  ;;  %v4865_v32 = vshll.u32 %v4492_v60, 16  ;;  %v4844_v14 = vor.u32 %v4843_v18, %v4840_v58  ;;  %v4857_v49 = vshll.u32 %v15272_v44, 16 }
 0x3bf   : > { %v15501_v53 = vpop.f32.mrb[88].mxu1  ;;  %v4886_v20 = vshrl.u32 %v4495_v29, 16  ;;  %v4889_v41 = vshll.u32 %v4495_v29, 16  ;;  %v10336_v25 = vcombine.low %v4802_v54, %v4812_v10  ;;  %v4831_v63 = vrot.slane %v4830_v47, 4 }
 0x3c0   : > { %17912 = vst [vmem:[#allocation82_spill] sm:$0xff] %v15501_v53  ;;  %v15508_v7 = vpop.f32.mrb[89].mxu1  ;;  %v4873_v43 = vrot.slane %v4871_v12, 5  ;;  %v4877_v2 = vrot.slane %v4875_v40, 4  ;;  %v4821_v0 = vrot.slane %v4820_v50, 4  ;;  %v4855_v38 = vrot.slane %v4854_v5, 4 }
 0x3c1   : > { %17913 = vst [vmem:[#allocation83_spill] sm:$0xff] %v15508_v7  ;;  %v15514_v37 = vpop.f32.mrb[90].mxu1  ;;  %v4897_v42 = vrot.slane %v4895_v56, 5  ;;  %v4901_v33 = vrot.slane %v4899_v15, 4  ;;  %v4835_v26 = vrot.slane %v4833_v3, 5  ;;  %v4864_v60 = vrot.slane %v4862_v23, 4 }
 0x3c2   : > { %17914 = vst [vmem:[#allocation84_spill] sm:$0xff] %v15514_v37  ;;  %v15517_v9 = vpop.f32.mrb[91].mxu1  ;;  %v4867_v58 = vrot.slane %v4865_v32, 5  ;;  %v4845_v18 = vrot.slane %v4844_v14, 4  ;;  %v4859_v44 = vrot.slane %v4857_v49, 5  ;;  %v4888_v13 = vrot.slane %v4886_v20, 4 }
 0x3c3   : > { %17915 = vst [vmem:[#allocation85_spill] sm:$0xff] %v15517_v9  ;;  %v4891_v29 = vrot.slane %v4889_v41, 5  ;;  %v4836_v10 = vsel %vm13997_vm7, %v4831_v63, %v4835_v26  ;;  %v4878_v47 = vor.u32 %v4877_v2, %v4873_v43  ;;  %v4910_v12 = vshrl.u32 %v4498_v27, 16 }
 0x3c4   : > { %11650 = vmatmul.mubr.bf16.gmra.mrb[20].mxu0 %v10335_v39  ;;  %v4913_v40 = vshll.u32 %v4498_v27, 16  ;;  %v4826_v39 = vsel %vm13997_vm7, %v4821_v0, %v15491_v6  ;;  %v4860_v50 = vsel %vm13997_vm7, %v4855_v38, %v4859_v44  ;;  %v4902_v5 = vor.u32 %v4901_v33, %v4897_v42 }
 0x3c5   : > { %11653 = vmatprep.mubr.bf16.mxu0 %v10336_v25  ;;  %v4868_v56 = vor.u32 %v4867_v58, %v4864_v60  ;;  %v4881_v15 = vshll.u32 %v15283_v59, 16  ;;  %v4919_v54 = vshll.u32 %v15337_v35, 16  ;;  %v4923_v3 = vshrl.u32 %v15337_v35, 16 }
 0x3c6   : > { %v10337_v32 = vcombine.low %v4826_v39, %v4836_v10  ;;  %v4850_v14 = vsel %vm13997_vm7, %v4845_v18, %v15493_v34  ;;  %v4892_v49 = vor.u32 %v4891_v29, %v4888_v13  ;;  %v4905_v6 = vshll.u32 %v15305_v45, 16  ;;  %v13285_v18 = vld [vmem:[#allocation3 + $0x10] sm:$0xf] }
 0x3c7   : > { %v10338_v41 = vcombine.low %v4850_v14, %v4860_v50  ;;  %v4879_v25 = vrot.slane %v4878_v47, 4  ;;  %v4912_v63 = vrot.slane %v4910_v12, 4  ;;  %v4915_v59 = vrot.slane %v4913_v40, 5 }
 0x3c8   : > { %v4903_v35 = vrot.slane %v4902_v5, 4  ;;  %v4869_v38 = vrot.slane %v4868_v56, 4  ;;  %v4883_v33 = vrot.slane %v4881_v15, 5  ;;  %v4921_v27 = vrot.slane %v4919_v54, 5 }
 0x3c9   : > { %v15529_v23 = vpop.f32.mrb[92].mxu1  ;;  %v4925_v34 = vrot.slane %v4923_v3, 4  ;;  %v4893_v13 = vrot.slane %v4892_v49, 4  ;;  %v4907_v26 = vrot.slane %v4905_v6, 5  ;;  %v4916_v60 = vor.u32 %v4915_v59, %v4912_v63  ;;  %v13286_v49 = vld [vmem:[#allocation3 + $0x14] sm:$0x1] }
 0x3ca   : > { %17916 = vst [vmem:[#allocation86_spill] sm:$0xff] %v15529_v23  ;;  %v15535_v20 = vpop.f32.mrb[93].mxu1  ;;  %v4884_v45 = vsel %vm13997_vm7, %v4879_v25, %v4883_v33  ;;  %v5348_v44 = vrot.slane %v13285_v18, 5  ;;  %v4874_v29 = vsel %vm13997_vm7, %v4869_v38, %v4873_v43  ;;  %v4929_v12 = vshll.u32 %v15323_v24, 16 }
 0x3cb   : > { %17917 = vst [vmem:[#allocation87_spill] sm:$0xff] %v15535_v20  ;;  %v15537_v2 = vpop.f32.mrb[94].mxu1  ;;  %v4908_v58 = vsel %vm13997_vm7, %v4903_v35, %v4907_v26  ;;  %v4926_v47 = vor.u32 %v4925_v34, %v4921_v27  ;;  %v10339_v39 = vcombine.low %v4874_v29, %v4884_v45  ;;  %v4898_v50 = vsel %vm13997_vm7, %v4893_v13, %v4897_v42  ;;  %v13287_v35 = vld [vmem:[#allocation3 + $0x1c] sm:$0xf]  ;;  %v13288_v34 = vld [vmem:[#allocation3 + $0x28] sm:$0xf] }
 0x3cc   : > { %17918 = vst [vmem:[#allocation88_spill] sm:$0xff] %v15537_v2  ;;  %11654 = vmatmul.mubr.bf16.gmra.mrb[24].mxu0 %v10337_v32  ;;  %v15539_v0 = vpop.f32.mrb[95].mxu1  ;;  %v10340_v15 = vcombine.low %v4898_v50, %v4908_v58  ;;  %v4917_v3 = vrot.slane %v4916_v60, 4  ;;  %v5274_v32 = vld [vmem:[#allocation3 + $0xc] sm:$0xe]  ;;  %v5350_v24 = vrot.slane %v5348_v44, 4 }
 0x3cd   : > { %17919 = vst [vmem:[#allocation89_spill] sm:$0xff] %v15539_v0  ;;  %11657 = vmatprep.mubr.bf16.mxu0 %v10338_v41  ;;  %v5351_v6 = vrot.slane %v13286_v49, 5  ;;  %v4927_v42 = vrot.slane %v4926_v47, 4  ;;  %v4931_v25 = vrot.slane %v4929_v12, 5  ;;  %v10350_v63 = vrot.slane %v5274_v32, 9 }
 0x3ce   : > { %v4922_v59 = vsel %vm13997_vm7, %v4917_v3, %v4921_v27  ;;  %v5355_v38 = vrot.slane %v13287_v35, 5  ;;  %v5362_v13 = vrot.slane %v13288_v34, 5  ;;  %v5275_v27 = vld [vmem:[#allocation3 + $0x18] sm:$0xe]  ;;  %v13290_v32 = vld [vmem:[#allocation3 + $0x2c] sm:$0x1] }
 0x3cf   : > { %v5352_v33 = vsel %vm14801_vm14, %v5350_v24, %v5351_v6  ;;  %v4932_v26 = vsel %vm13997_vm7, %v4927_v42, %v4931_v25  ;;  %v5349_v60 = vsel %vm14801_vm14, %v10350_v63, %v5348_v44  ;;  %v5365_v24 = vrot.slane %v13290_v32, 5  ;;  %v13291_v63 = vld [vmem:[#allocation3 + $0x34] sm:$0xf]  ;;  %v5278_v32 = vld [vmem:[#allocation3 + $0x3c] sm:$0xe] }
 0x3d0   : > { %v11507_v10 = vpop.f32.mrb[32].mxu0  ;;  %v10341_v45 = vcombine.low %v4922_v59, %v4932_v26  ;;  %v10368_v58 = vcombine.low %v5349_v60, %v5352_v33  ;;  %v5357_v18 = vrot.slane %v5355_v38, 4  ;;  %v10351_v42 = vrot.slane %v5275_v27, 9  ;;  %v13292_v26 = vld [vmem:[#allocation3 + $0x40] sm:$0xf] }
 0x3d1   : > { %v15548_v40 = vpop.f32.mrb[96].mxu1  ;;  %v15552_v5 = vpop.f32.mrb[33].mxu0  ;;  %v5364_v10 = vrot.slane %v5362_v13, 4  ;;  %v5369_v59 = vrot.slane %v13291_v63, 5  ;;  %v6236_v0 = vld [vmem:[#allocation3 + $0x3c] sm:$0xf] }
 0x3d2   : > { %17920 = vst [vmem:[#allocation90_spill] sm:$0xff] %v15548_v40  ;;  %v15554_v56 = vpop.f32.mrb[97].mxu1  ;;  %v11508_v54 = vpop.f32.mrb[34].mxu0  ;;  %v5356_v60 = vsel %vm14801_vm14, %v10351_v42, %v5355_v38  ;;  %v12348_v42 = vld [vmem:[%s17709_s7 + $0x190] sm:$0xff]   ;;  %v6354_v2 = vshrl.u32 %v6236_v0, 16 }
 0x3d3   : > { %17921 = vst [vmem:[#allocation91_spill] sm:$0xff] %v15554_v56  ;;  %v15556_v14 = vpop.f32.mrb[98].mxu1  ;;  %v15558_v43 = vpop.f32.mrb[35].mxu0  ;;  %v15812_v20 = vld [vmem:[#allocation3 + $0x4c] sm:$0xf] }
 0x3d4   : > { %17922 = vst [vmem:[#allocation92_spill] sm:$0xff] %v15556_v14  ;;  %11658 = vmatmul.mubr.bf16.gmra.mrb[28].mxu0 %v10339_v39  ;;  %v15560_v41 = vpop.f32.mrb[99].mxu1  ;;  %v13289_v39 = vld [vmem:[#allocation3 + $0x20] sm:$0x1] }
 0x3d5   : > { %17923 = vst [vmem:[#allocation93_spill] sm:$0xff] %v15560_v41  ;;  %11661 = vmatprep.mubr.bf16.mxu0 %v10340_v15  ;;  %v5358_v50 = vrot.slane %v13289_v39, 5  ;;  %v5276_v15 = vld [vmem:[#allocation3 + $0x24] sm:$0xe] }
 0x3d6   : > { %v10352_v34 = vrot.slane %v5276_v15, 9 }
 0x3d7   : > { %v5359_v25 = vsel %vm14801_vm14, %v5357_v18, %v5358_v50  ;;  %v12347_v18 = vld [vmem:[%s17709_s7 + $0x188] sm:$0xff]   ;;  %v5277_v50 = vld [vmem:[#allocation3 + $0x30] sm:$0xe] }
 0x3d8   : > { %v5363_v27 = vsel %vm14801_vm14, %v10352_v34, %v5362_v13  ;;  %v10353_v63 = vrot.slane %v5277_v50, 9 }
 0x3db   : > { %v15570_v29 = vpop.f32.mrb[100].mxu1 }
 0x3dc   : > { %17924 = vst [vmem:[#allocation94_spill] sm:$0xff] %v15570_v29  ;;  %11662 = vmatmul.mubr.bf16.gmra.mrb[56].mxu0 %v10341_v45  ;;  %v15572_v47 = vpop.f32.mrb[101].mxu1  ;;  %v5376_v45 = vrot.slane %v13292_v26, 5 }
 0x3dd   : > { %17925 = vst [vmem:[#allocation95_spill] sm:$0xff] %v15572_v47  ;;  %11681 = vmatprep.mubr.bf16.mxu0 %v10368_v58  ;;  %v11527_v12 = vpop.f32.mrb[36].mxu0  ;;  %v15574_v54 = vpop.f32.mrb[102].mxu1  ;;  %v10369_v58 = vcombine.low %v5356_v60, %v5359_v25 }
 0x3de   : > { %17926 = vst [vmem:[#allocation96_spill] sm:$0xff] %v15574_v54  ;;  %v15577_v3 = vadd.f32 %v11527_v12, %v15128_v1  ;;  %v3863_v44 = vpop.f32.mrb[37].mxu0  ;;  %v15579_v49 = vpop.f32.mrb[103].mxu1  ;;  %v5366_v1 = vsel %vm14801_vm14, %v5364_v10, %v5365_v24  ;;  %v5371_v12 = vrot.slane %v5369_v59, 4  ;;  %v5378_v15 = vrot.slane %v5376_v45, 4 }
 0x3df   : > { %17927 = vst [vmem:[#allocation97_spill] sm:$0xff] %v15579_v49  ;;  %v11528_v6 = vpop.f32.mrb[38].mxu0  ;;  %v13293_v44 = vld [vmem:[#allocation3 + $0x38] sm:$0x1]  ;;  %v17966_v49 = vld [vmem:[#allocation74_spill] sm:$0xff] }
 0x3e0   : > { %v15584_v35 = vadd.f32 %v11528_v6, %v15145_v51  ;;  %v3865_v33 = vpop.f32.mrb[39].mxu0  ;;  %v10370_v51 = vcombine.low %v5363_v27, %v5366_v1  ;;  %v5372_v38 = vrot.slane %v13293_v44, 5  ;;  %v5379_v6 = vrot.slane %v15069_v22, 5  ;;  %v12349_v27 = vld [vmem:[%s17709_s7 + $0x198] sm:$0xff]  }
 0x3e1   : > { %v13294_v33 = vld [vmem:[#allocation3 + $0x4c] sm:$0xf]  ;;  %v5370_v22 = vsel %vm14801_vm14, %v10353_v63, %v5369_v59  ;;  %v5386_v59 = vrot.slane %v15072_v36, 5  ;;  %v17967_v54 = vcombine.low %v15329_v21, %v17966_v49  ;;  %v12354_v21 = vld [vmem:[#allocation3 + $0x18] sm:$0xff]  }
 0x3e2   : > { %v5383_v34 = vrot.slane %v13294_v33, 5  ;;  %v5380_v26 = vsel %vm14801_vm14, %v5378_v15, %v5379_v6  ;;  %v12351_v36 = vld [vmem:[%s17709_s7 + $0x1a8] sm:$0xff]   ;;  %v15638_v6 = vld [vmem:[#allocation3 + $0x58] sm:$0xf]  ;;  %v12352_v33 = vld [vmem:[%s17709_s7 + $0x1b0] sm:$0xff]  }
 0x3e4   : > { %v11455_v39 = vpop.f32.mrb[104].mxu1  ;;  %11682 = vmatmul.mubr.bf16.vlgmr.msra.gmra.mrb[60].mxu0 %v10369_v58 }
 0x3e5   : > { %v3168_v10 = vpop.f32.mrb[105].mxu1  ;;  %11718 = vmatpush3.bf16.msra.mxu0 %v15472_v28  ;;  %11685 = vmatprep.mubr.bf16.mxu0 %v10370_v51  ;;  %v5373_v28 = vsel %vm14801_vm14, %v5371_v12, %v5372_v38  ;;  %v5279_v39 = vld [vmem:[#allocation3 + $0x48] sm:$0xe] }
 0x3e6   : > { %v15597_v24 = vadd.f32 %v15552_v5, %v3168_v10  ;;  %v11456_v13 = vpop.f32.mrb[106].mxu1  ;;  %11719 = vmatprep.subr.bf16.mxu0 %v12347_v18  ;;  %v10354_v5 = vrot.slane %v5278_v32, 9  ;;  %v10371_v60 = vcombine.low %v5370_v22, %v5373_v28  ;;  %v10355_v10 = vrot.slane %v5279_v39, 9 }
 0x3e7   : > { %v3171_v25 = vpop.f32.mrb[107].mxu1  ;;  %v7163_v22 = vrot.slane %v15638_v6, 5 }
 0x3e8   : > { %v15606_v1 = vadd.f32 %v15558_v43, %v3171_v25  ;;  %v5377_v58 = vsel %vm14801_vm14, %v10354_v5, %v5376_v45  ;;  %v5385_v43 = vrot.slane %v5383_v34, 4  ;;  %v12350_v45 = vld [vmem:[%s17709_s7 + $0x1a0] sm:$0xff]   ;;  %v5384_v38 = vsel %vm14801_vm14, %v10355_v10, %v5383_v34  ;;  %v17930_v25 = vld [vmem:[#allocation56_spill] sm:$0xff]  ;;  %v15650_v34 = vld [vmem:[#allocation3 + $0x5c] sm:$0x1] }
 0x3e9   : > { %11720 = vmatpush3.bf16.msra.mxu0 %v12347_v18  ;;  %v10372_v51 = vcombine.low %v5377_v58, %v5380_v26  ;;  %v17931_v63 = vcombine.low %v15187_v16, %v17930_v25  ;;  %v7059_v5 = vld [vmem:[#allocation3 + $0x54] sm:$0xe]  ;;  %v7165_v58 = vrot.slane %v7163_v22, 4  ;;  %v7166_v16 = vrot.slane %v15650_v34, 5 }
 0x3ea   : > { %11721 = vmatprep.subr.bf16.mxu0 %v12348_v42  ;;  %v5387_v44 = vsel %vm14801_vm14, %v5385_v43, %v5386_v59  ;;  %v17935_v59 = vld [vmem:[#allocation57_spill] sm:$0xff] }
 0x3eb   : > { %v10373_v32 = vcombine.low %v5384_v38, %v5387_v44  ;;  %v15665_v43 = vsel %vm14801_vm14, %v7165_v58, %v7166_v16  ;;  %v17945_v58 = vld [vmem:[#allocation60_spill] sm:$0xff]  ;;  %v17946_v16 = vld [vmem:[#allocation62_spill] sm:$0xff] }
 0x3ec   : > { %v15617_v12 = vpop.f32.mrb[108].mxu1  ;;  %11686 = vmatmul.mubr.bf16.gmra.mrb[4].mxu0 %v10371_v60  ;;  %v10451_v60 = vrot.slane %v7059_v5, 9  ;;  %v12355_v5 = vld [vmem:[%s17709_s7 + $0x1c0] sm:$0xff]  }
 0x3ed   : > { %v15619_v50 = vpop.f32.mrb[109].mxu1  ;;  %11689 = vmatprep.mubr.bf16.mxu0 %v10372_v51  ;;  %11722 = vmatpush3.bf16.msra.mxu0 %v12348_v42 }
 0x3ee   : > { %v15622_v18 = vpop.f32.mrb[110].mxu1  ;;  %11723 = vmatprep.subr.bf16.mxu0 %v12349_v27  ;;  %v15661_v51 = vsel %vm14801_vm14, %v10451_v60, %v7163_v22 }
 0x3ef   : > { %v15627_v15 = vpop.f32.mrb[111].mxu1 }
 0x3f1   : > { %11724 = vmatpush3.bf16.msra.mxu0 %v12349_v27  ;;  %v12353_v27 = vld [vmem:[%s17709_s7 + $0x1b8] sm:$0xff]  }
 0x3f2   : > { %11725 = vmatprep.subr.bf16.mxu0 %v12350_v45 }
 0x3f4   : > { %v15636_v13 = vpop.f32.mrb[112].mxu1  ;;  %11690 = vmatmul.mubr.bf16.gmra.mrb[8].mxu0 %v10373_v32  ;;  %v17939_v32 = vld [vmem:[#allocation59_spill] sm:$0xff] }
 0x3f5   : > { %17928 = vst [vmem:[#allocation98_spill] sm:$0xff] %v15636_v13  ;;  %v15640_v42 = vpop.f32.mrb[113].mxu1  ;;  %11693 = vmatprep.mubr.bf16.mxu0 %v17931_v63  ;;  %11726 = vmatpush3.bf16.msra.mxu0 %v12350_v45  ;;  %v17936_v45 = vld [vmem:[#allocation58_spill] sm:$0xff]  ;;  %v6411_v13 = vshll.u32 %v15638_v6, 16 }
 0x3f6   : > { %17929 = vst [vmem:[#allocation99_spill] sm:$0xff] %v15640_v42  ;;  %v15645_v28 = vpop.f32.mrb[114].mxu1  ;;  %11727 = vmatprep.subr.bf16.mxu0 %v12351_v36  ;;  %v17937_v10 = vcombine.low %v17935_v59, %v17936_v45  ;;  %v17947_v59 = vcombine.low %v17945_v58, %v17946_v16  ;;  %v17959_v58 = vld [vmem:[#allocation69_spill] sm:$0xff] }
 0x3f7   : > { %17932 = vst [vmem:[#allocation56_spill] sm:$0xff] %v15645_v28  ;;  %v15652_v26 = vpop.f32.mrb[115].mxu1  ;;  %v17960_v16 = vcombine.low %v15289_v62, %v17959_v58 }
 0x3f8   : > { %17933 = vst [vmem:[#allocation100_spill] sm:$0xff] %v15652_v26 }
 0x3f9   : > { %11728 = vmatpush3.bf16.msra.mxu0 %v12351_v36  ;;  %v17940_v36 = vld [vmem:[#allocation61_spill] sm:$0xff] }
 0x3fa   : > { %11729 = vmatprep.subr.bf16.mxu0 %v12352_v33  ;;  %v17941_v25 = vcombine.low %v17939_v32, %v17940_v36 }
 0x3fc   : > { %v15667_v39 = vpop.f32.mrb[116].mxu1  ;;  %11694 = vmatmul.mubr.bf16.gmra.mrb[12].mxu0 %v17937_v10  ;;  %v17950_v10 = vld [vmem:[#allocation64_spill] sm:$0xff] }
 0x3fd   : > { %17934 = vst [vmem:[#allocation101_spill] sm:$0xff] %v15667_v39  ;;  %v15674_v38 = vpop.f32.mrb[117].mxu1  ;;  %11697 = vmatprep.mubr.bf16.mxu0 %v17941_v25  ;;  %11730 = vmatpush3.bf16.msra.mxu0 %v12352_v33  ;;  %v17949_v33 = vld [vmem:[#allocation63_spill] sm:$0xff]  ;;  %v6357_v39 = vshll.u32 %v6236_v0, 16  ;;  %v6387_v0 = vshll.u32 %v15812_v20, 16 }
 0x3fe   : > { %17938 = vst [vmem:[#allocation57_spill] sm:$0xff] %v15674_v38  ;;  %v15679_v63 = vpop.f32.mrb[118].mxu1  ;;  %11731 = vmatprep.subr.bf16.mxu0 %v12353_v27  ;;  %v17951_v32 = vcombine.low %v17949_v33, %v17950_v10  ;;  %v17963_v10 = vld [vmem:[#allocation67_spill] sm:$0xff] }
 0x3ff   : > { %17942 = vst [vmem:[#allocation58_spill] sm:$0xff] %v15679_v63  ;;  %v15684_v22 = vpop.f32.mrb[119].mxu1  ;;  %v12376_v38 = vld [vmem:[#allocation3 + $0xcc] sm:$0xff]   ;;  %v6359_v9 = vrot.slane %v6357_v39, 5  ;;  %v15828_v39 = vrot.slane %v6387_v0, 5 }
 0x400   : > { %17943 = vst [vmem:[#allocation59_spill] sm:$0xff] %v15684_v22 }
 0x401   : > { %11732 = vmatpush3.bf16.msra.mxu0 %v12353_v27  ;;  %v17955_v27 = vld [vmem:[#allocation65_spill] sm:$0xff] }
 0x402   : > { %11769 = vmatprep.subr.bf16.mxu0 %v12355_v5  ;;  %v17957_v30 = vcombine.low %v17955_v27, %v17956_v61  ;;  %v17968_v61 = vld [vmem:[#allocation75_spill] sm:$0xff] }
 0x404   : > { %v15686_v60 = vpop.f32.mrb[120].mxu1  ;;  %11698 = vmatmul.mubr.bf16.gmra.mrb[16].mxu0 %v17947_v59 }
 0x405   : > { %17944 = vst [vmem:[#allocation61_spill] sm:$0xff] %v15686_v60  ;;  %v15691_v45 = vpop.f32.mrb[121].mxu1  ;;  %11701 = vmatprep.mubr.bf16.mxu0 %v17951_v32  ;;  %v17964_v32 = vld [vmem:[#allocation71_spill] sm:$0xff] }
 0x406   : > { %17948 = vst [vmem:[#allocation60_spill] sm:$0xff] %v15691_v45  ;;  %v15696_v36 = vpop.f32.mrb[122].mxu1  ;;  %v17965_v8 = vcombine.low %v17963_v10, %v17964_v32  ;;  %v15793_v45 = vld [vmem:[#allocation3 + $0x40] sm:$0xf] }
 0x407   : > { %17952 = vst [vmem:[#allocation62_spill] sm:$0xff] %v15696_v36  ;;  %v15698_v25 = vpop.f32.mrb[123].mxu1 }
 0x408   : > { %17953 = vst [vmem:[#allocation63_spill] sm:$0xff] %v15698_v25 }
 0x40c   : > { %v15700_v44 = vpop.f32.mrb[124].mxu1  ;;  %11702 = vmatmul.mubr.bf16.gmra.mrb[20].mxu0 %v17957_v30  ;;  %v17969_v30 = vld [vmem:[#allocation76_spill] sm:$0xff] }
 0x40d   : > { %17954 = vst [vmem:[#allocation64_spill] sm:$0xff] %v15700_v44  ;;  %v15705_v11 = vpop.f32.mrb[125].mxu1  ;;  %11705 = vmatprep.mubr.bf16.mxu0 %v17960_v16  ;;  %v17970_v27 = vcombine.low %v17968_v61, %v17969_v30  ;;  %v12356_v61 = vld [vmem:[#allocation3 + $0x24] sm:$0xff]   ;;  %v12357_v30 = vld [vmem:[#allocation3 + $0x30] sm:$0xff]  }
 0x40e   : > { %17958 = vst [vmem:[#allocation65_spill] sm:$0xff] %v15705_v11  ;;  %v15710_v59 = vpop.f32.mrb[126].mxu1  ;;  %v17971_v11 = vld [vmem:[#allocation77_spill] sm:$0xff] }
 0x40f   : > { %17961 = vst [vmem:[#allocation66_spill] sm:$0xff] %v15710_v59  ;;  %v15712_v33 = vpop.f32.mrb[127].mxu1  ;;  %v17972_v62 = vcombine.low %v15369_v31, %v17971_v11 }
 0x410   : > { %17962 = vst [vmem:[#allocation69_spill] sm:$0xff] %v15712_v33 }
 0x414   : > { %11706 = vmatmul.mubr.bf16.gmra.mrb[24].mxu0 %v17965_v8 }
 0x415   : > { %11709 = vmatprep.mubr.bf16.mxu0 %v17967_v54  ;;  %v17973_v54 = vcombine.low %v15381_v52, %v15385_v57  ;;  %v12363_v57 = vld [vmem:[%s17709_s7 + $0x1d0] sm:$0xff]   ;;  %v12358_v52 = vld [vmem:[#allocation3 + $0x3c] sm:$0xff]  }
 0x41c   : > { %11710 = vmatmul.mubr.bf16.gmra.mrb[28].mxu0 %v17970_v27  ;;  %v6278_v27 = vld [vmem:[#allocation3 + $0xe4] sm:$0xf] }
 0x41d   : > { %11713 = vmatprep.mubr.bf16.mxu0 %v17972_v62  ;;  %v6279_v62 = vld [vmem:[#allocation3 + $0xe8] sm:$0xf] }
 0x41f   : > { %v11559_v58 = vpop.f32.mrb[40].mxu0 }
 0x420   : > { %v3989_v16 = vpop.f32.mrb[41].mxu0  ;;  %v6280_v58 = vld [vmem:[#allocation3 + $0xec] sm:$0x1] }
 0x421   : > { %v15727_v33 = vadd.f32 %v3989_v16, %v15597_v24  ;;  %v11560_v59 = vpop.f32.mrb[42].mxu0  ;;  %v6690_v16 = vshrl.u32 %v6278_v27, 16 }
 0x422   : > { %v3992_v10 = vpop.f32.mrb[43].mxu0 }
 0x423   : > { %v15730_v8 = vadd.f32 %v3992_v10, %v15606_v1  ;;  %v12359_v1 = vld [vmem:[%s17709_s7 + $0x1c8] sm:$0xff]   ;;  %v6699_v10 = vshll.u32 %v6279_v62, 16 }
 0x424   : > { %11714 = vmatmul.mubr.bf16.gmra.mrb[64].mxu0 %v17973_v54  ;;  %v6709_v54 = vshll.u32 %v6280_v58, 16 }
 0x425   : > { %11733 = vmatprep.mubr.bf16.mxu0 %v12354_v21  ;;  %v6703_v21 = vshrl.u32 %v6279_v62, 16 }
 0x426   : > { %v6711_v25 = vrot.slane %v6709_v54, 5  ;;  %v12375_v54 = vld [vmem:[%s17709_s7 + $0x1f0] sm:$0xff]  }
 0x427   : > { %v11579_v49 = vpop.f32.mrb[44].mxu0  ;;  %v6705_v44 = vrot.slane %v6703_v21, 4  ;;  %v12362_v21 = vld [vmem:[#allocation3 + $0x60] sm:$0xff]  }
 0x428   : > { %v15736_v31 = vadd.f32 %v11579_v49, %v15577_v3  ;;  %v4276_v11 = vpop.f32.mrb[45].mxu0  ;;  %v12360_v3 = vld [vmem:[#allocation3 + $0x48] sm:$0xff]   ;;  %v7071_v49 = vld [vmem:[#allocation3 + $0xe4] sm:$0xe] }
 0x429   : > { %v11580_v32 = vpop.f32.mrb[46].mxu0  ;;  %v7247_v11 = vrot.slane %v6279_v62, 5  ;;  %v12361_v62 = vld [vmem:[#allocation3 + $0x54] sm:$0xff]  }
 0x42a   : > { %v15739_v24 = vadd.f32 %v11580_v32, %v15584_v35  ;;  %v4278_v59 = vpop.f32.mrb[47].mxu0  ;;  %v12366_v35 = vld [vmem:[%s17709_s7 + $0x1d8] sm:$0xff]   ;;  %v7250_v32 = vrot.slane %v6280_v58, 5  ;;  %v12372_v58 = vld [vmem:[%s17709_s7 + $0x1e8] sm:$0xff]  }
 0x42b   : > { %v12369_v59 = vld [vmem:[%s17709_s7 + $0x1e0] sm:$0xff]   ;;  %v7249_v47 = vrot.slane %v7247_v11, 4 }
 0x42c   : > { %11734 = vmatmul.mubr.bf16.vlgmr.msra.gmra.mrb[68].mxu0 %v12356_v61  ;;  %v6692_v61 = vrot.slane %v6690_v16, 4 }
 0x42d   : > { %11770 = vmatpush3.bf16.msra.mxu0 %v12355_v5  ;;  %11737 = vmatprep.mubr.bf16.mxu0 %v12357_v30  ;;  %v6693_v5 = vshll.u32 %v6278_v27, 16  ;;  %v6701_v30 = vrot.slane %v6699_v10, 5 }
 0x42e   : > { %11771 = vmatprep.subr.bf16.mxu0 %v12359_v1 }
 0x42f   : > { %v6706_v29 = vor.u32 %v6705_v44, %v6701_v30 }
 0x431   : > { %11772 = vmatpush3.bf16.msra.mxu0 %v12359_v1  ;;  %v6695_v1 = vrot.slane %v6693_v5, 5  ;;  %v6707_v5 = vrot.slane %v6706_v29, 4  ;;  %v12364_v29 = vld [vmem:[#allocation3 + $0x6c] sm:$0xff]  }
 0x432   : > { %11773 = vmatprep.subr.bf16.mxu0 %v12363_v57 }
 0x433   : > { %v6696_v27 = vor.u32 %v6695_v1, %v6692_v61  ;;  %v6227_v61 = vld [vmem:[#allocation3 + $0x18] sm:$0xf]  ;;  %v15778_v1 = vld [vmem:[#allocation3 + $0x1c] sm:$0xf] }
 0x434   : > { %11738 = vmatmul.mubr.bf16.gmra.mrb[4].mxu0 %v12358_v52  ;;  %v10463_v52 = vrot.slane %v7071_v49, 9  ;;  %v12378_v49 = vld [vmem:[%s17709_s7 + $0x1f8] sm:$0xff]  }
 0x435   : > { %11741 = vmatprep.mubr.bf16.mxu0 %v12360_v3  ;;  %11774 = vmatpush3.bf16.msra.mxu0 %v12363_v57  ;;  %v7251_v3 = vsel %vm14801_vm14, %v7249_v47, %v7250_v32  ;;  %v6697_v16 = vrot.slane %v6696_v27, 4  ;;  %v15775_v32 = vld [vmem:[%s17709_s7 + $0x200] sm:$0xff]  }
 0x436   : > { %11775 = vmatprep.subr.bf16.mxu0 %v12366_v35  ;;  %v7248_v57 = vsel %vm14801_vm14, %v10463_v52, %v7247_v11  ;;  %v12365_v11 = vld [vmem:[#allocation3 + $0x78] sm:$0xff]   ;;  %v6285_v52 = vshll.u32 %v6227_v61, 16 }
 0x437   : > { %v10481_v10 = vcombine.low %v7248_v57, %v7251_v3  ;;  %v6702_v44 = vsel %vm13997_vm7, %v6697_v16, %v6701_v30  ;;  %v6282_v30 = vshrl.u32 %v6227_v61, 16  ;;  %v12370_v27 = vld [vmem:[#allocation3 + $0x9c] sm:$0xff]   ;;  %v6291_v57 = vshll.u32 %v15778_v1, 16 }
 0x438   : > { %v6295_v3 = vshrl.u32 %v15778_v1, 16  ;;  %v6287_v16 = vrot.slane %v6285_v52, 5  ;;  %v12374_v52 = vld [vmem:[#allocation3 + $0xc0] sm:$0xff]  }
 0x439   : > { %11776 = vmatpush3.bf16.msra.mxu0 %v12366_v35  ;;  %v6712_v35 = vsel %vm13997_vm7, %v6707_v5, %v6711_v25  ;;  %11870 = vmatmul.mubr.bf16.gmra.mrb[128].mxu1 %v10481_v10  ;;  %v12367_v25 = vld [vmem:[#allocation3 + $0x84] sm:$0xff]   ;;  %v6293_v5 = vrot.slane %v6291_v57, 5 }
 0x43a   : > { %11777 = vmatprep.subr.bf16.mxu0 %v12369_v59  ;;  %v15764_v47 = vcombine.low %v6702_v44, %v6712_v35  ;;  %v6297_v10 = vrot.slane %v6295_v3, 4  ;;  %v15782_v44 = vld [vmem:[#allocation3 + $0x28] sm:$0xf]  ;;  %v6233_v35 = vld [vmem:[#allocation3 + $0x30] sm:$0xf] }
 0x43b   : > { %v6330_v57 = vshrl.u32 %v6233_v35, 16  ;;  %v6333_v3 = vshll.u32 %v6233_v35, 16 }
 0x43c   : > { %11742 = vmatmul.mubr.bf16.gmra.mrb[8].mxu0 %v12361_v62  ;;  %v12371_v62 = vld [vmem:[#allocation3 + $0xa8] sm:$0xff]  }
 0x43d   : > { %11745 = vmatprep.mubr.bf16.mxu0 %v12362_v21  ;;  %11778 = vmatpush3.bf16.msra.mxu0 %v12369_v59  ;;  %v12368_v59 = vld [vmem:[#allocation3 + $0x90] sm:$0xff]   ;;  %v6230_v21 = vld [vmem:[#allocation3 + $0x24] sm:$0xf]  ;;  %v6332_v35 = vrot.slane %v6330_v57, 4  ;;  %v6335_v40 = vrot.slane %v6333_v3, 5 }
 0x43e   : > { %11779 = vmatprep.subr.bf16.mxu0 %v12372_v58  ;;  %v6309_v61 = vshll.u32 %v6230_v21, 16 }
 0x43f   : > { %v6336_v3 = vor.u32 %v6335_v40, %v6332_v35  ;;  %v15817_v35 = vld [vmem:[#allocation3 + $0x44] sm:$0x1] }
 0x440   : > { %v6311_v14 = vrot.slane %v6309_v61, 5 }
 0x441   : > { %11780 = vmatpush3.bf16.msra.mxu0 %v12372_v58  ;;  %v6284_v58 = vrot.slane %v6282_v30, 4  ;;  %v6319_v30 = vshrl.u32 %v15782_v44, 16 }
 0x442   : > { %11781 = vmatprep.subr.bf16.mxu0 %v12375_v54 }
 0x443   : > { %v6321_v56 = vrot.slane %v6319_v30, 4 }
 0x444   : > { %11746 = vmatmul.mubr.bf16.gmra.mrb[12].mxu0 %v12364_v29  ;;  %v15786_v29 = vld [vmem:[#allocation3 + $0x20] sm:$0x1] }
 0x445   : > { %11749 = vmatprep.mubr.bf16.mxu0 %v12365_v11  ;;  %11782 = vmatpush3.bf16.msra.mxu0 %v12375_v54  ;;  %v15784_v54 = vld [vmem:[#allocation3 + $0x34] sm:$0xf]  ;;  %v6306_v11 = vshrl.u32 %v6230_v21, 16  ;;  %v6301_v41 = vshll.u32 %v15786_v29, 16  ;;  %v15795_v21 = vld [vmem:[#allocation3 + $0x2c] sm:$0x1] }
 0x446   : > { %11783 = vmatprep.subr.bf16.mxu0 %v12378_v49  ;;  %v6343_v36 = vshrl.u32 %v15784_v54, 16 }
 0x448   : > { %v6345_v63 = vrot.slane %v6343_v36, 4  ;;  %v15809_v36 = vld [vmem:[#allocation3 + $0x38] sm:$0x1] }
 0x449   : > { %11784 = vmatpush3.bf16.msra.mxu0 %v12378_v49  ;;  %v6288_v49 = vor.u32 %v6287_v16, %v6284_v58  ;;  %v6308_v16 = vrot.slane %v6306_v11, 4  ;;  %v6325_v11 = vshll.u32 %v15795_v21, 16 }
 0x44a   : > { %11821 = vmatprep.subr.bf16.mxu0 %v15775_v32 }
 0x44b   : > { %v6289_v58 = vrot.slane %v6288_v49, 4  ;;  %v6367_v49 = vshrl.u32 %v15793_v45, 16  ;;  %v6312_v30 = vor.u32 %v6311_v14, %v6308_v16  ;;  %v6327_v16 = vrot.slane %v6325_v11, 5 }
 0x44c   : > { %11750 = vmatmul.mubr.bf16.gmra.mrb[16].mxu0 %v12367_v25  ;;  %v12373_v25 = vld [vmem:[#allocation3 + $0xb4] sm:$0xff]  }
 0x44d   : > { %11753 = vmatprep.mubr.bf16.mxu0 %v12368_v59  ;;  %v6298_v59 = vor.u32 %v6297_v10, %v6293_v5  ;;  %v6294_v61 = vsel %vm13997_vm7, %v6289_v58, %v6293_v5  ;;  %v6369_v5 = vrot.slane %v6367_v49, 4  ;;  %v6356_v49 = vrot.slane %v6354_v2, 4 }
 0x44e   : > { %v6373_v2 = vshll.u32 %v15817_v35, 16 }
 0x44f   : > { %v6299_v10 = vrot.slane %v6298_v59, 4  ;;  %v6239_v59 = vld [vmem:[#allocation3 + $0x48] sm:$0xf] }
 0x450   : > { %v6378_v58 = vshrl.u32 %v6239_v59, 16  ;;  %v6381_v26 = vshll.u32 %v6239_v59, 16 }
 0x454   : > { %11754 = vmatmul.mubr.bf16.gmra.mrb[20].mxu0 %v12370_v27  ;;  %v6315_v27 = vshll.u32 %v15782_v44, 16 }
 0x455   : > { %11757 = vmatprep.mubr.bf16.mxu0 %v12371_v62  ;;  %v6339_v62 = vshll.u32 %v15784_v54, 16 }
 0x456   : > { %v15797_v60 = vrot.slane %v6315_v27, 5 }
 0x457   : > { %v15799_v22 = vrot.slane %v6339_v62, 5 }
 0x458   : > { %v6322_v57 = vor.u32 %v6321_v56, %v15797_v60  ;;  %v6349_v56 = vshll.u32 %v15809_v36, 16 }
 0x459   : > { %v6346_v62 = vor.u32 %v6345_v63, %v15799_v22  ;;  %v6391_v63 = vshrl.u32 %v15812_v20, 16 }
 0x45a   : > { %v6323_v40 = vrot.slane %v6322_v57, 4 }
 0x45b   : > { %v6347_v28 = vrot.slane %v6346_v62, 4  ;;  %v6351_v62 = vrot.slane %v6349_v56, 5  ;;  %v6393_v7 = vrot.slane %v6391_v63, 4  ;;  %v15843_v63 = vld [vmem:[#allocation3 + $0x50] sm:$0x1] }
 0x45c   : > { %11758 = vmatmul.mubr.bf16.gmra.mrb[24].mxu0 %v12373_v25  ;;  %v6303_v25 = vrot.slane %v6301_v41, 5  ;;  %v12377_v41 = vld [vmem:[#allocation3 + $0xd8] sm:$0xff]  }
 0x45d   : > { %11761 = vmatprep.mubr.bf16.mxu0 %v12374_v52  ;;  %v6363_v52 = vshll.u32 %v15793_v45, 16  ;;  %v6352_v56 = vsel %vm13997_vm7, %v6347_v28, %v6351_v62  ;;  %v13296_v28 = vld [vmem:[#allocation3 + $0x64] sm:$0xf] }
 0x45e   : > { %v6304_v27 = vsel %vm13997_vm7, %v6299_v10, %v6303_v25  ;;  %v6242_v10 = vld [vmem:[#allocation3 + $0x54] sm:$0xf]  ;;  %v6313_v25 = vrot.slane %v6312_v30, 4 }
 0x45f   : > { %v15814_v23 = vrot.slane %v6363_v52, 5  ;;  %v10420_v14 = vcombine.low %v6294_v61, %v6304_v27  ;;  %v6337_v52 = vrot.slane %v6336_v3, 4  ;;  %v6380_v61 = vrot.slane %v6378_v58, 4  ;;  %v6245_v58 = vld [vmem:[#allocation3 + $0x60] sm:$0xf] }
 0x460   : > { %v6383_v27 = vrot.slane %v6381_v26, 5  ;;  %v6402_v42 = vshrl.u32 %v6242_v10, 16  ;;  %v6405_v37 = vshll.u32 %v6242_v10, 16  ;;  %v6318_v26 = vsel %vm13997_vm7, %v6313_v25, %v15797_v60 }
 0x461   : > { %v6370_v11 = vor.u32 %v6369_v5, %v15814_v23  ;;  %v6360_v10 = vor.u32 %v6359_v9, %v6356_v49  ;;  %v15845_v25 = vrot.slane %v6411_v13, 5  ;;  %v6435_v9 = vshll.u32 %v13296_v28, 16 }
 0x462   : > { %v6407_v60 = vrot.slane %v6405_v37, 5  ;;  %v6439_v49 = vshrl.u32 %v13296_v28, 16  ;;  %v6397_v13 = vshll.u32 %v15843_v63, 16 }
 0x463   : > { %v6371_v0 = vrot.slane %v6370_v11, 4 }
 0x464   : > { %11762 = vmatmul.mubr.bf16.gmra.mrb[28].mxu0 %v12376_v38 }
 0x465   : > { %11765 = vmatprep.mubr.bf16.mxu0 %v12377_v41  ;;  %v12379_v41 = vld [vmem:[#allocation3 + $0xe4] sm:$0xff]  }
 0x467   : > { %v11611_v38 = vpop.f32.mrb[48].mxu0 }
 0x468   : > { %v4402_v59 = vpop.f32.mrb[49].mxu0  ;;  %v6415_v38 = vshrl.u32 %v15638_v6, 16  ;;  %v6342_v6 = vsel %vm13997_vm7, %v6337_v52, %v15799_v22  ;;  %v6426_v22 = vshrl.u32 %v6245_v58, 16  ;;  %v6429_v52 = vshll.u32 %v6245_v58, 16 }
 0x469   : > { %v15823_v30 = vadd.f32 %v4402_v59, %v15727_v33  ;;  %v11612_v57 = vpop.f32.mrb[50].mxu0  ;;  %v6328_v33 = vsel %vm13997_vm7, %v6323_v40, %v6327_v16  ;;  %v6404_v59 = vrot.slane %v6402_v42, 4  ;;  %v6375_v40 = vrot.slane %v6373_v2, 5 }
 0x46a   : > { %v4405_v3 = vpop.f32.mrb[51].mxu0  ;;  %v6417_v16 = vrot.slane %v6415_v38, 4  ;;  %v6394_v57 = vor.u32 %v6393_v7, %v15828_v39  ;;  %v10422_v53 = vcombine.low %v6342_v6, %v6352_v56  ;;  %v6361_v42 = vrot.slane %v6360_v10, 4 }
 0x46b   : > { %v15831_v5 = vadd.f32 %v4405_v3, %v15730_v8  ;;  %v6384_v8 = vor.u32 %v6383_v27, %v6380_v61  ;;  %v10421_v3 = vcombine.low %v6318_v26, %v6328_v33  ;;  %v6376_v37 = vsel %vm13997_vm7, %v6371_v0, %v6375_v40  ;;  %v6248_v61 = vld [vmem:[#allocation3 + $0x6c] sm:$0xf] }
 0x46c   : > { %11766 = vmatmul.mubr.bf16.gmra.mrb[72].mxu0 %v12379_v41  ;;  %v6408_v38 = vor.u32 %v6407_v60, %v6404_v59  ;;  %v6418_v62 = vor.u32 %v6417_v16, %v15845_v25  ;;  %v6421_v2 = vshll.u32 %v15650_v34, 16  ;;  %v6395_v33 = vrot.slane %v6394_v57, 4  ;;  %v13297_v60 = vld [vmem:[#allocation3 + $0x70] sm:$0xf] }
 0x46d   : > { %11785 = vmatprep.mubr.bf16.mxu0 %v10420_v14  ;;  %v6385_v27 = vrot.slane %v6384_v8, 4  ;;  %v6428_v6 = vrot.slane %v6426_v22, 4  ;;  %v6431_v58 = vrot.slane %v6429_v52, 5  ;;  %v15859_v56 = vrot.slane %v6435_v9, 5  ;;  %v6251_v22 = vld [vmem:[#allocation3 + $0x78] sm:$0xf] }
 0x46e   : > { %v6441_v10 = vrot.slane %v6439_v49, 4  ;;  %v6450_v0 = vshrl.u32 %v6248_v61, 16  ;;  %v6453_v40 = vshll.u32 %v6248_v61, 16  ;;  %v6366_v8 = vsel %vm13997_vm7, %v6361_v42, %v15814_v23  ;;  %v13298_v52 = vld [vmem:[#allocation3 + $0x7c] sm:$0xf] }
 0x46f   : > { %v11631_v41 = vpop.f32.mrb[52].mxu0  ;;  %v6399_v59 = vrot.slane %v6397_v13, 5  ;;  %v6459_v34 = vshll.u32 %v13297_v60, 16  ;;  %v6463_v16 = vshrl.u32 %v13297_v60, 16  ;;  %v6419_v57 = vrot.slane %v6418_v62, 4 }
 0x470   : > { %v15849_v14 = vadd.f32 %v11631_v41, %v15736_v31  ;;  %v5103_v11 = vpop.f32.mrb[53].mxu0  ;;  %v6483_v41 = vshll.u32 %v13298_v52, 16  ;;  %v6487_v28 = vshrl.u32 %v13298_v52, 16  ;;  %v6390_v23 = vsel %vm13997_vm7, %v6385_v27, %v15828_v39  ;;  %v13300_v13 = vld [vmem:[#allocation3 + $0x68] sm:$0x1] }
 0x471   : > { %v11632_v7 = vpop.f32.mrb[54].mxu0  ;;  %v6400_v9 = vsel %vm13997_vm7, %v6395_v33, %v6399_v59  ;;  %v6432_v49 = vor.u32 %v6431_v58, %v6428_v6  ;;  %v6442_v11 = vor.u32 %v6441_v10, %v15859_v56  ;;  %v6452_v42 = vrot.slane %v6450_v0, 4  ;;  %v13301_v6 = vld [vmem:[%s17709_s7 + $0x210] sm:$0xff]   ;;  %v6254_v58 = vld [vmem:[#allocation3 + $0x84] sm:$0xf] }
 0x472   : > { %v15857_v26 = vadd.f32 %v11632_v7, %v15739_v24  ;;  %v5105_v31 = vpop.f32.mrb[55].mxu0  ;;  %v10423_v24 = vcombine.low %v6366_v8, %v6376_v37  ;;  %v6455_v37 = vrot.slane %v6453_v40, 5  ;;  %v6445_v61 = vshll.u32 %v13300_v13, 16  ;;  %v13302_v10 = vld [vmem:[#allocation3 + $0x88] sm:$0xf] }
 0x473   : > { %v15874_v7 = vrot.slane %v6459_v34, 5  ;;  %v6465_v62 = vrot.slane %v6463_v16, 4  ;;  %v6474_v31 = vshrl.u32 %v6251_v22, 16  ;;  %v6477_v27 = vshll.u32 %v6251_v22, 16  ;;  %v13303_v16 = vld [vmem:[#allocation3 + $0x74] sm:$0x1] }
 0x474   : > { %11786 = vmatmul.mubr.bf16.vlgmr.msra.gmra.mrb[76].mxu0 %v10421_v3  ;;  %v13299_v3 = vld [vmem:[%s17709_s7 + $0x208] sm:$0xff]   ;;  %v15878_v8 = vrot.slane %v6483_v41, 5  ;;  %v6507_v0 = vshll.u32 %v13302_v10, 16  ;;  %v6511_v40 = vshrl.u32 %v13302_v10, 16  ;;  %v6433_v59 = vrot.slane %v6432_v49, 4 }
 0x475   : > { %11822 = vmatpush3.bf16.msra.mxu0 %v15775_v32  ;;  %11789 = vmatprep.mubr.bf16.mxu0 %v10422_v53  ;;  %v6409_v32 = vrot.slane %v6408_v38, 4  ;;  %v6423_v53 = vrot.slane %v6421_v2, 5  ;;  %v6489_v38 = vrot.slane %v6487_v28, 4  ;;  %v10424_v2 = vcombine.low %v6390_v23, %v6400_v9 }
 0x476   : > { %11823 = vmatprep.subr.bf16.mxu0 %v13299_v3  ;;  %v6443_v60 = vrot.slane %v6442_v11, 4  ;;  %v6456_v34 = vor.u32 %v6455_v37, %v6452_v42  ;;  %v6447_v52 = vrot.slane %v6445_v61, 5  ;;  %v6466_v41 = vor.u32 %v6465_v62, %v15874_v7  ;;  %v13305_v11 = vld [vmem:[#allocation3 + $0x94] sm:$0xf] }
 0x477   : > { %v6424_v39 = vsel %vm13997_vm7, %v6419_v57, %v6423_v53  ;;  %v6414_v33 = vsel %vm13997_vm7, %v6409_v32, %v15845_v25  ;;  %v6469_v57 = vshll.u32 %v13303_v16, 16  ;;  %v6476_v25 = vrot.slane %v6474_v31, 4  ;;  %v6257_v32 = vld [vmem:[#allocation3 + $0x90] sm:$0xf]  ;;  %v13304_v53 = vld [vmem:[%s17709_s7 + $0x218] sm:$0xff]  }
 0x478   : > { %v10425_v22 = vcombine.low %v6414_v33, %v6424_v39  ;;  %v6479_v28 = vrot.slane %v6477_v27, 5  ;;  %v6498_v23 = vshrl.u32 %v6254_v58, 16  ;;  %v6501_v9 = vshll.u32 %v6254_v58, 16  ;;  %v13306_v27 = vld [vmem:[#allocation3 + $0x80] sm:$0x1] }
 0x479   : > { %11824 = vmatpush3.bf16.msra.mxu0 %v13299_v3  ;;  %v6490_v3 = vor.u32 %v6489_v38, %v15878_v8  ;;  %v15891_v49 = vrot.slane %v6507_v0, 5  ;;  %v6531_v42 = vshll.u32 %v13305_v11, 16  ;;  %v6535_v37 = vshrl.u32 %v13305_v11, 16  ;;  %v13307_v0 = vld [vmem:[#allocation3 + $0x8c] sm:$0x1] }
 0x47a   : > { %11825 = vmatprep.subr.bf16.mxu0 %v13301_v6  ;;  %v6438_v13 = vsel %vm13997_vm7, %v6433_v59, %v15859_v56  ;;  %v6448_v61 = vsel %vm13997_vm7, %v6443_v60, %v6447_v52  ;;  %v6457_v62 = vrot.slane %v6456_v34, 4  ;;  %v6471_v31 = vrot.slane %v6469_v57, 5  ;;  %v13308_v60 = vld [vmem:[%s17709_s7 + $0x220] sm:$0xff]   ;;  %v6260_v34 = vld [vmem:[#allocation3 + $0x9c] sm:$0xf] }
 0x47b   : > { %v6467_v39 = vrot.slane %v6466_v41, 4  ;;  %v6493_v38 = vshll.u32 %v13306_v27, 16  ;;  %v6525_v33 = vshll.u32 %v6257_v32, 16  ;;  %v6500_v58 = vrot.slane %v6498_v23, 4  ;;  %v13309_v41 = vld [vmem:[#allocation3 + $0xa0] sm:$0xf] }
 0x47c   : > { %11790 = vmatmul.mubr.bf16.gmra.mrb[4].mxu0 %v10423_v24  ;;  %v6513_v24 = vrot.slane %v6511_v40, 4  ;;  %v6503_v10 = vrot.slane %v6501_v9, 5  ;;  %v6517_v40 = vshll.u32 %v13307_v0, 16  ;;  %v6491_v16 = vrot.slane %v6490_v3, 4 }
 0x47d   : > { %11793 = vmatprep.mubr.bf16.mxu0 %v10424_v2  ;;  %11826 = vmatpush3.bf16.msra.mxu0 %v13301_v6  ;;  %v6522_v2 = vshrl.u32 %v6257_v32, 16  ;;  %v6480_v6 = vor.u32 %v6479_v28, %v6476_v25  ;;  %v15899_v56 = vrot.slane %v6531_v42, 5  ;;  %v6537_v59 = vrot.slane %v6535_v37, 4 }
 0x47e   : > { %11827 = vmatprep.subr.bf16.mxu0 %v13304_v53  ;;  %v6514_v11 = vor.u32 %v6513_v24, %v15891_v49  ;;  %v10426_v57 = vcombine.low %v6438_v13, %v6448_v61  ;;  %v6462_v52 = vsel %vm13997_vm7, %v6457_v62, %v15874_v7  ;;  %v6555_v25 = vshll.u32 %v13309_v41, 16 }
 0x47f   : > { %v6559_v28 = vshrl.u32 %v13309_v41, 16  ;;  %v6472_v3 = vsel %vm13997_vm7, %v6467_v39, %v6471_v31  ;;  %v6495_v23 = vrot.slane %v6493_v38, 5  ;;  %v6524_v9 = vrot.slane %v6522_v2, 4  ;;  %v13310_v31 = vld [vmem:[%s17709_s7 + $0x228] sm:$0xff]  }
 0x480   : > { %v6527_v32 = vrot.slane %v6525_v33, 5  ;;  %v6481_v24 = vrot.slane %v6480_v6, 4  ;;  %v6504_v42 = vor.u32 %v6503_v10, %v6500_v58  ;;  %v6546_v37 = vshrl.u32 %v6260_v34, 16  ;;  %v13311_v6 = vld [vmem:[#allocation3 + $0x98] sm:$0x1] }
 0x481   : > { %11828 = vmatpush3.bf16.msra.mxu0 %v13304_v53  ;;  %v6263_v53 = vld [vmem:[#allocation3 + $0xa8] sm:$0xf]  ;;  %v6549_v13 = vshll.u32 %v6260_v34, 16  ;;  %v6496_v7 = vsel %vm13997_vm7, %v6491_v16, %v6495_v23  ;;  %v6515_v61 = vrot.slane %v6514_v11, 4  ;;  %v6519_v62 = vrot.slane %v6517_v40, 5 }
 0x482   : > { %11829 = vmatprep.subr.bf16.mxu0 %v13308_v60  ;;  %v15915_v39 = vrot.slane %v6555_v25, 5  ;;  %v6561_v27 = vrot.slane %v6559_v28, 4  ;;  %v6570_v38 = vshrl.u32 %v6263_v53, 16  ;;  %v6573_v2 = vshll.u32 %v6263_v53, 16  ;;  %v13312_v10 = vld [vmem:[#allocation3 + $0xac] sm:$0xf] }
 0x483   : > { %v6528_v33 = vor.u32 %v6527_v32, %v6524_v9  ;;  %v6541_v58 = vshll.u32 %v13311_v6, 16  ;;  %v6579_v0 = vshll.u32 %v13312_v10, 16  ;;  %v6583_v16 = vshrl.u32 %v13312_v10, 16  ;;  %v13313_v25 = vld [vmem:[%s17709_s7 + $0x230] sm:$0xff]   ;;  %v13317_v10 = vld [vmem:[#allocation3 + $0xc4] sm:$0xf] }
 0x484   : > { %11794 = vmatmul.mubr.bf16.gmra.mrb[8].mxu0 %v10425_v22  ;;  %v6538_v22 = vor.u32 %v6537_v59, %v15899_v56  ;;  %v6486_v40 = vsel %vm13997_vm7, %v6481_v24, %v15878_v8  ;;  %v6505_v11 = vrot.slane %v6504_v42, 4  ;;  %v6548_v59 = vrot.slane %v6546_v37, 4  ;;  %v13314_v37 = vld [vmem:[#allocation3 + $0xa4] sm:$0x1] }
 0x485   : > { %11797 = vmatprep.mubr.bf16.mxu0 %v10426_v57  ;;  %11830 = vmatpush3.bf16.msra.mxu0 %v13308_v60  ;;  %v6551_v60 = vrot.slane %v6549_v13, 5  ;;  %v10427_v34 = vcombine.low %v6462_v52, %v6472_v3  ;;  %v10428_v57 = vcombine.low %v6486_v40, %v6496_v7  ;;  %v6520_v28 = vsel %vm13997_vm7, %v6515_v61, %v6519_v62  ;;  %v6266_v62 = vld [vmem:[#allocation3 + $0xb4] sm:$0xf] }
 0x486   : > { %11831 = vmatprep.subr.bf16.mxu0 %v13310_v31  ;;  %v6539_v41 = vrot.slane %v6538_v22, 4  ;;  %v6562_v23 = vor.u32 %v6561_v27, %v15915_v39  ;;  %v6572_v9 = vrot.slane %v6570_v38, 4  ;;  %v6575_v32 = vrot.slane %v6573_v2, 5  ;;  %v13315_v22 = vld [vmem:[%s17709_s7 + $0x238] sm:$0xff]  }
 0x487   : > { %v6529_v8 = vrot.slane %v6528_v33, 4  ;;  %v6543_v53 = vrot.slane %v6541_v58, 5  ;;  %v15926_v24 = vrot.slane %v6579_v0, 5  ;;  %v6585_v52 = vrot.slane %v6583_v16, 4  ;;  %v13316_v38 = vld [vmem:[#allocation3 + $0xb8] sm:$0xf] }
 0x488   : > { %v6510_v3 = vsel %vm13997_vm7, %v6505_v11, %v15891_v49  ;;  %v6552_v42 = vor.u32 %v6551_v60, %v6548_v59  ;;  %v6565_v13 = vshll.u32 %v13314_v37, 16  ;;  %v6576_v27 = vor.u32 %v6575_v32, %v6572_v9  ;;  %v6269_v49 = vld [vmem:[#allocation3 + $0xc0] sm:$0xf] }
 0x489   : > { %11832 = vmatpush3.bf16.msra.mxu0 %v13310_v31  ;;  %v10429_v7 = vcombine.low %v6510_v3, %v6520_v28  ;;  %v6544_v61 = vsel %vm13997_vm7, %v6539_v41, %v6543_v53  ;;  %v6563_v31 = vrot.slane %v6562_v23, 4  ;;  %v6603_v2 = vshll.u32 %v13316_v38, 16 }
 0x48a   : > { %11833 = vmatprep.subr.bf16.mxu0 %v13313_v25  ;;  %v6607_v33 = vshrl.u32 %v13316_v38, 16  ;;  %v6534_v6 = vsel %vm13997_vm7, %v6529_v8, %v15899_v56  ;;  %v6586_v58 = vor.u32 %v6585_v52, %v15926_v24  ;;  %v6627_v0 = vshll.u32 %v13317_v10, 16 }
 0x48b   : > { %v6631_v16 = vshrl.u32 %v13317_v10, 16  ;;  %v6553_v40 = vrot.slane %v6552_v42, 4  ;;  %v6567_v11 = vrot.slane %v6565_v13, 5  ;;  %v6594_v59 = vshrl.u32 %v6266_v62, 16  ;;  %v6275_v13 = vld [vmem:[#allocation3 + $0xd8] sm:$0xf] }
 0x48c   : > { %11798 = vmatmul.mubr.bf16.gmra.mrb[12].mxu0 %v10427_v34  ;;  %v6597_v60 = vshll.u32 %v6266_v62, 16  ;;  %v10430_v34 = vcombine.low %v6534_v6, %v6544_v61  ;;  %v6621_v28 = vshll.u32 %v6269_v49, 16  ;;  %v6577_v9 = vrot.slane %v6576_v27, 4  ;;  %v6272_v27 = vld [vmem:[#allocation3 + $0xcc] sm:$0xf] }
 0x48d   : > { %11801 = vmatprep.mubr.bf16.mxu0 %v10428_v57  ;;  %11834 = vmatpush3.bf16.msra.mxu0 %v13313_v25  ;;  %v13318_v57 = vld [vmem:[#allocation3 + $0xb0] sm:$0x1]  ;;  %v6618_v25 = vshrl.u32 %v6269_v49, 16  ;;  %v6568_v23 = vsel %vm13997_vm7, %v6563_v31, %v6567_v11  ;;  %v6605_v56 = vrot.slane %v6603_v2, 5  ;;  %v6609_v32 = vrot.slane %v6607_v33, 4 }
 0x48e   : > { %11835 = vmatprep.subr.bf16.mxu0 %v13315_v22  ;;  %v6589_v41 = vshll.u32 %v13318_v57, 16  ;;  %v6587_v8 = vrot.slane %v6586_v58, 4  ;;  %v15942_v53 = vrot.slane %v6627_v0, 5  ;;  %v6633_v52 = vrot.slane %v6631_v16, 4  ;;  %v13319_v2 = vld [vmem:[#allocation3 + $0xd0] sm:$0xf] }
 0x48f   : > { %v6558_v3 = vsel %vm13997_vm7, %v6553_v40, %v15915_v39  ;;  %v6596_v42 = vrot.slane %v6594_v59, 4  ;;  %v6599_v37 = vrot.slane %v6597_v60, 5  ;;  %v6623_v31 = vrot.slane %v6621_v28, 5  ;;  %v13320_v16 = vld [vmem:[#allocation3 + $0xbc] sm:$0x1] }
 0x490   : > { %v10431_v61 = vcombine.low %v6558_v3, %v6568_v23  ;;  %v6591_v62 = vrot.slane %v6589_v41, 5  ;;  %v6610_v38 = vor.u32 %v6609_v32, %v6605_v56  ;;  %v6651_v33 = vshll.u32 %v13319_v2, 16 }
 0x491   : > { %11836 = vmatpush3.bf16.msra.mxu0 %v13315_v22  ;;  %v6620_v22 = vrot.slane %v6618_v25, 4  ;;  %v6655_v49 = vshrl.u32 %v13319_v2, 16  ;;  %v6634_v39 = vor.u32 %v6633_v52, %v15942_v53  ;;  %v6666_v58 = vshrl.u32 %v6275_v13, 16 }
 0x492   : > { %v6592_v6 = vsel %vm13997_vm7, %v6587_v8, %v6591_v62  ;;  %v6669_v10 = vshll.u32 %v6275_v13, 16  ;;  %v6600_v0 = vor.u32 %v6599_v37, %v6596_v42  ;;  %v6613_v40 = vshll.u32 %v13320_v16, 16 }
 0x493   : > { %v6642_v11 = vshrl.u32 %v6272_v27, 16  ;;  %v6645_v59 = vshll.u32 %v6272_v27, 16  ;;  %v6624_v60 = vor.u32 %v6623_v31, %v6620_v22  ;;  %v6611_v23 = vrot.slane %v6610_v38, 4 }
 0x494   : > { %11802 = vmatmul.mubr.bf16.gmra.mrb[16].mxu0 %v10429_v7  ;;  %v6582_v7 = vsel %vm13997_vm7, %v6577_v9, %v15926_v24  ;;  %v13322_v24 = vld [vmem:[#allocation3 + $0xdc] sm:$0xf]  ;;  %v6653_v9 = vrot.slane %v6651_v33, 5  ;;  %v6657_v32 = vrot.slane %v6655_v49, 4  ;;  %v6635_v8 = vrot.slane %v6634_v39, 4 }
 0x495   : > { %11805 = vmatprep.mubr.bf16.mxu0 %v10430_v34  ;;  %v13321_v34 = vld [vmem:[#allocation3 + $0xc8] sm:$0x1]  ;;  %v6675_v41 = vshll.u32 %v13322_v24, 16  ;;  %v6679_v25 = vshrl.u32 %v13322_v24, 16  ;;  %v10432_v28 = vcombine.low %v6582_v7, %v6592_v6  ;;  %v6668_v52 = vrot.slane %v6666_v58, 4 }
 0x496   : > { %v6637_v57 = vshll.u32 %v13321_v34, 16  ;;  %v6671_v3 = vrot.slane %v6669_v10, 5  ;;  %v6601_v42 = vrot.slane %v6600_v0, 4  ;;  %v6615_v37 = vrot.slane %v6613_v40, 5  ;;  %v13323_v6 = vld [vmem:[#allocation3 + $0xd4] sm:$0x1] }
 0x497   : > { %v6644_v13 = vrot.slane %v6642_v11, 4  ;;  %v6647_v62 = vrot.slane %v6645_v59, 5  ;;  %v6625_v27 = vrot.slane %v6624_v60, 4  ;;  %v6677_v31 = vrot.slane %v6675_v41, 5  ;;  %v13324_v40 = vld [vmem:[#allocation3 + $0xe0] sm:$0x1] }
 0x498   : > { %v6639_v22 = vrot.slane %v6637_v57, 5  ;;  %v6681_v2 = vrot.slane %v6679_v25, 4  ;;  %v6616_v16 = vsel %vm13997_vm7, %v6611_v23, %v6615_v37  ;;  %v6658_v7 = vor.u32 %v6657_v32, %v6653_v9 }
 0x499   : > { %v6606_v33 = vsel %vm13997_vm7, %v6601_v42, %v6605_v56  ;;  %v6648_v49 = vor.u32 %v6647_v62, %v6644_v13  ;;  %v6661_v39 = vshll.u32 %v13323_v6, 16  ;;  %v6630_v10 = vsel %vm13997_vm7, %v6625_v27, %v15942_v53  ;;  %v7054_v42 = vld [vmem:[#allocation3 + $0x18] sm:$0xe] }
 0x49a   : > { %v6640_v38 = vsel %vm13997_vm7, %v6635_v8, %v6639_v22  ;;  %v10433_v58 = vcombine.low %v6606_v33, %v6616_v16  ;;  %v6682_v0 = vor.u32 %v6681_v2, %v6677_v31  ;;  %v6685_v11 = vshll.u32 %v13324_v40, 16 }
 0x49b   : > { %v10434_v59 = vcombine.low %v6630_v10, %v6640_v38  ;;  %v6659_v60 = vrot.slane %v6658_v7, 4  ;;  %v6649_v57 = vrot.slane %v6648_v49, 4  ;;  %v6663_v24 = vrot.slane %v6661_v39, 5  ;;  %v7056_v49 = vld [vmem:[#allocation3 + $0x30] sm:$0xe] }
 0x49c   : > { %11806 = vmatmul.mubr.bf16.gmra.mrb[20].mxu0 %v10431_v61  ;;  %v6672_v61 = vor.u32 %v6671_v3, %v6668_v52  ;;  %v6683_v41 = vrot.slane %v6682_v0, 4  ;;  %v6687_v56 = vrot.slane %v6685_v11, 5  ;;  %v7128_v53 = vrot.slane %v15778_v1, 5 }
 0x49d   : > { %11809 = vmatprep.mubr.bf16.mxu0 %v10432_v28  ;;  %v6664_v25 = vsel %vm13997_vm7, %v6659_v60, %v6663_v24  ;;  %v6654_v23 = vsel %vm13997_vm7, %v6649_v57, %v6653_v9  ;;  %v7131_v37 = vrot.slane %v15786_v29, 5  ;;  %v7135_v62 = vrot.slane %v15782_v44, 5  ;;  %v7055_v44 = vld [vmem:[#allocation3 + $0x24] sm:$0xe]  ;;  %v7057_v57 = vld [vmem:[#allocation3 + $0x3c] sm:$0xe] }
 0x49e   : > { %v6673_v34 = vrot.slane %v6672_v61, 4  ;;  %v10435_v32 = vcombine.low %v6654_v23, %v6664_v25  ;;  %v6688_v8 = vsel %vm13997_vm7, %v6683_v41, %v6687_v56  ;;  %v7130_v3 = vrot.slane %v7128_v53, 4 }
 0x49f   : > { %v10446_v22 = vrot.slane %v7054_v42, 9  ;;  %v7142_v9 = vrot.slane %v15784_v54, 5  ;;  %v7137_v38 = vrot.slane %v7135_v62, 4  ;;  %v7138_v33 = vrot.slane %v15795_v21, 5 }
 0x4a0   : > { %v6678_v28 = vsel %vm13997_vm7, %v6673_v34, %v6677_v31  ;;  %v7132_v1 = vsel %vm14801_vm14, %v7130_v3, %v7131_v37  ;;  %v7145_v54 = vrot.slane %v15809_v36, 5  ;;  %v10447_v6 = vrot.slane %v7055_v44, 9  ;;  %v12382_v44 = vld [vmem:[%s17711_s9 + $0x10] sm:$0xff]  }
 0x4a1   : > { %v10436_v52 = vcombine.low %v6678_v28, %v6688_v8  ;;  %v7129_v16 = vsel %vm14801_vm14, %v10446_v22, %v7128_v53  ;;  %v7144_v61 = vrot.slane %v7142_v9, 4  ;;  %v7139_v39 = vsel %vm14801_vm14, %v7137_v38, %v7138_v33 }
 0x4a2   : > { %v10464_v29 = vcombine.low %v7129_v16, %v7132_v1  ;;  %v10448_v0 = vrot.slane %v7056_v49, 9  ;;  %v7156_v40 = vrot.slane %v15812_v20, 5  ;;  %v7136_v36 = vsel %vm14801_vm14, %v10447_v6, %v7135_v62  ;;  %v7058_v20 = vld [vmem:[#allocation3 + $0x48] sm:$0xe]  ;;  %v12384_v6 = vld [vmem:[%s17711_s9 + $0x20] sm:$0xff]  }
 0x4a3   : > { %v10465_v60 = vcombine.low %v7136_v36, %v7139_v39  ;;  %v7152_v41 = vrot.slane %v15817_v35, 5  ;;  %v7159_v56 = vrot.slane %v15843_v63, 5  ;;  %v10449_v25 = vrot.slane %v7057_v57, 9  ;;  %v12387_v36 = vld [vmem:[%s17711_s9 + $0x38] sm:$0xff]  }
 0x4a4   : > { %11810 = vmatmul.mubr.bf16.gmra.mrb[24].mxu0 %v10433_v58  ;;  %v7149_v58 = vrot.slane %v15793_v45, 5  ;;  %v7143_v45 = vsel %vm14801_vm14, %v10448_v0, %v7142_v9  ;;  %v7158_v24 = vrot.slane %v7156_v40, 4  ;;  %v10450_v28 = vrot.slane %v7058_v20, 9 }
 0x4a5   : > { %11813 = vmatprep.mubr.bf16.mxu0 %v10434_v59  ;;  %v17974_v35 = vcombine.low %v15661_v51, %v15665_v43  ;;  %v12380_v51 = vld [vmem:[%s17711_s9] sm:$0xff]   ;;  %v12381_v43 = vld [vmem:[%s17711_s9 + $0x8] sm:$0xff]  }
 0x4a6   : > { %v7160_v53 = vsel %vm14801_vm14, %v7158_v24, %v7159_v56  ;;  %v7150_v23 = vsel %vm14801_vm14, %v10449_v25, %v7149_v58  ;;  %v7157_v8 = vsel %vm14801_vm14, %v10450_v28, %v7156_v40  ;;  %11873 = vmatprep.subr.bf16.mxu1 %v12380_v51 }
 0x4a7   : > { %11874 = vmatpush3.bf16.msra.mxu1 %v12380_v51  ;;  %v17982_v51 = vld [vmem:[#allocation100_spill] sm:$0xff] }
 0x4a8   : > { %11875 = vmatprep.subr.bf16.mxu1 %v12381_v43 }
 0x4ab   : > { %11876 = vmatpush3.bf16.msra.mxu1 %v12381_v43 }
 0x4ac   : > { %11814 = vmatmul.mubr.bf16.gmra.mrb[28].mxu0 %v10435_v32  ;;  %11877 = vmatprep.subr.bf16.mxu1 %v12382_v44 }
 0x4ad   : > { %11817 = vmatprep.mubr.bf16.mxu0 %v10436_v52  ;;  %v10468_v52 = vcombine.low %v7157_v8, %v7160_v53 }
 0x4af   : > { %v11663_v13 = vpop.f32.mrb[56].mxu0  ;;  %11878 = vmatpush3.bf16.msra.mxu1 %v12382_v44 }
 0x4b0   : > { %v5229_v27 = vpop.f32.mrb[57].mxu0 }
 0x4b1   : > { %v5272_v55 = vadd.f32 %v5229_v27, %v15823_v30  ;;  %v11664_v31 = vpop.f32.mrb[58].mxu0 }
 0x4b2   : > { %v5232_v2 = vpop.f32.mrb[59].mxu0 }
 0x4b3   : > { %v5273_v7 = vadd.f32 %v5232_v2, %v15831_v5 }
 0x4b4   : > { %11818 = vmatmul.mubr.bf16.gmra.mrb[80].mxu0 %v15764_v47  ;;  %v7146_v47 = vsel %vm14801_vm14, %v7144_v61, %v7145_v54  ;;  %v12383_v61 = vld [vmem:[%s17711_s9 + $0x18] sm:$0xff]  }
 0x4b5   : > { %11837 = vmatprep.mubr.bf16.mxu0 %v10464_v29  ;;  %v10466_v34 = vcombine.low %v7143_v45, %v7146_v47  ;;  %11879 = vmatprep.subr.bf16.mxu1 %v12383_v61 }
 0x4b6   : > { %11880 = vmatpush3.bf16.msra.mxu1 %v12383_v61 }
 0x4b7   : > { %v11683_v30 = vpop.f32.mrb[60].mxu0  ;;  %11881 = vmatprep.subr.bf16.mxu1 %v12384_v6 }
 0x4b8   : > { %v5781_v5 = vadd.f32 %v11683_v30, %v15849_v14  ;;  %v5642_v10 = vpop.f32.mrb[61].mxu0  ;;  %v7151_v14 = vrot.slane %v7149_v58, 4 }
 0x4b9   : > { %v11684_v21 = vpop.f32.mrb[62].mxu0  ;;  %v12385_v10 = vld [vmem:[%s17711_s9 + $0x28] sm:$0xff]  }
 0x4ba   : > { %v5782_v11 = vadd.f32 %v11684_v21, %v15857_v26  ;;  %v5644_v59 = vpop.f32.mrb[63].mxu0  ;;  %v7153_v26 = vsel %vm14801_vm14, %v7151_v14, %v7152_v41  ;;  %11882 = vmatpush3.bf16.msra.mxu1 %v12384_v6  ;;  %v12386_v21 = vld [vmem:[%s17711_s9 + $0x30] sm:$0xff]   ;;  %v17983_v6 = vld [vmem:[#allocation86_spill] sm:$0xff] }
 0x4bb   : > { %v10467_v32 = vcombine.low %v7150_v23, %v7153_v26  ;;  %11883 = vmatprep.subr.bf16.mxu1 %v12385_v10 }
 0x4bc   : > { %11838 = vmatmul.mubr.bf16.vlgmr.msra.gmra.mrb[84].mxu0 %v10465_v60 }
 0x4bd   : > { %11841 = vmatprep.mubr.bf16.mxu0 %v10466_v34  ;;  %v16054_v34 = vld [vmem:[%s17710_s8] ss:$0 sm:$0xff] }
 0x4be   : > { %11884 = vmatpush3.bf16.msra.mxu1 %v12385_v10 }
 0x4bf   : > { %11885 = vmatprep.subr.bf16.mxu1 %v12386_v21 }
 0x4c2   : > { %11886 = vmatpush3.bf16.msra.mxu1 %v12386_v21 }
 0x4c3   : > { %11887 = vmatprep.subr.bf16.mxu1 %v12387_v36 }
 0x4c4   : > { %11842 = vmatmul.mubr.bf16.gmra.mrb[4].mxu0 %v10467_v32 }
 0x4c5   : > { %11845 = vmatprep.mubr.bf16.mxu0 %v10468_v52  ;;  %v17976_v52 = vld [vmem:[#allocation83_spill] sm:$0xff] }
 0x4c6   : > { %11888 = vmatpush3.bf16.msra.mxu1 %v12387_v36 }
 0x4cc   : > { %11846 = vmatmul.mubr.bf16.gmra.mrb[8].mxu0 %v17974_v35 }
 0x4f7   : > { %v11715_v63 = vpop.f32.mrb[64].mxu0 }
 0x4f8   : > { %v5768_v3 = vpop.f32.mrb[65].mxu0 }
 0x4f9   : > { %v5811_v42 = vadd.f32 %v5768_v3, %v5272_v55  ;;  %v11716_v37 = vpop.f32.mrb[66].mxu0  ;;  %v17977_v3 = vld [vmem:[#allocation98_spill] sm:$0xff] }
 0x4fa   : > { %v5771_v13 = vpop.f32.mrb[67].mxu0  ;;  %v17978_v37 = vld [vmem:[#allocation84_spill] sm:$0xff] }
 0x4fb   : > { %v5812_v62 = vadd.f32 %v5771_v13, %v5273_v7 }
 0x4ff   : > { %v11735_v27 = vpop.f32.mrb[68].mxu0 }
 0x500   : > { %v6195_v22 = vadd.f32 %v11735_v27, %v5781_v5  ;;  %v6056_v1 = vpop.f32.mrb[69].mxu0  ;;  %v17979_v27 = vld [vmem:[#allocation99_spill] sm:$0xff] }
 0x501   : > { %v11736_v9 = vpop.f32.mrb[70].mxu0  ;;  %v17980_v1 = vld [vmem:[#allocation85_spill] sm:$0xff] }
 0x502   : > { %v6196_v31 = vadd.f32 %v11736_v9, %v5782_v11  ;;  %v6058_v4 = vpop.f32.mrb[71].mxu0  ;;  %v16047_v11 = vld [vmem:[%s17705_s3] sm:$0xff]  }
 0x503   : > { %11921 = vmatprep.subr.bf16.mxu1 %v16047_v11  ;;  %v17981_v4 = vld [vmem:[#allocation56_spill] sm:$0xff] }
 0x50c   : > { %v11871_v2 = vpop.f32.mrb[128].mxu1 }
 0x50d   : > { %v16008_v16 = vpop.f32.mrb[129].mxu1 }
 0x50e   : > { %v11872_v29 = vpop.f32.mrb[130].mxu1 }
 0x50f   : > { %v16010_v38 = vpop.f32.mrb[131].mxu1 }
 0x53f   : > { %v11767_v55 = vpop.f32.mrb[72].mxu0 }
 0x540   : > { %v6182_v7 = vpop.f32.mrb[73].mxu0 }
 0x541   : > { %v16024_v33 = vadd.f32 %v6182_v7, %v5811_v42  ;;  %v11768_v49 = vpop.f32.mrb[74].mxu0 }
 0x542   : > { %v6185_v54 = vpop.f32.mrb[75].mxu0 }
 0x543   : > { %v16026_v30 = vadd.f32 %v6185_v54, %v5812_v62 }
 0x547   : > { %v11787_v39 = vpop.f32.mrb[76].mxu0 }
 0x548   : > { %v16031_v58 = vadd.f32 %v11787_v39, %v6195_v22  ;;  %v6883_v5 = vpop.f32.mrb[77].mxu0 }
 0x549   : > { %v11788_v0 = vpop.f32.mrb[78].mxu0 }
 0x54a   : > { %v16036_v47 = vadd.f32 %v11788_v0, %v6196_v31  ;;  %v6885_v40 = vpop.f32.mrb[79].mxu0  ;;  %v17984_v0 = vld [vmem:[#allocation87_spill] sm:$0xff] }
 0x55f   : > { %v11799_v59 = vpop.f32.mrb[12].mxu0 }
 0x560   : > { %v11993_v60 = vadd.f32 %v11799_v59, %v15476_v48  ;;  %v6929_v45 = vpop.f32.mrb[13].mxu0  ;;  %v17985_v59 = vld [vmem:[#allocation101_spill] sm:$0xff] }
 0x561   : > { %v11995_v14 = vadd.f32 %v6929_v45, %v15481_v17  ;;  %v11800_v57 = vpop.f32.mrb[14].mxu0  ;;  %v17986_v45 = vld [vmem:[#allocation88_spill] sm:$0xff] }
 0x562   : > { %v11994_v24 = vadd.f32 %v11993_v60, %v15617_v12  ;;  %v11997_v41 = vadd.f32 %v11800_v57, %v15483_v19  ;;  %v6932_v20 = vpop.f32.mrb[15].mxu0 }
 0x563   : > { %v11996_v56 = vadd.f32 %v11995_v14, %v15619_v50  ;;  %v11999_v25 = vadd.f32 %v6932_v20, %v15489_v46  ;;  %v17987_v20 = vld [vmem:[#allocation57_spill] sm:$0xff] }
 0x564   : > { %v16062_v48 = vadd.f32 %v11994_v24, %v16054_v34  ;;  %v11998_v26 = vadd.f32 %v11997_v41, %v15622_v18  ;;  %v17975_v18 = vld [vmem:[#allocation82_spill] sm:$0xff] }
 0x565   : > { %v16066_v28 = vadd.f32 %v11996_v56, %v16054_v34  ;;  %v12000_v17 = vadd.f32 %v11999_v25, %v15627_v15  ;;  %v17988_v25 = vld [vmem:[#allocation89_spill] sm:$0xff] }
 0x566   : > { %v10503_v53 = vmul.f32 -1.442695, %v16062_v48  ;;  %v16071_v12 = vadd.f32 %v11998_v26, %v16054_v34 }
 0x567   : > { %v10501_v19 = vmul.f32 -1.442695, %v16066_v28  ;;  %v16075_v50 = vadd.f32 %v12000_v17, %v16054_v34  ;;  %v11803_v46 = vpop.f32.mrb[16].mxu0 }
 0x568   : > { %12700 = vpow2.f32 %v10503_v53  ;;  %v10504_v23 = vmul.f32 -1.442695, %v16071_v12  ;;  %v12001_v32 = vadd.f32 %v11803_v46, %v17975_v18  ;;  %v6945_v8 = vpop.f32.mrb[17].mxu0  ;;  %v17989_v46 = vld [vmem:[#allocation58_spill] sm:$0xff] }
 0x569   : > { %12702 = vpow2.f32 %v10501_v19  ;;  %v10502_v15 = vmul.f32 -1.442695, %v16075_v50  ;;  %v12003_v35 = vadd.f32 %v6945_v8, %v17976_v52  ;;  %v11804_v63 = vpop.f32.mrb[18].mxu0 }
 0x56a   : > { %12704 = vpow2.f32 %v10504_v23  ;;  %v12002_v42 = vadd.f32 %v12001_v32, %v17977_v3  ;;  %v12005_v13 = vadd.f32 %v11804_v63, %v17978_v37  ;;  %v6948_v62 = vpop.f32.mrb[19].mxu0 }
 0x56b   : > { %12706 = vpow2.f32 %v10502_v15  ;;  %v12004_v22 = vadd.f32 %v12003_v35, %v17979_v27  ;;  %v12007_v9 = vadd.f32 %v6948_v62, %v17980_v1  ;;  %v17990_v15 = vld [vmem:[#allocation59_spill] sm:$0xff]  ;;  %v17991_v27 = vld [vmem:[#allocation90_spill] sm:$0xff] }
 0x56c   : > { %v16086_v31 = vadd.f32 %v12002_v42, %v16054_v34  ;;  %v12006_v2 = vadd.f32 %v12005_v13, %v17981_v4  ;;  %v17992_v4 = vld [vmem:[#allocation91_spill] sm:$0xff] }
 0x56d   : > { %v16090_v29 = vadd.f32 %v12004_v22, %v16054_v34  ;;  %v12008_v43 = vadd.f32 %v12007_v9, %v17982_v51 }
 0x56e   : > { %v10507_v55 = vmul.f32 -1.442695, %v16086_v31  ;;  %v16095_v7 = vadd.f32 %v12006_v2, %v16054_v34 }
 0x56f   : > { %v10505_v44 = vmul.f32 -1.442695, %v16090_v29  ;;  %v16099_v61 = vadd.f32 %v12008_v43, %v16054_v34  ;;  %v11807_v49 = vpop.f32.mrb[20].mxu0 }
 0x570   : > { %12708 = vpow2.f32 %v10507_v55  ;;  %v10508_v54 = vmul.f32 -1.442695, %v16095_v7  ;;  %v12009_v39 = vadd.f32 %v11807_v49, %v17983_v6  ;;  %v6961_v5 = vpop.f32.mrb[21].mxu0  ;;  %v17993_v55 = vld [vmem:[#allocation61_spill] sm:$0xff]  ;;  %v17994_v49 = vld [vmem:[#allocation92_spill] sm:$0xff] }
 0x571   : > { %12710 = vpow2.f32 %v10505_v44  ;;  %v10506_v10 = vmul.f32 -1.442695, %v16099_v61  ;;  %v12011_v40 = vadd.f32 %v6961_v5, %v17984_v0  ;;  %v11808_v21 = vpop.f32.mrb[22].mxu0 }
 0x572   : > { %v12701_v36 = vpop.eup %12700  ;;  %12712 = vpow2.f32 %v10508_v54  ;;  %v12010_v60 = vadd.f32 %v12009_v39, %v17985_v59  ;;  %v12013_v14 = vadd.f32 %v11808_v21, %v17986_v45  ;;  %v6964_v57 = vpop.f32.mrb[23].mxu0  ;;  %v17997_v45 = vld [vmem:[#allocation62_spill] sm:$0xff] }
 0x573   : > { %v12703_v24 = vpop.eup %12702  ;;  %v7740_v41 = vadd.f32 1.0, %v12701_v36  ;;  %12714 = vpow2.f32 %v10506_v10  ;;  %v12012_v56 = vadd.f32 %v12011_v40, %v17987_v20  ;;  %v12015_v26 = vadd.f32 %v6964_v57, %v17988_v25  ;;  %v17995_v10 = vld [vmem:[#allocation60_spill] sm:$0xff]  ;;  %v17996_v40 = vld [vmem:[#allocation93_spill] sm:$0xff]  ;;  %v17998_v20 = vld [vmem:[#allocation63_spill] sm:$0xff] }
 0x574   : > { %v12705_v17 = vpop.eup %12704  ;;  %v7738_v53 = vadd.f32 1.0, %v12703_v24  ;;  %v16110_v19 = vadd.f32 %v12010_v60, %v16054_v34  ;;  %v12014_v23 = vadd.f32 %v12013_v14, %v17989_v46 }
 0x575   : > { %v12707_v18 = vpop.eup %12706  ;;  %12716 = vrcp.f32 %v7740_v41  ;;  %v7741_v32 = vadd.f32 1.0, %v12705_v17  ;;  %v16114_v8 = vadd.f32 %v12012_v56, %v16054_v34  ;;  %v12016_v52 = vadd.f32 %v12015_v26, %v17990_v15 }
 0x576   : > { %12718 = vrcp.f32 %v7738_v53  ;;  %v7739_v35 = vadd.f32 1.0, %v12707_v18  ;;  %v10511_v63 = vmul.f32 -1.442695, %v16110_v19  ;;  %v16119_v3 = vadd.f32 %v12014_v23, %v16054_v34 }
 0x577   : > { %12720 = vrcp.f32 %v7741_v32  ;;  %v10509_v42 = vmul.f32 -1.442695, %v16114_v8  ;;  %v16123_v37 = vadd.f32 %v12016_v52, %v16054_v34  ;;  %v11811_v13 = vpop.f32.mrb[24].mxu0 }
 0x578   : > { %12722 = vrcp.f32 %v7739_v35  ;;  %v10512_v62 = vmul.f32 -1.442695, %v16119_v3  ;;  %v12017_v22 = vadd.f32 %v11811_v13, %v17991_v27  ;;  %v6977_v1 = vpop.f32.mrb[25].mxu0  ;;  %v17999_v35 = vld [vmem:[#allocation94_spill] sm:$0xff] }
 0x579   : > { %12724 = vpow2.f32 %v10511_v63  ;;  %v10510_v9 = vmul.f32 -1.442695, %v16123_v37  ;;  %v12019_v2 = vadd.f32 %v6977_v1, %v17992_v4  ;;  %v11812_v51 = vpop.f32.mrb[26].mxu0 }
 0x57a   : > { %v12709_v43 = vpop.eup %12708  ;;  %12726 = vpow2.f32 %v10509_v42  ;;  %v12018_v44 = vadd.f32 %v12017_v22, %v17993_v55  ;;  %v12021_v54 = vadd.f32 %v11812_v51, %v17994_v49  ;;  %v6980_v6 = vpop.f32.mrb[27].mxu0  ;;  %v18000_v22 = vld [vmem:[#allocation95_spill] sm:$0xff] }
 0x57b   : > { %v12711_v39 = vpop.eup %12710  ;;  %v7744_v5 = vadd.f32 1.0, %v12709_v43  ;;  %12728 = vpow2.f32 %v10512_v62  ;;  %v12020_v0 = vadd.f32 %v12019_v2, %v17995_v10  ;;  %v12023_v21 = vadd.f32 %v6980_v6, %v17996_v40  ;;  %v18002_v43 = vld [vmem:[#allocation96_spill] sm:$0xff] }
 0x57c   : > { %v12713_v36 = vpop.eup %12712  ;;  %v7742_v59 = vadd.f32 1.0, %v12711_v39  ;;  %12730 = vpow2.f32 %v10510_v9  ;;  %v16134_v60 = vadd.f32 %v12018_v44, %v16054_v34  ;;  %v12022_v14 = vadd.f32 %v12021_v54, %v17997_v45  ;;  %v18004_v39 = vld [vmem:[#allocation97_spill] sm:$0xff] }
 0x57d   : > { %v12715_v57 = vpop.eup %12714  ;;  %12732 = vrcp.f32 %v7744_v5  ;;  %v7745_v24 = vadd.f32 1.0, %v12713_v36  ;;  %v16138_v41 = vadd.f32 %v12020_v0, %v16054_v34  ;;  %v12024_v56 = vadd.f32 %v12023_v21, %v17998_v20 }
 0x57e   : > { %12734 = vrcp.f32 %v7742_v59  ;;  %v7743_v25 = vadd.f32 1.0, %v12715_v57  ;;  %v10515_v26 = vmul.f32 -1.442695, %v16134_v60  ;;  %v16143_v17 = vadd.f32 %v12022_v14, %v16054_v34  ;;  %v18006_v14 = vld [vmem:[#allocation69_spill] sm:$0xff] }
 0x57f   : > { %v12717_v53 = vpop.eup %12716  ;;  %12736 = vrcp.f32 %v7745_v24  ;;  %v10513_v46 = vmul.f32 -1.442695, %v16138_v41  ;;  %v16147_v23 = vadd.f32 %v12024_v56, %v16054_v34  ;;  %v11815_v18 = vpop.f32.mrb[28].mxu0  ;;  %v18007_v57 = vld [vmem:[#allocation37_spill] sm:$0xff] }
 0x580   : > { %v12719_v32 = vpop.eup %12718  ;;  %v7836_v15 = vmul.f32 %v12717_v53, %v16062_v48  ;;  %12738 = vrcp.f32 %v7743_v25  ;;  %v10516_v52 = vmul.f32 -1.442695, %v16143_v17  ;;  %v12025_v63 = vadd.f32 %v11815_v18, %v17999_v35  ;;  %v6993_v42 = vpop.f32.mrb[29].mxu0  ;;  %v18001_v48 = vld [vmem:[#allocation64_spill] sm:$0xff] }
 0x581   : > { %v12721_v13 = vpop.eup %12720  ;;  %v7834_v62 = vmul.f32 %v12719_v32, %v16066_v28  ;;  %12740 = vpow2.f32 %v10515_v26  ;;  %v10514_v27 = vmul.f32 -1.442695, %v16147_v23  ;;  %v12027_v1 = vadd.f32 %v6993_v42, %v18000_v22  ;;  %v11816_v9 = vpop.f32.mrb[30].mxu0  ;;  %v18003_v28 = vld [vmem:[#allocation65_spill] sm:$0xff] }
 0x582   : > { %v12723_v4 = vpop.eup %12722  ;;  %v7837_v2 = vmul.f32 %v12721_v13, %v16071_v12  ;;  %12742 = vpow2.f32 %v10513_v46  ;;  %v12026_v51 = vadd.f32 %v12025_v63, %v18001_v48  ;;  %v12029_v55 = vadd.f32 %v11816_v9, %v18002_v43  ;;  %v6996_v44 = vpop.f32.mrb[31].mxu0  ;;  %v18005_v12 = vld [vmem:[#allocation66_spill] sm:$0xff] }
 0x583   : > { %v12725_v49 = vpop.eup %12724  ;;  %v7835_v54 = vmul.f32 %v12723_v4, %v16075_v50  ;;  %12744 = vpow2.f32 %v10516_v52  ;;  %v12028_v6 = vadd.f32 %v12027_v1, %v18003_v28  ;;  %v12031_v5 = vadd.f32 %v6996_v44, %v18004_v39  ;;  %v18009_v44 = vld [vmem:[#allocation34_spill] sm:$0xff] }
 0x584   : > { %v12727_v10 = vpop.eup %12726  ;;  %v7748_v0 = vadd.f32 1.0, %v12725_v49  ;;  %12746 = vpow2.f32 %v10514_v27  ;;  %v16162_v40 = vadd.f32 %v12026_v51, %v16054_v34  ;;  %v12030_v21 = vadd.f32 %v12029_v55, %v18005_v12 }
 0x585   : > { %v12729_v36 = vpop.eup %12728  ;;  %v7746_v59 = vadd.f32 1.0, %v12727_v10  ;;  %v16166_v45 = vadd.f32 %v12028_v6, %v16054_v34  ;;  %v12032_v50 = vadd.f32 %v12031_v5, %v18006_v14  ;;  %v16170_v24 = vadd.f32 %v7834_v62, %v18007_v57  ;;  %v18008_v62 = vld [vmem:[#allocation35_spill] sm:$0xff]  ;;  %v18011_v10 = vld [vmem:[#allocation38_spill] sm:$0xff] }
 0x586   : > { %v12731_v20 = vpop.eup %12730  ;;  %12748 = vrcp.f32 %v7748_v0  ;;  %v7749_v56 = vadd.f32 1.0, %v12729_v36  ;;  %v10519_v25 = vmul.f32 -1.442695, %v16162_v40  ;;  %v16174_v26 = vadd.f32 %v12030_v21, %v16054_v34 }
 0x587   : > { %v12733_v53 = vpop.eup %12732  ;;  %12750 = vrcp.f32 %v7746_v59  ;;  %v7747_v46 = vadd.f32 1.0, %v12731_v20  ;;  %v10517_v18 = vmul.f32 -1.442695, %v16166_v45  ;;  %v16178_v32 = vadd.f32 %v12032_v50, %v16054_v34  ;;  %v11819_v52 = vpop.f32.mrb[80].mxu0  ;;  %v18012_v59 = vld [vmem:[#allocation40_spill] sm:$0xff] }
 0x588   : > { %v12735_v35 = vpop.eup %12734  ;;  %v7840_v63 = vmul.f32 %v12733_v53, %v16086_v31  ;;  %12752 = vrcp.f32 %v7749_v56  ;;  %v10520_v42 = vmul.f32 -1.442695, %v16174_v26  ;;  %v7009_v13 = vpop.f32.mrb[81].mxu0  ;;  %v16183_v27 = vadd.f32 %v7835_v54, %v18008_v62  ;;  %v18014_v62 = vld [vmem:[#allocation39_spill] sm:$0xff] }
 0x589   : > { %v12737_v22 = vpop.eup %12736  ;;  %v7838_v1 = vmul.f32 %v12735_v35, %v16090_v29  ;;  %12754 = vrcp.f32 %v7747_v46  ;;  %v10518_v9 = vmul.f32 -1.442695, %v16178_v32  ;;  %v7052_v4 = vadd.f32 %v7009_v13, %v16024_v33  ;;  %v11820_v48 = vpop.f32.mrb[82].mxu0  ;;  %v18013_v46 = vld [vmem:[#allocation41_spill] sm:$0xff] }
 0x58a   : > { %v12739_v51 = vpop.eup %12738  ;;  %v7841_v43 = vmul.f32 %v12737_v22, %v16095_v7  ;;  %12756 = vpow2.f32 %v10519_v25  ;;  %v7012_v31 = vpop.f32.mrb[83].mxu0  ;;  %v7893_v55 = vpack.c.bf16 %v16183_v27, %v16170_v24  ;;  %v16192_v49 = vadd.f32 %v7836_v15, %v18009_v44  ;;  %v18010_v7 = vld [vmem:[#allocation36_spill] sm:$0xff]  ;;  %v18048_v27 = vld [vmem:[#allocation9_spill] sm:$0xff] }
 0x58b   : > { %v12741_v54 = vpop.eup %12740  ;;  %v7839_v29 = vmul.f32 %v12739_v51, %v16099_v61  ;;  %12758 = vpow2.f32 %v10517_v18  ;;  %v7053_v28 = vadd.f32 %v7012_v31, %v16026_v30  ;;  %v7591_v33 = vadd.f32 %v16008_v16, %v7052_v4  ;;  %v18047_v24 = vld [vmem:[#allocation8_spill] sm:$0xff] }
 0x58c   : > { %v12743_v6 = vpop.eup %12742  ;;  %v7752_v39 = vadd.f32 1.0, %v12741_v54  ;;  %12760 = vpow2.f32 %v10520_v42  ;;  %v16198_v5 = vadd.f32 %v7837_v2, %v18010_v7  ;;  %v16201_v0 = vadd.f32 %v7838_v1, %v18011_v10  ;;  %v18017_v7 = vld [vmem:[#allocation42_spill] sm:$0xff] }
 0x58d   : > { %v12745_v12 = vpop.eup %12744  ;;  %v7750_v15 = vadd.f32 1.0, %v12743_v6  ;;  %12762 = vpow2.f32 %v10518_v9  ;;  %v16204_v21 = vadd.f32 %v16054_v34, %v7591_v33  ;;  %v7592_v61 = vadd.f32 %v16010_v38, %v7053_v28  ;;  %v18015_v28 = vld [vmem:[#allocation45_spill] sm:$0xff]  ;;  %v18016_v33 = vld [vmem:[#allocation43_spill] sm:$0xff] }
 0x58e   : > { %v12747_v30 = vpop.eup %12746  ;;  %12764 = vrcp.f32 %v7752_v39  ;;  %v7753_v16 = vadd.f32 1.0, %v12745_v12  ;;  %v7894_v36 = vpack.c.bf16 %v16198_v5, %v16192_v49  ;;  %v16210_v2 = vadd.f32 %v7839_v29, %v18012_v59  ;;  %v18050_v49 = vld [vmem:[#allocation11_spill] sm:$0xff]  ;;  %v18051_v5 = vld [vmem:[#allocation12_spill] sm:$0xff] }
 0x58f   : > { %12766 = vrcp.f32 %v7750_v15  ;;  %v7751_v14 = vadd.f32 1.0, %v12747_v30  ;;  %v10521_v50 = vmul.f32 -1.442695, %v16204_v21  ;;  %v16214_v57 = vadd.f32 %v16054_v34, %v7592_v61  ;;  %v11839_v20 = vpop.f32.mrb[84].mxu0 }
 0x590   : > { %v12749_v56 = vpop.eup %12748  ;;  %12768 = vrcp.f32 %v7753_v16  ;;  %v7561_v38 = vadd.f32 %v11839_v20, %v16031_v58  ;;  %v7422_v25 = vpop.f32.mrb[85].mxu0  ;;  %v7895_v53 = vpack.c.bf16 %v16210_v2, %v16201_v0  ;;  %v16220_v18 = vadd.f32 %v7840_v63, %v18013_v46  ;;  %v18019_v20 = vld [vmem:[#allocation68_spill] sm:$0xff]  ;;  %v18052_v0 = vld [vmem:[#allocation13_spill] sm:$0xff]  ;;  %v18054_v2 = vld [vmem:[#allocation15_spill] sm:$0xff] }
 0x591   : > { %v12751_v52 = vpop.eup %12750  ;;  %v7844_v35 = vmul.f32 %v12749_v56, %v16110_v19  ;;  %12770 = vrcp.f32 %v7751_v14  ;;  %v10522_v42 = vmul.f32 -1.442695, %v16214_v57  ;;  %v11840_v13 = vpop.f32.mrb[86].mxu0  ;;  %v16225_v22 = vadd.f32 %v7841_v43, %v18014_v62 }
 0x592   : > { %v12753_v1 = vpop.eup %12752  ;;  %v7842_v58 = vmul.f32 %v12751_v52, %v16114_v8  ;;  %12772 = vpow2.f32 %v10521_v50  ;;  %v16229_v9 = vadd.f32 %v16054_v34, %v7561_v38  ;;  %v7562_v63 = vadd.f32 %v11840_v13, %v16036_v47  ;;  %v7424_v4 = vpop.f32.mrb[87].mxu0 }
 0x593   : > { %v12755_v48 = vpop.eup %12754  ;;  %v7845_v19 = vmul.f32 %v12753_v1, %v16119_v3  ;;  %12774 = vpow2.f32 %v10522_v42  ;;  %v7896_v51 = vpack.c.bf16 %v16225_v22, %v16220_v18  ;;  %v16241_v47 = vadd.f32 %v7844_v35, %v18015_v28  ;;  %v18020_v35 = vld [vmem:[#allocation70_spill] sm:$0xff]  ;;  %v18056_v18 = vld [vmem:[#allocation17_spill] sm:$0xff] }
 0x594   : > { %v12757_v31 = vpop.eup %12756  ;;  %v7843_v43 = vmul.f32 %v12755_v48, %v16123_v37  ;;  %v10491_v44 = vmul.f32 -1.442695, %v16229_v9  ;;  %v16238_v8 = vadd.f32 %v16054_v34, %v7562_v63  ;;  %v16247_v10 = vadd.f32 %v7842_v58, %v18017_v7  ;;  %v18018_v37 = vld [vmem:[#allocation44_spill] sm:$0xff]  ;;  %v18023_v7 = vld [vmem:[#allocation47_spill] sm:$0xff]  ;;  %v18057_v22 = vld [vmem:[#allocation18_spill] sm:$0xff] }
 0x595   : > { %v12759_v54 = vpop.eup %12758  ;;  %v7756_v29 = vadd.f32 1.0, %v12757_v31  ;;  %v16244_v6 = vadd.f32 %v7845_v19, %v18016_v33  ;;  %v18021_v63 = vld [vmem:[#allocation72_spill] sm:$0xff] }
 0x596   : > { %v12761_v3 = vpop.eup %12760  ;;  %v7754_v39 = vadd.f32 1.0, %v12759_v54  ;;  %12776 = vpow2.f32 %v10491_v44  ;;  %v16250_v12 = vadd.f32 %v7843_v43, %v18018_v37  ;;  %v10492_v30 = vmul.f32 -1.442695, %v16238_v8  ;;  %v18022_v43 = vld [vmem:[#allocation73_spill] sm:$0xff] }
 0x597   : > { %v12763_v15 = vpop.eup %12762  ;;  %12778 = vrcp.f32 %v7756_v29  ;;  %v7757_v61 = vadd.f32 1.0, %v12761_v3  ;;  %v11843_v16 = vpop.f32.mrb[4].mxu0  ;;  %v7898_v59 = vpack.c.bf16 %v16244_v6, %v16241_v47  ;;  %v18059_v47 = vld [vmem:[#allocation20_spill] sm:$0xff]  ;;  %v18060_v6 = vld [vmem:[#allocation21_spill] sm:$0xff] }
 0x598   : > { %v12765_v14 = vpop.eup %12764  ;;  %12780 = vrcp.f32 %v7754_v39  ;;  %v7755_v50 = vadd.f32 1.0, %v12763_v15  ;;  %v11985_v56 = vadd.f32 %v11843_v16, %v18019_v20  ;;  %v7436_v38 = vpop.f32.mrb[5].mxu0  ;;  %v7897_v25 = vpack.c.bf16 %v16250_v12, %v16247_v10  ;;  %v18026_v20 = vld [vmem:[#allocation46_spill] sm:$0xff]  ;;  %v18062_v12 = vld [vmem:[#allocation23_spill] sm:$0xff] }
 0x599   : > { %v12767_v46 = vpop.eup %12766  ;;  %v7848_v52 = vmul.f32 %v12765_v14, %v16134_v60  ;;  %12782 = vrcp.f32 %v7757_v61  ;;  %v11986_v42 = vadd.f32 %v7436_v38, %v18020_v35  ;;  %v11844_v13 = vpop.f32.mrb[6].mxu0  ;;  %v18025_v14 = vld [vmem:[#allocation49_spill] sm:$0xff]  ;;  %v18027_v35 = vld [vmem:[#allocation78_spill] sm:$0xff] }
 0x59a   : > { %v12769_v62 = vpop.eup %12768  ;;  %v7846_v1 = vmul.f32 %v12767_v46, %v16138_v41  ;;  %12784 = vrcp.f32 %v7755_v50  ;;  %v16262_v58 = vadd.f32 %v11985_v56, %v16054_v34  ;;  %v11987_v4 = vadd.f32 %v11844_v13, %v18021_v63  ;;  %v7439_v48 = vpop.f32.mrb[7].mxu0  ;;  %v18061_v10 = vld [vmem:[#allocation22_spill] sm:$0xff] }
 0x59b   : > { %v12771_v19 = vpop.eup %12770  ;;  %v7849_v31 = vmul.f32 %v12769_v62, %v16143_v17  ;;  %12786 = vpow2.f32 %v10492_v30  ;;  %v16267_v60 = vadd.f32 %v11986_v42, %v16054_v34  ;;  %v11988_v44 = vadd.f32 %v7439_v48, %v18022_v43 }
 0x59c   : > { %v12773_v54 = vpop.eup %12772  ;;  %v7847_v29 = vmul.f32 %v12771_v19, %v16147_v23  ;;  %v10495_v41 = vmul.f32 -1.442695, %v16262_v58  ;;  %v16273_v28 = vadd.f32 %v11987_v4, %v16054_v34  ;;  %v16280_v37 = vadd.f32 %v7846_v1, %v18023_v7  ;;  %v18024_v23 = vld [vmem:[#allocation48_spill] sm:$0xff]  ;;  %v18028_v4 = vld [vmem:[#allocation79_spill] sm:$0xff]  ;;  %v18030_v7 = vld [vmem:[#allocation81_spill] sm:$0xff] }
 0x59d   : > { %v12775_v33 = vpop.eup %12774  ;;  %v7758_v3 = vadd.f32 1.0, %v12773_v54  ;;  %v10493_v39 = vmul.f32 -1.442695, %v16267_v60  ;;  %v16277_v17 = vadd.f32 %v11988_v44, %v16054_v34  ;;  %v16287_v50 = vadd.f32 %v7848_v52, %v18025_v14  ;;  %v18029_v54 = vld [vmem:[#allocation80_spill] sm:$0xff] }
 0x59e   : > { %v7759_v15 = vadd.f32 1.0, %v12775_v33  ;;  %12788 = vpow2.f32 %v10495_v41  ;;  %v10496_v61 = vmul.f32 -1.442695, %v16273_v28  ;;  %v16284_v30 = vadd.f32 %v7847_v29, %v18024_v23 }
 0x59f   : > { %12790 = vrcp.f32 %v7758_v3  ;;  %v11847_v16 = vpop.f32.mrb[8].mxu0  ;;  %v16290_v56 = vadd.f32 %v7849_v31, %v18026_v20  ;;  %v10494_v46 = vmul.f32 -1.442695, %v16277_v17 }
 0x5a0   : > { %v12777_v38 = vpop.eup %12776  ;;  %12792 = vrcp.f32 %v7759_v15  ;;  %v11989_v42 = vadd.f32 %v11847_v16, %v18027_v35  ;;  %v7452_v13 = vpop.f32.mrb[9].mxu0  ;;  %v7899_v62 = vpack.c.bf16 %v16284_v30, %v16280_v37  ;;  %v18031_v35 = vld [vmem:[#allocation51_spill] sm:$0xff] }
 0x5a1   : > { %v12779_v1 = vpop.eup %12778  ;;  %v7728_v63 = vadd.f32 1.0, %v12777_v38  ;;  %12794 = vpow2.f32 %v10493_v39  ;;  %v11990_v48 = vadd.f32 %v7452_v13, %v18028_v4  ;;  %v11848_v52 = vpop.f32.mrb[10].mxu0  ;;  %v7900_v19 = vpack.c.bf16 %v16290_v56, %v16287_v50  ;;  %v18033_v4 = vld [vmem:[#allocation52_spill] sm:$0xff]  ;;  %v12398_v37 = vld [vmem:[%s17713_s11 + $0x48] sm:$0xff]  }
 0x5a2   : > { %v12781_v31 = vpop.eup %12780  ;;  %v7852_v43 = vmul.f32 %v12779_v1, %v16162_v40  ;;  %12796 = vpow2.f32 %v10496_v61  ;;  %v16301_v44 = vadd.f32 %v11989_v42, %v16054_v34  ;;  %v11991_v29 = vadd.f32 %v11848_v52, %v18029_v54  ;;  %v7455_v41 = vpop.f32.mrb[11].mxu0  ;;  %v12399_v30 = vld [vmem:[%s17713_s11 + $0x8] sm:$0xff]   ;;  %v12400_v50 = vld [vmem:[%s17713_s11 + $0x50] sm:$0xff]  }
 0x5a3   : > { %v12783_v33 = vpop.eup %12782  ;;  %v7850_v3 = vmul.f32 %v12781_v31, %v16166_v45  ;;  %12798 = vrcp.f32 %v7728_v63  ;;  %v16306_v39 = vadd.f32 %v11990_v48, %v16054_v34  ;;  %v11992_v15 = vadd.f32 %v7455_v41, %v18030_v7  ;;  %v18034_v48 = vld [vmem:[#allocation50_spill] sm:$0xff]  ;;  %v12401_v56 = vld [vmem:[%s17713_s11 + $0x10] sm:$0xff]  }
 0x5a4   : > { %v12785_v23 = vpop.eup %12784  ;;  %v7853_v16 = vmul.f32 %v12783_v33, %v16174_v26  ;;  %12800 = vpow2.f32 %v10494_v46  ;;  %v10499_v40 = vmul.f32 -1.442695, %v16301_v44  ;;  %v16312_v61 = vadd.f32 %v11991_v29, %v16054_v34  ;;  %v18032_v46 = vld [vmem:[#allocation53_spill] sm:$0xff] }
 0x5a5   : > { %v12787_v14 = vpop.eup %12786  ;;  %v7851_v20 = vmul.f32 %v12785_v23, %v16178_v32  ;;  %v10497_v45 = vmul.f32 -1.442695, %v16306_v39  ;;  %v16317_v38 = vadd.f32 %v11992_v15, %v16054_v34  ;;  %v16320_v42 = vadd.f32 %v7850_v3, %v18031_v35 }
 0x5a6   : > { %v7729_v13 = vadd.f32 1.0, %v12787_v14  ;;  %12802 = vpow2.f32 %v10499_v40  ;;  %v10500_v26 = vmul.f32 -1.442695, %v16312_v61  ;;  %v16324_v1 = vadd.f32 %v7852_v43, %v18032_v46  ;;  %v18035_v14 = vld [vmem:[#allocation54_spill] sm:$0xff] }
 0x5a7   : > { %12804 = vpow2.f32 %v10497_v45  ;;  %v10498_v63 = vmul.f32 -1.442695, %v16317_v38  ;;  %v16328_v32 = vadd.f32 %v7851_v20, %v18033_v4  ;;  %v16331_v52 = vadd.f32 %v7853_v16, %v18034_v48  ;;  %v18036_v45 = vld [vmem:[#allocation55_spill] sm:$0xff] }
 0x5a8   : > { %v12789_v34 = vpop.eup %12788  ;;  %12806 = vrcp.f32 %v7729_v13 }
 0x5a9   : > { %v12791_v31 = vpop.eup %12790  ;;  %v7732_v54 = vadd.f32 1.0, %v12789_v34  ;;  %12808 = vpow2.f32 %v10500_v26  ;;  %v7901_v29 = vpack.c.bf16 %v16328_v32, %v16320_v42  ;;  %v7902_v43 = vpack.c.bf16 %v16331_v52, %v16324_v1  ;;  %v12404_v42 = vld [vmem:[%s17713_s11 + $0x60] sm:$0xff]   ;;  %v12406_v32 = vld [vmem:[%s17713_s11 + $0x68] sm:$0xff]  }
 0x5aa   : > { %v12793_v41 = vpop.eup %12792  ;;  %v7854_v33 = vmul.f32 %v12791_v31, %v16204_v21  ;;  %12810 = vpow2.f32 %v10498_v63  ;;  %v12405_v1 = vld [vmem:[%s17713_s11 + $0x20] sm:$0xff]   ;;  %v12407_v52 = vld [vmem:[%s17713_s11 + $0x28] sm:$0xff]  }
 0x5ab   : > { %v12795_v3 = vpop.eup %12794  ;;  %v7855_v7 = vmul.f32 %v12793_v41, %v16214_v57  ;;  %12812 = vrcp.f32 %v7732_v54 }
 0x5ac   : > { %v12797_v15 = vpop.eup %12796  ;;  %v7730_v23 = vadd.f32 1.0, %v12795_v3  ;;  %v16340_v20 = vadd.f32 %v7854_v33, %v18035_v14 }
 0x5ad   : > { %v12799_v16 = vpop.eup %12798  ;;  %v7733_v40 = vadd.f32 1.0, %v12797_v15  ;;  %v16343_v35 = vadd.f32 %v7855_v7, %v18036_v45  ;;  %v18037_v15 = vld [vmem:[#allocation25_spill] sm:$0xff] }
 0x5ae   : > { %v12801_v13 = vpop.eup %12800  ;;  %12814 = vrcp.f32 %v7730_v23  ;;  %v7824_v63 = vmul.f32 %v12799_v16, %v16229_v9 }
 0x5af   : > { %12816 = vrcp.f32 %v7733_v40  ;;  %v7731_v26 = vadd.f32 1.0, %v12801_v13  ;;  %v7903_v21 = vpack.c.bf16 %v16343_v35, %v16340_v20  ;;  %v18038_v40 = vld [vmem:[#allocation24_spill] sm:$0xff]  ;;  %v12410_v20 = vld [vmem:[%s17713_s11 + $0x78] sm:$0xff]  }
 0x5b0   : > { %v12803_v46 = vpop.eup %12802  ;;  %v7856_v23 = vadd.f32 %v7824_v63, %v18037_v15  ;;  %v18040_v63 = vld [vmem:[#allocation27_spill] sm:$0xff]  ;;  %v12411_v35 = vld [vmem:[%s17713_s11 + $0x38] sm:$0xff]  }
 0x5b1   : > { %v12805_v57 = vpop.eup %12804  ;;  %12818 = vrcp.f32 %v7731_v26  ;;  %v7736_v4 = vadd.f32 1.0, %v12803_v46 }
 0x5b2   : > { %v12807_v48 = vpop.eup %12806  ;;  %v7734_v34 = vadd.f32 1.0, %v12805_v57 }
 0x5b3   : > { %v12809_v31 = vpop.eup %12808  ;;  %v7825_v54 = vmul.f32 %v12807_v48, %v16238_v8  ;;  %12820 = vrcp.f32 %v7736_v4  ;;  %v18039_v4 = vld [vmem:[#allocation26_spill] sm:$0xff] }
 0x5b4   : > { %v12811_v41 = vpop.eup %12810  ;;  %12822 = vrcp.f32 %v7734_v34  ;;  %v7737_v33 = vadd.f32 1.0, %v12809_v31 }
 0x5b5   : > { %v12813_v3 = vpop.eup %12812  ;;  %v7735_v7 = vadd.f32 1.0, %v12811_v41  ;;  %v7857_v14 = vadd.f32 %v7825_v54, %v18038_v40  ;;  %v18041_v41 = vld [vmem:[#allocation28_spill] sm:$0xff] }
 0x5b6   : > { %12824 = vrcp.f32 %v7737_v33  ;;  %v7828_v45 = vmul.f32 %v12813_v3, %v16262_v58 }
 0x5b7   : > { %12826 = vrcp.f32 %v7735_v7  ;;  %v7888_v9 = vpack.c.bf16 %v7857_v14, %v7856_v23  ;;  %v18042_v7 = vld [vmem:[#allocation29_spill] sm:$0xff] }
 0x5b8   : > { %v12815_v16 = vpop.eup %12814  ;;  %v7860_v48 = vadd.f32 %v7828_v45, %v18039_v4 }
 0x5b9   : > { %v12817_v13 = vpop.eup %12816  ;;  %11889 = vmatprep.mubr.bf16.mxu1 %v7888_v9  ;;  %v7826_v8 = vmul.f32 %v12815_v16, %v16267_v60  ;;  %v18043_v16 = vld [vmem:[#allocation30_spill] sm:$0xff] }
 0x5ba   : > { %v7829_v26 = vmul.f32 %v12817_v13, %v16273_v28 }
 0x5bb   : > { %v12819_v46 = vpop.eup %12818  ;;  %v7858_v33 = vadd.f32 %v7826_v8, %v18041_v41  ;;  %v18045_v8 = vld [vmem:[#allocation32_spill] sm:$0xff] }
 0x5bc   : > { %v7827_v57 = vmul.f32 %v12819_v46, %v16277_v17  ;;  %v7861_v34 = vadd.f32 %v7829_v26, %v18040_v63  ;;  %v12389_v17 = vld [vmem:[%s17705_s3 + $0x8] sm:$0xff]   ;;  %v18046_v26 = vld [vmem:[#allocation33_spill] sm:$0xff]  ;;  %v12394_v63 = vld [vmem:[%s17705_s3 + $0x30] sm:$0xff]  }
 0x5bd   : > { %v12821_v31 = vpop.eup %12820 }
 0x5be   : > { %v12823_v54 = vpop.eup %12822  ;;  %v7859_v15 = vadd.f32 %v7827_v57, %v18042_v7  ;;  %v7890_v58 = vpack.c.bf16 %v7861_v34, %v7860_v48  ;;  %v7832_v3 = vmul.f32 %v12821_v31, %v16301_v44  ;;  %v18044_v44 = vld [vmem:[#allocation31_spill] sm:$0xff]  ;;  %v12390_v57 = vld [vmem:[%s17705_s3 + $0x10] sm:$0xff]   ;;  %v12395_v34 = vld [vmem:[%s17705_s3 + $0x38] sm:$0xff]  }
 0x5bf   : > { %v7830_v28 = vmul.f32 %v12823_v54, %v16306_v39  ;;  %v12393_v48 = vld [vmem:[%s17705_s3 + $0x28] sm:$0xff]  }
 0x5c0   : > { %v12825_v23 = vpop.eup %12824  ;;  %v7889_v60 = vpack.c.bf16 %v7859_v15, %v7858_v33  ;;  %v7864_v45 = vadd.f32 %v7832_v3, %v18043_v16 }
 0x5c1   : > { %v12827_v40 = vpop.eup %12826  ;;  %v7833_v14 = vmul.f32 %v12825_v23, %v16312_v61  ;;  %v7862_v39 = vadd.f32 %v7830_v28, %v18045_v8 }
 0x5c2   : > { %v7831_v9 = vmul.f32 %v12827_v40, %v16317_v38  ;;  %11890 = vmatmul.mubr.bf16.vlgmr.msra.gmra.mrb[132].mxu1 %v7889_v60  ;;  %v12392_v38 = vld [vmem:[%s17705_s3 + $0x20] sm:$0xff]  }
 0x5c3   : > { %11922 = vmatpush3.bf16.msra.mxu1 %v16047_v11  ;;  %11893 = vmatprep.mubr.bf16.mxu1 %v7890_v58  ;;  %v7865_v13 = vadd.f32 %v7833_v14, %v18044_v44  ;;  %v12391_v11 = vld [vmem:[%s17705_s3 + $0x18] sm:$0xff]  }
 0x5c4   : > { %11923 = vmatprep.subr.bf16.mxu1 %v12389_v17  ;;  %v7863_v46 = vadd.f32 %v7831_v9, %v18046_v26 }
 0x5c5   : > { %v7892_v61 = vpack.c.bf16 %v7865_v13, %v7864_v45 }
 0x5c6   : > { %v7891_v4 = vpack.c.bf16 %v7863_v46, %v7862_v39 }
 0x5c7   : > { %11924 = vmatpush3.bf16.msra.mxu1 %v12389_v17 }
 0x5c8   : > { %11925 = vmatprep.subr.bf16.mxu1 %v12390_v57 }
 0x5ca   : > { %11894 = vmatmul.mubr.bf16.gmra.mrb[136].mxu1 %v7891_v4 }
 0x5cb   : > { %11897 = vmatprep.mubr.bf16.mxu1 %v7892_v61  ;;  %11926 = vmatpush3.bf16.msra.mxu1 %v12390_v57 }
 0x5cc   : > { %11927 = vmatprep.subr.bf16.mxu1 %v12391_v11 }
 0x5cf   : > { %11928 = vmatpush3.bf16.msra.mxu1 %v12391_v11 }
 0x5d0   : > { %11929 = vmatprep.subr.bf16.mxu1 %v12392_v38 }
 0x5d2   : > { %11898 = vmatmul.mubr.bf16.gmra.mrb[140].mxu1 %v7893_v55  ;;  %v18049_v55 = vld [vmem:[#allocation10_spill] sm:$0xff] }
 0x5d3   : > { %11901 = vmatprep.mubr.bf16.mxu1 %v7894_v36  ;;  %11930 = vmatpush3.bf16.msra.mxu1 %v12392_v38  ;;  %v18053_v36 = vld [vmem:[#allocation14_spill] sm:$0xff] }
 0x5d4   : > { %11931 = vmatprep.subr.bf16.mxu1 %v12393_v48 }
 0x5d7   : > { %11932 = vmatpush3.bf16.msra.mxu1 %v12393_v48 }
 0x5d8   : > { %11933 = vmatprep.subr.bf16.mxu1 %v12394_v63 }
 0x5da   : > { %11902 = vmatmul.mubr.bf16.gmra.mrb[144].mxu1 %v7895_v53  ;;  %v18055_v53 = vld [vmem:[#allocation16_spill] sm:$0xff] }
 0x5db   : > { %11905 = vmatprep.mubr.bf16.mxu1 %v7896_v51  ;;  %11934 = vmatpush3.bf16.msra.mxu1 %v12394_v63  ;;  %v18058_v51 = vld [vmem:[#allocation19_spill] sm:$0xff] }
 0x5dc   : > { %11935 = vmatprep.subr.bf16.mxu1 %v12395_v34 }
 0x5df   : > { %11936 = vmatpush3.bf16.msra.mxu1 %v12395_v34 }
 0x5e2   : > { %11906 = vmatmul.mubr.bf16.gmra.mrb[148].mxu1 %v7897_v25  ;;  %v12397_v25 = vld [vmem:[%s17713_s11] sm:$0xff]  }
 0x5e3   : > { %11909 = vmatprep.mubr.bf16.mxu1 %v7898_v59  ;;  %v12396_v59 = vld [vmem:[%s17713_s11 + $0x40] sm:$0xff]  }
 0x5e4   : > { %11189 = vmatprep.subr.bf16.mxu1 %v12396_v59 }
 0x5ea   : > { %11910 = vmatmul.mubr.bf16.gmra.mrb[152].mxu1 %v7899_v62  ;;  %v12402_v62 = vld [vmem:[%s17713_s11 + $0x58] sm:$0xff]  }
 0x5eb   : > { %11913 = vmatprep.mubr.bf16.mxu1 %v7900_v19  ;;  %v12403_v19 = vld [vmem:[%s17713_s11 + $0x18] sm:$0xff]  }
 0x5f2   : > { %11914 = vmatmul.mubr.bf16.gmra.mrb[156].mxu1 %v7901_v29  ;;  %v12408_v29 = vld [vmem:[%s17713_s11 + $0x70] sm:$0xff]  }
 0x5f3   : > { %11917 = vmatprep.mubr.bf16.mxu1 %v7902_v43  ;;  %v12409_v43 = vld [vmem:[%s17713_s11 + $0x30] sm:$0xff]  }
 0x5fa   : > { %11918 = vmatmul.mubr.bf16.gmra.mrb[160].mxu1 %v7903_v21  ;;  %v16489_v21 = vld [vmem:[%s17712_s10] ss:$0 sm:$0xff] }
 0x5fb   : > { %11937 = vmatprep.mubr.bf16.mxu1 %v18047_v24 }
 0x602   : > { %11938 = vmatmul.mubr.bf16.vlgmr.msra.gmra.mrb[164].mxu1 %v18048_v27 }
 0x603   : > { %11941 = vmatprep.mubr.bf16.mxu1 %v18049_v55  ;;  %11190 = vmatpush3.bf16.msra.mxu1 %v12397_v25 }
 0x604   : > { %11191 = vmatprep.subr.bf16.mxu1 %v12398_v37 }
 0x607   : > { %11192 = vmatpush3.bf16.msra.mxu1 %v12399_v30 }
 0x608   : > { %11193 = vmatprep.subr.bf16.mxu1 %v12400_v50 }
 0x60a   : > { %11942 = vmatmul.mubr.bf16.gmra.mrb[168].mxu1 %v18050_v49 }
 0x60b   : > { %11945 = vmatprep.mubr.bf16.mxu1 %v18051_v5  ;;  %11194 = vmatpush3.bf16.msra.mxu1 %v12401_v56 }
 0x60c   : > { %11195 = vmatprep.subr.bf16.mxu1 %v12402_v62 }
 0x60f   : > { %11196 = vmatpush3.bf16.msra.mxu1 %v12403_v19 }
 0x610   : > { %11197 = vmatprep.subr.bf16.mxu1 %v12404_v42 }
 0x612   : > { %11946 = vmatmul.mubr.bf16.gmra.mrb[172].mxu1 %v18052_v0 }
 0x613   : > { %11949 = vmatprep.mubr.bf16.mxu1 %v18053_v36  ;;  %11198 = vmatpush3.bf16.msra.mxu1 %v12405_v1 }
 0x614   : > { %11199 = vmatprep.subr.bf16.mxu1 %v12406_v32 }
 0x617   : > { %11200 = vmatpush3.bf16.msra.mxu1 %v12407_v52 }
 0x618   : > { %11201 = vmatprep.subr.bf16.mxu1 %v12408_v29 }
 0x61a   : > { %11950 = vmatmul.mubr.bf16.gmra.mrb[176].mxu1 %v18054_v2 }
 0x61b   : > { %11953 = vmatprep.mubr.bf16.mxu1 %v18055_v53  ;;  %11202 = vmatpush3.bf16.msra.mxu1 %v12409_v43 }
 0x61c   : > { %11203 = vmatprep.subr.bf16.mxu1 %v12410_v20 }
 0x61f   : > { %11204 = vmatpush3.bf16.msra.mxu1 %v12411_v35 }
 0x622   : > { %11954 = vmatmul.mubr.bf16.gmra.mrb[180].mxu1 %v18056_v18 }
 0x623   : > { %11957 = vmatprep.mubr.bf16.mxu1 %v18057_v22 }
 0x62a   : > { %11958 = vmatmul.mubr.bf16.gmra.mrb[184].mxu1 %v18058_v51 }
 0x62b   : > { %11961 = vmatprep.mubr.bf16.mxu1 %v18059_v47 }
 0x632   : > { %11962 = vmatmul.mubr.bf16.gmra.mrb[188].mxu1 %v18060_v6 }
 0x633   : > { %11965 = vmatprep.mubr.bf16.mxu1 %v18061_v10 }
 0x63a   : > { %11966 = vmatmul.mubr.bf16.gmra.mrb[192].mxu1 %v18062_v12 }
 0x695   : > { %v11891_v31 = vpop.f32.mrb[132].mxu1 }
 0x696   : > { %v16492_v54 = vadd.f32 %v11891_v31, %v16489_v21  ;;  %v8026_v41 = vpop.f32.mrb[133].mxu1 }
 0x697   : > { %v16495_v33 = vadd.f32 %v16489_v21, %v8026_v41  ;;  %v11892_v7 = vpop.f32.mrb[134].mxu1 }
 0x698   : > { %v10534_v15 = vmul.f32 -1.442695, %v16492_v54  ;;  %v16499_v58 = vadd.f32 %v11892_v7, %v16489_v21  ;;  %v8029_v3 = vpop.f32.mrb[135].mxu1 }
 0x699   : > { %v10532_v23 = vmul.f32 -1.442695, %v16495_v33  ;;  %v16503_v60 = vadd.f32 %v16489_v21, %v8029_v3 }
 0x69a   : > { %12828 = vpow2.f32 %v10534_v15  ;;  %v10535_v28 = vmul.f32 -1.442695, %v16499_v58 }
 0x69b   : > { %12830 = vpow2.f32 %v10532_v23  ;;  %v10533_v17 = vmul.f32 -1.442695, %v16503_v60 }
 0x69c   : > { %12832 = vpow2.f32 %v10535_v28 }
 0x69d   : > { %12834 = vpow2.f32 %v10533_v17  ;;  %v11895_v40 = vpop.f32.mrb[136].mxu1 }
 0x69e   : > { %v16508_v14 = vadd.f32 %v11895_v40, %v16489_v21  ;;  %v8042_v9 = vpop.f32.mrb[137].mxu1 }
 0x69f   : > { %v16511_v16 = vadd.f32 %v16489_v21, %v8042_v9  ;;  %v11896_v45 = vpop.f32.mrb[138].mxu1 }
 0x6a0   : > { %v10538_v44 = vmul.f32 -1.442695, %v16508_v14  ;;  %v16515_v13 = vadd.f32 %v11896_v45, %v16489_v21  ;;  %v8045_v8 = vpop.f32.mrb[139].mxu1 }
 0x6a1   : > { %v10536_v39 = vmul.f32 -1.442695, %v16511_v16  ;;  %v16519_v26 = vadd.f32 %v16489_v21, %v8045_v8 }
 0x6a2   : > { %12836 = vpow2.f32 %v10538_v44  ;;  %v10539_v46 = vmul.f32 -1.442695, %v16515_v13 }
 0x6a3   : > { %12838 = vpow2.f32 %v10536_v39  ;;  %v10537_v57 = vmul.f32 -1.442695, %v16519_v26 }
 0x6a4   : > { %v12829_v61 = vpop.eup %12828  ;;  %12840 = vpow2.f32 %v10539_v46 }
 0x6a5   : > { %v12831_v4 = vpop.eup %12830  ;;  %v8251_v11 = vadd.f32 1.0, %v12829_v61  ;;  %12842 = vpow2.f32 %v10537_v57  ;;  %v11899_v38 = vpop.f32.mrb[140].mxu1 }
 0x6a6   : > { %v12833_v48 = vpop.eup %12832  ;;  %v8249_v63 = vadd.f32 1.0, %v12831_v4  ;;  %v16524_v34 = vadd.f32 %v11899_v38, %v16489_v21  ;;  %v8058_v24 = vpop.f32.mrb[141].mxu1 }
 0x6a7   : > { %v12835_v27 = vpop.eup %12834  ;;  %12844 = vrcp.f32 %v8251_v11  ;;  %v8252_v55 = vadd.f32 1.0, %v12833_v48  ;;  %v16527_v49 = vadd.f32 %v16489_v21, %v8058_v24  ;;  %v11900_v5 = vpop.f32.mrb[142].mxu1 }
 0x6a8   : > { %12846 = vrcp.f32 %v8249_v63  ;;  %v8250_v0 = vadd.f32 1.0, %v12835_v27  ;;  %v10542_v36 = vmul.f32 -1.442695, %v16524_v34  ;;  %v16531_v2 = vadd.f32 %v11900_v5, %v16489_v21  ;;  %v8061_v53 = vpop.f32.mrb[143].mxu1 }
 0x6a9   : > { %12848 = vrcp.f32 %v8252_v55  ;;  %v10540_v18 = vmul.f32 -1.442695, %v16527_v49  ;;  %v16535_v22 = vadd.f32 %v16489_v21, %v8061_v53 }
 0x6aa   : > { %12850 = vrcp.f32 %v8250_v0  ;;  %v10543_v51 = vmul.f32 -1.442695, %v16531_v2 }
 0x6ab   : > { %12852 = vpow2.f32 %v10542_v36  ;;  %v10541_v47 = vmul.f32 -1.442695, %v16535_v22 }
 0x6ac   : > { %v12837_v6 = vpop.eup %12836  ;;  %12854 = vpow2.f32 %v10540_v18 }
 0x6ad   : > { %v12839_v10 = vpop.eup %12838  ;;  %v8255_v12 = vadd.f32 1.0, %v12837_v6  ;;  %12856 = vpow2.f32 %v10543_v51  ;;  %v11903_v59 = vpop.f32.mrb[144].mxu1 }
 0x6ae   : > { %v12841_v25 = vpop.eup %12840  ;;  %v8253_v37 = vadd.f32 1.0, %v12839_v10  ;;  %12858 = vpow2.f32 %v10541_v47  ;;  %v16540_v30 = vadd.f32 %v11903_v59, %v16489_v21  ;;  %v8074_v50 = vpop.f32.mrb[145].mxu1 }
 0x6af   : > { %v12843_v56 = vpop.eup %12842  ;;  %12860 = vrcp.f32 %v8255_v12  ;;  %v8256_v62 = vadd.f32 1.0, %v12841_v25  ;;  %v16543_v19 = vadd.f32 %v16489_v21, %v8074_v50  ;;  %v11904_v42 = vpop.f32.mrb[146].mxu1 }
 0x6b0   : > { %12862 = vrcp.f32 %v8253_v37  ;;  %v8254_v1 = vadd.f32 1.0, %v12843_v56  ;;  %v10546_v32 = vmul.f32 -1.442695, %v16540_v30  ;;  %v16547_v52 = vadd.f32 %v11904_v42, %v16489_v21  ;;  %v8077_v29 = vpop.f32.mrb[147].mxu1 }
 0x6b1   : > { %v12845_v43 = vpop.eup %12844  ;;  %12864 = vrcp.f32 %v8256_v62  ;;  %v10544_v20 = vmul.f32 -1.442695, %v16543_v19  ;;  %v16551_v35 = vadd.f32 %v16489_v21, %v8077_v29 }
 0x6b2   : > { %v12847_v31 = vpop.eup %12846  ;;  %12866 = vrcp.f32 %v8254_v1  ;;  %v10547_v41 = vmul.f32 -1.442695, %v16547_v52  ;;  %v16556_v23 = vmul.f32 %v12845_v43, %v16492_v54 }
 0x6b3   : > { %v12849_v7 = vpop.eup %12848  ;;  %12868 = vpow2.f32 %v10546_v32  ;;  %v10545_v15 = vmul.f32 -1.442695, %v16551_v35  ;;  %v16562_v40 = vmul.f32 %v12847_v31, %v16495_v33 }
 0x6b4   : > { %v12851_v3 = vpop.eup %12850  ;;  %v16559_v28 = vmul.f32 %v12849_v7, %v16499_v58  ;;  %12870 = vpow2.f32 %v10544_v20 }
 0x6b5   : > { %v12853_v17 = vpop.eup %12852  ;;  %v16565_v9 = vmul.f32 %v12851_v3, %v16503_v60  ;;  %12872 = vpow2.f32 %v10547_v41  ;;  %v11907_v45 = vpop.f32.mrb[148].mxu1 }
 0x6b6   : > { %v12855_v44 = vpop.eup %12854  ;;  %v8259_v8 = vadd.f32 1.0, %v12853_v17  ;;  %12874 = vpow2.f32 %v10545_v15  ;;  %v16568_v39 = vadd.f32 %v11907_v45, %v16489_v21  ;;  %v8090_v54 = vpop.f32.mrb[149].mxu1 }
 0x6b7   : > { %v12857_v46 = vpop.eup %12856  ;;  %v8257_v57 = vadd.f32 1.0, %v12855_v44  ;;  %v16575_v60 = vadd.f32 %v16489_v21, %v8090_v54  ;;  %v11908_v61 = vpop.f32.mrb[150].mxu1 }
 0x6b8   : > { %v12859_v4 = vpop.eup %12858  ;;  %12876 = vrcp.f32 %v8259_v8  ;;  %v8260_v11 = vadd.f32 1.0, %v12857_v46  ;;  %v10550_v38 = vmul.f32 -1.442695, %v16568_v39  ;;  %v16579_v48 = vadd.f32 %v11908_v61, %v16489_v21  ;;  %v8093_v63 = vpop.f32.mrb[151].mxu1 }
 0x6b9   : > { %v12861_v24 = vpop.eup %12860  ;;  %12878 = vrcp.f32 %v8257_v57  ;;  %v8258_v27 = vadd.f32 1.0, %v12859_v4  ;;  %v10548_v55 = vmul.f32 -1.442695, %v16575_v60  ;;  %v16583_v5 = vadd.f32 %v16489_v21, %v8093_v63 }
 0x6ba   : > { %v12863_v0 = vpop.eup %12862  ;;  %12880 = vrcp.f32 %v8260_v11  ;;  %v10551_v36 = vmul.f32 -1.442695, %v16579_v48  ;;  %v16588_v47 = vmul.f32 %v12861_v24, %v16508_v14 }
 0x6bb   : > { %v12865_v53 = vpop.eup %12864  ;;  %12882 = vrcp.f32 %v8258_v27  ;;  %v10549_v18 = vmul.f32 -1.442695, %v16583_v5  ;;  %v16594_v12 = vmul.f32 %v12863_v0, %v16511_v16 }
 0x6bc   : > { %v12867_v51 = vpop.eup %12866  ;;  %v16591_v6 = vmul.f32 %v12865_v53, %v16515_v13  ;;  %12884 = vpow2.f32 %v10550_v38 }
 0x6bd   : > { %v12869_v10 = vpop.eup %12868  ;;  %v16597_v59 = vmul.f32 %v12867_v51, %v16519_v26  ;;  %12886 = vpow2.f32 %v10548_v55  ;;  %v11911_v25 = vpop.f32.mrb[152].mxu1 }
 0x6be   : > { %v12871_v37 = vpop.eup %12870  ;;  %v8263_v50 = vadd.f32 1.0, %v12869_v10  ;;  %12888 = vpow2.f32 %v10551_v36  ;;  %v16600_v56 = vadd.f32 %v11911_v25, %v16489_v21  ;;  %v8106_v14 = vpop.f32.mrb[153].mxu1 }
 0x6bf   : > { %v12873_v62 = vpop.eup %12872  ;;  %v8261_v42 = vadd.f32 1.0, %v12871_v37  ;;  %12890 = vpow2.f32 %v10549_v18  ;;  %v16605_v16 = vadd.f32 %v16489_v21, %v8106_v14  ;;  %v11912_v26 = vpop.f32.mrb[154].mxu1 }
 0x6c0   : > { %v12875_v32 = vpop.eup %12874  ;;  %12892 = vrcp.f32 %v8263_v50  ;;  %v8264_v29 = vadd.f32 1.0, %v12873_v62  ;;  %v10554_v43 = vmul.f32 -1.442695, %v16600_v56  ;;  %v16611_v20 = vadd.f32 %v11912_v26, %v16489_v21  ;;  %v8109_v31 = vpop.f32.mrb[155].mxu1 }
 0x6c1   : > { %12894 = vrcp.f32 %v8261_v42  ;;  %v8262_v41 = vadd.f32 1.0, %v12875_v32  ;;  %v10552_v7 = vmul.f32 -1.442695, %v16605_v16  ;;  %v16615_v15 = vadd.f32 %v16489_v21, %v8109_v31 }
 0x6c2   : > { %v12877_v3 = vpop.eup %12876  ;;  %12896 = vrcp.f32 %v8264_v29  ;;  %v10555_v17 = vmul.f32 -1.442695, %v16611_v20 }
 0x6c3   : > { %v12879_v45 = vpop.eup %12878  ;;  %12898 = vrcp.f32 %v8262_v41  ;;  %v10553_v44 = vmul.f32 -1.442695, %v16615_v15  ;;  %v16620_v46 = vmul.f32 %v12877_v3, %v16524_v34 }
 0x6c4   : > { %v12881_v8 = vpop.eup %12880  ;;  %12900 = vpow2.f32 %v10554_v43  ;;  %v16626_v11 = vmul.f32 %v12879_v45, %v16527_v49 }
 0x6c5   : > { %v12883_v54 = vpop.eup %12882  ;;  %v16623_v57 = vmul.f32 %v12881_v8, %v16531_v2  ;;  %12902 = vpow2.f32 %v10552_v7  ;;  %v11915_v61 = vpop.f32.mrb[156].mxu1 }
 0x6c6   : > { %v12885_v4 = vpop.eup %12884  ;;  %v16629_v38 = vmul.f32 %v12883_v54, %v16535_v22  ;;  %12904 = vpow2.f32 %v10555_v17  ;;  %v16632_v63 = vadd.f32 %v11915_v61, %v16489_v21  ;;  %v8122_v24 = vpop.f32.mrb[157].mxu1 }
 0x6c7   : > { %v12887_v27 = vpop.eup %12886  ;;  %v8267_v34 = vadd.f32 1.0, %v12885_v4  ;;  %12906 = vpow2.f32 %v10553_v44  ;;  %v16635_v2 = vadd.f32 %v16489_v21, %v8122_v24  ;;  %v11916_v55 = vpop.f32.mrb[158].mxu1 }
 0x6c8   : > { %v12889_v49 = vpop.eup %12888  ;;  %v8265_v36 = vadd.f32 1.0, %v12887_v27  ;;  %v16640_v22 = vadd.f32 %v11916_v55, %v16489_v21  ;;  %v8125_v53 = vpop.f32.mrb[159].mxu1  ;;  %v10558_v25 = vmul.f32 -1.442695, %v16632_v63 }
 0x6c9   : > { %v12891_v51 = vpop.eup %12890  ;;  %12908 = vrcp.f32 %v8267_v34  ;;  %v8268_v10 = vadd.f32 1.0, %v12889_v49  ;;  %v16646_v37 = vadd.f32 %v16489_v21, %v8125_v53  ;;  %v10556_v62 = vmul.f32 -1.442695, %v16635_v2 }
 0x6ca   : > { %v12893_v50 = vpop.eup %12892  ;;  %12910 = vrcp.f32 %v8265_v36  ;;  %v8266_v14 = vadd.f32 1.0, %v12891_v51  ;;  %v10559_v26 = vmul.f32 -1.442695, %v16640_v22 }
 0x6cb   : > { %v12895_v42 = vpop.eup %12894  ;;  %12912 = vrcp.f32 %v8268_v10  ;;  %v10557_v29 = vmul.f32 -1.442695, %v16646_v37  ;;  %v16652_v31 = vmul.f32 %v12893_v50, %v16540_v30 }
 0x6cc   : > { %v12897_v32 = vpop.eup %12896  ;;  %12914 = vrcp.f32 %v8266_v14  ;;  %v16669_v24 = vmul.f32 %v12895_v42, %v16543_v19  ;;  %v16685_v14 = vld [vmem:[%s17706_s4] ss:$0 sm:$0xff] }
 0x6cd   : > { %v12899_v43 = vpop.eup %12898  ;;  %v16655_v41 = vmul.f32 %v12897_v32, %v16547_v52  ;;  %12916 = vpow2.f32 %v10558_v25  ;;  %v11919_v7 = vpop.f32.mrb[160].mxu1 }
 0x6ce   : > { %v12901_v3 = vpop.eup %12900  ;;  %v16658_v17 = vmul.f32 %v12899_v43, %v16551_v35  ;;  %12918 = vpow2.f32 %v10556_v62  ;;  %v16661_v45 = vadd.f32 %v11919_v7, %v16489_v21  ;;  %v8138_v44 = vpop.f32.mrb[161].mxu1 }
 0x6cf   : > { %v12903_v8 = vpop.eup %12902  ;;  %v8271_v54 = vadd.f32 1.0, %v12901_v3  ;;  %12920 = vpow2.f32 %v10559_v26  ;;  %v16664_v30 = vadd.f32 %v16489_v21, %v8138_v44  ;;  %v11920_v61 = vpop.f32.mrb[162].mxu1 }
 0x6d0   : > { %v12905_v4 = vpop.eup %12904  ;;  %v8269_v35 = vadd.f32 1.0, %v12903_v8  ;;  %12922 = vpow2.f32 %v10557_v29  ;;  %v16672_v27 = vadd.f32 %v11920_v61, %v16489_v21  ;;  %v8141_v34 = vpop.f32.mrb[163].mxu1  ;;  %v10562_v36 = vmul.f32 -1.442695, %v16661_v45 }
 0x6d1   : > { %v12907_v55 = vpop.eup %12906  ;;  %12924 = vrcp.f32 %v8271_v54  ;;  %v8272_v49 = vadd.f32 1.0, %v12905_v4  ;;  %v16676_v53 = vadd.f32 %v16489_v21, %v8141_v34  ;;  %v10560_v10 = vmul.f32 -1.442695, %v16664_v30 }
 0x6d2   : > { %12926 = vrcp.f32 %v8269_v35  ;;  %v8270_v51 = vadd.f32 1.0, %v12907_v55  ;;  %v10563_v50 = vmul.f32 -1.442695, %v16672_v27 }
 0x6d3   : > { %v12909_v25 = vpop.eup %12908  ;;  %12928 = vrcp.f32 %v8272_v49  ;;  %v10561_v21 = vmul.f32 -1.442695, %v16676_v53 }
 0x6d4   : > { %v12911_v62 = vpop.eup %12910  ;;  %12930 = vrcp.f32 %v8270_v51 }
 0x6d5   : > { %v12913_v42 = vpop.eup %12912  ;;  %12932 = vpow2.f32 %v10562_v36  ;;  %v11939_v26 = vpop.f32.mrb[164].mxu1  ;;  %v16695_v44 = vmul.f32 %v12911_v62, %v16575_v60 }
 0x6d6   : > { %v12915_v32 = vpop.eup %12914  ;;  %v16689_v29 = vmul.f32 %v12913_v42, %v16579_v48  ;;  %12934 = vpow2.f32 %v10560_v10  ;;  %v16692_v43 = vadd.f32 %v11939_v26, %v16685_v14  ;;  %v8482_v7 = vpop.f32.mrb[165].mxu1  ;;  %v16704_v48 = vmul.f32 %v12909_v25, %v16568_v39 }
 0x6d7   : > { %v12917_v3 = vpop.eup %12916  ;;  %v16698_v8 = vmul.f32 %v12915_v32, %v16583_v5  ;;  %12936 = vpow2.f32 %v10563_v50  ;;  %v16701_v54 = vadd.f32 %v16685_v14, %v8482_v7  ;;  %v11940_v61 = vpop.f32.mrb[166].mxu1 }
 0x6d8   : > { %v12919_v4 = vpop.eup %12918  ;;  %v8275_v35 = vadd.f32 1.0, %v12917_v3  ;;  %12938 = vpow2.f32 %v10561_v21  ;;  %v16707_v34 = vadd.f32 %v11940_v61, %v16685_v14  ;;  %v8485_v55 = vpop.f32.mrb[167].mxu1  ;;  %v10575_v39 = vmul.f32 -1.442695, %v16692_v43 }
 0x6d9   : > { %v12921_v60 = vpop.eup %12920  ;;  %v8273_v49 = vadd.f32 1.0, %v12919_v4  ;;  %v16710_v5 = vadd.f32 %v16685_v14, %v8485_v55  ;;  %v10573_v21 = vmul.f32 -1.442695, %v16701_v54 }
 0x6da   : > { %v12923_v51 = vpop.eup %12922  ;;  %12940 = vrcp.f32 %v8275_v35  ;;  %v8276_v10 = vadd.f32 1.0, %v12921_v60  ;;  %v10576_v26 = vmul.f32 -1.442695, %v16707_v34 }
 0x6db   : > { %v12925_v50 = vpop.eup %12924  ;;  %12942 = vrcp.f32 %v8273_v49  ;;  %v8274_v62 = vadd.f32 1.0, %v12923_v51  ;;  %v10574_v7 = vmul.f32 -1.442695, %v16710_v5 }
 0x6dc   : > { %v12927_v42 = vpop.eup %12926  ;;  %12944 = vrcp.f32 %v8276_v10 }
 0x6dd   : > { %v12929_v32 = vpop.eup %12928  ;;  %12946 = vrcp.f32 %v8274_v62  ;;  %v11943_v3 = vpop.f32.mrb[168].mxu1  ;;  %v16733_v25 = vmul.f32 %v12927_v42, %v16605_v16 }
 0x6de   : > { %v12931_v61 = vpop.eup %12930  ;;  %12948 = vpow2.f32 %v10575_v39  ;;  %v16721_v4 = vadd.f32 %v11943_v3, %v16685_v14  ;;  %v8498_v35 = vpop.f32.mrb[169].mxu1  ;;  %v16724_v60 = vmul.f32 %v12929_v32, %v16611_v20  ;;  %v16739_v32 = vmul.f32 %v12925_v50, %v16600_v56 }
 0x6df   : > { %v12933_v55 = vpop.eup %12932  ;;  %v16727_v49 = vmul.f32 %v12931_v61, %v16615_v15  ;;  %12950 = vpow2.f32 %v10573_v21  ;;  %v16730_v51 = vadd.f32 %v16685_v14, %v8498_v35  ;;  %v11944_v10 = vpop.f32.mrb[170].mxu1 }
 0x6e0   : > { %v12935_v62 = vpop.eup %12934  ;;  %v8279_v39 = vadd.f32 1.0, %v12933_v55  ;;  %12952 = vpow2.f32 %v10576_v26  ;;  %v16736_v3 = vadd.f32 %v11944_v10, %v16685_v14  ;;  %v8501_v36 = vpop.f32.mrb[171].mxu1  ;;  %v10579_v16 = vmul.f32 -1.442695, %v16721_v4 }
 0x6e1   : > { %v12937_v20 = vpop.eup %12936  ;;  %v8277_v15 = vadd.f32 1.0, %v12935_v62  ;;  %12954 = vpow2.f32 %v10574_v7  ;;  %v16742_v21 = vadd.f32 %v16685_v14, %v8501_v36  ;;  %v10577_v55 = vmul.f32 -1.442695, %v16730_v51 }
 0x6e2   : > { %v12939_v61 = vpop.eup %12938  ;;  %12956 = vrcp.f32 %v8279_v39  ;;  %v8280_v35 = vadd.f32 1.0, %v12937_v20  ;;  %v10580_v36 = vmul.f32 -1.442695, %v16736_v3 }
 0x6e3   : > { %12958 = vrcp.f32 %v8277_v15  ;;  %v8278_v26 = vadd.f32 1.0, %v12939_v61  ;;  %v10578_v10 = vmul.f32 -1.442695, %v16742_v21 }
 0x6e4   : > { %v12941_v50 = vpop.eup %12940  ;;  %12960 = vrcp.f32 %v8280_v35 }
 0x6e5   : > { %v12943_v7 = vpop.eup %12942  ;;  %12962 = vrcp.f32 %v8278_v26  ;;  %v11947_v62 = vpop.f32.mrb[172].mxu1 }
 0x6e6   : > { %v12945_v39 = vpop.eup %12944  ;;  %12964 = vpow2.f32 %v10579_v16  ;;  %v16753_v20 = vadd.f32 %v11947_v62, %v16685_v14  ;;  %v8514_v15 = vpop.f32.mrb[173].mxu1  ;;  %v16756_v42 = vmul.f32 %v12943_v7, %v16635_v2 }
 0x6e7   : > { %v12947_v61 = vpop.eup %12946  ;;  %v16759_v56 = vmul.f32 %v12945_v39, %v16640_v22  ;;  %12966 = vpow2.f32 %v10577_v55  ;;  %v16762_v35 = vadd.f32 %v16685_v14, %v8514_v15  ;;  %v11948_v26 = vpop.f32.mrb[174].mxu1  ;;  %v16772_v22 = vmul.f32 %v12941_v50, %v16632_v63 }
 0x6e8   : > { %18063 = vst [vmem:[#allocation67_spill] sm:$0xff] %v16756_v42  ;;  %v12949_v52 = vpop.eup %12948  ;;  %v16765_v19 = vmul.f32 %v12947_v61, %v16646_v37  ;;  %12968 = vpow2.f32 %v10580_v36  ;;  %v10583_v16 = vmul.f32 -1.442695, %v16753_v20  ;;  %v16769_v62 = vadd.f32 %v11948_v26, %v16685_v14  ;;  %v8517_v2 = vpop.f32.mrb[175].mxu1 }
 0x6e9   : > { %18064 = vst [vmem:[#allocation71_spill] sm:$0xff] %v16759_v56  ;;  %v12951_v7 = vpop.eup %12950  ;;  %18065 = vst [vmem:[#allocation74_spill] sm:$0xff] %v16772_v22  ;;  %v8707_v55 = vadd.f32 1.0, %v12949_v52  ;;  %12970 = vpow2.f32 %v10578_v10  ;;  %v16775_v39 = vadd.f32 %v16685_v14, %v8517_v2  ;;  %v10581_v26 = vmul.f32 -1.442695, %v16762_v35 }
 0x6ea   : > { %v12953_v15 = vpop.eup %12952  ;;  %v8705_v0 = vadd.f32 1.0, %v12951_v7  ;;  %12972 = vpow2.f32 %v10583_v16  ;;  %v10584_v10 = vmul.f32 -1.442695, %v16769_v62 }
 0x6eb   : > { %v12955_v36 = vpop.eup %12954  ;;  %12974 = vrcp.f32 %v8707_v55  ;;  %v8708_v61 = vadd.f32 1.0, %v12953_v15  ;;  %v10582_v16 = vmul.f32 -1.442695, %v16775_v39 }
 0x6ec   : > { %v12957_v50 = vpop.eup %12956  ;;  %12976 = vrcp.f32 %v8705_v0  ;;  %v8706_v52 = vadd.f32 1.0, %v12955_v36 }
 0x6ed   : > { %v12959_v2 = vpop.eup %12958  ;;  %12978 = vrcp.f32 %v8708_v61  ;;  %v11951_v7 = vpop.f32.mrb[176].mxu1  ;;  %v16788_v13 = vmul.f32 %v12957_v50, %v16661_v45 }
 0x6ee   : > { %v12961_v18 = vpop.eup %12960  ;;  %12980 = vrcp.f32 %v8706_v52  ;;  %v16785_v55 = vadd.f32 %v11951_v7, %v16685_v14  ;;  %v8530_v15 = vpop.f32.mrb[177].mxu1  ;;  %v16791_v0 = vmul.f32 %v12959_v2, %v16664_v30 }
 0x6ef   : > { %v12963_v37 = vpop.eup %12962  ;;  %18066 = vst [vmem:[#allocation75_spill] sm:$0xff] %v16788_v13  ;;  %v16794_v36 = vmul.f32 %v12961_v18, %v16672_v27  ;;  %12982 = vpow2.f32 %v10581_v26  ;;  %v11952_v61 = vpop.f32.mrb[178].mxu1  ;;  %v16801_v7 = vadd.f32 %v16685_v14, %v8530_v15 }
 0x6f0   : > { %18067 = vst [vmem:[#allocation76_spill] sm:$0xff] %v16791_v0  ;;  %v12965_v63 = vpop.eup %12964  ;;  %v16797_v1 = vmul.f32 %v12963_v37, %v16676_v53  ;;  %12984 = vpow2.f32 %v10584_v10  ;;  %v10587_v52 = vmul.f32 -1.442695, %v16785_v55  ;;  %v8533_v45 = vpop.f32.mrb[179].mxu1  ;;  %v16806_v18 = vadd.f32 %v11952_v61, %v16685_v14 }
 0x6f1   : > { %18068 = vst [vmem:[#allocation77_spill] sm:$0xff] %v16794_v36  ;;  %v12967_v50 = vpop.eup %12966  ;;  %v8711_v2 = vadd.f32 1.0, %v12965_v63  ;;  %12986 = vpow2.f32 %v10582_v16  ;;  %v16809_v53 = vadd.f32 %v16685_v14, %v8533_v45  ;;  %v10585_v63 = vmul.f32 -1.442695, %v16801_v7 }
 0x6f2   : > { %18069 = vst [vmem:[#allocation82_spill] sm:$0xff] %v16797_v1  ;;  %v12969_v27 = vpop.eup %12968  ;;  %v8709_v26 = vadd.f32 1.0, %v12967_v50  ;;  %12988 = vpow2.f32 %v10587_v52  ;;  %v10588_v50 = vmul.f32 -1.442695, %v16806_v18 }
 0x6f3   : > { %v12971_v37 = vpop.eup %12970  ;;  %12990 = vrcp.f32 %v8711_v2  ;;  %v8712_v10 = vadd.f32 1.0, %v12969_v27  ;;  %v10586_v45 = vmul.f32 -1.442695, %v16809_v53 }
 0x6f4   : > { %v12973_v58 = vpop.eup %12972  ;;  %12992 = vrcp.f32 %v8709_v26  ;;  %v8710_v30 = vadd.f32 1.0, %v12971_v37 }
 0x6f5   : > { %v12975_v16 = vpop.eup %12974  ;;  %12994 = vrcp.f32 %v8712_v10  ;;  %v8715_v61 = vadd.f32 1.0, %v12973_v58  ;;  %v11955_v52 = vpop.f32.mrb[180].mxu1 }
 0x6f6   : > { %v12977_v33 = vpop.eup %12976  ;;  %12996 = vrcp.f32 %v8710_v30  ;;  %v16817_v2 = vadd.f32 %v11955_v52, %v16685_v14  ;;  %v8546_v27 = vpop.f32.mrb[181].mxu1  ;;  %v8803_v26 = vmul.f32 %v12975_v16, %v16692_v43 }
 0x6f7   : > { %v12979_v15 = vpop.eup %12978  ;;  %12998 = vrcp.f32 %v8715_v61  ;;  %v16821_v37 = vadd.f32 %v16685_v14, %v8546_v27  ;;  %v11956_v10 = vpop.f32.mrb[182].mxu1  ;;  %v8801_v1 = vmul.f32 %v12977_v33, %v16701_v54 }
 0x6f8   : > { %v12981_v58 = vpop.eup %12980  ;;  %v8804_v13 = vmul.f32 %v12979_v15, %v16707_v34  ;;  %13000 = vpow2.f32 %v10585_v63  ;;  %v10591_v30 = vmul.f32 -1.442695, %v16817_v2  ;;  %v16826_v36 = vadd.f32 %v11956_v10, %v16685_v14  ;;  %v8549_v52 = vpop.f32.mrb[183].mxu1 }
 0x6f9   : > { %v12983_v0 = vpop.eup %12982  ;;  %v8802_v43 = vmul.f32 %v12981_v58, %v16710_v5  ;;  %13002 = vpow2.f32 %v10588_v50  ;;  %v16831_v27 = vadd.f32 %v16685_v14, %v8549_v52  ;;  %v10589_v42 = vmul.f32 -1.442695, %v16821_v37 }
 0x6fa   : > { %v12985_v16 = vpop.eup %12984  ;;  %v8713_v61 = vadd.f32 1.0, %v12983_v0  ;;  %13004 = vpow2.f32 %v10586_v45  ;;  %v8850_v34 = vpack.c.bf16 %v8804_v13, %v8803_v26  ;;  %v10592_v5 = vmul.f32 -1.442695, %v16826_v36 }
 0x6fb   : > { %v12987_v15 = vpop.eup %12986  ;;  %v8716_v63 = vadd.f32 1.0, %v12985_v16  ;;  %13006 = vpow2.f32 %v10591_v30  ;;  %v8849_v22 = vpack.c.bf16 %v8802_v43, %v8801_v1  ;;  %v18070_v13 = vpack.c.bf16 %v16565_v9, %v16562_v40 }
 0x6fc   : > { %v12989_v10 = vpop.eup %12988  ;;  %13008 = vrcp.f32 %v8713_v61  ;;  %v8714_v56 = vadd.f32 1.0, %v12987_v15  ;;  %v10590_v1 = vmul.f32 -1.442695, %v16831_v27 }
 0x6fd   : > { %v12991_v33 = vpop.eup %12990  ;;  %13010 = vrcp.f32 %v8716_v63  ;;  %v8719_v54 = vadd.f32 1.0, %v12989_v10  ;;  %9032 = vmatprep.mubr.bf16.mxu1 %v8849_v22  ;;  %v11959_v0 = vpop.f32.mrb[184].mxu1 }
 0x6fe   : > { %v12993_v50 = vpop.eup %12992  ;;  %13012 = vrcp.f32 %v8714_v56  ;;  %9033 = vmatmul.mubr.bf16.vlgmr.msra.gmra.mrb[196].mxu1 %v18070_v13  ;;  %v16840_v45 = vadd.f32 %v11959_v0, %v16685_v14  ;;  %v8562_v26 = vpop.f32.mrb[185].mxu1  ;;  %v16843_v30 = vmul.f32 %v12991_v33, %v16721_v4 }
 0x6ff   : > { %v12995_v58 = vpop.eup %12994  ;;  %v8805_v22 = vmul.f32 %v12993_v50, %v16730_v51  ;;  %13014 = vrcp.f32 %v8719_v54  ;;  %9040 = vmatprep.mubr.bf16.mxu1 %v8850_v34  ;;  %v16847_v56 = vadd.f32 %v16685_v14, %v8562_v26  ;;  %v11960_v52 = vpop.f32.mrb[186].mxu1 }
 0x700   : > { %v12997_v40 = vpop.eup %12996  ;;  %v16850_v9 = vmul.f32 %v12995_v58, %v16736_v3  ;;  %13016 = vpow2.f32 %v10589_v42  ;;  %v10595_v43 = vmul.f32 -1.442695, %v16840_v45  ;;  %v16854_v16 = vadd.f32 %v11960_v52, %v16685_v14  ;;  %v8565_v4 = vpop.f32.mrb[187].mxu1 }
 0x701   : > { %v12999_v61 = vpop.eup %12998  ;;  %v8806_v51 = vmul.f32 %v12997_v40, %v16742_v21  ;;  %13018 = vpow2.f32 %v10592_v5  ;;  %v10593_v34 = vmul.f32 -1.442695, %v16847_v56  ;;  %v16859_v15 = vadd.f32 %v16685_v14, %v8565_v4 }
 0x702   : > { %v13001_v63 = vpop.eup %13000  ;;  %13020 = vpow2.f32 %v10590_v1  ;;  %v8852_v3 = vpack.c.bf16 %v16850_v9, %v16843_v30  ;;  %v10596_v5 = vmul.f32 -1.442695, %v16854_v16  ;;  %v18071_v1 = vpack.c.bf16 %v16559_v28, %v16556_v23 }
 0x703   : > { %v13003_v42 = vpop.eup %13002  ;;  %v8717_v10 = vadd.f32 1.0, %v13001_v63  ;;  %v8851_v33 = vpack.c.bf16 %v8806_v51, %v8805_v22  ;;  %13022 = vpow2.f32 %v10595_v43  ;;  %v10594_v30 = vmul.f32 -1.442695, %v16859_v15 }
 0x704   : > { %v13005_v54 = vpop.eup %13004  ;;  %v8720_v0 = vadd.f32 1.0, %v13003_v42  ;;  %13024 = vpow2.f32 %v10593_v34  ;;  %v16872_v9 = vmul.f32 %v12999_v61, %v16753_v20 }
 0x705   : > { %v13007_v50 = vpop.eup %13006  ;;  %13026 = vrcp.f32 %v8717_v10  ;;  %v8718_v21 = vadd.f32 1.0, %v13005_v54  ;;  %v11963_v13 = vpop.f32.mrb[188].mxu1 }
 0x706   : > { %v13009_v26 = vpop.eup %13008  ;;  %13028 = vrcp.f32 %v8720_v0  ;;  %v8723_v58 = vadd.f32 1.0, %v13007_v50  ;;  %9041 = vmatmul.mubr.bf16.gmra.mrb[200].mxu1 %v18071_v1  ;;  %v16869_v22 = vadd.f32 %v11963_v13, %v16685_v14  ;;  %v8578_v52 = vpop.f32.mrb[189].mxu1 }
 0x707   : > { %v13011_v40 = vpop.eup %13010  ;;  %v16875_v43 = vmul.f32 %v13009_v26, %v16762_v35  ;;  %13030 = vrcp.f32 %v8718_v21  ;;  %9048 = vmatprep.mubr.bf16.mxu1 %v8851_v33  ;;  %v16878_v4 = vadd.f32 %v16685_v14, %v8578_v52  ;;  %v11964_v23 = vpop.f32.mrb[190].mxu1 }
 0x708   : > { %v13013_v28 = vpop.eup %13012  ;;  %v16881_v51 = vmul.f32 %v13011_v40, %v16769_v62  ;;  %13032 = vrcp.f32 %v8723_v58  ;;  %v10599_v34 = vmul.f32 -1.442695, %v16869_v22  ;;  %v16885_v63 = vadd.f32 %v11964_v23, %v16685_v14  ;;  %v8581_v20 = vpop.f32.mrb[191].mxu1 }
 0x709   : > { %v13015_v61 = vpop.eup %13014  ;;  %v16888_v35 = vmul.f32 %v13013_v28, %v16775_v39  ;;  %13034 = vpow2.f32 %v10596_v5  ;;  %v10597_v42 = vmul.f32 -1.442695, %v16878_v4  ;;  %v16892_v10 = vadd.f32 %v16685_v14, %v8581_v20 }
 0x70a   : > { %v13017_v33 = vpop.eup %13016  ;;  %13036 = vpow2.f32 %v10594_v30  ;;  %v8854_v62 = vpack.c.bf16 %v16881_v51, %v16872_v9  ;;  %v18072_v30 = vpack.c.bf16 %v16597_v59, %v16594_v12  ;;  %v10600_v52 = vmul.f32 -1.442695, %v16885_v63 }
 0x70b   : > { %v13019_v54 = vpop.eup %13018  ;;  %v8721_v0 = vadd.f32 1.0, %v13017_v33  ;;  %v8853_v50 = vpack.c.bf16 %v16888_v35, %v16875_v43  ;;  %13038 = vpow2.f32 %v10599_v34  ;;  %v10598_v34 = vmul.f32 -1.442695, %v16892_v10 }
 0x70c   : > { %v13021_v21 = vpop.eup %13020  ;;  %v8724_v39 = vadd.f32 1.0, %v13019_v54  ;;  %13040 = vpow2.f32 %v10597_v42  ;;  %v16910_v12 = vmul.f32 %v13015_v61, %v16785_v55 }
 0x70d   : > { %v13023_v5 = vpop.eup %13022  ;;  %13042 = vrcp.f32 %v8721_v0  ;;  %v8722_v13 = vadd.f32 1.0, %v13021_v21  ;;  %v11967_v26 = vpop.f32.mrb[192].mxu1 }
 0x70e   : > { %v13025_v58 = vpop.eup %13024  ;;  %13044 = vrcp.f32 %v8724_v39  ;;  %v8727_v1 = vadd.f32 1.0, %v13023_v5  ;;  %9049 = vmatmul.mubr.bf16.gmra.mrb[204].mxu1 %v18072_v30  ;;  %v16903_v40 = vadd.f32 %v11967_v26, %v16685_v14  ;;  %v8594_v43 = vpop.f32.mrb[193].mxu1 }
 0x70f   : > { %v13027_v23 = vpop.eup %13026  ;;  %13046 = vrcp.f32 %v8722_v13  ;;  %v8725_v28 = vadd.f32 1.0, %v13025_v58  ;;  %9056 = vmatprep.mubr.bf16.mxu1 %v8852_v3  ;;  %v16907_v20 = vadd.f32 %v16685_v14, %v8594_v43  ;;  %v11968_v35 = vpop.f32.mrb[194].mxu1 }
 0x710   : > { %v13029_v42 = vpop.eup %13028  ;;  %13048 = vrcp.f32 %v8727_v1  ;;  %v10603_v59 = vmul.f32 -1.442695, %v16903_v40  ;;  %v16914_v33 = vadd.f32 %v11968_v35, %v16685_v14  ;;  %v8597_v54 = vpop.f32.mrb[195].mxu1  ;;  %v16924_v55 = vmul.f32 %v13027_v23, %v16801_v7 }
 0x711   : > { %v13031_v0 = vpop.eup %13030  ;;  %v16917_v3 = vmul.f32 %v13029_v42, %v16806_v18  ;;  %13050 = vrcp.f32 %v8725_v28  ;;  %v10601_v21 = vmul.f32 -1.442695, %v16907_v20  ;;  %v16921_v39 = vadd.f32 %v16685_v14, %v8597_v54 }
 0x712   : > { %v13033_v5 = vpop.eup %13032  ;;  %v16927_v61 = vmul.f32 %v13031_v0, %v16809_v53  ;;  %13052 = vpow2.f32 %v10600_v52  ;;  %v18073_v53 = vpack.c.bf16 %v16591_v6, %v16588_v47  ;;  %v10604_v43 = vmul.f32 -1.442695, %v16914_v33 }
 0x713   : > { %v13035_v13 = vpop.eup %13034  ;;  %13054 = vpow2.f32 %v10598_v34  ;;  %v8856_v18 = vpack.c.bf16 %v16917_v3, %v16910_v12  ;;  %v16938_v28 = vmul.f32 %v13033_v5, %v16817_v2  ;;  %v10602_v34 = vmul.f32 -1.442695, %v16921_v39  ;;  %v18085_v12 = vld [vmem:[#allocation74_spill] sm:$0xff]  ;;  %v18091_v3 = vld [vmem:[#allocation75_spill] sm:$0xff] }
 0x714   : > { %v13037_v26 = vpop.eup %13036  ;;  %v8728_v58 = vadd.f32 1.0, %v13035_v13  ;;  %v8855_v1 = vpack.c.bf16 %v16927_v61, %v16924_v55  ;;  %13056 = vpow2.f32 %v10603_v59 }
 0x715   : > { %v13039_v14 = vpop.eup %13038  ;;  %v8726_v30 = vadd.f32 1.0, %v13037_v26  ;;  %13058 = vpow2.f32 %v10601_v21 }
 0x716   : > { %v13041_v7 = vpop.eup %13040  ;;  %13060 = vrcp.f32 %v8728_v58  ;;  %9057 = vmatmul.mubr.bf16.gmra.mrb[208].mxu1 %v18073_v53  ;;  %v8731_v52 = vadd.f32 1.0, %v13039_v14 }
 0x717   : > { %v13043_v23 = vpop.eup %13042  ;;  %13062 = vrcp.f32 %v8726_v30  ;;  %9064 = vmatprep.mubr.bf16.mxu1 %v8853_v50  ;;  %v8729_v59 = vadd.f32 1.0, %v13041_v7 }
 0x718   : > { %v13045_v35 = vpop.eup %13044  ;;  %v16942_v42 = vmul.f32 %v13043_v23, %v16821_v37  ;;  %13064 = vrcp.f32 %v8731_v52 }
 0x719   : > { %v13047_v54 = vpop.eup %13046  ;;  %v16945_v47 = vmul.f32 %v13045_v35, %v16826_v36  ;;  %13066 = vpow2.f32 %v10604_v43  ;;  %v18074_v36 = vpack.c.bf16 %v16629_v38, %v16626_v11 }
 0x71a   : > { %v13049_v6 = vpop.eup %13048  ;;  %v8818_v0 = vmul.f32 %v13047_v54, %v16831_v27  ;;  %13068 = vpow2.f32 %v10602_v34 }
 0x71b   : > { %v13051_v2 = vpop.eup %13050  ;;  %v8858_v50 = vpack.c.bf16 %v16945_v47, %v16938_v28  ;;  %13070 = vrcp.f32 %v8729_v59  ;;  %v8823_v27 = vmul.f32 %v13049_v6, %v16840_v45 }
 0x71c   : > { %v13053_v21 = vpop.eup %13052  ;;  %v8857_v37 = vpack.c.bf16 %v8818_v0, %v16942_v42  ;;  %v8821_v30 = vmul.f32 %v13051_v2, %v16847_v56 }
 0x71d   : > { %v13055_v5 = vpop.eup %13054  ;;  %v8732_v55 = vadd.f32 1.0, %v13053_v21 }
 0x71e   : > { %v13057_v61 = vpop.eup %13056  ;;  %9065 = vmatmul.mubr.bf16.gmra.mrb[212].mxu1 %v18074_v36  ;;  %v8730_v13 = vadd.f32 1.0, %v13055_v5 }
 0x71f   : > { %v13059_v26 = vpop.eup %13058  ;;  %13072 = vrcp.f32 %v8732_v55  ;;  %9072 = vmatprep.mubr.bf16.mxu1 %v8854_v62  ;;  %v8735_v58 = vadd.f32 1.0, %v13057_v61  ;;  %v18075_v62 = vpack.c.bf16 %v16623_v57, %v16620_v46  ;;  %v18076_v46 = vpack.c.bf16 %v16658_v17, %v16669_v24 }
 0x720   : > { %v13061_v14 = vpop.eup %13060  ;;  %13074 = vrcp.f32 %v8730_v13  ;;  %v8733_v7 = vadd.f32 1.0, %v13059_v26  ;;  %v18077_v17 = vpack.c.bf16 %v16655_v41, %v16652_v31  ;;  %v18078_v24 = vpack.c.bf16 %v16698_v8, %v16695_v44  ;;  %v18082_v41 = vld [vmem:[#allocation67_spill] sm:$0xff] }
 0x721   : > { %v13063_v53 = vpop.eup %13062  ;;  %v8824_v52 = vmul.f32 %v13061_v14, %v16854_v16  ;;  %13076 = vrcp.f32 %v8735_v58  ;;  %v18081_v31 = vpack.c.bf16 %v16724_v60, %v16739_v32  ;;  %v18083_v44 = vpack.c.bf16 %v16765_v19, %v18082_v41  ;;  %v18084_v8 = vld [vmem:[#allocation71_spill] sm:$0xff]  ;;  %v17008_v19 = vld [vmem:[%s17714_s12] ss:$0 sm:$0xff] }
 0x722   : > { %v8822_v11 = vmul.f32 %v13063_v53, %v16859_v15  ;;  %v13065_v38 = vpop.eup %13064  ;;  %13078 = vrcp.f32 %v8733_v7 }
 0x723   : > { %v8860_v43 = vpack.c.bf16 %v8824_v52, %v8823_v27  ;;  %v13067_v45 = vpop.eup %13066  ;;  %v8827_v16 = vmul.f32 %v13065_v38, %v16869_v22 }
 0x724   : > { %v8859_v23 = vpack.c.bf16 %v8822_v11, %v8821_v30  ;;  %v13069_v28 = vpop.eup %13068  ;;  %v8736_v9 = vadd.f32 1.0, %v13067_v45 }
 0x725   : > { %v13071_v51 = vpop.eup %13070  ;;  %v8734_v56 = vadd.f32 1.0, %v13069_v28 }
 0x726   : > { %9073 = vmatmul.mubr.bf16.gmra.mrb[216].mxu1 %v18075_v62  ;;  %13080 = vrcp.f32 %v8736_v9  ;;  %v8825_v34 = vmul.f32 %v13071_v51, %v16878_v4 }
 0x727   : > { %9080 = vmatprep.mubr.bf16.mxu1 %v8855_v1  ;;  %13082 = vrcp.f32 %v8734_v56 }
 0x729   : > { %v13073_v15 = vpop.eup %13072 }
 0x72a   : > { %v13075_v35 = vpop.eup %13074  ;;  %v8828_v42 = vmul.f32 %v13073_v15, %v16885_v63 }
 0x72b   : > { %v8826_v59 = vmul.f32 %v13075_v35, %v16892_v10  ;;  %v13077_v47 = vpop.eup %13076 }
 0x72c   : > { %v8862_v54 = vpack.c.bf16 %v8828_v42, %v8827_v16  ;;  %v13079_v0 = vpop.eup %13078  ;;  %v8831_v57 = vmul.f32 %v13077_v47, %v16903_v40  ;;  %v18079_v40 = vpack.c.bf16 %v16689_v29, %v16704_v48  ;;  %v18086_v29 = vpack.c.bf16 %v18084_v8, %v18085_v12  ;;  %v18087_v48 = vld [vmem:[#allocation82_spill] sm:$0xff] }
 0x72d   : > { %v8861_v6 = vpack.c.bf16 %v8826_v59, %v8825_v34  ;;  %v8829_v4 = vmul.f32 %v13079_v0, %v16907_v20  ;;  %v18080_v20 = vpack.c.bf16 %v16727_v49, %v16733_v25  ;;  %v18090_v49 = vld [vmem:[#allocation77_spill] sm:$0xff] }
 0x72e   : > { %9081 = vmatmul.mubr.bf16.gmra.mrb[220].mxu1 %v18076_v46  ;;  %v18092_v60 = vpack.c.bf16 %v18090_v49, %v18091_v3 }
 0x72f   : > { %9088 = vmatprep.mubr.bf16.mxu1 %v8856_v18 }
 0x730   : > { %v13081_v22 = vpop.eup %13080 }
 0x731   : > { %v13083_v63 = vpop.eup %13082  ;;  %v8832_v10 = vmul.f32 %v13081_v22, %v16914_v33  ;;  %v18088_v33 = vld [vmem:[#allocation76_spill] sm:$0xff] }
 0x732   : > { %v8830_v1 = vmul.f32 %v13083_v63, %v16921_v39  ;;  %v18089_v25 = vpack.c.bf16 %v18087_v48, %v18088_v33 }
 0x733   : > { %v8864_v2 = vpack.c.bf16 %v8832_v10, %v8831_v57 }
 0x734   : > { %v8863_v21 = vpack.c.bf16 %v8830_v1, %v8829_v4 }
 0x736   : > { %9089 = vmatmul.mubr.bf16.gmra.mrb[224].mxu1 %v18077_v17 }
 0x737   : > { %9096 = vmatprep.mubr.bf16.mxu1 %v8857_v37 }
 0x73e   : > { %9097 = vmatmul.mubr.bf16.gmra.mrb[228].mxu1 %v18078_v24  ;;  %v17038_v24 = vld [vmem:[%s17715_s13] ss:$0 sm:$0xff] }
 0x73f   : > { %9104 = vmatprep.mubr.bf16.mxu1 %v8858_v50 }
 0x746   : > { %9105 = vmatmul.mubr.bf16.gmra.mrb[232].mxu1 %v18079_v40 }
 0x747   : > { %9112 = vmatprep.mubr.bf16.mxu1 %v8859_v23 }
 0x74e   : > { %9113 = vmatmul.mubr.bf16.gmra.mrb[236].mxu1 %v18080_v20 }
 0x74f   : > { %9120 = vmatprep.mubr.bf16.mxu1 %v8860_v43 }
 0x756   : > { %9121 = vmatmul.mubr.bf16.gmra.mrb[240].mxu1 %v18081_v31 }
 0x757   : > { %9128 = vmatprep.mubr.bf16.mxu1 %v8861_v6 }
 0x75e   : > { %9129 = vmatmul.mubr.bf16.gmra.mrb[244].mxu1 %v18083_v44 }
 0x75f   : > { %9136 = vmatprep.mubr.bf16.mxu1 %v8862_v54 }
 0x766   : > { %9137 = vmatmul.mubr.bf16.gmra.mrb[248].mxu1 %v18086_v29 }
 0x767   : > { %9144 = vmatprep.mubr.bf16.mxu1 %v8863_v21 }
 0x76e   : > { %9145 = vmatmul.mubr.bf16.gmra.mrb[252].mxu1 %v18089_v25 }
 0x76f   : > { %9152 = vmatprep.mubr.bf16.mxu1 %v8864_v2 }
 0x776   : > { %9153 = vmatmul.mubr.bf16.gmra.mrb[0].mxu1 %v18092_v60 }
 0x7d1   : > { %v11205_v32 = vpop.f32.mrb[196].mxu1 }
 0x7d2   : > { %v11206_v39 = vpop.f32.mrb[197].mxu1 }
 0x7d3   : > { %v11207_v18 = vadd.f32 %v11206_v39, %v11205_v32  ;;  %v11208_v50 = vpop.f32.mrb[198].mxu1 }
 0x7d4   : > { %v11209_v37 = vpop.f32.mrb[199].mxu1 }
 0x7d5   : > { %v9035_v5 = vadd.f32 %v11207_v18, %v17008_v19  ;;  %v11210_v55 = vadd.f32 %v11209_v37, %v11208_v50 }
 0x7d7   : > { %v10622_v61 = vmul.f32 -1.442695, %v9035_v5  ;;  %v9038_v36 = vadd.f32 %v11210_v55, %v17008_v19 }
 0x7d9   : > { %13084 = vpow2.f32 %v10622_v61  ;;  %v10623_v13 = vmul.f32 -1.442695, %v9038_v36  ;;  %v11211_v26 = vpop.f32.mrb[200].mxu1 }
 0x7da   : > { %v11212_v27 = vpop.f32.mrb[201].mxu1 }
 0x7db   : > { %13086 = vpow2.f32 %v10623_v13  ;;  %v11213_v58 = vadd.f32 %v11212_v27, %v11211_v26  ;;  %v11214_v14 = vpop.f32.mrb[202].mxu1 }
 0x7dc   : > { %v11215_v30 = vpop.f32.mrb[203].mxu1 }
 0x7dd   : > { %v17013_v7 = vadd.f32 %v11213_v58, %v17008_v19  ;;  %v11216_v53 = vadd.f32 %v11215_v30, %v11214_v14 }
 0x7df   : > { %v10624_v52 = vmul.f32 -1.442695, %v17013_v7  ;;  %v17017_v11 = vadd.f32 %v11216_v53, %v17008_v19 }
 0x7e1   : > { %13088 = vpow2.f32 %v10624_v52  ;;  %v10625_v38 = vmul.f32 -1.442695, %v17017_v11  ;;  %v11217_v43 = vpop.f32.mrb[204].mxu1 }
 0x7e2   : > { %v11218_v45 = vpop.f32.mrb[205].mxu1 }
 0x7e3   : > { %v13085_v23 = vpop.eup %13084  ;;  %13090 = vpow2.f32 %v10625_v38  ;;  %v11219_v28 = vadd.f32 %v11218_v45, %v11217_v43  ;;  %v11220_v9 = vpop.f32.mrb[206].mxu1 }
 0x7e4   : > { %v9257_v51 = vadd.f32 1.0, %v13085_v23  ;;  %v11221_v62 = vpop.f32.mrb[207].mxu1 }
 0x7e5   : > { %v13087_v56 = vpop.eup %13086  ;;  %v17021_v16 = vadd.f32 %v11219_v28, %v17008_v19  ;;  %v11222_v15 = vadd.f32 %v11221_v62, %v11220_v9 }
 0x7e6   : > { %13092 = vrcp.f32 %v9257_v51  ;;  %v9258_v34 = vadd.f32 1.0, %v13087_v56 }
 0x7e7   : > { %v10626_v35 = vmul.f32 -1.442695, %v17021_v16  ;;  %v17025_v42 = vadd.f32 %v11222_v15, %v17008_v19 }
 0x7e8   : > { %13094 = vrcp.f32 %v9258_v34 }
 0x7e9   : > { %13096 = vpow2.f32 %v10626_v35  ;;  %v10627_v59 = vmul.f32 -1.442695, %v17025_v42  ;;  %v11223_v54 = vpop.f32.mrb[208].mxu1 }
 0x7ea   : > { %v11224_v47 = vpop.f32.mrb[209].mxu1 }
 0x7eb   : > { %v13089_v6 = vpop.eup %13088  ;;  %13098 = vpow2.f32 %v10627_v59  ;;  %v11225_v0 = vadd.f32 %v11224_v47, %v11223_v54  ;;  %v11226_v46 = vpop.f32.mrb[210].mxu1 }
 0x7ec   : > { %v9259_v57 = vadd.f32 1.0, %v13089_v6  ;;  %v11227_v22 = vpop.f32.mrb[211].mxu1 }
 0x7ed   : > { %v13091_v4 = vpop.eup %13090  ;;  %v17029_v63 = vadd.f32 %v11225_v0, %v17008_v19  ;;  %v11228_v10 = vadd.f32 %v11227_v22, %v11226_v46 }
 0x7ee   : > { %13100 = vrcp.f32 %v9259_v57  ;;  %v9260_v1 = vadd.f32 1.0, %v13091_v4 }
 0x7ef   : > { %v10628_v2 = vmul.f32 -1.442695, %v17029_v63  ;;  %v17033_v21 = vadd.f32 %v11228_v10, %v17008_v19 }
 0x7f0   : > { %v13093_v17 = vpop.eup %13092  ;;  %13102 = vrcp.f32 %v9260_v1 }
 0x7f1   : > { %13104 = vpow2.f32 %v10628_v2  ;;  %v10629_v40 = vmul.f32 -1.442695, %v17033_v21  ;;  %v11229_v20 = vpop.f32.mrb[212].mxu1  ;;  %v17041_v31 = vmul.f32 %v13093_v17, %v9035_v5 }
 0x7f2   : > { %v13095_v41 = vpop.eup %13094  ;;  %v11230_v44 = vpop.f32.mrb[213].mxu1 }
 0x7f3   : > { %v13097_v8 = vpop.eup %13096  ;;  %v17043_v12 = vmul.f32 %v13095_v41, %v9038_v36  ;;  %13106 = vpow2.f32 %v10629_v40  ;;  %v11231_v29 = vadd.f32 %v11230_v44, %v11229_v20  ;;  %v11232_v48 = vpop.f32.mrb[214].mxu1  ;;  %v9552_v33 = vmul.f32 %v17038_v24, %v17041_v31 }
 0x7f4   : > { %v9261_v25 = vadd.f32 1.0, %v13097_v8  ;;  %v11233_v49 = vpop.f32.mrb[215].mxu1 }
 0x7f5   : > { %v13099_v3 = vpop.eup %13098  ;;  %v17048_v60 = vadd.f32 %v11231_v29, %v17008_v19  ;;  %v11234_v32 = vadd.f32 %v11233_v49, %v11232_v48  ;;  %9584 = vadd.xlane.f32.xlu0 %v9552_v33  ;;  %v10763_v39 = vpack.c.bf16 %v17043_v12, %v17041_v31  ;;  %v9553_v5 = vmul.f32 %v17038_v24, %v17043_v12 }
 0x7f6   : > { %13108 = vrcp.f32 %v9261_v25  ;;  %v9262_v18 = vadd.f32 1.0, %v13099_v3 }
 0x7f7   : > { %v10630_v50 = vmul.f32 -1.442695, %v17048_v60  ;;  %v17054_v37 = vadd.f32 %v11234_v32, %v17008_v19  ;;  %10764 = vst [vmem:[%s13462_s30] sm:$0xff] %v10763_v39  }
 0x7f8   : > { %v13101_v55 = vpop.eup %13100  ;;  %13110 = vrcp.f32 %v9262_v18 }
 0x7f9   : > { %13112 = vpow2.f32 %v10630_v50  ;;  %v10631_v61 = vmul.f32 -1.442695, %v17054_v37  ;;  %v11235_v36 = vpop.f32.mrb[216].mxu1  ;;  %9586 = vadd.xlane.f32.xlu0 %v9553_v5  ;;  %v17061_v13 = vmul.f32 %v13101_v55, %v17013_v7 }
 0x7fa   : > { %v13103_v26 = vpop.eup %13102  ;;  %v11236_v27 = vpop.f32.mrb[217].mxu1 }
 0x7fb   : > { %v13105_v58 = vpop.eup %13104  ;;  %v17064_v14 = vmul.f32 %v13103_v26, %v17017_v11  ;;  %13114 = vpow2.f32 %v10631_v61  ;;  %v11237_v30 = vadd.f32 %v11236_v27, %v11235_v36  ;;  %v11238_v53 = vpop.f32.mrb[218].mxu1  ;;  %v9554_v52 = vmul.f32 %v17038_v24, %v17061_v13 }
 0x7fc   : > { %v9263_v38 = vadd.f32 1.0, %v13105_v58  ;;  %v11239_v43 = vpop.f32.mrb[219].mxu1 }
 0x7fd   : > { %v13107_v45 = vpop.eup %13106  ;;  %v17069_v23 = vadd.f32 %v11237_v30, %v17008_v19  ;;  %v11240_v7 = vadd.f32 %v11239_v43, %v11238_v53  ;;  %9588 = vadd.xlane.f32.xlu1 %v9554_v52  ;;  %v10768_v28 = vpack.c.bf16 %v17064_v14, %v17061_v13  ;;  %v9555_v62 = vmul.f32 %v17038_v24, %v17064_v14 }
 0x7fe   : > { %13116 = vrcp.f32 %v9263_v38  ;;  %v9264_v11 = vadd.f32 1.0, %v13107_v45 }
 0x7ff   : > { %v10632_v9 = vmul.f32 -1.442695, %v17069_v23  ;;  %v17075_v51 = vadd.f32 %v11240_v7, %v17008_v19  ;;  %10840 = vst [vmem:[%s13462_s30 + $0x8] sm:$0xff] %v10768_v28  }
 0x800   : > { %v13109_v56 = vpop.eup %13108  ;;  %13118 = vrcp.f32 %v9264_v11 }
 0x801   : > { %v17081_v15 = vmul.f32 %v13109_v56, %v17021_v16  ;;  %13120 = vpow2.f32 %v10632_v9  ;;  %v10633_v34 = vmul.f32 -1.442695, %v17075_v51  ;;  %v11241_v35 = vpop.f32.mrb[220].mxu1  ;;  %9590 = vadd.xlane.f32.xlu1 %v9555_v62 }
 0x802   : > { %v13111_v59 = vpop.eup %13110  ;;  %v11242_v54 = vpop.f32.mrb[221].mxu1 }
 0x803   : > { %v13113_v47 = vpop.eup %13112  ;;  %v17085_v6 = vmul.f32 %v13111_v59, %v17025_v42  ;;  %13122 = vpow2.f32 %v10633_v34  ;;  %v11243_v0 = vadd.f32 %v11242_v54, %v11241_v35  ;;  %v11244_v46 = vpop.f32.mrb[222].mxu1  ;;  %v9556_v57 = vmul.f32 %v17038_v24, %v17081_v15 }
 0x804   : > { %v9265_v16 = vadd.f32 1.0, %v13113_v47  ;;  %v11245_v22 = vpop.f32.mrb[223].mxu1 }
 0x805   : > { %v13115_v4 = vpop.eup %13114  ;;  %v10773_v10 = vpack.c.bf16 %v17085_v6, %v17081_v15  ;;  %v17092_v1 = vadd.f32 %v11243_v0, %v17008_v19  ;;  %v11246_v2 = vadd.f32 %v11245_v22, %v11244_v46  ;;  %9592 = vadd.xlane.f32.xlu0 %v9556_v57  ;;  %v9557_v42 = vmul.f32 %v17038_v24, %v17085_v6 }
 0x806   : > { %13124 = vrcp.f32 %v9265_v16  ;;  %v9266_v17 = vadd.f32 1.0, %v13115_v4 }
 0x807   : > { %10841 = vst [vmem:[%s13462_s30 + $0x10] sm:$0xff] %v10773_v10   ;;  %v10634_v40 = vmul.f32 -1.442695, %v17092_v1  ;;  %v17099_v20 = vadd.f32 %v11246_v2, %v17008_v19  ;;  %9594 = vadd.xlane.f32.xlu1 %v9557_v42 }
 0x808   : > { %v13117_v41 = vpop.eup %13116  ;;  %13126 = vrcp.f32 %v9266_v17 }
 0x809   : > { %v17102_v44 = vmul.f32 %v13117_v41, %v17029_v63  ;;  %13128 = vpow2.f32 %v10634_v40  ;;  %v10635_v8 = vmul.f32 -1.442695, %v17099_v20  ;;  %v11247_v29 = vpop.f32.mrb[224].mxu1 }
 0x80a   : > { %v13119_v48 = vpop.eup %13118  ;;  %v11248_v33 = vpop.f32.mrb[225].mxu1 }
 0x80b   : > { %v13121_v25 = vpop.eup %13120  ;;  %v17106_v49 = vmul.f32 %v13119_v48, %v17033_v21  ;;  %13130 = vpow2.f32 %v10635_v8  ;;  %v11249_v3 = vadd.f32 %v11248_v33, %v11247_v29  ;;  %v11250_v32 = vpop.f32.mrb[226].mxu1  ;;  %v9558_v39 = vmul.f32 %v17038_v24, %v17102_v44 }
 0x80c   : > { %v9267_v18 = vadd.f32 1.0, %v13121_v25  ;;  %v11251_v63 = vpop.f32.mrb[227].mxu1 }
 0x80d   : > { %v13123_v50 = vpop.eup %13122  ;;  %v10778_v5 = vpack.c.bf16 %v17106_v49, %v17102_v44  ;;  %v17113_v55 = vadd.f32 %v11249_v3, %v17008_v19  ;;  %v11252_v61 = vadd.f32 %v11251_v63, %v11250_v32  ;;  %9596 = vadd.xlane.f32.xlu0 %v9558_v39  ;;  %v9559_v21 = vmul.f32 %v17038_v24, %v17106_v49 }
 0x80e   : > { %13132 = vrcp.f32 %v9267_v18  ;;  %v9268_v36 = vadd.f32 1.0, %v13123_v50 }
 0x80f   : > { %10842 = vst [vmem:[%s13462_s30 + $0x18] sm:$0xff] %v10778_v5   ;;  %v10636_v26 = vmul.f32 -1.442695, %v17113_v55  ;;  %v17120_v27 = vadd.f32 %v11252_v61, %v17008_v19  ;;  %9598 = vadd.xlane.f32.xlu1 %v9559_v21 }
 0x810   : > { %v13125_v58 = vpop.eup %13124  ;;  %13134 = vrcp.f32 %v9268_v36 }
 0x811   : > { %v17123_v30 = vmul.f32 %v13125_v58, %v17048_v60  ;;  %13136 = vpow2.f32 %v10636_v26  ;;  %v10637_v53 = vmul.f32 -1.442695, %v17120_v27  ;;  %v11253_v52 = vpop.f32.mrb[228].mxu1 }
 0x812   : > { %v13127_v38 = vpop.eup %13126  ;;  %v11254_v43 = vpop.f32.mrb[229].mxu1 }
 0x813   : > { %v13129_v45 = vpop.eup %13128  ;;  %v17127_v7 = vmul.f32 %v13127_v38, %v17054_v37  ;;  %13138 = vpow2.f32 %v10637_v53  ;;  %v11255_v28 = vadd.f32 %v11254_v43, %v11253_v52  ;;  %v11256_v11 = vpop.f32.mrb[230].mxu1  ;;  %v9560_v9 = vmul.f32 %v17038_v24, %v17123_v30 }
 0x814   : > { %v9269_v62 = vadd.f32 1.0, %v13129_v45  ;;  %v11257_v60 = vpop.f32.mrb[231].mxu1 }
 0x815   : > { %v13131_v56 = vpop.eup %13130  ;;  %v10783_v34 = vpack.c.bf16 %v17127_v7, %v17123_v30  ;;  %v17134_v35 = vadd.f32 %v11255_v28, %v17008_v19  ;;  %v11258_v59 = vadd.f32 %v11257_v60, %v11256_v11  ;;  %9600 = vadd.xlane.f32.xlu0 %v9560_v9  ;;  %v9561_v37 = vmul.f32 %v17038_v24, %v17127_v7 }
 0x816   : > { %13140 = vrcp.f32 %v9269_v62  ;;  %v9270_v54 = vadd.f32 1.0, %v13131_v56 }
 0x817   : > { %10843 = vst [vmem:[%s13462_s30 + $0x20] sm:$0xff] %v10783_v34   ;;  %v10638_v47 = vmul.f32 -1.442695, %v17134_v35  ;;  %v17141_v0 = vadd.f32 %v11258_v59, %v17008_v19  ;;  %9602 = vadd.xlane.f32.xlu1 %v9561_v37 }
 0x818   : > { %v13133_v46 = vpop.eup %13132  ;;  %13142 = vrcp.f32 %v9270_v54 }
 0x819   : > { %v17144_v57 = vmul.f32 %v13133_v46, %v17069_v23  ;;  %13144 = vpow2.f32 %v10638_v47  ;;  %v10639_v16 = vmul.f32 -1.442695, %v17141_v0  ;;  %v11259_v22 = vpop.f32.mrb[232].mxu1 }
 0x81a   : > { %v13135_v4 = vpop.eup %13134  ;;  %v11260_v10 = vpop.f32.mrb[233].mxu1 }
 0x81b   : > { %v13137_v2 = vpop.eup %13136  ;;  %v17148_v42 = vmul.f32 %v13135_v4, %v17075_v51  ;;  %13146 = vpow2.f32 %v10639_v16  ;;  %v11261_v17 = vadd.f32 %v11260_v10, %v11259_v22  ;;  %v11262_v40 = vpop.f32.mrb[234].mxu1  ;;  %v9562_v41 = vmul.f32 %v17038_v24, %v17144_v57 }
 0x81c   : > { %v9271_v8 = vadd.f32 1.0, %v13137_v2  ;;  %v11263_v23 = vpop.f32.mrb[235].mxu1 }
 0x81d   : > { %v13139_v29 = vpop.eup %13138  ;;  %v10788_v48 = vpack.c.bf16 %v17148_v42, %v17144_v57  ;;  %v17155_v33 = vadd.f32 %v11261_v17, %v17008_v19  ;;  %v11264_v25 = vadd.f32 %v11263_v23, %v11262_v40  ;;  %9604 = vadd.xlane.f32.xlu0 %v9562_v41  ;;  %v9563_v51 = vmul.f32 %v17038_v24, %v17148_v42 }
 0x81e   : > { %13148 = vrcp.f32 %v9271_v8  ;;  %v9272_v3 = vadd.f32 1.0, %v13139_v29 }
 0x81f   : > { %10844 = vst [vmem:[%s13462_s30 + $0x28] sm:$0xff] %v10788_v48   ;;  %v10640_v32 = vmul.f32 -1.442695, %v17155_v33  ;;  %v17162_v39 = vadd.f32 %v11264_v25, %v17008_v19  ;;  %9606 = vadd.xlane.f32.xlu1 %v9563_v51 }
 0x820   : > { %v13141_v18 = vpop.eup %13140  ;;  %13150 = vrcp.f32 %v9272_v3 }
 0x821   : > { %v17165_v63 = vmul.f32 %v13141_v18, %v17092_v1  ;;  %13152 = vpow2.f32 %v10640_v32  ;;  %v10641_v50 = vmul.f32 -1.442695, %v17162_v39  ;;  %v11265_v5 = vpop.f32.mrb[236].mxu1 }
 0x822   : > { %v13143_v61 = vpop.eup %13142  ;;  %v11266_v21 = vpop.f32.mrb[237].mxu1 }
 0x823   : > { %v13145_v36 = vpop.eup %13144  ;;  %v17169_v26 = vmul.f32 %v13143_v61, %v17099_v20  ;;  %13154 = vpow2.f32 %v10641_v50  ;;  %v11267_v58 = vadd.f32 %v11266_v21, %v11265_v5  ;;  %v11268_v53 = vpop.f32.mrb[238].mxu1  ;;  %v9564_v52 = vmul.f32 %v17038_v24, %v17165_v63 }
 0x824   : > { %v9273_v38 = vadd.f32 1.0, %v13145_v36  ;;  %v11269_v1 = vpop.f32.mrb[239].mxu1 }
 0x825   : > { %v13147_v43 = vpop.eup %13146  ;;  %v10793_v45 = vpack.c.bf16 %v17169_v26, %v17165_v63  ;;  %v17176_v28 = vadd.f32 %v11267_v58, %v17008_v19  ;;  %v11270_v11 = vadd.f32 %v11269_v1, %v11268_v53  ;;  %9608 = vadd.xlane.f32.xlu0 %v9564_v52  ;;  %v9565_v20 = vmul.f32 %v17038_v24, %v17169_v26 }
 0x826   : > { %13156 = vrcp.f32 %v9273_v38  ;;  %v9274_v9 = vadd.f32 1.0, %v13147_v43 }
 0x827   : > { %10845 = vst [vmem:[%s13462_s30 + $0x30] sm:$0xff] %v10793_v45   ;;  %v10642_v62 = vmul.f32 -1.442695, %v17176_v28  ;;  %v17183_v60 = vadd.f32 %v11270_v11, %v17008_v19  ;;  %9610 = vadd.xlane.f32.xlu1 %v9565_v20 }
 0x828   : > { %v13149_v56 = vpop.eup %13148  ;;  %13158 = vrcp.f32 %v9274_v9 }
 0x829   : > { %v17186_v34 = vmul.f32 %v13149_v56, %v17113_v55  ;;  %13160 = vpow2.f32 %v10642_v62  ;;  %v10643_v59 = vmul.f32 -1.442695, %v17183_v60  ;;  %v11271_v37 = vpop.f32.mrb[240].mxu1 }
 0x82a   : > { %v13151_v54 = vpop.eup %13150  ;;  %v11272_v47 = vpop.f32.mrb[241].mxu1 }
 0x82b   : > { %18093 = vst [vmem:[#allocation83_spill] sm:$0xff] %v17186_v34  ;;  %v13153_v46 = vpop.eup %13152  ;;  %v17190_v16 = vmul.f32 %v13151_v54, %v17120_v27  ;;  %13162 = vpow2.f32 %v10643_v59  ;;  %v11273_v22 = vadd.f32 %v11272_v47, %v11271_v37  ;;  %v11274_v4 = vpop.f32.mrb[242].mxu1  ;;  %v9566_v10 = vmul.f32 %v17038_v24, %v17186_v34 }
 0x82c   : > { %v9275_v2 = vadd.f32 1.0, %v13153_v46  ;;  %v11275_v55 = vpop.f32.mrb[243].mxu1 }
 0x82d   : > { %18094 = vst [vmem:[#allocation98_spill] sm:$0xff] %v17190_v16  ;;  %v13155_v17 = vpop.eup %13154  ;;  %v10798_v40 = vpack.c.bf16 %v17190_v16, %v17186_v34  ;;  %v17197_v41 = vadd.f32 %v11273_v22, %v17008_v19  ;;  %v11276_v8 = vadd.f32 %v11275_v55, %v11274_v4  ;;  %9612 = vadd.xlane.f32.xlu0 %v9566_v10 }
 0x82e   : > { %v9567_v27 = vmul.f32 %v17038_v24, %v17190_v16  ;;  %13164 = vrcp.f32 %v9275_v2  ;;  %v9276_v23 = vadd.f32 1.0, %v13155_v17 }
 0x82f   : > { %10846 = vst [vmem:[%s13462_s30 + $0x38] sm:$0xff] %v10798_v40   ;;  %v10644_v29 = vmul.f32 -1.442695, %v17197_v41  ;;  %v17204_v48 = vadd.f32 %v11276_v8, %v17008_v19 }
 0x830   : > { %9614 = vadd.xlane.f32.xlu1 %v9567_v27  ;;  %v13157_v25 = vpop.eup %13156  ;;  %13166 = vrcp.f32 %v9276_v23 }
 0x831   : > { %v17207_v51 = vmul.f32 %v13157_v25, %v17134_v35  ;;  %13168 = vpow2.f32 %v10644_v29  ;;  %v10645_v3 = vmul.f32 -1.442695, %v17204_v48  ;;  %v11277_v32 = vpop.f32.mrb[244].mxu1 }
 0x832   : > { %v13159_v18 = vpop.eup %13158  ;;  %v11278_v50 = vpop.f32.mrb[245].mxu1 }
 0x833   : > { %18095 = vst [vmem:[#allocation84_spill] sm:$0xff] %v17207_v51  ;;  %v13161_v5 = vpop.eup %13160  ;;  %v17211_v61 = vmul.f32 %v13159_v18, %v17141_v0  ;;  %13170 = vpow2.f32 %v10645_v3  ;;  %v11279_v21 = vadd.f32 %v11278_v50, %v11277_v32  ;;  %v11280_v36 = vpop.f32.mrb[246].mxu1  ;;  %v9568_v58 = vmul.f32 %v17038_v24, %v17207_v51 }
 0x834   : > { %v9277_v53 = vadd.f32 1.0, %v13161_v5  ;;  %v11281_v35 = vpop.f32.mrb[247].mxu1 }
 0x835   : > { %18096 = vst [vmem:[#allocation99_spill] sm:$0xff] %v17211_v61  ;;  %v13163_v52 = vpop.eup %13162  ;;  %v10803_v38 = vpack.c.bf16 %v17211_v61, %v17207_v51  ;;  %v17218_v1 = vadd.f32 %v11279_v21, %v17008_v19  ;;  %v11282_v43 = vadd.f32 %v11281_v35, %v11280_v36  ;;  %9616 = vadd.xlane.f32.xlu0 %v9568_v58 }
 0x836   : > { %v9569_v0 = vmul.f32 %v17038_v24, %v17211_v61  ;;  %13172 = vrcp.f32 %v9277_v53  ;;  %v9278_v45 = vadd.f32 1.0, %v13163_v52 }
 0x837   : > { %10847 = vst [vmem:[%s13462_s30 + $0x40] sm:$0xff] %v10803_v38   ;;  %v10646_v11 = vmul.f32 -1.442695, %v17218_v1  ;;  %v17225_v20 = vadd.f32 %v11282_v43, %v17008_v19 }
 0x838   : > { %9618 = vadd.xlane.f32.xlu1 %v9569_v0  ;;  %v13165_v9 = vpop.eup %13164  ;;  %13174 = vrcp.f32 %v9278_v45 }
 0x839   : > { %v17228_v62 = vmul.f32 %v13165_v9, %v17155_v33  ;;  %13176 = vpow2.f32 %v10646_v11  ;;  %v10647_v56 = vmul.f32 -1.442695, %v17225_v20  ;;  %v11283_v59 = vpop.f32.mrb[248].mxu1 }
 0x83a   : > { %v13167_v37 = vpop.eup %13166  ;;  %v11284_v54 = vpop.f32.mrb[249].mxu1 }
 0x83b   : > { %18097 = vst [vmem:[#allocation85_spill] sm:$0xff] %v17228_v62  ;;  %v13169_v47 = vpop.eup %13168  ;;  %v17232_v46 = vmul.f32 %v13167_v37, %v17162_v39  ;;  %13178 = vpow2.f32 %v10647_v56  ;;  %v11285_v22 = vadd.f32 %v11284_v54, %v11283_v59  ;;  %v11286_v4 = vpop.f32.mrb[250].mxu1  ;;  %v9570_v10 = vmul.f32 %v17038_v24, %v17228_v62 }
 0x83c   : > { %v9279_v2 = vadd.f32 1.0, %v13169_v47  ;;  %v11287_v33 = vpop.f32.mrb[251].mxu1 }
 0x83d   : > { %18098 = vst [vmem:[#allocation56_spill] sm:$0xff] %v17232_v46  ;;  %v13171_v55 = vpop.eup %13170  ;;  %v10808_v17 = vpack.c.bf16 %v17232_v46, %v17228_v62  ;;  %v17239_v40 = vadd.f32 %v11285_v22, %v17008_v19  ;;  %v11288_v8 = vadd.f32 %v11287_v33, %v11286_v4  ;;  %9620 = vadd.xlane.f32.xlu0 %v9570_v10 }
 0x83e   : > { %v9571_v39 = vmul.f32 %v17038_v24, %v17232_v46  ;;  %13180 = vrcp.f32 %v9279_v2  ;;  %v9280_v27 = vadd.f32 1.0, %v13171_v55 }
 0x83f   : > { %10848 = vst [vmem:[%s13462_s30 + $0x48] sm:$0xff] %v10808_v17   ;;  %v10648_v23 = vmul.f32 -1.442695, %v17239_v40  ;;  %v17246_v29 = vadd.f32 %v11288_v8, %v17008_v19 }
 0x840   : > { %9622 = vadd.xlane.f32.xlu1 %v9571_v39  ;;  %v13173_v25 = vpop.eup %13172  ;;  %13182 = vrcp.f32 %v9280_v27 }
 0x841   : > { %v17249_v3 = vmul.f32 %v13173_v25, %v17176_v28  ;;  %13184 = vpow2.f32 %v10648_v23  ;;  %v10649_v32 = vmul.f32 -1.442695, %v17246_v29  ;;  %v11289_v18 = vpop.f32.mrb[252].mxu1 }
 0x842   : > { %v13175_v50 = vpop.eup %13174  ;;  %v11290_v5 = vpop.f32.mrb[253].mxu1 }
 0x843   : > { %18099 = vst [vmem:[#allocation100_spill] sm:$0xff] %v17249_v3  ;;  %v13177_v21 = vpop.eup %13176  ;;  %v17253_v36 = vmul.f32 %v13175_v50, %v17183_v60  ;;  %13186 = vpow2.f32 %v10649_v32  ;;  %v11291_v58 = vadd.f32 %v11290_v5, %v11289_v18  ;;  %v11292_v53 = vpop.f32.mrb[254].mxu1  ;;  %v9572_v35 = vmul.f32 %v17038_v24, %v17249_v3 }
 0x844   : > { %v9281_v52 = vadd.f32 1.0, %v13177_v21  ;;  %v11293_v28 = vpop.f32.mrb[255].mxu1 }
 0x845   : > { %18100 = vst [vmem:[#allocation86_spill] sm:$0xff] %v17253_v36  ;;  %v13179_v38 = vpop.eup %13178  ;;  %v10813_v43 = vpack.c.bf16 %v17253_v36, %v17249_v3  ;;  %v17260_v0 = vadd.f32 %v11291_v58, %v17008_v19  ;;  %v11294_v45 = vadd.f32 %v11293_v28, %v11292_v53  ;;  %9624 = vadd.xlane.f32.xlu0 %v9572_v35 }
 0x846   : > { %v9573_v60 = vmul.f32 %v17038_v24, %v17253_v36  ;;  %13188 = vrcp.f32 %v9281_v52  ;;  %v9282_v11 = vadd.f32 1.0, %v13179_v38 }
 0x847   : > { %10849 = vst [vmem:[%s13462_s30 + $0x50] sm:$0xff] %v10813_v43   ;;  %v10650_v9 = vmul.f32 -1.442695, %v17260_v0  ;;  %v17267_v56 = vadd.f32 %v11294_v45, %v17008_v19 }
 0x848   : > { %9626 = vadd.xlane.f32.xlu1 %v9573_v60  ;;  %v13181_v59 = vpop.eup %13180  ;;  %13190 = vrcp.f32 %v9282_v11 }
 0x849   : > { %v17270_v37 = vmul.f32 %v13181_v59, %v17197_v41  ;;  %13192 = vpow2.f32 %v10650_v9  ;;  %v10651_v54 = vmul.f32 -1.442695, %v17267_v56  ;;  %v11295_v47 = vpop.f32.mrb[0].mxu1 }
 0x84a   : > { %v13183_v22 = vpop.eup %13182  ;;  %v11296_v4 = vpop.f32.mrb[1].mxu1 }
 0x84b   : > { %18101 = vst [vmem:[#allocation87_spill] sm:$0xff] %v17270_v37  ;;  %v13185_v10 = vpop.eup %13184  ;;  %v17274_v2 = vmul.f32 %v13183_v22, %v17204_v48  ;;  %13194 = vpow2.f32 %v10651_v54  ;;  %v11297_v33 = vadd.f32 %v11296_v4, %v11295_v47  ;;  %v11298_v55 = vpop.f32.mrb[2].mxu1  ;;  %v9574_v17 = vmul.f32 %v17038_v24, %v17270_v37 }
 0x84c   : > { %v9283_v8 = vadd.f32 1.0, %v13185_v10  ;;  %v11299_v41 = vpop.f32.mrb[3].mxu1 }
 0x84d   : > { %18102 = vst [vmem:[#allocation101_spill] sm:$0xff] %v17274_v2  ;;  %v13187_v39 = vpop.eup %13186  ;;  %v10818_v27 = vpack.c.bf16 %v17274_v2, %v17270_v37  ;;  %v9155_v23 = vadd.f32 %v11297_v33, %v17008_v19  ;;  %v11300_v25 = vadd.f32 %v11299_v41, %v11298_v55  ;;  %9628 = vadd.xlane.f32.xlu0 %v9574_v17 }
 0x84e   : > { %v9575_v48 = vmul.f32 %v17038_v24, %v17274_v2  ;;  %13196 = vrcp.f32 %v9283_v8  ;;  %v9284_v32 = vadd.f32 1.0, %v13187_v39 }
 0x84f   : > { %10850 = vst [vmem:[%s13462_s30 + $0x58] sm:$0xff] %v10818_v27   ;;  %v10652_v18 = vmul.f32 -1.442695, %v9155_v23  ;;  %v9158_v50 = vadd.f32 %v11300_v25, %v17008_v19 }
 0x850   : > { %9630 = vadd.xlane.f32.xlu1 %v9575_v48  ;;  %v13189_v5 = vpop.eup %13188  ;;  %13198 = vrcp.f32 %v9284_v32 }
 0x851   : > { %v17286_v21 = vmul.f32 %v13189_v5, %v17218_v1  ;;  %13200 = vpow2.f32 %v10652_v18  ;;  %v10653_v58 = vmul.f32 -1.442695, %v9158_v50 }
 0x852   : > { %v13191_v53 = vpop.eup %13190 }
 0x853   : > { %18103 = vst [vmem:[#allocation88_spill] sm:$0xff] %v17286_v21  ;;  %v13193_v35 = vpop.eup %13192  ;;  %v17289_v52 = vmul.f32 %v13191_v53, %v17225_v20  ;;  %13202 = vpow2.f32 %v10653_v58  ;;  %v9576_v28 = vmul.f32 %v17038_v24, %v17286_v21 }
 0x854   : > { %v9285_v38 = vadd.f32 1.0, %v13193_v35 }
 0x855   : > { %18104 = vst [vmem:[#allocation57_spill] sm:$0xff] %v17289_v52  ;;  %v13195_v19 = vpop.eup %13194  ;;  %v10823_v43 = vpack.c.bf16 %v17289_v52, %v17286_v21  ;;  %9632 = vadd.xlane.f32.xlu0 %v9576_v28  ;;  %v9577_v1 = vmul.f32 %v17038_v24, %v17289_v52 }
 0x856   : > { %13204 = vrcp.f32 %v9285_v38  ;;  %v9286_v45 = vadd.f32 1.0, %v13195_v19 }
 0x857   : > { %10851 = vst [vmem:[%s13462_s30 + $0x60] sm:$0xff] %v10823_v43   ;;  %9634 = vadd.xlane.f32.xlu1 %v9577_v1 }
 0x858   : > { %v13197_v20 = vpop.eup %13196  ;;  %13206 = vrcp.f32 %v9286_v45 }
 0x859   : > { %v17299_v60 = vmul.f32 %v13197_v20, %v17239_v40 }
 0x85a   : > { %v13199_v11 = vpop.eup %13198 }
 0x85b   : > { %18105 = vst [vmem:[#allocation89_spill] sm:$0xff] %v17299_v60  ;;  %v13201_v9 = vpop.eup %13200  ;;  %v17302_v59 = vmul.f32 %v13199_v11, %v17246_v29  ;;  %v9578_v54 = vmul.f32 %v17038_v24, %v17299_v60 }
 0x85c   : > { %v9287_v47 = vadd.f32 1.0, %v13201_v9 }
 0x85d   : > { %18106 = vst [vmem:[#allocation58_spill] sm:$0xff] %v17302_v59  ;;  %v13203_v22 = vpop.eup %13202  ;;  %v10828_v4 = vpack.c.bf16 %v17302_v59, %v17299_v60  ;;  %9636 = vadd.xlane.f32.xlu0 %v9578_v54  ;;  %v9579_v10 = vmul.f32 %v17038_v24, %v17302_v59 }
 0x85e   : > { %13208 = vrcp.f32 %v9287_v47  ;;  %v9288_v40 = vadd.f32 1.0, %v13203_v22 }
 0x85f   : > { %10852 = vst [vmem:[%s13462_s30 + $0x68] sm:$0xff] %v10828_v4   ;;  %9638 = vadd.xlane.f32.xlu1 %v9579_v10 }
 0x860   : > { %v13205_v33 = vpop.eup %13204  ;;  %13210 = vrcp.f32 %v9288_v40 }
 0x861   : > { %v17312_v29 = vmul.f32 %v13205_v33, %v17260_v0 }
 0x862   : > { %v13207_v55 = vpop.eup %13206 }
 0x863   : > { %18107 = vst [vmem:[#allocation59_spill] sm:$0xff] %v17312_v29  ;;  %v17315_v17 = vmul.f32 %v13207_v55, %v17267_v56  ;;  %v9580_v8 = vmul.f32 %v17038_v24, %v17312_v29 }
 0x865   : > { %18108 = vst [vmem:[#allocation90_spill] sm:$0xff] %v17315_v17  ;;  %v10833_v41 = vpack.c.bf16 %v17315_v17, %v17312_v29  ;;  %9640 = vadd.xlane.f32.xlu0 %v9580_v8  ;;  %v9581_v39 = vmul.f32 %v17038_v24, %v17315_v17 }
 0x867   : > { %10853 = vst [vmem:[%s13462_s30 + $0x70] sm:$0xff] %v10833_v41   ;;  %9642 = vadd.xlane.f32.xlu1 %v9581_v39 }
 0x868   : > { %v13209_v27 = vpop.eup %13208 }
 0x869   : > { %v17324_v0 = vmul.f32 %v13209_v27, %v9155_v23 }
 0x86a   : > { %v13211_v25 = vpop.eup %13210 }
 0x86b   : > { %18109 = vst [vmem:[#allocation91_spill] sm:$0xff] %v17324_v0  ;;  %v17326_v48 = vmul.f32 %v13211_v25, %v9158_v50  ;;  %v9582_v56 = vmul.f32 %v17038_v24, %v17324_v0 }
 0x86d   : > { %18110 = vst [vmem:[#allocation61_spill] sm:$0xff] %v17326_v48  ;;  %v10838_v32 = vpack.c.bf16 %v17326_v48, %v17324_v0  ;;  %9644 = vadd.xlane.f32.xlu0 %v9582_v56  ;;  %v9583_v18 = vmul.f32 %v17038_v24, %v17326_v48 }
 0x86f   : > { %10854 = vst [vmem:[%s13462_s30 + $0x78] sm:$0xff] %v10838_v32   ;;  %9646 = vadd.xlane.f32.xlu1 %v9583_v18 }
 0x882   : > { %v17335_v5 = vpop.xlane.xlu0 %9584 }
 0x886   : > { %v17339_v23 = vpop.xlane.xlu0 %9586 }
 0x88a   : > { %v17337_v58 = vpop.xlane.xlu1 %9588 }
 0x88e   : > { %v17341_v50 = vpop.xlane.xlu1 %9590 }
 0x892   : > { %v17343_v53 = vpop.xlane.xlu0 %9592 }
 0x893   : > { %v9648_v27 = vmax.f32 %v17335_v5, %v17343_v53 }
 0x894   : > { %v17345_v35 = vpop.xlane.xlu1 %9594 }
 0x895   : > { %v9649_v41 = vmax.f32 %v17339_v23, %v17345_v35 }
 0x89a   : > { %v17347_v28 = vpop.xlane.xlu0 %9596 }
 0x89b   : > { %v9650_v25 = vmax.f32 %v17337_v58, %v17347_v28 }
 0x89c   : > { %v17349_v38 = vpop.xlane.xlu1 %9598 }
 0x89d   : > { %v9651_v56 = vmax.f32 %v17341_v50, %v17349_v38 }
 0x8a2   : > { %v17351_v19 = vpop.xlane.xlu0 %9600 }
 0x8a3   : > { %v9652_v48 = vmax.f32 %v9648_v27, %v17351_v19 }
 0x8a4   : > { %v17353_v24 = vpop.xlane.xlu1 %9602 }
 0x8a5   : > { %v9653_v32 = vmax.f32 %v9649_v41, %v17353_v24 }
 0x8aa   : > { %v17355_v43 = vpop.xlane.xlu0 %9604 }
 0x8ab   : > { %v9654_v0 = vmax.f32 %v9650_v25, %v17355_v43 }
 0x8ac   : > { %v17357_v1 = vpop.xlane.xlu1 %9606 }
 0x8ad   : > { %v9655_v17 = vmax.f32 %v9651_v56, %v17357_v1 }
 0x8b2   : > { %v17359_v45 = vpop.xlane.xlu0 %9608 }
 0x8b3   : > { %v9656_v60 = vmax.f32 %v9652_v48, %v17359_v45 }
 0x8b4   : > { %v17361_v20 = vpop.xlane.xlu1 %9610 }
 0x8b5   : > { %v9657_v29 = vmax.f32 %v9653_v32, %v17361_v20 }
 0x8ba   : > { %v17363_v11 = vpop.xlane.xlu0 %9612 }
 0x8bb   : > { %v9658_v52 = vmax.f32 %v9654_v0, %v17363_v11 }
 0x8bd   : > { %v17365_v9 = vpop.xlane.xlu1 %9614 }
 0x8be   : > { %v9659_v21 = vmax.f32 %v9655_v17, %v17365_v9 }
 0x8c2   : > { %v17367_v54 = vpop.xlane.xlu0 %9616 }
 0x8c3   : > { %v9660_v27 = vmax.f32 %v9656_v60, %v17367_v54 }
 0x8c5   : > { %v17369_v47 = vpop.xlane.xlu1 %9618 }
 0x8c6   : > { %v9661_v41 = vmax.f32 %v9657_v29, %v17369_v47 }
 0x8ca   : > { %v17371_v22 = vpop.xlane.xlu0 %9620 }
 0x8cb   : > { %v9662_v25 = vmax.f32 %v9658_v52, %v17371_v22 }
 0x8cd   : > { %v17373_v4 = vpop.xlane.xlu1 %9622 }
 0x8ce   : > { %v9663_v56 = vmax.f32 %v9659_v21, %v17373_v4 }
 0x8d2   : > { %v17375_v10 = vpop.xlane.xlu0 %9624 }
 0x8d3   : > { %v9664_v48 = vmax.f32 %v9660_v27, %v17375_v10 }
 0x8d5   : > { %v17377_v40 = vpop.xlane.xlu1 %9626 }
 0x8d6   : > { %v9665_v32 = vmax.f32 %v9661_v41, %v17377_v40 }
 0x8da   : > { %v17379_v33 = vpop.xlane.xlu0 %9628 }
 0x8db   : > { %v9666_v0 = vmax.f32 %v9662_v25, %v17379_v33 }
 0x8dd   : > { %v17381_v55 = vpop.xlane.xlu1 %9630 }
 0x8de   : > { %v9667_v17 = vmax.f32 %v9663_v56, %v17381_v55 }
 0x8e2   : > { %v17383_v8 = vpop.xlane.xlu0 %9632 }
 0x8e3   : > { %v9668_v60 = vmax.f32 %v9664_v48, %v17383_v8 }
 0x8e4   : > { %v17387_v39 = vpop.xlane.xlu1 %9634 }
 0x8e5   : > { %v9669_v29 = vmax.f32 %v9665_v32, %v17387_v39 }
 0x8ea   : > { %v17396_v18 = vpop.xlane.xlu0 %9636 }
 0x8eb   : > { %v9670_v52 = vmax.f32 %v9666_v0, %v17396_v18 }
 0x8ec   : > { %v17402_v59 = vpop.xlane.xlu1 %9638 }
 0x8ed   : > { %v9671_v21 = vmax.f32 %v9667_v17, %v17402_v59 }
 0x8f2   : > { %v17408_v2 = vpop.xlane.xlu0 %9640 }
 0x8f3   : > { %v9672_v27 = vmax.f32 %v9668_v60, %v17408_v2 }
 0x8f4   : > { %v17414_v37 = vpop.xlane.xlu1 %9642 }
 0x8f5   : > { %v9673_v41 = vmax.f32 %v9669_v29, %v17414_v37 }
 0x8f7   : > { %v9676_v46 = vmax.f32 %v9672_v27, %v9673_v41 }
 0x8fa   : > { %v17420_v36 = vpop.xlane.xlu0 %9644 }
 0x8fb   : > { %v9674_v25 = vmax.f32 %v9670_v52, %v17420_v36 }
 0x8fc   : > { %v17426_v3 = vpop.xlane.xlu1 %9646 }
 0x8fd   : > { %v9675_v56 = vmax.f32 %v9671_v21, %v17426_v3 }
 0x8ff   : > { %v9677_v32 = vmax.f32 %v9674_v25, %v9675_v56 }
 0x901   : > { %v9678_v62 = vmax.f32 %v9676_v46, %v9677_v32 }
 0x903   : > { %v9679_v61 = vrot.slane %v9678_v62, 4 }
 0x905   : > { %v9680_v51 = vmax.f32 %v9678_v62, %v9679_v61 }
 0x907   : > { %v9681_v48 = vrot.slane %v9680_v51, 2 }
 0x909   : > { %v9682_v16 = vmax.f32 %v9680_v51, %v9681_v48 }
 0x90b   : > { %v9683_v0 = vrot.slane %v9682_v16, 1 }
 0x90d   : > { %v9684_v34 = vmax.f32 %v9682_v16, %v9683_v0 }
 0x90f   : > { %12209 = vpush %v9684_v34 }
 0x940   : > { %s12210_s30 = spop %12209 }
 0x941   : > { %v17431_v17 = vstv %s12210_s30 }
 0x942   : > { %v9687_v29 = vsub.f32 %v17335_v5, %v17431_v17  ;;  %v9688_v60 = vsub.f32 %v17339_v23, %v17431_v17  ;;  %v9689_v52 = vsub.f32 %v17337_v58, %v17431_v17  ;;  %v9690_v61 = vsub.f32 %v17341_v50, %v17431_v17 }
 0x943   : > { %v9691_v51 = vsub.f32 %v17343_v53, %v17431_v17  ;;  %v9692_v46 = vsub.f32 %v17345_v35, %v17431_v17  ;;  %v9693_v5 = vsub.f32 %v17347_v28, %v17431_v17  ;;  %v9694_v58 = vsub.f32 %v17349_v38, %v17431_v17 }
 0x944   : > { %v9719_v16 = vmul.f32 1.442695, %v9687_v29  ;;  %v9721_v34 = vmul.f32 1.442695, %v9688_v60  ;;  %v9723_v62 = vmul.f32 1.442695, %v9689_v52  ;;  %v9695_v53 = vsub.f32 %v17351_v19, %v17431_v17 }
 0x945   : > { %v9725_v21 = vmul.f32 1.442695, %v9690_v61  ;;  %v9727_v23 = vmul.f32 1.442695, %v9691_v51  ;;  %v9729_v50 = vmul.f32 1.442695, %v9692_v46  ;;  %v9696_v35 = vsub.f32 %v17353_v24, %v17431_v17 }
 0x946   : > { %13212 = vpow2.f32 %v9719_v16  ;;  %v9731_v41 = vmul.f32 1.442695, %v9693_v5  ;;  %v9733_v27 = vmul.f32 1.442695, %v9694_v58  ;;  %v9697_v28 = vsub.f32 %v17355_v43, %v17431_v17 }
 0x947   : > { %13214 = vpow2.f32 %v9721_v34  ;;  %v9735_v25 = vmul.f32 1.442695, %v9695_v53  ;;  %v9698_v19 = vsub.f32 %v17357_v1, %v17431_v17  ;;  %v9737_v32 = vmul.f32 1.442695, %v9696_v35 }
 0x948   : > { %13216 = vpow2.f32 %v9723_v62  ;;  %v9699_v29 = vsub.f32 %v17359_v45, %v17431_v17  ;;  %v9739_v60 = vmul.f32 1.442695, %v9697_v28  ;;  %v9700_v51 = vsub.f32 %v17361_v20, %v17431_v17 }
 0x949   : > { %13218 = vpow2.f32 %v9725_v21  ;;  %v9741_v16 = vmul.f32 1.442695, %v9698_v19  ;;  %v9701_v45 = vsub.f32 %v17363_v11, %v17431_v17  ;;  %v9702_v20 = vsub.f32 %v17365_v9, %v17431_v17 }
 0x94a   : > { %13220 = vpow2.f32 %v9727_v23  ;;  %v9743_v21 = vmul.f32 1.442695, %v9699_v29  ;;  %v9703_v11 = vsub.f32 %v17367_v54, %v17431_v17  ;;  %v9704_v9 = vsub.f32 %v17369_v47, %v17431_v17 }
 0x94b   : > { %13222 = vpow2.f32 %v9729_v50  ;;  %v9745_v50 = vmul.f32 1.442695, %v9700_v51  ;;  %v9705_v54 = vsub.f32 %v17371_v22, %v17431_v17  ;;  %v9706_v47 = vsub.f32 %v17373_v4, %v17431_v17 }
 0x94c   : > { %13224 = vpow2.f32 %v9731_v41  ;;  %v9707_v22 = vsub.f32 %v17375_v10, %v17431_v17  ;;  %v9708_v4 = vsub.f32 %v17377_v40, %v17431_v17  ;;  %v9709_v10 = vsub.f32 %v17379_v33, %v17431_v17 }
 0x94d   : > { %13226 = vpow2.f32 %v9733_v27  ;;  %v9747_v27 = vmul.f32 1.442695, %v9701_v45  ;;  %v9710_v40 = vsub.f32 %v17381_v55, %v17431_v17  ;;  %v9711_v33 = vsub.f32 %v17383_v8, %v17431_v17 }
 0x94e   : > { %13228 = vpow2.f32 %v9735_v25  ;;  %v9712_v55 = vsub.f32 %v17387_v39, %v17431_v17  ;;  %v9713_v8 = vsub.f32 %v17396_v18, %v17431_v17  ;;  %v9714_v39 = vsub.f32 %v17402_v59, %v17431_v17 }
 0x94f   : > { %13230 = vpow2.f32 %v9737_v32  ;;  %v9749_v32 = vmul.f32 1.442695, %v9702_v20  ;;  %v9715_v18 = vsub.f32 %v17408_v2, %v17431_v17  ;;  %v9716_v59 = vsub.f32 %v17414_v37, %v17431_v17 }
 0x950   : > { %v17455_v56 = vpop.eup %13212  ;;  %13232 = vpow2.f32 %v9739_v60  ;;  %v9751_v60 = vmul.f32 1.442695, %v9703_v11  ;;  %v9717_v2 = vsub.f32 %v17420_v36, %v17431_v17  ;;  %v9718_v37 = vsub.f32 %v17426_v3, %v17431_v17 }
 0x951   : > { %v17457_v38 = vpop.eup %13214  ;;  %v9784_v24 = vsel %vm9783_vm15, %v17455_v56, 0.0  ;;  %13234 = vpow2.f32 %v9741_v16  ;;  %v9753_v16 = vmul.f32 1.442695, %v9704_v9 }
 0x952   : > { %v17463_v48 = vpop.eup %13216  ;;  %v9785_v0 = vsel %vm9783_vm15, %v17457_v38, 0.0  ;;  %13236 = vpow2.f32 %v9743_v21  ;;  %v9755_v21 = vmul.f32 1.442695, %v9705_v54  ;;  %v9779_v36 = vmul.f32 1.442695, %v9717_v2 }
 0x953   : > { %v17467_v43 = vpop.eup %13218  ;;  %v9786_v52 = vadd.f32 %v9785_v0, %v9784_v24  ;;  %v9787_v1 = vsel %vm9783_vm15, %v17463_v48, 0.0  ;;  %13238 = vpow2.f32 %v9745_v50  ;;  %v9757_v50 = vmul.f32 1.442695, %v9706_v47 }
 0x954   : > { %v17473_v61 = vpop.eup %13220  ;;  %v9789_v62 = vsel %vm9783_vm15, %v17467_v43, 0.0  ;;  %13240 = vpow2.f32 %v9747_v27  ;;  %v9759_v27 = vmul.f32 1.442695, %v9707_v22 }
 0x955   : > { %v9788_v34 = vadd.f32 %v9787_v1, %v9786_v52  ;;  %v17479_v46 = vpop.eup %13222  ;;  %v9791_v23 = vsel %vm9783_vm15, %v17473_v61, 0.0  ;;  %13242 = vpow2.f32 %v9749_v32  ;;  %v9761_v32 = vmul.f32 1.442695, %v9708_v4 }
 0x956   : > { %v17485_v58 = vpop.eup %13224  ;;  %v9793_v41 = vsel %vm9783_vm15, %v17479_v46, 0.0  ;;  %13244 = vpow2.f32 %v9751_v60  ;;  %v9763_v60 = vmul.f32 1.442695, %v9709_v10 }
 0x957   : > { %v9790_v5 = vadd.f32 %v9789_v62, %v9788_v34  ;;  %v17491_v35 = vpop.eup %13226  ;;  %v9795_v25 = vsel %vm9783_vm15, %v17485_v58, 0.0  ;;  %13246 = vpow2.f32 %v9753_v16  ;;  %v9765_v16 = vmul.f32 1.442695, %v9710_v40 }
 0x958   : > { %v17497_v19 = vpop.eup %13228  ;;  %v9797_v0 = vsel %vm9783_vm15, %v17491_v35, 0.0  ;;  %13248 = vpow2.f32 %v9755_v21  ;;  %v9767_v21 = vmul.f32 1.442695, %v9711_v33 }
 0x959   : > { %v9792_v53 = vadd.f32 %v9791_v23, %v9790_v5  ;;  %v17503_v29 = vpop.eup %13230  ;;  %v9799_v1 = vsel %vm9783_vm15, %v17497_v19, 0.0  ;;  %13250 = vpow2.f32 %v9757_v50  ;;  %v9769_v50 = vmul.f32 1.442695, %v9712_v55 }
 0x95a   : > { %v17509_v51 = vpop.eup %13232  ;;  %v9801_v62 = vsel %vm9783_vm15, %v17503_v29, 0.0  ;;  %13252 = vpow2.f32 %v9759_v27  ;;  %v9771_v27 = vmul.f32 1.442695, %v9713_v8 }
 0x95b   : > { %v9794_v28 = vadd.f32 %v9793_v41, %v9792_v53  ;;  %v17515_v45 = vpop.eup %13234  ;;  %v9803_v23 = vsel %vm9783_vm15, %v17509_v51, 0.0  ;;  %13254 = vpow2.f32 %v9761_v32  ;;  %v9773_v32 = vmul.f32 1.442695, %v9714_v39 }
 0x95c   : > { %v17521_v20 = vpop.eup %13236  ;;  %v9805_v41 = vsel %vm9783_vm15, %v17515_v45, 0.0  ;;  %13256 = vpow2.f32 %v9763_v60  ;;  %v9775_v60 = vmul.f32 1.442695, %v9715_v18  ;;  %v9781_v39 = vmul.f32 1.442695, %v9718_v37 }
 0x95d   : > { %v9796_v24 = vadd.f32 %v9795_v25, %v9794_v28  ;;  %v17527_v11 = vpop.eup %13238  ;;  %v9807_v25 = vsel %vm9783_vm15, %v17521_v20, 0.0  ;;  %13258 = vpow2.f32 %v9765_v16  ;;  %v9777_v16 = vmul.f32 1.442695, %v9716_v59 }
 0x95e   : > { %v17533_v9 = vpop.eup %13240  ;;  %13260 = vpow2.f32 %v9767_v21 }
 0x95f   : > { %v9798_v52 = vadd.f32 %v9797_v0, %v9796_v24  ;;  %v9809_v0 = vsel %vm9783_vm15, %v17527_v11, 0.0  ;;  %v17539_v54 = vpop.eup %13242  ;;  %13262 = vpow2.f32 %v9769_v50 }
 0x960   : > { %v17545_v47 = vpop.eup %13244  ;;  %13264 = vpow2.f32 %v9771_v27 }
 0x961   : > { %v9800_v34 = vadd.f32 %v9799_v1, %v9798_v52  ;;  %v9811_v1 = vsel %vm9783_vm15, %v17533_v9, 0.0  ;;  %v17551_v22 = vpop.eup %13246  ;;  %13266 = vpow2.f32 %v9773_v32 }
 0x962   : > { %v17557_v4 = vpop.eup %13248  ;;  %13268 = vpow2.f32 %v9775_v60 }
 0x963   : > { %v9802_v5 = vadd.f32 %v9801_v62, %v9800_v34  ;;  %v9813_v62 = vsel %vm9783_vm15, %v17539_v54, 0.0  ;;  %v17563_v10 = vpop.eup %13250  ;;  %13270 = vpow2.f32 %v9777_v16 }
 0x964   : > { %v17569_v40 = vpop.eup %13252  ;;  %13272 = vpow2.f32 %v9779_v36 }
 0x965   : > { %v9804_v53 = vadd.f32 %v9803_v23, %v9802_v5  ;;  %v9815_v23 = vsel %vm9783_vm15, %v17545_v47, 0.0  ;;  %v17575_v33 = vpop.eup %13254  ;;  %13274 = vpow2.f32 %v9781_v39 }
 0x966   : > { %v17581_v55 = vpop.eup %13256 }
 0x967   : > { %v9806_v28 = vadd.f32 %v9805_v41, %v9804_v53  ;;  %v9817_v41 = vsel %vm9783_vm15, %v17551_v22, 0.0  ;;  %v17587_v8 = vpop.eup %13258 }
 0x968   : > { %v9829_v3 = vsel %vm9783_vm15, %v17587_v8, 0.0 }
 0x969   : > { %v9808_v24 = vadd.f32 %v9807_v25, %v9806_v28  ;;  %v9819_v25 = vsel %vm9783_vm15, %v17557_v4, 0.0 }
 0x96b   : > { %v9810_v52 = vadd.f32 %v9809_v0, %v9808_v24  ;;  %v9821_v0 = vsel %vm9783_vm15, %v17563_v10, 0.0 }
 0x96d   : > { %v9812_v34 = vadd.f32 %v9811_v1, %v9810_v52  ;;  %v9823_v1 = vsel %vm9783_vm15, %v17569_v40, 0.0 }
 0x96f   : > { %v9814_v5 = vadd.f32 %v9813_v62, %v9812_v34  ;;  %v9825_v62 = vsel %vm9783_vm15, %v17575_v33, 0.0 }
 0x971   : > { %v9816_v53 = vadd.f32 %v9815_v23, %v9814_v5  ;;  %v9827_v5 = vsel %vm9783_vm15, %v17581_v55, 0.0  ;;  %v17591_v23 = vpop.eup %13260 }
 0x972   : > { %v9831_v18 = vsel %vm9783_vm15, %v17591_v23, 0.0 }
 0x973   : > { %v9818_v28 = vadd.f32 %v9817_v41, %v9816_v53  ;;  %v17595_v53 = vpop.eup %13262 }
 0x974   : > { %v17599_v27 = vpop.eup %13264 }
 0x975   : > { %v9820_v24 = vadd.f32 %v9819_v25, %v9818_v28  ;;  %v9833_v25 = vsel %vm9783_vm15, %v17595_v53, 0.0  ;;  %v17603_v59 = vpop.eup %13266 }
 0x976   : > { %v9837_v60 = vsel %vm9783_vm15, %v17603_v59, 0.0 }
 0x977   : > { %v9822_v52 = vadd.f32 %v9821_v0, %v9820_v24  ;;  %v9835_v24 = vsel %vm9783_vm15, %v17599_v27, 0.0  ;;  %v17607_v0 = vpop.eup %13268 }
 0x978   : > { %v9839_v37 = vsel %vm9783_vm15, %v17607_v0, 0.0 }
 0x979   : > { %v9824_v34 = vadd.f32 %v9823_v1, %v9822_v52  ;;  %v17611_v52 = vpop.eup %13270 }
 0x97a   : > { %v17615_v16 = vpop.eup %13272 }
 0x97b   : > { %v9826_v21 = vadd.f32 %v9825_v62, %v9824_v34  ;;  %v9841_v62 = vsel %vm9783_vm15, %v17611_v52, 0.0  ;;  %v17619_v36 = vpop.eup %13274 }
 0x97d   : > { %v9828_v50 = vadd.f32 %v9827_v5, %v9826_v21  ;;  %v9843_v5 = vsel %vm9783_vm15, %v17615_v16, 0.0 }
 0x97f   : > { %v9830_v41 = vadd.f32 %v9829_v3, %v9828_v50  ;;  %v9845_v50 = vsel %vm9783_vm15, %v17619_v36, 0.0 }
 0x981   : > { %v9832_v28 = vadd.f32 %v9831_v18, %v9830_v41  ;;  %v9856_v41 = vmul.f32 %v17455_v56, %v17041_v31  ;;  %v9857_v18 = vmul.f32 %v17457_v38, %v17043_v12  ;;  %v9862_v31 = vmul.f32 %v17485_v58, %v17102_v44 }
 0x982   : > { %v9863_v56 = vmul.f32 %v17491_v35, %v17106_v49  ;;  %v9864_v38 = vmul.f32 %v17497_v19, %v17123_v30  ;;  %v9867_v44 = vmul.f32 %v17515_v45, %v17148_v42  ;;  %v9868_v49 = vmul.f32 %v17521_v20, %v17165_v63  ;;  %v18111_v35 = vld [vmem:[#allocation83_spill] sm:$0xff] }
 0x983   : > { %v9834_v32 = vadd.f32 %v9833_v25, %v9832_v28  ;;  %v9888_v28 = vadd.f32 %v9857_v18, %v9856_v41  ;;  %v9858_v25 = vmul.f32 %v17463_v48, %v17061_v13  ;;  %v9869_v30 = vmul.f32 %v17527_v11, %v17169_v26  ;;  %v18118_v41 = vld [vmem:[#allocation86_spill] sm:$0xff] }
 0x985   : > { %v9836_v2 = vadd.f32 %v9835_v24, %v9834_v32  ;;  %v9889_v32 = vadd.f32 %v9888_v28, %v9858_v25  ;;  %v9859_v24 = vmul.f32 %v17467_v43, %v17064_v14  ;;  %v18119_v28 = vld [vmem:[#allocation87_spill] sm:$0xff] }
 0x987   : > { %v9838_v1 = vadd.f32 %v9837_v60, %v9836_v2  ;;  %v9860_v2 = vmul.f32 %v17473_v61, %v17081_v15  ;;  %v9890_v60 = vadd.f32 %v9889_v32, %v9859_v24  ;;  %v9865_v15 = vmul.f32 %v17503_v29, %v17127_v7  ;;  %v18112_v29 = vld [vmem:[#allocation98_spill] sm:$0xff]  ;;  %v18120_v32 = vld [vmem:[#allocation101_spill] sm:$0xff] }
 0x988   : > { %v9870_v7 = vmul.f32 %v17533_v9, %v18111_v35 }
 0x989   : > { %v9840_v34 = vadd.f32 %v9839_v37, %v9838_v1  ;;  %v9861_v1 = vmul.f32 %v17479_v46, %v17085_v6  ;;  %v9891_v37 = vadd.f32 %v9890_v60, %v9860_v2  ;;  %v9866_v6 = vmul.f32 %v17509_v51, %v17144_v57  ;;  %v18121_v2 = vld [vmem:[#allocation88_spill] sm:$0xff] }
 0x98a   : > { %v9871_v57 = vmul.f32 %v17539_v54, %v18112_v29 }
 0x98b   : > { %v9842_v21 = vadd.f32 %v9841_v62, %v9840_v34  ;;  %v9892_v12 = vadd.f32 %v9891_v37, %v9861_v1  ;;  %v18113_v34 = vld [vmem:[#allocation84_spill] sm:$0xff]  ;;  %v18114_v62 = vld [vmem:[#allocation99_spill] sm:$0xff]  ;;  %v18122_v1 = vld [vmem:[#allocation57_spill] sm:$0xff] }
 0x98c   : > { %v9872_v42 = vmul.f32 %v17545_v47, %v18113_v34  ;;  %v9873_v63 = vmul.f32 %v17551_v22, %v18114_v62  ;;  %v9877_v47 = vmul.f32 %v17575_v33, %v18118_v41  ;;  %v9878_v22 = vmul.f32 %v17581_v55, %v18119_v28 }
 0x98d   : > { %v9844_v39 = vadd.f32 %v9843_v5, %v9842_v21  ;;  %v9893_v13 = vadd.f32 %v9892_v12, %v9862_v31  ;;  %v18115_v21 = vld [vmem:[#allocation85_spill] sm:$0xff]  ;;  %v18116_v5 = vld [vmem:[#allocation56_spill] sm:$0xff] }
 0x98e   : > { %v9874_v26 = vmul.f32 %v17557_v4, %v18115_v21  ;;  %v9875_v9 = vmul.f32 %v17563_v10, %v18116_v5  ;;  %v9879_v4 = vmul.f32 %v17587_v8, %v18120_v32  ;;  %v9880_v10 = vmul.f32 %v17591_v23, %v18121_v2  ;;  %v18123_v31 = vld [vmem:[#allocation89_spill] sm:$0xff] }
 0x98f   : > { %v9846_v3 = vadd.f32 %v9845_v50, %v9844_v39  ;;  %v9894_v14 = vadd.f32 %v9893_v13, %v9863_v56  ;;  %v18117_v50 = vld [vmem:[#allocation100_spill] sm:$0xff]  ;;  %v9882_v33 = vmul.f32 %v17599_v27, %v18123_v31  ;;  %v18124_v56 = vld [vmem:[#allocation58_spill] sm:$0xff] }
 0x990   : > { %v9876_v54 = vmul.f32 %v17569_v40, %v18117_v50  ;;  %v9881_v40 = vmul.f32 %v17595_v53, %v18122_v1  ;;  %v9883_v55 = vmul.f32 %v17603_v59, %v18124_v56 }
 0x991   : > { %9847 = vadd.xlane.f32.xlu0 %v9846_v3  ;;  %v9895_v48 = vadd.f32 %v9894_v14, %v9864_v38  ;;  %v18125_v38 = vld [vmem:[#allocation59_spill] sm:$0xff] }
 0x992   : > { %v9884_v8 = vmul.f32 %v17607_v0, %v18125_v38 }
 0x993   : > { %v9896_v43 = vadd.f32 %v9895_v48, %v9865_v15  ;;  %v18126_v15 = vld [vmem:[#allocation90_spill] sm:$0xff] }
 0x994   : > { %v9885_v23 = vmul.f32 %v17611_v52, %v18126_v15 }
 0x995   : > { %v9897_v61 = vadd.f32 %v9896_v43, %v9866_v6  ;;  %v18127_v6 = vld [vmem:[#allocation91_spill] sm:$0xff] }
 0x996   : > { %v9886_v53 = vmul.f32 %v17615_v16, %v18127_v6 }
 0x997   : > { %v9898_v46 = vadd.f32 %v9897_v61, %v9867_v44  ;;  %v18128_v44 = vld [vmem:[#allocation61_spill] sm:$0xff] }
 0x998   : > { %v9887_v27 = vmul.f32 %v17619_v36, %v18128_v44 }
 0x999   : > { %v9899_v58 = vadd.f32 %v9898_v46, %v9868_v49 }
 0x99b   : > { %v9900_v19 = vadd.f32 %v9899_v58, %v9869_v30 }
 0x99d   : > { %v9901_v51 = vadd.f32 %v9900_v19, %v9870_v7 }
 0x99f   : > { %v9902_v45 = vadd.f32 %v9901_v51, %v9871_v57 }
 0x9a1   : > { %v9903_v20 = vadd.f32 %v9902_v45, %v9872_v42 }
 0x9a3   : > { %v9904_v11 = vadd.f32 %v9903_v20, %v9873_v63 }
 0x9a5   : > { %v9905_v39 = vadd.f32 %v9904_v11, %v9874_v26 }
 0x9a7   : > { %v9906_v3 = vadd.f32 %v9905_v39, %v9875_v9 }
 0x9a9   : > { %v9907_v18 = vadd.f32 %v9906_v3, %v9876_v54 }
 0x9ab   : > { %v9908_v25 = vadd.f32 %v9907_v18, %v9877_v47 }
 0x9ad   : > { %v9909_v24 = vadd.f32 %v9908_v25, %v9878_v22 }
 0x9af   : > { %v9910_v60 = vadd.f32 %v9909_v24, %v9879_v4 }
 0x9b1   : > { %v9911_v37 = vadd.f32 %v9910_v60, %v9880_v10 }
 0x9b3   : > { %v9912_v12 = vadd.f32 %v9911_v37, %v9881_v40 }
 0x9b5   : > { %v9913_v13 = vadd.f32 %v9912_v12, %v9882_v33 }
 0x9b7   : > { %v9914_v14 = vadd.f32 %v9913_v13, %v9883_v55 }
 0x9b9   : > { %v9915_v48 = vadd.f32 %v9914_v14, %v9884_v8 }
 0x9bb   : > { %v9916_v43 = vadd.f32 %v9915_v48, %v9885_v23 }
 0x9bd   : > { %v9917_v61 = vadd.f32 %v9916_v43, %v9886_v53 }
 0x9bf   : > { %v9918_v49 = vadd.f32 %v9917_v61, %v9887_v27 }
 0x9c1   : > { %v9919_v52 = vrot.slane %v9918_v49, 4 }
 0x9c3   : > { %v9920_v19 = vadd.f32 %v9919_v52, %v9918_v49 }
 0x9c5   : > { %v9921_v29 = vrot.slane %v9920_v19, 2 }
 0x9c7   : > { %v9922_v57 = vadd.f32 %v9921_v29, %v9920_v19 }
 0x9c9   : > { %v9923_v16 = vrot.slane %v9922_v57, 1 }
 0x9cb   : > { %v9924_v51 = vadd.f32 %v9923_v16, %v9922_v57 }
 0x9cd   : > { %v9927_v34 = vsel %vm583_vm0, %v9924_v51, %v17431_v17 }
 0xa1e   : > { %v9848_v46 = vpop.xlane.xlu0 %9847 }
 0xa1f   : > { %v9849_v59 = vrot.slane %v9848_v46, 4 }
 0xa21   : > { %v9850_v30 = vadd.f32 %v9849_v59, %v9848_v46 }
 0xa23   : > { %v9851_v58 = vrot.slane %v9850_v30, 2 }
 0xa25   : > { %v9852_v35 = vadd.f32 %v9851_v58, %v9850_v30 }
 0xa27   : > { %v9853_v0 = vrot.slane %v9852_v35, 1 }
 0xa29   : > { %v9854_v7 = vadd.f32 %v9853_v0, %v9852_v35 }
 0xa2b   : > { %12211 = vpush %v9854_v7 }
 0xa5c   : > { %s12212_s17 = spop %12211 }
 0xa5d   : > { %v9925_v36 = vstv %s12212_s17 }
 0xa5e   : > { %v9929_v42 = vsel %vm9928_vm1, %v9927_v34, %v9925_v36 }
 0xa5f   : > { %v9931_v45 = vsel %vm3564_vm12, %v9929_v42, 0.0 }
 0xa60   : > { %9932 = vst [vmem:[%s13467_s21] sm:$0xff] %v9931_v45 }
 0xa61 PF: > { %s26_s20 = sadd.s32 1, %s13349_s20   ;;  %s18129_s22 = sld [smem:[#allocation7_spill]] }
 0xa62   : > { %p23_p5 = scmp.ge.s32.totalorder %s26_s20, 4   ;;  %s18130_s18 = smov %s13345_s19 }
 0xa64   :  { %25 = sbr.rel (!%p23_p5) target bundleno = 2 (0x2), region = 163 }
 0xa67   : > { %s18131_s19 = smov %s18129_s22 }
 0xa6b   :  { %9985 = vsyncmov [#allocation4] }
 0xa6e   :  { %s9986_s23 = vpop.sfrf %9985 }
 0xa6f   :  { %p10689_p6 = scmp.ne.s32.totalorder %s9986_s23, 0 }
 0xa71   :  { %9990 = shalt.err (%p10689_p6)  }

</bundles_post_ra>
